<compile_context>
chip_gen: v7x
topology: tpu7x:2x2x1
jax: 0.10.0
libtpu: 0.0.40
codegen_flags: <defaults>
</compile_context>

<pallas_src>
import functools

import jax
import jax.numpy as jnp
import numpy as np
from jax.experimental import pallas as pl
from jax.experimental.pallas import tpu as pltpu


def _round_up(a, b):
    return ((a + b - 1) // b) * b


def _tpu_vmem_bytes(default=64 * 1024 * 1024):
    """Best-effort VMEM capacity query (falls back to a conservative default)."""
    try:
        info = pltpu.get_tpu_info()
        for name in ("vmem_capacity_bytes", "vmem_bytes", "vmem_size_bytes"):
            v = getattr(info, name, None)
            if v:
                return int(v)
    except Exception:
        pass
    return default


# ---------------------------------------------------------------------------
# In-kernel helper: tap-stacked window for a 3x3 conv folded into K.
#   x      : (Cin, Lwin) bf16 window (flattened padded frame)
#   result : (9*Cin, length) bf16, row block (di*3+dj) holds
#            x[:, start + (di-1)*wp + (dj-1) : ... + length]
# so a single (Cout, 9*Cin) @ (9*Cin, length) matmul computes the conv.
# ---------------------------------------------------------------------------
def _stack_taps(x, *, wp, start, length):
    parts = []
    for di in range(3):
        for dj in range(3):
            off = start + (di - 1) * wp + (dj - 1)          # static offset
            parts.append(x[:, off:off + length])
    return jnp.concatenate(parts, axis=0)


# ---------------------------------------------------------------------------
# Fused kernel: trunk conv + LeakyReLU + (conv1 + ReLU + conv2 + residual add).
# All intermediates live in VMEM; only the final activation is written to HBM.
# ---------------------------------------------------------------------------
def _fused_kernel(xp_ref, xc_ref, xn_ref, m_ref,
                  wt_ref, bt_ref, w1_ref, b1_ref, w2_ref, b2_ref,
                  o_ref, *, wp, tl, halo, bb, slope):
    h1 = wp + 1                 # flat-axis halo consumed by one 3x3 conv
    h2 = 2 * h1                 # ... by two stacked convs
    l1 = tl + 2 * h2            # trunk-output window length
    l2 = tl + 2 * h1            # conv1-output window length

    maskw = m_ref[0]            # (1, WLEN) bf16, 1.0 only at real (interior) pixels
    m1 = maskw[:, halo - h2: halo - h2 + l1].astype(jnp.float32)
    m2 = maskw[:, halo - h1: halo - h1 + l2].astype(jnp.float32)
    mo = maskw[:, halo: halo + tl].astype(jnp.float32)

    for bi in range(bb):        # static unrolled loop over packed batch images
        # (Cin, TL + 2*HALO) bf16 window assembled from narrow halo blocks.
        x3 = jnp.concatenate([xp_ref[bi], xc_ref[bi], xn_ref[bi]], axis=-1)

        # ---- trunk: 3x3 conv + bias + LeakyReLU(0.1) over the +-h2 window ----
        stk = _stack_taps(x3, wp=wp, start=halo - h2, length=l1)
        a = jnp.dot(wt_ref[...], stk, preferred_element_type=jnp.float32)
        a = a + bt_ref[...]
        a = jnp.where(a >= 0, a, slope * a)
        a = a * m1                               # zero pad ring / out-of-frame junk
        ident = a[:, h2:h2 + tl]                 # residual identity, kept f32
        a_bf = a.astype(jnp.bfloat16)

        # ---- resblock conv1 + bias + ReLU over the +-h1 window (VMEM only) ----
        stk = _stack_taps(a_bf, wp=wp, start=h2 - h1, length=l2)
        t = jnp.dot(w1_ref[...], stk, preferred_element_type=jnp.float32)
        t = jnp.maximum(t + b1_ref[...], 0.0)
        t = t * m2
        t_bf = t.astype(jnp.bfloat16)

        # ---- resblock conv2 + bias + residual add on the output tile ----
        stk = _stack_taps(t_bf, wp=wp, start=h1, length=tl)
        out = jnp.dot(w2_ref[...], stk, preferred_element_type=jnp.float32)
        out = (out + b2_ref[...] + ident) * mo
        o_ref[bi] = out.astype(o_ref.dtype)


# ---------------------------------------------------------------------------
# pallas_call wrapper
# ---------------------------------------------------------------------------
def _fused_call(x_flat, mask_win, wt, bt, w1, b1, w2, b2, *, wp, tl, halo, bb):
    B, cin, lt = x_flat.shape
    cout = wt.shape[0]
    nt = lt // tl
    bg = B // bb
    r_blk = tl // halo
    n_hblk = lt // halo
    wlen = tl + 2 * halo

    kernel = functools.partial(_fused_kernel, wp=wp, tl=tl, halo=halo, bb=bb,
                               slope=0.1)

    prev_h = lambda b, t: (b, 0, jnp.maximum(t * r_blk - 1, 0))
    cur_x = lambda b, t: (b, 0, t)
    next_h = lambda b, t: (b, 0, jnp.minimum((t + 1) * r_blk, n_hblk - 1))
    wmap = lambda b, t: (0, 0)

    # Advisory only (ignores halo over-compute).
    flops = 2 * B * lt * 9 * (cin * cout + 2 * cout * cout)
    bytes_accessed = (B * cin * (lt + 2 * halo * nt) * 2
                      + B * cout * lt * 4 + nt * wlen * 2)

    vmem_cap = _tpu_vmem_bytes()
    vmem_limit = int(min(vmem_cap * 3 // 4, 64 * 1024 * 1024))

    return pl.pallas_call(
        kernel,
        grid=(bg, nt),
        in_specs=[
            pl.BlockSpec((bb, cin, halo), prev_h),          # prev-tile halo
            pl.BlockSpec((bb, cin, tl), cur_x),             # current tile
            pl.BlockSpec((bb, cin, halo), next_h),          # next-tile halo
            pl.BlockSpec((1, 1, wlen), lambda b, t: (t, 0, 0)),   # per-tile mask
            pl.BlockSpec((cout, 9 * cin), wmap),            # trunk weight (K-folded)
            pl.BlockSpec((cout, 1), wmap),                  # trunk bias
            pl.BlockSpec((cout, 9 * cout), wmap),           # resblock conv1 weight
            pl.BlockSpec((cout, 1), wmap),                  # resblock conv1 bias
            pl.BlockSpec((cout, 9 * cout), wmap),           # resblock conv2 weight
            pl.BlockSpec((cout, 1), wmap),                  # resblock conv2 bias
        ],
        out_specs=pl.BlockSpec((bb, cout, tl), cur_x),
        out_shape=jax.ShapeDtypeStruct((B, cout, lt), jnp.float32),
        compiler_params=pltpu.CompilerParams(
            dimension_semantics=("parallel", "parallel"),
            vmem_limit_bytes=vmem_limit),
        cost_estimate=pl.CostEstimate(flops=flops, transcendentals=0,
                                      bytes_accessed=bytes_accessed),
    )(x_flat, x_flat, x_flat, mask_win, wt, bt, w1, b1, w2, b2)


# ---------------------------------------------------------------------------
# Weight / layout glue
# ---------------------------------------------------------------------------
def _w_to_kfold(w):
    """(Cout, Cin, 3, 3) -> (Cout, 9*Cin) bf16, column = (di*3+dj)*Cin + ci."""
    cout, cin = w.shape[0], w.shape[1]
    return jnp.transpose(w, (0, 2, 3, 1)).reshape(cout, 9 * cin).astype(jnp.bfloat16)


def _bias_col(b):
    return b.reshape(-1, 1).astype(jnp.float32)


# ---------------------------------------------------------------------------
# Module forward (PixelShuffleRecurrentConvLayer.forward)
# ---------------------------------------------------------------------------
def pixel_shuffle_recurrent_forward(params, x_nchw, prev_state=None):
    out_ch = params["trunk_w"].shape[0]
    B, in_ch, h0, w0 = x_nchw.shape
    r = 2
    c_ps = in_ch // (r * r)
    assert c_ps == out_ch, "module requires in_channels == 4 * out_channels"
    assert len(params["resblocks"]) == 1, "module uses num_block=1"

    # PixelShuffle(2): (B, 4C, h0, w0) -> (B, C, 2h0, 2w0)   (XLA layout glue)
    xs = x_nchw.reshape(B, c_ps, r, r, h0, w0)
    xs = jnp.transpose(xs, (0, 1, 4, 2, 5, 3)).reshape(B, c_ps, h0 * r, w0 * r)
    H, W = h0 * r, w0 * r
    hp, wp = H + 2, W + 2
    lp = hp * wp

    # Zero hidden state -> skip the concat, slice the trunk weight instead.
    if prev_state is None:
        w_trunk = params["trunk_w"][:, :c_ps]
        feat = xs
    else:
        w_trunk = params["trunk_w"]
        feat = jnp.concatenate([xs, prev_state.astype(xs.dtype)], axis=1)
    cin = feat.shape[1]

    # ---- tiling: HALO must cover the 3-conv receptive field on the flat axis ----
    halo = _round_up(3 * (wp + 1), 128)
    vmem_cap = _tpu_vmem_bytes()
    tl_cap = 4096 if vmem_cap >= 100 * 1024 * 1024 else 2048   # v7x: 64MiB VMEM
    tl = min(_round_up(tl_cap, halo), max(halo, _round_up(lp, halo)))
    # Correctness prerequisites for the clamped prev/next halo blocks.
    assert halo >= 3 * (wp + 1) and tl % halo == 0 and tl >= halo
    lt = _round_up(lp, tl)
    nt = lt // tl

    bb = 2 if (B % 2 == 0 and c_ps < 16) else 1    # sublane / grid-step packing

    # Padded, flattened, bf16 activation buffer: (B, Cin, LT).
    fpad = jnp.pad(feat, ((0, 0), (0, 0), (1, 1), (1, 1))).reshape(B, cin, lp)
    fpad = jnp.pad(fpad, ((0, 0), (0, 0), (0, lt - lp))).astype(jnp.bfloat16)

    # Per-tile windowed validity mask (compile-time constant, bf16, 1 block/step).
    # Window position j of tile t <-> flat position t*tl - halo + j; 1.0 only for
    # real interior pixels.  Zeroes the pad ring after every conv (emulating
    # PyTorch's zero padding) AND kills the clamped-halo garbage at tile edges.
    wlen = tl + 2 * halo
    absp = (np.arange(nt, dtype=np.int64)[:, None] * tl - halo
            + np.arange(wlen, dtype=np.int64)[None, :])
    row = np.floor_divide(absp, wp)
    col = absp - row * wp
    valid = ((absp >= 0) & (absp < lp)
             & (row >= 1) & (row <= H) & (col >= 1) & (col <= W))
    mask_win = jnp.asarray(valid[:, None, :].astype(np.float32), dtype=jnp.bfloat16)

    blk = params["resblocks"][0]
    out_flat = _fused_call(
        fpad, mask_win,
        _w_to_kfold(w_trunk), _bias_col(params["trunk_b"]),
        _w_to_kfold(blk["w1"]), _bias_col(blk["b1"]),
        _w_to_kfold(blk["w2"]), _bias_col(blk["b2"]),
        wp=wp, tl=tl, halo=halo, bb=bb)

    # Un-pad back to NCHW f32.   (XLA layout glue)
    out = out_flat[:, :, :lp].reshape(B, out_ch, hp, wp)[:, :, 1:H + 1, 1:W + 1]
    return out, out            # module returns (out, state), state is out


# ---------------------------------------------------------------------------
# Deterministic synthetic parameters (mimicking the module's __init__)
# ---------------------------------------------------------------------------
def init_params(key, in_ch, out_ch, num_block=1):
    def kaiming(k, shape, scale=1.0):
        fan_in = shape[1] * shape[2] * shape[3]
        return jax.random.normal(k, shape, jnp.float32) * np.sqrt(2.0 / fan_in) * scale

    ks = jax.random.split(key, 2 + 4 * num_block)
    params = {
        "trunk_w": kaiming(ks[0], (out_ch, 2 * out_ch, 3, 3)),
        "trunk_b": jax.random.normal(ks[1], (out_ch,), jnp.float32) * 0.05,
        "resblocks": [],
    }
    for i in range(num_block):   # default_init_weights scale=0.1 on resblock convs
        params["resblocks"].append({
            "w1": kaiming(ks[2 + 4 * i], (out_ch, out_ch, 3, 3), 0.1),
            "b1": jax.random.normal(ks[3 + 4 * i], (out_ch,), jnp.float32) * 0.05,
            "w2": kaiming(ks[4 + 4 * i], (out_ch, out_ch, 3, 3), 0.1),
            "b2": jax.random.normal(ks[5 + 4 * i], (out_ch,), jnp.float32) * 0.05,
        })
    return params


# ---------------------------------------------------------------------------
# Pure-JAX f32 reference (lax.conv) — correctness check only
# ---------------------------------------------------------------------------
def _ref_conv(x, w, b, stride, pad):
    out = jax.lax.conv_general_dilated(
        x, w, (stride, stride), ((pad, pad), (pad, pad)),
        dimension_numbers=("NCHW", "OIHW", "NCHW"))
    if b is not None:
        out = out + b.reshape(1, -1, 1, 1)
    return out


def _ref_forward(params, x, prev_state=None):
    B, in_ch, h0, w0 = x.shape
    r, c = 2, in_ch // 4
    xs = x.reshape(B, c, r, r, h0, w0).transpose(0, 1, 4, 2, 5, 3)
    xs = xs.reshape(B, c, h0 * r, w0 * r)
    if prev_state is None:
        prev_state = jnp.zeros_like(xs)
    feat = jnp.concatenate([xs, prev_state], axis=1)
    feat = _ref_conv(feat, params["trunk_w"], params["trunk_b"], 1, 1)
    feat = jnp.where(feat >= 0, feat, 0.1 * feat)
    for blk in params["resblocks"]:
        t = jnp.maximum(_ref_conv(feat, blk["w1"], blk["b1"], 1, 1), 0.0)
        feat = feat + _ref_conv(t, blk["w2"], blk["b2"], 1, 1)
    return feat, feat


if __name__ == "__main__":
    B, OUT_CH, H0, W0 = 2, 8, 16, 16
    IN_CH = 4 * OUT_CH                    # PixelShuffle(2) implies in_ch = 4*out_ch
    key = jax.random.PRNGKey(0)
    kx, kp = jax.random.split(key)
    x = jax.random.normal(kx, (B, IN_CH, H0, W0), jnp.float32)   # NCHW like PyTorch
    params = init_params(kp, IN_CH, OUT_CH, num_block=1)

    fwd = jax.jit(pixel_shuffle_recurrent_forward)
    out, state = fwd(params, x)
    out = jax.block_until_ready(out)
    state = jax.block_until_ready(state)

    assert out.shape == (B, OUT_CH, 2 * H0, 2 * W0), out.shape
    assert state.shape == (B, OUT_CH, 2 * H0, 2 * W0), state.shape

    ref_out, ref_state = _ref_forward(params, x)
    # bf16 MXU operands (f32 accumulate + f32 identity/output) -> relaxed tolerance.
    np.testing.assert_allclose(np.asarray(out), np.asarray(ref_out),
                               rtol=5e-2, atol=5e-2)
    np.testing.assert_allclose(np.asarray(state), np.asarray(ref_state),
                               rtol=5e-2, atol=5e-2)

    print("KERNEL_OK")
</pallas_src>

<mosaic_0001>
module attributes {stable_mosaic.version = 11 : i64} {
  func.func @_fused_kernel(%arg0: i32, %arg1: i32, %arg2: memref<2x8x128xbf16, #tpu.memory_space<vmem>>, %arg3: memref<2x8x1280xbf16, #tpu.memory_space<vmem>>, %arg4: memref<2x8x128xbf16, #tpu.memory_space<vmem>>, %arg5: memref<1x1x1536xbf16, #tpu.memory_space<vmem>>, %arg6: memref<8x72xbf16, #tpu.memory_space<vmem>>, %arg7: memref<8x1xf32, #tpu.memory_space<vmem>>, %arg8: memref<8x72xbf16, #tpu.memory_space<vmem>>, %arg9: memref<8x1xf32, #tpu.memory_space<vmem>>, %arg10: memref<8x72xbf16, #tpu.memory_space<vmem>>, %arg11: memref<8x1xf32, #tpu.memory_space<vmem>>, %arg12: memref<2x8x1280xf32, #tpu.memory_space<vmem>>) attributes {dimension_semantics = [#tpu.dimension_semantics<parallel>, #tpu.dimension_semantics<parallel>], iteration_bounds = array<i64: 1, 1>, scalar_prefetch = 0 : i64, scratch_operands = 0 : i64, tpu.core_type = #tpu.core_type<tc>, window_params = [{transform_indices = @transform_0, window_bounds = array<i64: 2, 8, 128>}, {transform_indices = @transform_1, window_bounds = array<i64: 2, 8, 1280>}, {transform_indices = @transform_2, window_bounds = array<i64: 2, 8, 128>}, {transform_indices = @transform_3, window_bounds = array<i64: 1, 1, 1536>}, {pipeline_mode = #tpu.pipeline_mode<synchronous>, transform_indices = @transform_4, window_bounds = array<i64: 8, 72>}, {pipeline_mode = #tpu.pipeline_mode<synchronous>, transform_indices = @transform_5, window_bounds = array<i64: 8, 1>}, {pipeline_mode = #tpu.pipeline_mode<synchronous>, transform_indices = @transform_6, window_bounds = array<i64: 8, 72>}, {pipeline_mode = #tpu.pipeline_mode<synchronous>, transform_indices = @transform_7, window_bounds = array<i64: 8, 1>}, {pipeline_mode = #tpu.pipeline_mode<synchronous>, transform_indices = @transform_8, window_bounds = array<i64: 8, 72>}, {pipeline_mode = #tpu.pipeline_mode<synchronous>, transform_indices = @transform_9, window_bounds = array<i64: 8, 1>}, {transform_indices = @transform_10, window_bounds = array<i64: 2, 8, 1280>}]} {
    %c0 = arith.constant 0 : index
    %c0_0 = arith.constant 0 : index
    %c0_1 = arith.constant 0 : index
    %0 = vector.load %arg5[%c0, %c0_0, %c0_1] : memref<1x1x1536xbf16, #tpu.memory_space<vmem>>, vector<1x1x1536xbf16>
    %1 = vector.shape_cast %0 : vector<1x1x1536xbf16> to vector<1x1536xbf16>
    %2 = vector.extract_strided_slice %1 {offsets = [0, 58], sizes = [1, 1420], strides = [1, 1]} : vector<1x1536xbf16> to vector<1x1420xbf16>
    %3 = arith.extf %2 : vector<1x1420xbf16> to vector<1x1420xf32>
    %4 = vector.extract_strided_slice %1 {offsets = [0, 93], sizes = [1, 1350], strides = [1, 1]} : vector<1x1536xbf16> to vector<1x1350xbf16>
    %5 = arith.extf %4 : vector<1x1350xbf16> to vector<1x1350xf32>
    %6 = vector.extract_strided_slice %1 {offsets = [0, 128], sizes = [1, 1280], strides = [1, 1]} : vector<1x1536xbf16> to vector<1x1280xbf16>
    %7 = arith.extf %6 : vector<1x1280xbf16> to vector<1x1280xf32>
    %c0_2 = arith.constant 0 : index
    %c0_3 = arith.constant 0 : index
    %c0_4 = arith.constant 0 : index
    %8 = vector.load %arg2[%c0_2, %c0_3, %c0_4] : memref<2x8x128xbf16, #tpu.memory_space<vmem>>, vector<1x8x128xbf16>
    %9 = vector.shape_cast %8 : vector<1x8x128xbf16> to vector<8x128xbf16>
    %c0_5 = arith.constant 0 : index
    %c0_6 = arith.constant 0 : index
    %c0_7 = arith.constant 0 : index
    %10 = vector.load %arg3[%c0_5, %c0_6, %c0_7] : memref<2x8x1280xbf16, #tpu.memory_space<vmem>>, vector<1x8x1280xbf16>
    %11 = vector.shape_cast %10 : vector<1x8x1280xbf16> to vector<8x1280xbf16>
    %c0_8 = arith.constant 0 : index
    %c0_9 = arith.constant 0 : index
    %c0_10 = arith.constant 0 : index
    %12 = vector.load %arg4[%c0_8, %c0_9, %c0_10] : memref<2x8x128xbf16, #tpu.memory_space<vmem>>, vector<1x8x128xbf16>
    %13 = vector.shape_cast %12 : vector<1x8x128xbf16> to vector<8x128xbf16>
    %14 = tpu.concatenate %9, %11, %13 in 1 : vector<8x128xbf16>, vector<8x1280xbf16>, vector<8x128xbf16> -> vector<8x1536xbf16>
    %15 = vector.extract_strided_slice %14 {offsets = [0, 23], sizes = [8, 1420], strides = [1, 1]} : vector<8x1536xbf16> to vector<8x1420xbf16>
    %16 = vector.extract_strided_slice %14 {offsets = [0, 24], sizes = [8, 1420], strides = [1, 1]} : vector<8x1536xbf16> to vector<8x1420xbf16>
    %17 = vector.extract_strided_slice %14 {offsets = [0, 25], sizes = [8, 1420], strides = [1, 1]} : vector<8x1536xbf16> to vector<8x1420xbf16>
    %18 = vector.extract_strided_slice %14 {offsets = [0, 57], sizes = [8, 1420], strides = [1, 1]} : vector<8x1536xbf16> to vector<8x1420xbf16>
    %19 = vector.extract_strided_slice %14 {offsets = [0, 58], sizes = [8, 1420], strides = [1, 1]} : vector<8x1536xbf16> to vector<8x1420xbf16>
    %20 = vector.extract_strided_slice %14 {offsets = [0, 59], sizes = [8, 1420], strides = [1, 1]} : vector<8x1536xbf16> to vector<8x1420xbf16>
    %21 = vector.extract_strided_slice %14 {offsets = [0, 91], sizes = [8, 1420], strides = [1, 1]} : vector<8x1536xbf16> to vector<8x1420xbf16>
    %22 = vector.extract_strided_slice %14 {offsets = [0, 92], sizes = [8, 1420], strides = [1, 1]} : vector<8x1536xbf16> to vector<8x1420xbf16>
    %23 = vector.extract_strided_slice %14 {offsets = [0, 93], sizes = [8, 1420], strides = [1, 1]} : vector<8x1536xbf16> to vector<8x1420xbf16>
    %24 = tpu.concatenate %15, %16, %17, %18, %19, %20, %21, %22, %23 in 0 : vector<8x1420xbf16>, vector<8x1420xbf16>, vector<8x1420xbf16>, vector<8x1420xbf16>, vector<8x1420xbf16>, vector<8x1420xbf16>, vector<8x1420xbf16>, vector<8x1420xbf16>, vector<8x1420xbf16> -> vector<72x1420xbf16>
    %c0_11 = arith.constant 0 : index
    %c0_12 = arith.constant 0 : index
    %25 = vector.load %arg6[%c0_11, %c0_12] : memref<8x72xbf16, #tpu.memory_space<vmem>>, vector<8x72xbf16>
    %cst = arith.constant dense<0.000000e+00> : vector<8x1420xf32>
    %26 = tpu.matmul %25, %24, %cst {dimension_numbers = #tpu.dot_dimension_numbers<[1], [0], [0], [1], [0, 0, 1, 1], [], []>} : vector<8x72xbf16>, vector<72x1420xbf16>, vector<8x1420xf32> -> vector<8x1420xf32>
    %c0_13 = arith.constant 0 : index
    %c0_14 = arith.constant 0 : index
    %27 = vector.load %arg7[%c0_13, %c0_14] : memref<8x1xf32, #tpu.memory_space<vmem>>, vector<8x1xf32>
    %28 = vector.broadcast %27 : vector<8x1xf32> to vector<8x1420xf32>
    %29 = arith.addf %26, %28 : vector<8x1420xf32>
    %cst_15 = arith.constant 0.000000e+00 : f32
    %30 = vector.broadcast %cst_15 : f32 to vector<8x1420xf32>
    %31 = arith.cmpf oge, %29, %30 : vector<8x1420xf32>
    %cst_16 = arith.constant 1.000000e-01 : f32
    %32 = vector.broadcast %cst_16 : f32 to vector<8x1420xf32>
    %33 = arith.mulf %32, %29 : vector<8x1420xf32>
    %34 = arith.select %31, %29, %33 : vector<8x1420xi1>, vector<8x1420xf32>
    %35 = vector.broadcast %3 : vector<1x1420xf32> to vector<8x1420xf32>
    %36 = arith.mulf %34, %35 : vector<8x1420xf32>
    %37 = vector.extract_strided_slice %36 {offsets = [0, 70], sizes = [8, 1280], strides = [1, 1]} : vector<8x1420xf32> to vector<8x1280xf32>
    %38 = arith.truncf %36 : vector<8x1420xf32> to vector<8x1420xbf16>
    %39 = vector.extract_strided_slice %38 {offsets = [0, 0], sizes = [8, 1350], strides = [1, 1]} : vector<8x1420xbf16> to vector<8x1350xbf16>
    %40 = vector.extract_strided_slice %38 {offsets = [0, 1], sizes = [8, 1350], strides = [1, 1]} : vector<8x1420xbf16> to vector<8x1350xbf16>
    %41 = vector.extract_strided_slice %38 {offsets = [0, 2], sizes = [8, 1350], strides = [1, 1]} : vector<8x1420xbf16> to vector<8x1350xbf16>
    %42 = vector.extract_strided_slice %38 {offsets = [0, 34], sizes = [8, 1350], strides = [1, 1]} : vector<8x1420xbf16> to vector<8x1350xbf16>
    %43 = vector.extract_strided_slice %38 {offsets = [0, 35], sizes = [8, 1350], strides = [1, 1]} : vector<8x1420xbf16> to vector<8x1350xbf16>
    %44 = vector.extract_strided_slice %38 {offsets = [0, 36], sizes = [8, 1350], strides = [1, 1]} : vector<8x1420xbf16> to vector<8x1350xbf16>
    %45 = vector.extract_strided_slice %38 {offsets = [0, 68], sizes = [8, 1350], strides = [1, 1]} : vector<8x1420xbf16> to vector<8x1350xbf16>
    %46 = vector.extract_strided_slice %38 {offsets = [0, 69], sizes = [8, 1350], strides = [1, 1]} : vector<8x1420xbf16> to vector<8x1350xbf16>
    %47 = vector.extract_strided_slice %38 {offsets = [0, 70], sizes = [8, 1350], strides = [1, 1]} : vector<8x1420xbf16> to vector<8x1350xbf16>
    %48 = tpu.concatenate %39, %40, %41, %42, %43, %44, %45, %46, %47 in 0 : vector<8x1350xbf16>, vector<8x1350xbf16>, vector<8x1350xbf16>, vector<8x1350xbf16>, vector<8x1350xbf16>, vector<8x1350xbf16>, vector<8x1350xbf16>, vector<8x1350xbf16>, vector<8x1350xbf16> -> vector<72x1350xbf16>
    %c0_17 = arith.constant 0 : index
    %c0_18 = arith.constant 0 : index
    %49 = vector.load %arg8[%c0_17, %c0_18] : memref<8x72xbf16, #tpu.memory_space<vmem>>, vector<8x72xbf16>
    %cst_19 = arith.constant dense<0.000000e+00> : vector<8x1350xf32>
    %50 = tpu.matmul %49, %48, %cst_19 {dimension_numbers = #tpu.dot_dimension_numbers<[1], [0], [0], [1], [0, 0, 1, 1], [], []>} : vector<8x72xbf16>, vector<72x1350xbf16>, vector<8x1350xf32> -> vector<8x1350xf32>
    %c0_20 = arith.constant 0 : index
    %c0_21 = arith.constant 0 : index
    %51 = vector.load %arg9[%c0_20, %c0_21] : memref<8x1xf32, #tpu.memory_space<vmem>>, vector<8x1xf32>
    %52 = vector.broadcast %51 : vector<8x1xf32> to vector<8x1350xf32>
    %53 = arith.addf %50, %52 : vector<8x1350xf32>
    %cst_22 = arith.constant 0.000000e+00 : f32
    %54 = vector.broadcast %cst_22 : f32 to vector<8x1350xf32>
    %55 = arith.maximumf %53, %54 : vector<8x1350xf32>
    %56 = vector.broadcast %5 : vector<1x1350xf32> to vector<8x1350xf32>
    %57 = arith.mulf %55, %56 : vector<8x1350xf32>
    %58 = arith.truncf %57 : vector<8x1350xf32> to vector<8x1350xbf16>
    %59 = vector.extract_strided_slice %58 {offsets = [0, 0], sizes = [8, 1280], strides = [1, 1]} : vector<8x1350xbf16> to vector<8x1280xbf16>
    %60 = vector.extract_strided_slice %58 {offsets = [0, 1], sizes = [8, 1280], strides = [1, 1]} : vector<8x1350xbf16> to vector<8x1280xbf16>
    %61 = vector.extract_strided_slice %58 {offsets = [0, 2], sizes = [8, 1280], strides = [1, 1]} : vector<8x1350xbf16> to vector<8x1280xbf16>
    %62 = vector.extract_strided_slice %58 {offsets = [0, 34], sizes = [8, 1280], strides = [1, 1]} : vector<8x1350xbf16> to vector<8x1280xbf16>
    %63 = vector.extract_strided_slice %58 {offsets = [0, 35], sizes = [8, 1280], strides = [1, 1]} : vector<8x1350xbf16> to vector<8x1280xbf16>
    %64 = vector.extract_strided_slice %58 {offsets = [0, 36], sizes = [8, 1280], strides = [1, 1]} : vector<8x1350xbf16> to vector<8x1280xbf16>
    %65 = vector.extract_strided_slice %58 {offsets = [0, 68], sizes = [8, 1280], strides = [1, 1]} : vector<8x1350xbf16> to vector<8x1280xbf16>
    %66 = vector.extract_strided_slice %58 {offsets = [0, 69], sizes = [8, 1280], strides = [1, 1]} : vector<8x1350xbf16> to vector<8x1280xbf16>
    %67 = vector.extract_strided_slice %58 {offsets = [0, 70], sizes = [8, 1280], strides = [1, 1]} : vector<8x1350xbf16> to vector<8x1280xbf16>
    %68 = tpu.concatenate %59, %60, %61, %62, %63, %64, %65, %66, %67 in 0 : vector<8x1280xbf16>, vector<8x1280xbf16>, vector<8x1280xbf16>, vector<8x1280xbf16>, vector<8x1280xbf16>, vector<8x1280xbf16>, vector<8x1280xbf16>, vector<8x1280xbf16>, vector<8x1280xbf16> -> vector<72x1280xbf16>
    %c0_23 = arith.constant 0 : index
    %c0_24 = arith.constant 0 : index
    %69 = vector.load %arg10[%c0_23, %c0_24] : memref<8x72xbf16, #tpu.memory_space<vmem>>, vector<8x72xbf16>
    %cst_25 = arith.constant dense<0.000000e+00> : vector<8x1280xf32>
    %70 = tpu.matmul %69, %68, %cst_25 {dimension_numbers = #tpu.dot_dimension_numbers<[1], [0], [0], [1], [0, 0, 1, 1], [], []>} : vector<8x72xbf16>, vector<72x1280xbf16>, vector<8x1280xf32> -> vector<8x1280xf32>
    %c0_26 = arith.constant 0 : index
    %c0_27 = arith.constant 0 : index
    %71 = vector.load %arg11[%c0_26, %c0_27] : memref<8x1xf32, #tpu.memory_space<vmem>>, vector<8x1xf32>
    %72 = vector.broadcast %71 : vector<8x1xf32> to vector<8x1280xf32>
    %73 = arith.addf %70, %72 : vector<8x1280xf32>
    %74 = arith.addf %73, %37 : vector<8x1280xf32>
    %75 = vector.broadcast %7 : vector<1x1280xf32> to vector<8x1280xf32>
    %76 = arith.mulf %74, %75 : vector<8x1280xf32>
    %c0_28 = arith.constant 0 : index
    %c0_29 = arith.constant 0 : index
    %c0_30 = arith.constant 0 : index
    %77 = vector.load %arg12[%c0_28, %c0_29, %c0_30] : memref<2x8x1280xf32, #tpu.memory_space<vmem>>, vector<1x8x1280xf32>
    %78 = vector.shape_cast %77 : vector<1x8x1280xf32> to vector<8x1280xf32>
    %79 = vector.shape_cast %76 : vector<8x1280xf32> to vector<1x8x1280xf32>
    tpu.vector_store %arg12[%c0_28, %c0_29, %c0_30], %79 {strides = array<i32>} : memref<2x8x1280xf32, #tpu.memory_space<vmem>>, vector<1x8x1280xf32>,
    %c1 = arith.constant 1 : index
    %c0_31 = arith.constant 0 : index
    %c0_32 = arith.constant 0 : index
    %80 = vector.load %arg2[%c1, %c0_31, %c0_32] : memref<2x8x128xbf16, #tpu.memory_space<vmem>>, vector<1x8x128xbf16>
    %81 = vector.shape_cast %80 : vector<1x8x128xbf16> to vector<8x128xbf16>
    %c1_33 = arith.constant 1 : index
    %c0_34 = arith.constant 0 : index
    %c0_35 = arith.constant 0 : index
    %82 = vector.load %arg3[%c1_33, %c0_34, %c0_35] : memref<2x8x1280xbf16, #tpu.memory_space<vmem>>, vector<1x8x1280xbf16>
    %83 = vector.shape_cast %82 : vector<1x8x1280xbf16> to vector<8x1280xbf16>
    %c1_36 = arith.constant 1 : index
    %c0_37 = arith.constant 0 : index
    %c0_38 = arith.constant 0 : index
    %84 = vector.load %arg4[%c1_36, %c0_37, %c0_38] : memref<2x8x128xbf16, #tpu.memory_space<vmem>>, vector<1x8x128xbf16>
    %85 = vector.shape_cast %84 : vector<1x8x128xbf16> to vector<8x128xbf16>
    %86 = tpu.concatenate %81, %83, %85 in 1 : vector<8x128xbf16>, vector<8x1280xbf16>, vector<8x128xbf16> -> vector<8x1536xbf16>
    %87 = vector.extract_strided_slice %86 {offsets = [0, 23], sizes = [8, 1420], strides = [1, 1]} : vector<8x1536xbf16> to vector<8x1420xbf16>
    %88 = vector.extract_strided_slice %86 {offsets = [0, 24], sizes = [8, 1420], strides = [1, 1]} : vector<8x1536xbf16> to vector<8x1420xbf16>
    %89 = vector.extract_strided_slice %86 {offsets = [0, 25], sizes = [8, 1420], strides = [1, 1]} : vector<8x1536xbf16> to vector<8x1420xbf16>
    %90 = vector.extract_strided_slice %86 {offsets = [0, 57], sizes = [8, 1420], strides = [1, 1]} : vector<8x1536xbf16> to vector<8x1420xbf16>
    %91 = vector.extract_strided_slice %86 {offsets = [0, 58], sizes = [8, 1420], strides = [1, 1]} : vector<8x1536xbf16> to vector<8x1420xbf16>
    %92 = vector.extract_strided_slice %86 {offsets = [0, 59], sizes = [8, 1420], strides = [1, 1]} : vector<8x1536xbf16> to vector<8x1420xbf16>
    %93 = vector.extract_strided_slice %86 {offsets = [0, 91], sizes = [8, 1420], strides = [1, 1]} : vector<8x1536xbf16> to vector<8x1420xbf16>
    %94 = vector.extract_strided_slice %86 {offsets = [0, 92], sizes = [8, 1420], strides = [1, 1]} : vector<8x1536xbf16> to vector<8x1420xbf16>
    %95 = vector.extract_strided_slice %86 {offsets = [0, 93], sizes = [8, 1420], strides = [1, 1]} : vector<8x1536xbf16> to vector<8x1420xbf16>
    %96 = tpu.concatenate %87, %88, %89, %90, %91, %92, %93, %94, %95 in 0 : vector<8x1420xbf16>, vector<8x1420xbf16>, vector<8x1420xbf16>, vector<8x1420xbf16>, vector<8x1420xbf16>, vector<8x1420xbf16>, vector<8x1420xbf16>, vector<8x1420xbf16>, vector<8x1420xbf16> -> vector<72x1420xbf16>
    %c0_39 = arith.constant 0 : index
    %c0_40 = arith.constant 0 : index
    %97 = vector.load %arg6[%c0_39, %c0_40] : memref<8x72xbf16, #tpu.memory_space<vmem>>, vector<8x72xbf16>
    %cst_41 = arith.constant dense<0.000000e+00> : vector<8x1420xf32>
    %98 = tpu.matmul %97, %96, %cst_41 {dimension_numbers = #tpu.dot_dimension_numbers<[1], [0], [0], [1], [0, 0, 1, 1], [], []>} : vector<8x72xbf16>, vector<72x1420xbf16>, vector<8x1420xf32> -> vector<8x1420xf32>
    %c0_42 = arith.constant 0 : index
    %c0_43 = arith.constant 0 : index
    %99 = vector.load %arg7[%c0_42, %c0_43] : memref<8x1xf32, #tpu.memory_space<vmem>>, vector<8x1xf32>
    %100 = vector.broadcast %99 : vector<8x1xf32> to vector<8x1420xf32>
    %101 = arith.addf %98, %100 : vector<8x1420xf32>
    %cst_44 = arith.constant 0.000000e+00 : f32
    %102 = vector.broadcast %cst_44 : f32 to vector<8x1420xf32>
    %103 = arith.cmpf oge, %101, %102 : vector<8x1420xf32>
    %cst_45 = arith.constant 1.000000e-01 : f32
    %104 = vector.broadcast %cst_45 : f32 to vector<8x1420xf32>
    %105 = arith.mulf %104, %101 : vector<8x1420xf32>
    %106 = arith.select %103, %101, %105 : vector<8x1420xi1>, vector<8x1420xf32>
    %107 = vector.broadcast %3 : vector<1x1420xf32> to vector<8x1420xf32>
    %108 = arith.mulf %106, %107 : vector<8x1420xf32>
    %109 = vector.extract_strided_slice %108 {offsets = [0, 70], sizes = [8, 1280], strides = [1, 1]} : vector<8x1420xf32> to vector<8x1280xf32>
    %110 = arith.truncf %108 : vector<8x1420xf32> to vector<8x1420xbf16>
    %111 = vector.extract_strided_slice %110 {offsets = [0, 0], sizes = [8, 1350], strides = [1, 1]} : vector<8x1420xbf16> to vector<8x1350xbf16>
    %112 = vector.extract_strided_slice %110 {offsets = [0, 1], sizes = [8, 1350], strides = [1, 1]} : vector<8x1420xbf16> to vector<8x1350xbf16>
    %113 = vector.extract_strided_slice %110 {offsets = [0, 2], sizes = [8, 1350], strides = [1, 1]} : vector<8x1420xbf16> to vector<8x1350xbf16>
    %114 = vector.extract_strided_slice %110 {offsets = [0, 34], sizes = [8, 1350], strides = [1, 1]} : vector<8x1420xbf16> to vector<8x1350xbf16>
    %115 = vector.extract_strided_slice %110 {offsets = [0, 35], sizes = [8, 1350], strides = [1, 1]} : vector<8x1420xbf16> to vector<8x1350xbf16>
    %116 = vector.extract_strided_slice %110 {offsets = [0, 36], sizes = [8, 1350], strides = [1, 1]} : vector<8x1420xbf16> to vector<8x1350xbf16>
    %117 = vector.extract_strided_slice %110 {offsets = [0, 68], sizes = [8, 1350], strides = [1, 1]} : vector<8x1420xbf16> to vector<8x1350xbf16>
    %118 = vector.extract_strided_slice %110 {offsets = [0, 69], sizes = [8, 1350], strides = [1, 1]} : vector<8x1420xbf16> to vector<8x1350xbf16>
    %119 = vector.extract_strided_slice %110 {offsets = [0, 70], sizes = [8, 1350], strides = [1, 1]} : vector<8x1420xbf16> to vector<8x1350xbf16>
    %120 = tpu.concatenate %111, %112, %113, %114, %115, %116, %117, %118, %119 in 0 : vector<8x1350xbf16>, vector<8x1350xbf16>, vector<8x1350xbf16>, vector<8x1350xbf16>, vector<8x1350xbf16>, vector<8x1350xbf16>, vector<8x1350xbf16>, vector<8x1350xbf16>, vector<8x1350xbf16> -> vector<72x1350xbf16>
    %c0_46 = arith.constant 0 : index
    %c0_47 = arith.constant 0 : index
    %121 = vector.load %arg8[%c0_46, %c0_47] : memref<8x72xbf16, #tpu.memory_space<vmem>>, vector<8x72xbf16>
    %cst_48 = arith.constant dense<0.000000e+00> : vector<8x1350xf32>
    %122 = tpu.matmul %121, %120, %cst_48 {dimension_numbers = #tpu.dot_dimension_numbers<[1], [0], [0], [1], [0, 0, 1, 1], [], []>} : vector<8x72xbf16>, vector<72x1350xbf16>, vector<8x1350xf32> -> vector<8x1350xf32>
    %c0_49 = arith.constant 0 : index
    %c0_50 = arith.constant 0 : index
    %123 = vector.load %arg9[%c0_49, %c0_50] : memref<8x1xf32, #tpu.memory_space<vmem>>, vector<8x1xf32>
    %124 = vector.broadcast %123 : vector<8x1xf32> to vector<8x1350xf32>
    %125 = arith.addf %122, %124 : vector<8x1350xf32>
    %cst_51 = arith.constant 0.000000e+00 : f32
    %126 = vector.broadcast %cst_51 : f32 to vector<8x1350xf32>
    %127 = arith.maximumf %125, %126 : vector<8x1350xf32>
    %128 = vector.broadcast %5 : vector<1x1350xf32> to vector<8x1350xf32>
    %129 = arith.mulf %127, %128 : vector<8x1350xf32>
    %130 = arith.truncf %129 : vector<8x1350xf32> to vector<8x1350xbf16>
    %131 = vector.extract_strided_slice %130 {offsets = [0, 0], sizes = [8, 1280], strides = [1, 1]} : vector<8x1350xbf16> to vector<8x1280xbf16>
    %132 = vector.extract_strided_slice %130 {offsets = [0, 1], sizes = [8, 1280], strides = [1, 1]} : vector<8x1350xbf16> to vector<8x1280xbf16>
    %133 = vector.extract_strided_slice %130 {offsets = [0, 2], sizes = [8, 1280], strides = [1, 1]} : vector<8x1350xbf16> to vector<8x1280xbf16>
    %134 = vector.extract_strided_slice %130 {offsets = [0, 34], sizes = [8, 1280], strides = [1, 1]} : vector<8x1350xbf16> to vector<8x1280xbf16>
    %135 = vector.extract_strided_slice %130 {offsets = [0, 35], sizes = [8, 1280], strides = [1, 1]} : vector<8x1350xbf16> to vector<8x1280xbf16>
    %136 = vector.extract_strided_slice %130 {offsets = [0, 36], sizes = [8, 1280], strides = [1, 1]} : vector<8x1350xbf16> to vector<8x1280xbf16>
    %137 = vector.extract_strided_slice %130 {offsets = [0, 68], sizes = [8, 1280], strides = [1, 1]} : vector<8x1350xbf16> to vector<8x1280xbf16>
    %138 = vector.extract_strided_slice %130 {offsets = [0, 69], sizes = [8, 1280], strides = [1, 1]} : vector<8x1350xbf16> to vector<8x1280xbf16>
    %139 = vector.extract_strided_slice %130 {offsets = [0, 70], sizes = [8, 1280], strides = [1, 1]} : vector<8x1350xbf16> to vector<8x1280xbf16>
    %140 = tpu.concatenate %131, %132, %133, %134, %135, %136, %137, %138, %139 in 0 : vector<8x1280xbf16>, vector<8x1280xbf16>, vector<8x1280xbf16>, vector<8x1280xbf16>, vector<8x1280xbf16>, vector<8x1280xbf16>, vector<8x1280xbf16>, vector<8x1280xbf16>, vector<8x1280xbf16> -> vector<72x1280xbf16>
    %c0_52 = arith.constant 0 : index
    %c0_53 = arith.constant 0 : index
    %141 = vector.load %arg10[%c0_52, %c0_53] : memref<8x72xbf16, #tpu.memory_space<vmem>>, vector<8x72xbf16>
    %cst_54 = arith.constant dense<0.000000e+00> : vector<8x1280xf32>
    %142 = tpu.matmul %141, %140, %cst_54 {dimension_numbers = #tpu.dot_dimension_numbers<[1], [0], [0], [1], [0, 0, 1, 1], [], []>} : vector<8x72xbf16>, vector<72x1280xbf16>, vector<8x1280xf32> -> vector<8x1280xf32>
    %c0_55 = arith.constant 0 : index
    %c0_56 = arith.constant 0 : index
    %143 = vector.load %arg11[%c0_55, %c0_56] : memref<8x1xf32, #tpu.memory_space<vmem>>, vector<8x1xf32>
    %144 = vector.broadcast %143 : vector<8x1xf32> to vector<8x1280xf32>
    %145 = arith.addf %142, %144 : vector<8x1280xf32>
    %146 = arith.addf %145, %109 : vector<8x1280xf32>
    %147 = vector.broadcast %7 : vector<1x1280xf32> to vector<8x1280xf32>
    %148 = arith.mulf %146, %147 : vector<8x1280xf32>
    %c1_57 = arith.constant 1 : index
    %c0_58 = arith.constant 0 : index
    %c0_59 = arith.constant 0 : index
    %149 = vector.load %arg12[%c1_57, %c0_58, %c0_59] : memref<2x8x1280xf32, #tpu.memory_space<vmem>>, vector<1x8x1280xf32>
    %150 = vector.shape_cast %149 : vector<1x8x1280xf32> to vector<8x1280xf32>
    %151 = vector.shape_cast %148 : vector<8x1280xf32> to vector<1x8x1280xf32>
    tpu.vector_store %arg12[%c1_57, %c0_58, %c0_59], %151 {strides = array<i32>} : memref<2x8x1280xf32, #tpu.memory_space<vmem>>, vector<1x8x1280xf32>,
    return
  }
  func.func @transform_0(%arg0: i32, %arg1: i32) -> (i32, i32, i32) {
    %c10_i32 = arith.constant 10 : i32
    %0 = arith.muli %arg1, %c10_i32 : i32
    %c1_i32 = arith.constant 1 : i32
    %1 = arith.subi %0, %c1_i32 : i32
    %c0_i32 = arith.constant 0 : i32
    %2 = arith.maxsi %1, %c0_i32 : i32
    %c0_i32_0 = arith.constant 0 : i32
    %c0_i32_1 = arith.constant 0 : i32
    return %arg0, %c0_i32_0, %2 : i32, i32, i32
  }
  func.func @transform_1(%arg0: i32, %arg1: i32) -> (i32, i32, i32) {
    %c0_i32 = arith.constant 0 : i32
    %c0_i32_0 = arith.constant 0 : i32
    return %arg0, %c0_i32, %arg1 : i32, i32, i32
  }
  func.func @transform_2(%arg0: i32, %arg1: i32) -> (i32, i32, i32) {
    %c1_i32 = arith.constant 1 : i32
    %0 = arith.addi %arg1, %c1_i32 : i32
    %c10_i32 = arith.constant 10 : i32
    %1 = arith.muli %0, %c10_i32 : i32
    %c9_i32 = arith.constant 9 : i32
    %2 = arith.minsi %1, %c9_i32 : i32
    %c0_i32 = arith.constant 0 : i32
    %c0_i32_0 = arith.constant 0 : i32
    return %arg0, %c0_i32, %2 : i32, i32, i32
  }
  func.func @transform_3(%arg0: i32, %arg1: i32) -> (i32, i32, i32) {
    %c0_i32 = arith.constant 0 : i32
    %c0_i32_0 = arith.constant 0 : i32
    %c0_i32_1 = arith.constant 0 : i32
    return %arg1, %c0_i32, %c0_i32_0 : i32, i32, i32
  }
  func.func @transform_4(%arg0: i32, %arg1: i32) -> (i32, i32) {
    %c0_i32 = arith.constant 0 : i32
    %c0_i32_0 = arith.constant 0 : i32
    %c0_i32_1 = arith.constant 0 : i32
    return %c0_i32, %c0_i32_0 : i32, i32
  }
  func.func @transform_5(%arg0: i32, %arg1: i32) -> (i32, i32) {
    %c0_i32 = arith.constant 0 : i32
    %c0_i32_0 = arith.constant 0 : i32
    %c0_i32_1 = arith.constant 0 : i32
    return %c0_i32, %c0_i32_0 : i32, i32
  }
  func.func @transform_6(%arg0: i32, %arg1: i32) -> (i32, i32) {
    %c0_i32 = arith.constant 0 : i32
    %c0_i32_0 = arith.constant 0 : i32
    %c0_i32_1 = arith.constant 0 : i32
    return %c0_i32, %c0_i32_0 : i32, i32
  }
  func.func @transform_7(%arg0: i32, %arg1: i32) -> (i32, i32) {
    %c0_i32 = arith.constant 0 : i32
    %c0_i32_0 = arith.constant 0 : i32
    %c0_i32_1 = arith.constant 0 : i32
    return %c0_i32, %c0_i32_0 : i32, i32
  }
  func.func @transform_8(%arg0: i32, %arg1: i32) -> (i32, i32) {
    %c0_i32 = arith.constant 0 : i32
    %c0_i32_0 = arith.constant 0 : i32
    %c0_i32_1 = arith.constant 0 : i32
    return %c0_i32, %c0_i32_0 : i32, i32
  }
  func.func @transform_9(%arg0: i32, %arg1: i32) -> (i32, i32) {
    %c0_i32 = arith.constant 0 : i32
    %c0_i32_0 = arith.constant 0 : i32
    %c0_i32_1 = arith.constant 0 : i32
    return %c0_i32, %c0_i32_0 : i32, i32
  }
  func.func @transform_10(%arg0: i32, %arg1: i32) -> (i32, i32, i32) {
    %c0_i32 = arith.constant 0 : i32
    %c0_i32_0 = arith.constant 0 : i32
    return %arg0, %c0_i32, %arg1 : i32, i32, i32
  }
}

</mosaic_0001>

<bundles_post_ra>
// kernel: pixel_shuffle_recurrent_forward.1
= control target key start
LH: loop header
LB: loop body
LE: loop exit
PB: predicated region body
PF: predicated region fallthrough
CT: control target
= control target key end

     0   :  { %s6037_s21 = smov 127   ;;  %s6038_s22 = smov 126   ;;  %vm232_vm0 = vcmask 1039360   ;;  %vm496_vm1 = vcmask 1043456   ;;  %vm304_vm2 = vcmask 769024   ;;  %vm268_vm3 = vcmask 1031168   ;;  %s10759_s0 = inlined_call_operand.vmem [shape: bf16[2,8,1280], index: 0, kind: input, shape index: {}, may-alias: {0,1,2}]   ;;  %s10760_s1 = inlined_call_operand.vmem [shape: bf16[2,8,1280], index: 1, kind: input, shape index: {}, may-alias: {0,1,2}]   ;;  %s10761_s2 = inlined_call_operand.vmem [shape: bf16[2,8,1280], index: 2, kind: input, shape index: {}, may-alias: {0,1,2}]   ;;  %s10762_s3 = inlined_call_operand.vmem [shape: bf16[1,1,1536], index: 3, kind: input, shape index: {}]   ;;  %s10763_s4 = inlined_call_operand.vmem [shape: bf16[8,72], index: 4, kind: input, shape index: {}]   ;;  %s10764_s5 = inlined_call_operand.vmem [shape: f32[8,1], index: 5, kind: input, shape index: {}]   ;;  %s10765_s6 = inlined_call_operand.vmem [shape: bf16[8,72], index: 6, kind: input, shape index: {}]   ;;  %s10766_s7 = inlined_call_operand.vmem [shape: f32[8,1], index: 7, kind: input, shape index: {}]   ;;  %s10767_s8 = inlined_call_operand.vmem [shape: bf16[8,72], index: 8, kind: input, shape index: {}]   ;;  %s10768_s9 = inlined_call_operand.vmem [shape: f32[8,1], index: 9, kind: input, shape index: {}]   ;;  %s10769_s10 = inlined_call_operand.vmem [shape: f32[2,8,1280], index: 10, kind: output, shape index: {}]  }
   0x1   :  { %v164_v0 = vld [vmem:[%s10760_s1 + $0x8] sm:$0xff]  ;;  %v163_v1 = vld [vmem:[%s10760_s1] sm:$0xff]  ;;  %v6115_v2 = vld [vmem:[%s10760_s1 + $0x10] sm:$0xff]  ;;  %s6039_s23 = smov 94   ;;  %s6040_s26 = smov 93   ;;  %vm376_vm4 = vcmask 752640  }
   0x2   :  { %v6117_v3 = vcombine.low %v164_v0, %v164_v0  ;;  %v6119_v4 = vcombine.low %v163_v1, %v163_v1  ;;  %v38_v5 = vld [vmem:[%s10759_s0] sm:$0xf]  ;;  %v6130_v6 = vcombine.low %v6115_v2, %v6115_v2  ;;  %v6132_v7 = vcombine.high %v163_v1, %v163_v1  ;;  %v5795_v11 = vld [vmem:[%s10761_s2 + $0x24] sm:$0xf]  ;;  %s6041_s27 = smov 92   ;;  %s6042_s28 = smov 60  }
   0x3   :  { %39 = vst [vmem:[#allocation2] sm:$0xf] %v38_v5  ;;  %v6138_v8 = vcombine.high %v164_v0, %v164_v0  ;;  %92 = vst [vmem:[#allocation3] sm:$0xf] %v5795_v11  ;;  %s6043_s29 = smov 59   ;;  %s6044_s30 = smov 58   ;;  %v6233_v13 = vcombine.high %v6115_v2, %v6115_v2 }
   0x4   :  { %214 = vrot.lane.b32.xlu1 %v6117_v3, %s6037_s21  ;;  %210 = vrot.lane.b32.xlu0 %v6119_v4, %s6037_s21  ;;  %v166_v12 = vld [vmem:[%s10760_s1 + $0x18] sm:$0xff]  ;;  %v167_v15 = vld [vmem:[%s10760_s1 + $0x20] sm:$0xff]  ;;  %s6045_s15 = smov 105   ;;  %vm340_vm5 = vcmask 760832   ;;  %vm448_vm6 = vcmask 482304   ;;  %vm412_vm7 = vcmask 490496  }
   0x5   :  { %v6237_v14 = vcombine.low %v166_v12, %v166_v12  ;;  %v6244_v16 = vcombine.high %v166_v12, %v166_v12  ;;  %v6248_v17 = vcombine.low %v167_v15, %v167_v15  ;;  %v6354_v41 = vcombine.high %v167_v15, %v167_v15  ;;  %s6047_s25 = smov 70   ;;  %s6048_s11 = smov 35  }
   0x6   :  { %vm484_vm8 = vcmask 474112   ;;  %vm816_vm9 = vcmask 859136   ;;  %vm920_vm10 = vcmask 588800   ;;  %vm1389_vm11 = vcmask 572416  }
   0x8   :  { %218 = vrot.lane.b32.xlu1 %v6130_v6, %s6037_s21  ;;  %212 = vrot.lane.b32.xlu0 %v6132_v7, %s6037_s21 }
   0xa   :  { %v6140_v9 = vld [vmem:[#allocation2] sm:$0xf]  ;;  %v6348_v39 = vld [vmem:[#allocation3] sm:$0xf] }
   0xb   :  { %v196_v10 = vrot.slane %v6140_v9, 4  ;;  %v207_v42 = vrot.slane %v6348_v39, 4 }
   0xc   :  { %216 = vrot.lane.b32.xlu0 %v6138_v8, %s6037_s21 }
   0xd   :  { %208 = vrot.lane.b32.xlu1 %v196_v10, %s6037_s21 }
  0x10   :  { %246 = vrot.lane.b32.xlu0 %v6119_v4, %s6038_s22 }
  0x11   :  { %248 = vrot.lane.b32.xlu1 %v6132_v7, %s6038_s22 }
  0x14   :  { %250 = vrot.lane.b32.xlu0 %v6117_v3, %s6038_s22 }
  0x15   :  { %282 = vrot.lane.b32.xlu1 %v6119_v4, %s6039_s23 }
  0x18   :  { %284 = vrot.lane.b32.xlu0 %v6132_v7, %s6039_s23 }
  0x19   :  { %286 = vrot.lane.b32.xlu1 %v6117_v3, %s6039_s23 }
  0x1c   :  { %244 = vrot.lane.b32.xlu0 %v6140_v9, %s6038_s22 }
  0x1d   :  { %252 = vrot.lane.b32.xlu1 %v6138_v8, %s6038_s22 }
  0x20   :  { %254 = vrot.lane.b32.xlu0 %v6130_v6, %s6038_s22 }
  0x21   :  { %280 = vrot.lane.b32.xlu1 %v196_v10, %s6039_s23 }
  0x24   :  { %288 = vrot.lane.b32.xlu0 %v6138_v8, %s6039_s23 }
  0x25   :  { %290 = vrot.lane.b32.xlu1 %v6130_v6, %s6039_s23 }
  0x28   :  { %318 = vrot.lane.b32.xlu0 %v6119_v4, %s6040_s26 }
  0x29   :  { %320 = vrot.lane.b32.xlu1 %v6132_v7, %s6040_s26 }
  0x2c   :  { %322 = vrot.lane.b32.xlu0 %v6117_v3, %s6040_s26 }
  0x2d   :  { %354 = vrot.lane.b32.xlu1 %v6119_v4, %s6041_s27 }
  0x30   :  { %356 = vrot.lane.b32.xlu0 %v6132_v7, %s6041_s27 }
  0x31   :  { %358 = vrot.lane.b32.xlu1 %v6117_v3, %s6041_s27 }
  0x34   :  { %316 = vrot.lane.b32.xlu0 %v6140_v9, %s6040_s26 }
  0x35   :  { %324 = vrot.lane.b32.xlu1 %v6138_v8, %s6040_s26 }
  0x38   :  { %326 = vrot.lane.b32.xlu0 %v6130_v6, %s6040_s26 }
  0x39   :  { %352 = vrot.lane.b32.xlu1 %v196_v10, %s6041_s27 }
  0x3c   :  { %360 = vrot.lane.b32.xlu0 %v6138_v8, %s6041_s27 }
  0x3d   :  { %362 = vrot.lane.b32.xlu1 %v6130_v6, %s6041_s27 }
  0x40   :  { %390 = vrot.lane.b32.xlu0 %v6119_v4, %s6042_s28 }
  0x41   :  { %392 = vrot.lane.b32.xlu1 %v6132_v7, %s6042_s28 }
  0x44   :  { %394 = vrot.lane.b32.xlu0 %v6117_v3, %s6042_s28 }
  0x45   :  { %426 = vrot.lane.b32.xlu1 %v6119_v4, %s6043_s29 }
  0x48   :  { %428 = vrot.lane.b32.xlu0 %v6132_v7, %s6043_s29 }
  0x49   :  { %430 = vrot.lane.b32.xlu1 %v6117_v3, %s6043_s29 }
  0x4c   :  { %388 = vrot.lane.b32.xlu0 %v6140_v9, %s6042_s28 }
  0x4d   :  { %396 = vrot.lane.b32.xlu1 %v6138_v8, %s6042_s28 }
  0x50   :  { %398 = vrot.lane.b32.xlu0 %v6130_v6, %s6042_s28 }
  0x51   :  { %424 = vrot.lane.b32.xlu1 %v196_v10, %s6043_s29 }
  0x54   :  { %432 = vrot.lane.b32.xlu0 %v6138_v8, %s6043_s29 }
  0x55   :  { %434 = vrot.lane.b32.xlu1 %v6130_v6, %s6043_s29 }
  0x58   :  { %460 = vrot.lane.b32.xlu0 %v6140_v9, %s6044_s30 }
  0x59   :  { %462 = vrot.lane.b32.xlu1 %v6119_v4, %s6044_s30 }
  0x5c   :  { %464 = vrot.lane.b32.xlu0 %v6132_v7, %s6044_s30 }
  0x5d   :  { %466 = vrot.lane.b32.xlu1 %v6117_v3, %s6044_s30 }
  0x60   :  { %468 = vrot.lane.b32.xlu0 %v6138_v8, %s6044_s30 }
  0x61   :  { %470 = vrot.lane.b32.xlu1 %v6130_v6, %s6044_s30 }
  0x64   :  { %220 = vrot.lane.b32.xlu0 %v6233_v13, %s6037_s21 }
  0x65   :  { %222 = vrot.lane.b32.xlu1 %v6237_v14, %s6037_s21 }
  0x68   :  { %224 = vrot.lane.b32.xlu0 %v6244_v16, %s6037_s21 }
  0x69   :  { %226 = vrot.lane.b32.xlu1 %v6248_v17, %s6037_s21 }
  0x6c   :  { %256 = vrot.lane.b32.xlu0 %v6233_v13, %s6038_s22 }
  0x6d   :  { %258 = vrot.lane.b32.xlu1 %v6237_v14, %s6038_s22 }
  0x70   :  { %292 = vrot.lane.b32.xlu0 %v6233_v13, %s6039_s23 }
  0x71   :  { %294 = vrot.lane.b32.xlu1 %v6237_v14, %s6039_s23 }
  0x74   :  { %260 = vrot.lane.b32.xlu0 %v6244_v16, %s6038_s22 }
  0x75   :  { %262 = vrot.lane.b32.xlu1 %v6248_v17, %s6038_s22 }
  0x76   :  { %v6266_v18 = vpop.permute.xlu1 %214  ;;  %v6268_v19 = vpop.permute.xlu0 %210 }
  0x78   :  { %296 = vrot.lane.b32.xlu0 %v6244_v16, %s6039_s23 }
  0x79   :  { %298 = vrot.lane.b32.xlu1 %v6248_v17, %s6039_s23 }
  0x7a   :  { %v6274_v20 = vpop.permute.xlu1 %218  ;;  %v6276_v21 = vpop.permute.xlu0 %212 }
  0x7b   :  { %v234_v59 = vsel %vm232_vm0, %v6268_v19, %v6276_v21  ;;  %v235_v60 = vsel %vm232_vm0, %v6276_v21, %v6266_v18 }
  0x7c   :  { %328 = vrot.lane.b32.xlu0 %v6233_v13, %s6040_s26  ;;  %v502_v63 = vsel %vm496_vm1, %v6119_v4, %v234_v59  ;;  %v505_v1 = vsel %vm496_vm1, %v6132_v7, %v235_v60 }
  0x7d   :  { %330 = vrot.lane.b32.xlu1 %v6237_v14, %s6040_s26 }
  0x7e   :  { %v6282_v22 = vpop.permute.xlu0 %216 }
  0x7f   :  { %v6284_v23 = vpop.permute.xlu1 %208  ;;  %v236_v2 = vsel %vm232_vm0, %v6266_v18, %v6282_v22  ;;  %v237_v11 = vsel %vm232_vm0, %v6282_v22, %v6274_v20 }
  0x80   :  { %364 = vrot.lane.b32.xlu0 %v6233_v13, %s6041_s27  ;;  %v233_v0 = vsel %vm232_vm0, %v6284_v23, %v6268_v19  ;;  %v508_v7 = vsel %vm496_vm1, %v6117_v3, %v236_v2  ;;  %v511_v19 = vsel %vm496_vm1, %v6138_v8, %v237_v11 }
  0x81   :  { %366 = vrot.lane.b32.xlu1 %v6237_v14, %s6041_s27  ;;  %v499_v10 = vsel %vm496_vm1, %v6140_v9, %v233_v0 }
  0x82   :  { %v6290_v24 = vpop.permute.xlu0 %246 }
  0x83   :  { %v6292_v25 = vpop.permute.xlu1 %248 }
  0x84   :  { %332 = vrot.lane.b32.xlu0 %v6244_v16, %s6040_s26  ;;  %v270_v9 = vsel %vm268_vm3, %v6290_v24, %v6292_v25 }
  0x85   :  { %334 = vrot.lane.b32.xlu1 %v6248_v17, %s6040_s26 }
  0x86   :  { %v6298_v26 = vpop.permute.xlu0 %250 }
  0x87   :  { %v6300_v27 = vpop.permute.xlu1 %282  ;;  %v271_v23 = vsel %vm268_vm3, %v6292_v25, %v6298_v26 }
  0x88   :  { %368 = vrot.lane.b32.xlu0 %v6244_v16, %s6041_s27 }
  0x89   :  { %370 = vrot.lane.b32.xlu1 %v6248_v17, %s6041_s27 }
  0x8a   :  { %v6306_v28 = vpop.permute.xlu0 %284 }
  0x8b   :  { %v6308_v29 = vpop.permute.xlu1 %286  ;;  %v306_v12 = vsel %vm304_vm2, %v6300_v27, %v6306_v28 }
  0x8c   :  { %400 = vrot.lane.b32.xlu0 %v6233_v13, %s6042_s28  ;;  %v307_v3 = vsel %vm304_vm2, %v6306_v28, %v6308_v29  ;;  %v538_v21 = vsel %vm496_vm1, %v270_v9, %v306_v12 }
  0x8d   :  { %402 = vrot.lane.b32.xlu1 %v6237_v14, %s6042_s28  ;;  %v541_v59 = vsel %vm496_vm1, %v271_v23, %v307_v3 }
  0x8e   :  { %v6314_v30 = vpop.permute.xlu0 %244 }
  0x8f   :  { %v6316_v31 = vpop.permute.xlu1 %252  ;;  %v269_v8 = vsel %vm268_vm3, %v6314_v30, %v6290_v24 }
  0x90   :  { %436 = vrot.lane.b32.xlu0 %v6233_v13, %s6043_s29  ;;  %v272_v24 = vsel %vm268_vm3, %v6298_v26, %v6316_v31 }
  0x91   :  { %438 = vrot.lane.b32.xlu1 %v6237_v14, %s6043_s29 }
  0x92   :  { %v6322_v32 = vpop.permute.xlu0 %254 }
  0x93   :  { %v6324_v33 = vpop.permute.xlu1 %280 }
  0x94   :  { %404 = vrot.lane.b32.xlu0 %v6244_v16, %s6042_s28  ;;  %v305_v22 = vsel %vm304_vm2, %v6324_v33, %v6300_v27 }
  0x95   :  { %406 = vrot.lane.b32.xlu1 %v6248_v17, %s6042_s28  ;;  %v535_v33 = vsel %vm496_vm1, %v269_v8, %v305_v22 }
  0x96   :  { %v6330_v34 = vpop.permute.xlu0 %288 }
  0x97   :  { %v6332_v35 = vpop.permute.xlu1 %290  ;;  %v308_v27 = vsel %vm304_vm2, %v6308_v29, %v6330_v34  ;;  %v273_v29 = vsel %vm268_vm3, %v6316_v31, %v6322_v32 }
  0x98   :  { %440 = vrot.lane.b32.xlu0 %v6244_v16, %s6043_s29  ;;  %v309_v25 = vsel %vm304_vm2, %v6330_v34, %v6332_v35 }
  0x99   :  { %442 = vrot.lane.b32.xlu1 %v6248_v17, %s6043_s29  ;;  %v547_v0 = vsel %vm496_vm1, %v273_v29, %v309_v25 }
  0x9a   :  { %v6338_v36 = vpop.permute.xlu0 %318 }
  0x9b   :  { %v6340_v37 = vpop.permute.xlu1 %320 }
  0x9c   :  { %472 = vrot.lane.b32.xlu0 %v6233_v13, %s6044_s30  ;;  %v342_v31 = vsel %vm340_vm5, %v6338_v36, %v6340_v37 }
  0x9d   :  { %474 = vrot.lane.b32.xlu1 %v6237_v14, %s6044_s30 }
  0x9e   :  { %v6346_v38 = vpop.permute.xlu0 %322 }
  0x9f   :  { %v6350_v40 = vpop.permute.xlu1 %354  ;;  %v343_v2 = vsel %vm340_vm5, %v6340_v37, %v6346_v38 }
  0xa0   :  { %476 = vrot.lane.b32.xlu0 %v6244_v16, %s6044_s30 }
  0xa1   :  { %478 = vrot.lane.b32.xlu1 %v6248_v17, %s6044_s30 }
  0xa2   :  { %v6359_v43 = vpop.permute.xlu0 %356 }
  0xa3   :  { %v6361_v44 = vpop.permute.xlu1 %358  ;;  %v378_v34 = vsel %vm376_vm4, %v6350_v40, %v6359_v43 }
  0xa4   :  { %228 = vrot.lane.b32.xlu0 %v6354_v41, %s6037_s21  ;;  %v379_v26 = vsel %vm376_vm4, %v6359_v43, %v6361_v44  ;;  %v574_v11 = vsel %vm496_vm1, %v342_v31, %v378_v34 }
  0xa5   :  { %230 = vrot.lane.b32.xlu1 %v207_v42, %s6037_s21 }
  0xa6   :  { %v6366_v45 = vpop.permute.xlu0 %316 }
  0xa7   :  { %v6368_v46 = vpop.permute.xlu1 %324  ;;  %v341_v37 = vsel %vm340_vm5, %v6366_v45, %v6338_v36 }
  0xa8   :  { %264 = vrot.lane.b32.xlu0 %v6354_v41, %s6038_s22 }
  0xa9   :  { %266 = vrot.lane.b32.xlu1 %v6348_v39, %s6038_s22 }
  0xaa   :  { %v6374_v47 = vpop.permute.xlu0 %326 }
  0xab   :  { %v6376_v48 = vpop.permute.xlu1 %352 }
  0xac   :  { %300 = vrot.lane.b32.xlu0 %v6354_v41, %s6039_s23  ;;  %v377_v43 = vsel %vm376_vm4, %v6376_v48, %v6350_v40  ;;  %v344_v40 = vsel %vm340_vm5, %v6346_v38, %v6368_v46  ;;  %v345_v38 = vsel %vm340_vm5, %v6368_v46, %v6374_v47 }
  0xad   :  { %302 = vrot.lane.b32.xlu1 %v207_v42, %s6039_s23 }
  0xae   :  { %v6381_v49 = vpop.permute.xlu0 %360 }
  0xaf   :  { %v6383_v50 = vpop.permute.xlu1 %362  ;;  %v380_v12 = vsel %vm376_vm4, %v6361_v44, %v6381_v49 }
  0xb0   :  { %336 = vrot.lane.b32.xlu0 %v6354_v41, %s6040_s26  ;;  %v381_v44 = vsel %vm376_vm4, %v6381_v49, %v6383_v50  ;;  %v580_v3 = vsel %vm496_vm1, %v344_v40, %v380_v12 }
  0xb1   :  { %338 = vrot.lane.b32.xlu1 %v6348_v39, %s6040_s26  ;;  %v583_v22 = vsel %vm496_vm1, %v345_v38, %v381_v44 }
  0xb2   :  { %v6389_v51 = vpop.permute.xlu0 %390 }
  0xb3   :  { %v6391_v52 = vpop.permute.xlu1 %392 }
  0xb4   :  { %372 = vrot.lane.b32.xlu0 %v6354_v41, %s6041_s27  ;;  %v414_v49 = vsel %vm412_vm7, %v6389_v51, %v6391_v52 }
  0xb5   :  { %374 = vrot.lane.b32.xlu1 %v207_v42, %s6041_s27 }
  0xb6   :  { %v6396_v53 = vpop.permute.xlu0 %394 }
  0xb7   :  { %v6398_v54 = vpop.permute.xlu1 %426 }
  0xb8   :  { %408 = vrot.lane.b32.xlu0 %v6354_v41, %s6042_s28 }
  0xb9   :  { %410 = vrot.lane.b32.xlu1 %v6348_v39, %s6042_s28 }
  0xba   :  { %v6404_v55 = vpop.permute.xlu0 %428 }
  0xbb   :  { %v6406_v56 = vpop.permute.xlu1 %430  ;;  %v450_v36 = vsel %vm448_vm6, %v6398_v54, %v6404_v55 }
  0xbc   :  { %444 = vrot.lane.b32.xlu0 %v6354_v41, %s6043_s29  ;;  %v451_v23 = vsel %vm448_vm6, %v6404_v55, %v6406_v56  ;;  %v610_v8 = vsel %vm496_vm1, %v414_v49, %v450_v36 }
  0xbd   :  { %446 = vrot.lane.b32.xlu1 %v207_v42, %s6043_s29 }
  0xbe   :  { %v6411_v57 = vpop.permute.xlu0 %388 }
  0xbf   :  { %v6413_v58 = vpop.permute.xlu1 %396 }
  0xc0   :  { %480 = vrot.lane.b32.xlu0 %v6354_v41, %s6044_s30 }
  0xc1   :  { %482 = vrot.lane.b32.xlu1 %v6348_v39, %s6044_s30 }
  0xc2   :  { %v6425_v61 = vpop.permute.xlu0 %398 }
  0xc3   :  { %v6427_v62 = vpop.permute.xlu1 %424 }
  0xc4   :  { %698 = vrot.lane.b32.xlu0 %v502_v63, %s6045_s15  ;;  %v544_v63 = vsel %vm496_vm1, %v272_v24, %v308_v27  ;;  %v449_v46 = vsel %vm448_vm6, %v6427_v62, %v6398_v54  ;;  %v417_v62 = vsel %vm412_vm7, %v6413_v58, %v6425_v61 }
  0xc5   :  { %700 = vrot.lane.b32.xlu1 %v505_v1, %s6045_s15 }
  0xc6   :  { %v6441_v5 = vpop.permute.xlu0 %432 }
  0xc7   :  { %v6443_v4 = vpop.permute.xlu1 %434  ;;  %v452_v24 = vsel %vm448_vm6, %v6406_v56, %v6441_v5 }
  0xc8   :  { %696 = vrot.lane.b32.xlu0 %v499_v10, %s6045_s15 }
  0xc9   :  { %702 = vrot.lane.b32.xlu1 %v508_v7, %s6045_s15  ;;  %v577_v7 = vsel %vm496_vm1, %v343_v2, %v379_v26 }
  0xca   :  { %v6457_v15 = vpop.permute.xlu0 %460 }
  0xcb   :  { %v6462_v18 = vpop.permute.xlu1 %462 }
  0xcc   :  { %704 = vrot.lane.b32.xlu0 %v511_v19, %s6045_s15  ;;  %v571_v19 = vsel %vm496_vm1, %v341_v37, %v377_v43  ;;  %v485_v34 = vsel %vm484_vm8, %v6457_v15, %v6462_v18 }
  0xcd   :  { %722 = vrot.lane.b32.xlu1 %v538_v21, %s6045_s15 }
  0xce   :  { %v6478_v42 = vpop.permute.xlu0 %464 }
  0xcf   :  { %v6483_v28 = vpop.permute.xlu1 %466 }
  0xd0   :  { %724 = vrot.lane.b32.xlu0 %v541_v59, %s6045_s15  ;;  %v415_v59 = vsel %vm412_vm7, %v6391_v52, %v6396_v53  ;;  %v453_v52 = vsel %vm448_vm6, %v6441_v5, %v6443_v4  ;;  %v10770_v5 = vmov 0   ;;  %v487_v2 = vsel %vm484_vm8, %v6478_v42, %v6483_v28 }
  0xd1   :  { %720 = vrot.lane.b32.xlu1 %v535_v33, %s6045_s15  ;;  %v413_v33 = vsel %vm412_vm7, %v6411_v57, %v6389_v51  ;;  %v613_v25 = vsel %vm496_vm1, %v415_v59, %v451_v23  ;;  %v416_v51 = vsel %vm412_vm7, %v6396_v53, %v6413_v58  ;;  %992 = vmatprep.mubr.bf16.mxu0 %v10770_v5 }
  0xd2   :  { %v6498_v30 = vpop.permute.xlu0 %468  ;;  %v607_v54 = vsel %vm496_vm1, %v413_v33, %v449_v46  ;;  %v616_v29 = vsel %vm496_vm1, %v416_v51, %v452_v24  ;;  %1033 = vmatprep.mubr.bf16.mxu1 %v10770_v5  ;;  %5952 = vset.pattern.permute.xlu0 %v10770_v5 }
  0xd3   :  { %v6503_v60 = vpop.permute.xlu1 %470  ;;  %5983 = vset.pattern.permute.xlu1 %v10770_v5 }
  0xd4   :  { %726 = vrot.lane.b32.xlu0 %v544_v63, %s6045_s15  ;;  %v619_v63 = vsel %vm496_vm1, %v417_v62, %v453_v52 }
  0xd5   :  { %728 = vrot.lane.b32.xlu1 %v547_v0, %s6045_s15  ;;  %v486_v0 = vsel %vm484_vm8, %v6462_v18, %v6478_v42 }
  0xd6   :  { %v6518_v1 = vpop.permute.xlu0 %220 }
  0xd7   :  { %v6523_v10 = vpop.permute.xlu1 %222  ;;  %v238_v15 = vsel %vm232_vm0, %v6274_v20, %v6518_v1 }
  0xd8   :  { %746 = vrot.lane.b32.xlu0 %v574_v11, %s6045_s15  ;;  %v488_v11 = vsel %vm484_vm8, %v6483_v28, %v6498_v30  ;;  %v239_v42 = vsel %vm232_vm0, %v6518_v1, %v6523_v10  ;;  %v514_v28 = vsel %vm496_vm1, %v6130_v6, %v238_v15 }
  0xd9   :  { %748 = vrot.lane.b32.xlu1 %v577_v7, %s6045_s15  ;;  %v489_v7 = vsel %vm484_vm8, %v6498_v30, %v6503_v60  ;;  %v517_v30 = vsel %vm496_vm1, %v6233_v13, %v239_v42 }
  0xda   :  { %v6538_v9 = vpop.permute.xlu0 %224 }
  0xdb   :  { %v6543_v48 = vpop.permute.xlu1 %226  ;;  %v240_v20 = vsel %vm232_vm0, %v6523_v10, %v6538_v9 }
  0xdc   :  { %744 = vrot.lane.b32.xlu0 %v571_v19, %s6045_s15  ;;  %v241_v1 = vsel %vm232_vm0, %v6538_v9, %v6543_v48  ;;  %v520_v6 = vsel %vm496_vm1, %v6237_v14, %v240_v20 }
  0xdd   :  { %750 = vrot.lane.b32.xlu1 %v580_v3, %s6045_s15  ;;  %v523_v9 = vsel %vm496_vm1, %v6244_v16, %v241_v1 }
  0xde   :  { %v6558_v45 = vpop.permute.xlu0 %256 }
  0xdf   :  { %v6563_v21 = vpop.permute.xlu1 %258  ;;  %v274_v19 = vsel %vm268_vm3, %v6322_v32, %v6558_v45 }
  0xe0   :  { %752 = vrot.lane.b32.xlu0 %v583_v22, %s6045_s15  ;;  %v275_v3 = vsel %vm268_vm3, %v6558_v45, %v6563_v21 }
  0xe1   :  { %770 = vrot.lane.b32.xlu1 %v610_v8, %s6045_s15 }
  0xe2   :  { %v293_v27 = vpop.permute.xlu0 %292 }
  0xe3   :  { %v295_v55 = vpop.permute.xlu1 %294  ;;  %v310_v10 = vsel %vm304_vm2, %v6332_v35, %v293_v27 }
  0xe4   :  { %772 = vrot.lane.b32.xlu0 %v613_v25, %s6045_s15  ;;  %v311_v44 = vsel %vm304_vm2, %v293_v27, %v295_v55  ;;  %v550_v14 = vsel %vm496_vm1, %v274_v19, %v310_v10 }
  0xe5   :  { %768 = vrot.lane.b32.xlu1 %v607_v54, %s6045_s15  ;;  %v553_v16 = vsel %vm496_vm1, %v275_v3, %v311_v44 }
  0xe6   :  { %v261_v57 = vpop.permute.xlu0 %260 }
  0xe7   :  { %v6597_v56 = vpop.permute.xlu1 %262  ;;  %v276_v36 = vsel %vm268_vm3, %v6563_v21, %v261_v57 }
  0xe8   :  { %774 = vrot.lane.b32.xlu0 %v616_v29, %s6045_s15  ;;  %v277_v45 = vsel %vm268_vm3, %v261_v57, %v6597_v56 }
  0xe9   :  { %776 = vrot.lane.b32.xlu1 %v619_v63, %s6045_s15 }
  0xea   :  { %v297_v53 = vpop.permute.xlu0 %296 }
  0xeb   :  { %v6607_v58 = vpop.permute.xlu1 %298  ;;  %v312_v35 = vsel %vm304_vm2, %v295_v55, %v297_v53 }
  0xec   :  { %792 = vrot.lane.b32.xlu0 %v485_v34, %s6045_s15  ;;  %v313_v49 = vsel %vm304_vm2, %v297_v53, %v6607_v58  ;;  %v556_v22 = vsel %vm496_vm1, %v276_v36, %v312_v35 }
  0xed   :  { %794 = vrot.lane.b32.xlu1 %v486_v0, %s6045_s15  ;;  %v559_v59 = vsel %vm496_vm1, %v277_v45, %v313_v49 }
  0xee   :  { %v329_v26 = vpop.permute.xlu0 %328 }
  0xef   :  { %v331_v31 = vpop.permute.xlu1 %330  ;;  %v346_v21 = vsel %vm340_vm5, %v6374_v47, %v329_v26 }
  0xf0   :  { %796 = vrot.lane.b32.xlu0 %v487_v2, %s6045_s15  ;;  %v347_v55 = vsel %vm340_vm5, %v329_v26, %v331_v31 }
  0xf1   :  { %798 = vrot.lane.b32.xlu1 %v488_v11, %s6045_s15 }
  0xf2   :  { %v365_v18 = vpop.permute.xlu0 %364 }
  0xf3   :  { %v367_v43 = vpop.permute.xlu1 %366  ;;  %v382_v23 = vsel %vm376_vm4, %v6383_v50, %v365_v18 }
  0xf4   :  { %800 = vrot.lane.b32.xlu0 %v489_v7, %s6045_s15  ;;  %v383_v27 = vsel %vm376_vm4, %v365_v18, %v367_v43  ;;  %v586_v33 = vsel %vm496_vm1, %v346_v21, %v382_v23 }
  0xf5   :  { %706 = vrot.lane.b32.xlu1 %v514_v28, %s6045_s15  ;;  %v589_v47 = vsel %vm496_vm1, %v347_v55, %v383_v27 }
  0xf6   :  { %v333_v12 = vpop.permute.xlu0 %332 }
  0xf7   :  { %v6641_v37 = vpop.permute.xlu1 %334  ;;  %v348_v24 = vsel %vm340_vm5, %v331_v31, %v333_v12 }
  0xf8   :  { %708 = vrot.lane.b32.xlu0 %v517_v30, %s6045_s15  ;;  %v349_v62 = vsel %vm340_vm5, %v333_v12, %v6641_v37 }
  0xf9   :  { %710 = vrot.lane.b32.xlu1 %v520_v6, %s6045_s15 }
  0xfa   :  { %v369_v40 = vpop.permute.xlu0 %368 }
  0xfb   :  { %v6657_v13 = vpop.permute.xlu1 %370  ;;  %v384_v50 = vsel %vm376_vm4, %v367_v43, %v369_v40 }
  0xfc   :  { %712 = vrot.lane.b32.xlu0 %v523_v9, %s6045_s15  ;;  %v385_v52 = vsel %vm376_vm4, %v369_v40, %v6657_v13  ;;  %v592_v51 = vsel %vm496_vm1, %v348_v24, %v384_v50 }
  0xfd   :  { %730 = vrot.lane.b32.xlu1 %v550_v14, %s6045_s15  ;;  %v595_v34 = vsel %vm496_vm1, %v349_v62, %v385_v52 }
  0xfe   :  { %v401_v32 = vpop.permute.xlu0 %400 }
  0xff   :  { %v403_v38 = vpop.permute.xlu1 %402  ;;  %v418_v63 = vsel %vm412_vm7, %v6425_v61, %v401_v32 }
 0x100   :  { %732 = vrot.lane.b32.xlu0 %v553_v16, %s6045_s15  ;;  %v419_v31 = vsel %vm412_vm7, %v401_v32, %v403_v38 }
 0x101   :  { %734 = vrot.lane.b32.xlu1 %v556_v22, %s6045_s15 }
 0x102   :  { %v437_v8 = vpop.permute.xlu0 %436 }
 0x103   :  { %v439_v46 = vpop.permute.xlu1 %438  ;;  %v454_v57 = vsel %vm448_vm6, %v6443_v4, %v437_v8 }
 0x104   :  { %736 = vrot.lane.b32.xlu0 %v559_v59, %s6045_s15  ;;  %v455_v0 = vsel %vm448_vm6, %v437_v8, %v439_v46  ;;  %v622_v26 = vsel %vm496_vm1, %v418_v63, %v454_v57 }
 0x105   :  { %754 = vrot.lane.b32.xlu1 %v586_v33, %s6045_s15  ;;  %v625_v15 = vsel %vm496_vm1, %v419_v31, %v455_v0 }
 0x106   :  { %v405_v25 = vpop.permute.xlu0 %404 }
 0x107   :  { %v6691_v54 = vpop.permute.xlu1 %406  ;;  %v420_v11 = vsel %vm412_vm7, %v403_v38, %v405_v25 }
 0x108   :  { %756 = vrot.lane.b32.xlu0 %v589_v47, %s6045_s15  ;;  %v421_v7 = vsel %vm412_vm7, %v405_v25, %v6691_v54 }
 0x109   :  { %758 = vrot.lane.b32.xlu1 %v592_v51, %s6045_s15 }
 0x10a   :  { %v441_v29 = vpop.permute.xlu0 %440 }
 0x10b   :  { %v6705_v53 = vpop.permute.xlu1 %442  ;;  %v456_v4 = vsel %vm448_vm6, %v439_v46, %v441_v29 }
 0x10c   :  { %760 = vrot.lane.b32.xlu0 %v595_v34, %s6045_s15  ;;  %v457_v18 = vsel %vm448_vm6, %v441_v29, %v6705_v53  ;;  %v628_v43 = vsel %vm496_vm1, %v420_v11, %v456_v4  ;;  %v1245_v29 = vlaneseq }
 0x10d   :  { %778 = vrot.lane.b32.xlu1 %v622_v26, %s6045_s15  ;;  %v631_v20 = vsel %vm496_vm1, %v421_v7, %v457_v18  ;;  %v147_v18 = vld [vmem:[%s10762_s3 + $0x8] sm:$0xf] }
 0x10e   :  { %v473_v2 = vpop.permute.xlu0 %472  ;;  %v1246_v26 = vshrl.u32 %v1245_v29, 7 }
 0x10f   :  { %v475_v61 = vpop.permute.xlu1 %474  ;;  %v490_v12 = vsel %vm484_vm8, %v6503_v60, %v473_v2 }
 0x110   :  { %780 = vrot.lane.b32.xlu0 %v625_v15, %s6045_s15  ;;  %v491_v6 = vsel %vm484_vm8, %v473_v2, %v475_v61  ;;  %v6791_v2 = vsub.s32 0, %v1246_v26  ;;  %v6793_v11 = vsub.s32 2, %v1246_v26  ;;  %v6797_v15 = vsub.s32 6, %v1246_v26 }
 0x111   :  { %782 = vrot.lane.b32.xlu1 %v628_v43, %s6045_s15 }
 0x112   :  { %v477_v42 = vpop.permute.xlu0 %476  ;;  %10907 = vst [vmem:[#allocation4_spill] sm:$0xff] %v6791_v2  ;;  %10908 = vst [vmem:[#allocation5_spill] sm:$0xff] %v6793_v11 }
 0x113   :  { %v6723_v28 = vpop.permute.xlu1 %478  ;;  %v492_v10 = vsel %vm484_vm8, %v475_v61, %v477_v42  ;;  %v6795_v61 = vsub.s32 4, %v1246_v26  ;;  %10910 = vst [vmem:[#allocation7_spill] sm:$0xff] %v6797_v15 }
 0x114   :  { %784 = vrot.lane.b32.xlu0 %v631_v20, %s6045_s15  ;;  %v493_v60 = vsel %vm484_vm8, %v477_v42, %v6723_v28 }
 0x115   :  { %802 = vrot.lane.b32.xlu1 %v490_v12, %s6045_s15  ;;  %10909 = vst [vmem:[#allocation6_spill] sm:$0xff] %v6795_v61 }
 0x116   :  { %v229_v30 = vpop.permute.xlu0 %228 }
 0x117   :  { %v231_v1 = vpop.permute.xlu1 %230  ;;  %v242_v40 = vsel %vm232_vm0, %v6543_v48, %v229_v30 }
 0x118   :  { %804 = vrot.lane.b32.xlu0 %v491_v6, %s6045_s15  ;;  %v243_v44 = vsel %vm232_vm0, %v229_v30, %v231_v1  ;;  %v526_v14 = vsel %vm496_vm1, %v6248_v17, %v242_v40  ;;  %v532_v36 = vsel %vm496_vm1, %v6348_v39, %v231_v1 }
 0x119   :  { %806 = vrot.lane.b32.xlu1 %v492_v10, %s6045_s15  ;;  %v529_v48 = vsel %vm496_vm1, %v6354_v41, %v243_v44  ;;  %v150_v10 = vunpack.c.l.bf16 %v147_v18 }
 0x11a   :  { %v265_v19 = vpop.permute.xlu0 %264 }
 0x11b   :  { %v267_v9 = vpop.permute.xlu1 %266  ;;  %v278_v17 = vsel %vm268_vm3, %v6597_v56, %v265_v19 }
 0x11c   :  { %808 = vrot.lane.b32.xlu0 %v493_v60, %s6045_s15  ;;  %v279_v49 = vsel %vm268_vm3, %v265_v19, %v267_v9  ;;  %v642_v19 = vld [vmem:[%s10764_s5] sm:$0xff] }
 0x11d   :  { %714 = vrot.lane.b32.xlu1 %v526_v14, %s6045_s15 }
 0x11e   :  { %v301_v35 = vpop.permute.xlu0 %300 }
 0x11f   :  { %v303_v3 = vpop.permute.xlu1 %302  ;;  %v314_v32 = vsel %vm304_vm2, %v6607_v58, %v301_v35 }
 0x120   :  { %716 = vrot.lane.b32.xlu0 %v529_v48, %s6045_s15  ;;  %v315_v38 = vsel %vm304_vm2, %v301_v35, %v303_v3  ;;  %v562_v41 = vsel %vm496_vm1, %v278_v17, %v314_v32  ;;  %v568_v8 = vsel %vm496_vm1, %v267_v9, %v303_v3 }
 0x121   :  { %718 = vrot.lane.b32.xlu1 %v532_v36, %s6045_s15  ;;  %v565_v58 = vsel %vm496_vm1, %v279_v49, %v315_v38 }
 0x122   :  { %v337_v16 = vpop.permute.xlu0 %336 }
 0x123   :  { %v339_v22 = vpop.permute.xlu1 %338  ;;  %v350_v23 = vsel %vm340_vm5, %v6641_v37, %v337_v16 }
 0x124   :  { %738 = vrot.lane.b32.xlu0 %v562_v41, %s6045_s15  ;;  %v351_v59 = vsel %vm340_vm5, %v337_v16, %v339_v22  ;;  %v1284_v41 = vrot.slane %v150_v10, %v6793_v11 }
 0x125   :  { %740 = vrot.lane.b32.xlu1 %v565_v58, %s6045_s15 }
 0x126   :  { %v373_v39 = vpop.permute.xlu0 %372 }
 0x127   :  { %v386_v45 = vsel %vm376_vm4, %v6657_v13, %v373_v39  ;;  %v375_v56 = vpop.permute.xlu1 %374 }
 0x128   :  { %v387_v21 = vsel %vm376_vm4, %v373_v39, %v375_v56  ;;  %742 = vrot.lane.b32.xlu0 %v568_v8, %s6045_s15  ;;  %v598_v46 = vsel %vm496_vm1, %v350_v23, %v386_v45  ;;  %v604_v13 = vsel %vm496_vm1, %v339_v22, %v375_v56  ;;  %v1280_v22 = vrot.slane %v150_v10, %v6791_v2 }
 0x129   :  { %762 = vrot.lane.b32.xlu1 %v598_v46, %s6045_s15  ;;  %v601_v37 = vsel %vm496_vm1, %v351_v59, %v387_v21  ;;  %v1288_v45 = vrot.slane %v150_v10, %v6795_v61  ;;  %v1292_v56 = vrot.slane %v150_v10, %v6797_v15  ;;  %v1344_v59 = vrot.slane %v1284_v41, %v6791_v2 }
 0x12a   :  { %v409_v27 = vpop.permute.xlu0 %408  ;;  %v1340_v46 = vrot.slane %v1280_v22, %v6791_v2 }
 0x12b   :  { %v411_v33 = vpop.permute.xlu1 %410  ;;  %v422_v55 = vsel %vm412_vm7, %v6691_v54, %v409_v27  ;;  %v146_v54 = vld [vmem:[%s10762_s3] sm:$0xff] }
 0x12c   :  { %764 = vrot.lane.b32.xlu0 %v601_v37, %s6045_s15  ;;  %v423_v47 = vsel %vm412_vm7, %v409_v27, %v411_v33  ;;  %v148_v0 = vunpack.c.l.bf16 %v146_v54  ;;  %v149_v4 = vunpack.c.h.bf16 %v146_v54 }
 0x12d   :  { %766 = vrot.lane.b32.xlu1 %v604_v13, %s6045_s15 }
 0x12e   :  { %v445_v50 = vpop.permute.xlu0 %444  ;;  %v1256_v20 = vrot.slane %v148_v0, %v6795_v61  ;;  %v1248_v12 = vrot.slane %v148_v0, %v6791_v2  ;;  %v1260_v30 = vrot.slane %v148_v0, %v6797_v15  ;;  %v1264_v1 = vrot.slane %v149_v4, %v6791_v2 }
 0x12f   :  { %v458_v25 = vsel %vm448_vm6, %v6705_v53, %v445_v50  ;;  %v447_v24 = vpop.permute.xlu1 %446  ;;  %v1268_v6 = vrot.slane %v149_v4, %v6793_v11  ;;  %v1272_v14 = vrot.slane %v149_v4, %v6795_v61  ;;  %v1276_v17 = vrot.slane %v149_v4, %v6797_v15 }
 0x130   :  { %v459_v52 = vsel %vm448_vm6, %v445_v50, %v447_v24  ;;  %v634_v51 = vsel %vm496_vm1, %v422_v55, %v458_v25  ;;  %v640_v34 = vsel %vm496_vm1, %v411_v33, %v447_v24  ;;  %v1316_v60 = vrot.slane %v1256_v20, %v6791_v2 }
 0x131   :  { %786 = vrot.lane.b32.xlu0 %v634_v51, %s6045_s15  ;;  %v637_v57 = vsel %vm496_vm1, %v423_v47, %v459_v52  ;;  %v1308_v44 = vrot.slane %v1248_v12, %v6791_v2  ;;  %v1320_v48 = vrot.slane %v1260_v30, %v6791_v2  ;;  %v1324_v32 = vrot.slane %v1264_v1, %v6791_v2 }
 0x132   :  { %788 = vrot.lane.b32.xlu1 %v637_v57, %s6045_s15  ;;  %v481_v62 = vpop.permute.xlu0 %480  ;;  %v1328_v36 = vrot.slane %v1268_v6, %v6791_v2  ;;  %v1332_v49 = vrot.slane %v1272_v14, %v6791_v2  ;;  %v1336_v23 = vrot.slane %v1276_v17, %v6791_v2  ;;  %v6839_v33 = vpack.i.bf16 %v1344_v59, %v1340_v46 }
 0x133   :  { %v483_v63 = vpop.permute.xlu1 %482  ;;  %v494_v53 = vsel %vm484_vm8, %v6723_v28, %v481_v62  ;;  %v1252_v28 = vrot.slane %v148_v0, %v6793_v11  ;;  %v5958_v39 = vpack.i.bf16 %v1308_v44, %v1320_v48  ;;  %v1348_v50 = vrot.slane %v1288_v45, %v6791_v2 }
 0x134   :  { %v495_v7 = vsel %vm484_vm8, %v481_v62, %v483_v63  ;;  %v5963_v16 = vpack.i.bf16 %v1328_v36, %v1324_v32  ;;  %v6842_v13 = vpack.i.bf16 %v1336_v23, %v1332_v49  ;;  %v1352_v55 = vrot.slane %v1292_v56, %v6791_v2 }
 0x135   :  { %790 = vrot.lane.b32.xlu0 %v640_v34, %s6045_s15  ;;  %v1312_v9 = vrot.slane %v1252_v28, %v6791_v2 }
 0x136   :  { %810 = vrot.lane.b32.xlu1 %v494_v53, %s6045_s15  ;;  %v699_v31 = vpop.permute.xlu0 %698  ;;  %v6852_v51 = vpack.i.bf16 %v1352_v55, %v1348_v50  ;;  %v1903_v53 = vld [vmem:[%s10766_s7] sm:$0xff] }
 0x137   :  { %v701_v43 = vpop.permute.xlu1 %700  ;;  %v5953_v38 = vpack.i.bf16 %v1316_v60, %v1312_v9 }
 0x138   :  { %v818_v42 = vsel %vm816_vm9, %v699_v31, %v701_v43 }
 0x139   :  { %960 = vmatprep.subr.bf16.mxu0 %v818_v42  ;;  %812 = vrot.lane.b32.xlu0 %v495_v7, %s6045_s15 }
 0x13a   :  { %814 = vrot.lane.b32.xlu1 %v483_v63, %s6045_s15  ;;  %v697_v40 = vpop.permute.xlu0 %696 }
 0x13b   :  { %v703_v35 = vpop.permute.xlu1 %702  ;;  %v817_v3 = vsel %vm816_vm9, %v697_v40, %v699_v31 }
 0x13c   :  { %961 = vmatpush1.bf16.msra.mxu0 %v817_v3  ;;  %v819_v27 = vsel %vm816_vm9, %v701_v43, %v703_v35  ;;  %v6888_v3 = vld [vmem:[%s10763_s4] sm:$0xf] }
 0x13d   :  { %645 = vperm.xlu0 %5952, %v642_v19  }
 0x13e   :  { %v6827_v58 = vpop.permute.xlu0 %704  ;;  %5954 = vrot.lane.b32.xlu1 %v5953_v38, %s6047_s25 }
 0x13f   :  { %v723_v8 = vpop.permute.xlu1 %722  ;;  %v820_v21 = vsel %vm816_vm9, %v703_v35, %v6827_v58 }
 0x140   :  { %1001 = vmatprep.subr.bf16.mxu1 %v820_v21 }
 0x141   :  { %1002 = vmatpush1.bf16.msra.mxu1 %v819_v27  ;;  %5964 = vrot.lane.b32.xlu0 %v5963_v16, %s6047_s25 }
 0x142   :  { %v725_v37 = vpop.permute.xlu0 %724  ;;  %5959 = vrot.lane.b32.xlu1 %v5958_v39, %s6047_s25 }
 0x143   :  { %v721_v25 = vpop.permute.xlu1 %720  ;;  %v829_v24 = vsel %vm816_vm9, %v723_v8, %v725_v37 }
 0x144   :  { %962 = vmatprep.subr.bf16.mxu0 %v829_v24  ;;  %v828_v47 = vsel %vm816_vm9, %v721_v25, %v723_v8 }
 0x145   :  { %963 = vmatpush1.bf16.msra.mxu0 %v828_v47  ;;  %5974 = vrot.lane.b32.xlu0 %v6839_v33, %s6047_s25 }
 0x146   :  { %v727_v52 = vpop.permute.xlu0 %726  ;;  %5969 = vrot.lane.b32.xlu1 %v6842_v13, %s6047_s25 }
 0x147   :  { %v6854_v57 = vpop.permute.xlu1 %728  ;;  %v830_v62 = vsel %vm816_vm9, %v725_v37, %v727_v52 }
 0x148   :  { %v831_v54 = vsel %vm816_vm9, %v727_v52, %v6854_v57 }
 0x149   :  { %1003 = vmatprep.subr.bf16.mxu1 %v831_v54  ;;  %5985 = vrot.lane.b32.xlu0 %v5953_v38, %s6048_s11 }
 0x14a   :  { %1004 = vmatpush1.bf16.msra.mxu1 %v830_v62  ;;  %v747_v29 = vpop.permute.xlu0 %746  ;;  %5979 = vrot.lane.b32.xlu1 %v6852_v51, %s6047_s25 }
 0x14b   :  { %v749_v63 = vpop.permute.xlu1 %748 }
 0x14c   :  { %v840_v34 = vsel %vm816_vm9, %v747_v29, %v749_v63 }
 0x14d   :  { %964 = vmatprep.subr.bf16.mxu0 %v840_v34  ;;  %5995 = vrot.lane.b32.xlu0 %v5963_v16, %s6048_s11 }
 0x14e   :  { %v745_v0 = vpop.permute.xlu0 %744  ;;  %1906 = vperm.xlu1 %5983, %v1903_v53  }
 0x14f   :  { %v751_v26 = vpop.permute.xlu1 %750  ;;  %v839_v4 = vsel %vm816_vm9, %v745_v0, %v747_v29 }
 0x150   :  { %965 = vmatpush1.bf16.msra.mxu0 %v839_v4  ;;  %v841_v7 = vsel %vm816_vm9, %v749_v63, %v751_v26 }
 0x151   :  { %6005 = vrot.lane.b32.xlu0 %v6839_v33, %s6048_s11 }
 0x152   :  { %v6868_v31 = vpop.permute.xlu0 %752  ;;  %5990 = vrot.lane.b32.xlu1 %v5958_v39, %s6048_s11 }
 0x153   :  { %v771_v18 = vpop.permute.xlu1 %770  ;;  %v842_v43 = vsel %vm816_vm9, %v751_v26, %v6868_v31 }
 0x154   :  { %1005 = vmatprep.subr.bf16.mxu1 %v842_v43 }
 0x155   :  { %1006 = vmatpush1.bf16.msra.mxu1 %v841_v7 }
 0x156   :  { %v773_v42 = vpop.permute.xlu0 %772  ;;  %6000 = vrot.lane.b32.xlu1 %v6842_v13, %s6048_s11 }
 0x157   :  { %v769_v28 = vpop.permute.xlu1 %768  ;;  %v851_v20 = vsel %vm816_vm9, %v771_v18, %v773_v42 }
 0x158   :  { %966 = vmatprep.subr.bf16.mxu0 %v851_v20  ;;  %v850_v12 = vsel %vm816_vm9, %v769_v28, %v771_v18 }
 0x159   :  { %967 = vmatpush1.bf16.msra.mxu0 %v850_v12 }
 0x15a   :  { %v775_v30 = vpop.permute.xlu0 %774  ;;  %6010 = vrot.lane.b32.xlu1 %v6852_v51, %s6048_s11 }
 0x15b   :  { %v6876_v1 = vpop.permute.xlu1 %776  ;;  %v852_v6 = vsel %vm816_vm9, %v773_v42, %v775_v30 }
 0x15c   :  { %v853_v10 = vsel %vm816_vm9, %v775_v30, %v6876_v1 }
 0x15d   :  { %1007 = vmatprep.subr.bf16.mxu1 %v853_v10 }
 0x15e   :  { %1008 = vmatpush1.bf16.msra.mxu1 %v852_v6  ;;  %v793_v40 = vpop.permute.xlu0 %792 }
 0x15f   :  { %v795_v19 = vpop.permute.xlu1 %794 }
 0x160   :  { %v861_v9 = vsel %vm816_vm9, %v793_v40, %v795_v19 }
 0x161   :  { %v925_v35 = vsel %vm496_vm1, %v861_v9, 0 }
 0x162   :  { %v797_v60 = vpop.permute.xlu0 %796 }
 0x163   :  { %v799_v44 = vpop.permute.xlu1 %798  ;;  %v862_v14 = vsel %vm816_vm9, %v795_v19, %v797_v60 }
 0x164   :  { %5807 = vmatprep.subr.msk.bf16.mxu0 %vm496_vm1, %v862_v14  ;;  %v863_v48 = vsel %vm816_vm9, %v797_v60, %v799_v44 }
 0x165   :  { %969 = vmatpush1.bf16.msra.mxu0 %v925_v35  ;;  %v931_v17 = vsel %vm496_vm1, %v863_v48, 0 }
 0x166   :  { %v801_v32 = vpop.permute.xlu0 %800 }
 0x167   :  { %v707_v36 = vpop.permute.xlu1 %706  ;;  %v864_v38 = vsel %vm816_vm9, %v799_v44, %v801_v32 }
 0x168   :  { %5808 = vmatmul.mubr.msk.bf16.vlgmr.msra.gmra.mrb[0].mxu0 %vm920_vm10, %v6888_v3  ;;  %5809 = vmatprep.subr.msk.bf16.mxu1 %vm496_vm1, %v864_v38  ;;  %v821_v41 = vsel %vm816_vm9, %v6827_v58, %v707_v36 }
 0x169   :  { %1010 = vmatpush1.bf16.msra.mxu1 %v931_v17  ;;  %1074 = vmatprep.mubr.bf16.mxu0 %v10770_v5 }
 0x16a   :  { %v709_v16 = vpop.permute.xlu0 %708 }
 0x16b   :  { %v711_v49 = vpop.permute.xlu1 %710  ;;  %v822_v22 = vsel %vm816_vm9, %v707_v36, %v709_v16 }
 0x16c   :  { %5810 = vmatmul.mubr.msk.bf16.vlgmr.msra.gmra.mrb[0].mxu1 %vm920_vm10, %v6888_v3  ;;  %1042 = vmatprep.subr.bf16.mxu0 %v822_v22  ;;  %v823_v56 = vsel %vm816_vm9, %v709_v16, %v711_v49 }
 0x16d   :  { %1043 = vmatpush1.bf16.msra.mxu0 %v821_v41  ;;  %1115 = vmatprep.mubr.bf16.mxu1 %v10770_v5 }
 0x16e   :  { %v6903_v39 = vpop.permute.xlu0 %712 }
 0x16f   :  { %v731_v23 = vpop.permute.xlu1 %730  ;;  %v824_v45 = vsel %vm816_vm9, %v711_v49, %v6903_v39 }
 0x170   :  { %1083 = vmatprep.subr.bf16.mxu1 %v824_v45  ;;  %v832_v58 = vsel %vm816_vm9, %v6854_v57, %v731_v23 }
 0x171   :  { %1084 = vmatpush1.bf16.msra.mxu1 %v823_v56 }
 0x172   :  { %v733_v8 = vpop.permute.xlu0 %732 }
 0x173   :  { %v735_v21 = vpop.permute.xlu1 %734  ;;  %v833_v46 = vsel %vm816_vm9, %v731_v23, %v733_v8 }
 0x174   :  { %1044 = vmatprep.subr.bf16.mxu0 %v833_v46  ;;  %v834_v50 = vsel %vm816_vm9, %v733_v8, %v735_v21 }
 0x175   :  { %1045 = vmatpush1.bf16.msra.mxu0 %v832_v58 }
 0x176   :  { %v737_v59 = vpop.permute.xlu0 %736 }
 0x177   :  { %v755_v27 = vpop.permute.xlu1 %754  ;;  %v835_v37 = vsel %vm816_vm9, %v735_v21, %v737_v59 }
 0x178   :  { %1085 = vmatprep.subr.bf16.mxu1 %v835_v37  ;;  %v843_v47 = vsel %vm816_vm9, %v6868_v31, %v755_v27 }
 0x179   :  { %1086 = vmatpush1.bf16.msra.mxu1 %v834_v50 }
 0x17a   :  { %v757_v55 = vpop.permute.xlu0 %756 }
 0x17b   :  { %v759_v25 = vpop.permute.xlu1 %758  ;;  %v844_v24 = vsel %vm816_vm9, %v755_v27, %v757_v55 }
 0x17c   :  { %1046 = vmatprep.subr.bf16.mxu0 %v844_v24  ;;  %v845_v54 = vsel %vm816_vm9, %v757_v55, %v759_v25  ;;  %v5840_v24 = vld [vmem:[%s10760_s1 + $0x28] sm:$0xff] }
 0x17d   :  { %1047 = vmatpush1.bf16.msra.mxu0 %v843_v47  ;;  %v6972_v47 = vcombine.low %v5840_v24, %v5840_v24 }
 0x17e   :  { %v761_v52 = vpop.permute.xlu0 %760 }
 0x17f   :  { %v779_v57 = vpop.permute.xlu1 %778  ;;  %v846_v62 = vsel %vm816_vm9, %v759_v25, %v761_v52  ;;  %3181 = vrot.lane.b32.xlu0 %v6972_v47, %s6037_s21 }
 0x180   :  { %1087 = vmatprep.subr.bf16.mxu1 %v846_v62  ;;  %v854_v34 = vsel %vm816_vm9, %v6876_v1, %v779_v57 }
 0x181   :  { %1088 = vmatpush1.bf16.msra.mxu1 %v845_v54 }
 0x182   :  { %v781_v29 = vpop.permute.xlu0 %780 }
 0x183   :  { %v783_v63 = vpop.permute.xlu1 %782  ;;  %v855_v53 = vsel %vm816_vm9, %v779_v57, %v781_v29 }
 0x184   :  { %1048 = vmatprep.subr.bf16.mxu0 %v855_v53  ;;  %v856_v31 = vsel %vm816_vm9, %v781_v29, %v783_v63 }
 0x185   :  { %1049 = vmatpush1.bf16.msra.mxu0 %v854_v34 }
 0x186   :  { %v785_v0 = vpop.permute.xlu0 %784 }
 0x187   :  { %v803_v26 = vpop.permute.xlu1 %802  ;;  %v857_v4 = vsel %vm816_vm9, %v783_v63, %v785_v0 }
 0x188   :  { %1089 = vmatprep.subr.bf16.mxu1 %v857_v4  ;;  %v865_v18 = vsel %vm816_vm9, %v801_v32, %v803_v26 }
 0x189   :  { %1090 = vmatpush1.bf16.msra.mxu1 %v856_v31  ;;  %v937_v28 = vsel %vm496_vm1, %v865_v18, 0 }
 0x18a   :  { %v805_v43 = vpop.permute.xlu0 %804 }
 0x18b   :  { %v807_v7 = vpop.permute.xlu1 %806  ;;  %v866_v42 = vsel %vm816_vm9, %v803_v26, %v805_v43 }
 0x18c   :  { %5811 = vmatprep.subr.msk.bf16.mxu0 %vm496_vm1, %v866_v42  ;;  %v867_v20 = vsel %vm816_vm9, %v805_v43, %v807_v7 }
 0x18d   :  { %1051 = vmatpush1.bf16.msra.mxu0 %v937_v28  ;;  %v943_v6 = vsel %vm496_vm1, %v867_v20, 0 }
 0x18e   :  { %v809_v12 = vpop.permute.xlu0 %808 }
 0x18f   :  { %v715_v30 = vpop.permute.xlu1 %714  ;;  %v868_v1 = vsel %vm816_vm9, %v807_v7, %v809_v12 }
 0x190   :  { %5812 = vmatmul.mubr.msk.bf16.vlgmr.msra.gmra.mrb[4].mxu0 %vm920_vm10, %v6888_v3  ;;  %5813 = vmatprep.subr.msk.bf16.mxu1 %vm496_vm1, %v868_v1  ;;  %v825_v60 = vsel %vm816_vm9, %v6903_v39, %v715_v30 }
 0x191   :  { %1092 = vmatpush1.bf16.msra.mxu1 %v943_v6  ;;  %1156 = vmatprep.mubr.bf16.mxu0 %v10770_v5 }
 0x192   :  { %v717_v10 = vpop.permute.xlu0 %716 }
 0x193   :  { %v719_v40 = vpop.permute.xlu1 %718  ;;  %v826_v19 = vsel %vm816_vm9, %v715_v30, %v717_v10 }
 0x194   :  { %1165 = vmatprep.subr.bf16.mxu1 %v719_v40  ;;  %5814 = vmatmul.mubr.msk.bf16.vlgmr.msra.gmra.mrb[4].mxu1 %vm920_vm10, %v6888_v3  ;;  %v827_v9 = vsel %vm816_vm9, %v717_v10, %v719_v40 }
 0x195   :  { %1124 = vmatprep.subr.bf16.mxu0 %v826_v19  ;;  %1166 = vmatpush1.bf16.msra.mxu1 %v827_v9 }
 0x196   :  { %1125 = vmatpush1.bf16.msra.mxu0 %v825_v60  ;;  %v739_v44 = vpop.permute.xlu0 %738  ;;  %1197 = vmatprep.mubr.bf16.mxu1 %v10770_v5 }
 0x197   :  { %v741_v14 = vpop.permute.xlu1 %740  ;;  %v836_v35 = vsel %vm816_vm9, %v737_v59, %v739_v44 }
 0x198   :  { %v837_v48 = vsel %vm816_vm9, %v739_v44, %v741_v14 }
 0x199   :  { %1126 = vmatprep.subr.bf16.mxu0 %v837_v48 }
 0x19a   :  { %1127 = vmatpush1.bf16.msra.mxu0 %v836_v35  ;;  %v743_v32 = vpop.permute.xlu0 %742 }
 0x19b   :  { %1167 = vmatprep.subr.bf16.mxu1 %v743_v32  ;;  %v763_v36 = vpop.permute.xlu1 %762  ;;  %v838_v38 = vsel %vm816_vm9, %v741_v14, %v743_v32 }
 0x19c   :  { %1168 = vmatpush1.bf16.msra.mxu1 %v838_v38  ;;  %v847_v22 = vsel %vm816_vm9, %v761_v52, %v763_v36 }
 0x19e   :  { %v765_v17 = vpop.permute.xlu0 %764 }
 0x19f   :  { %v767_v16 = vpop.permute.xlu1 %766  ;;  %v848_v49 = vsel %vm816_vm9, %v763_v36, %v765_v17 }
 0x1a0   :  { %1128 = vmatprep.subr.bf16.mxu0 %v848_v49  ;;  %1169 = vmatprep.subr.bf16.mxu1 %v767_v16  ;;  %v849_v41 = vsel %vm816_vm9, %v765_v17, %v767_v16 }
 0x1a1   :  { %1129 = vmatpush1.bf16.msra.mxu0 %v847_v22  ;;  %1170 = vmatpush1.bf16.msra.mxu1 %v849_v41 }
 0x1a3   :  { %v787_v39 = vpop.permute.xlu0 %786 }
 0x1a4   :  { %v789_v23 = vpop.permute.xlu1 %788  ;;  %v858_v45 = vsel %vm816_vm9, %v785_v0, %v787_v39 }
 0x1a5   :  { %v859_v56 = vsel %vm816_vm9, %v787_v39, %v789_v23 }
 0x1a6   :  { %1130 = vmatprep.subr.bf16.mxu0 %v859_v56 }
 0x1a7   :  { %1131 = vmatpush1.bf16.msra.mxu0 %v858_v45  ;;  %v791_v8 = vpop.permute.xlu0 %790 }
 0x1a8   :  { %v811_v21 = vpop.permute.xlu1 %810  ;;  %1171 = vmatprep.subr.bf16.mxu1 %v791_v8  ;;  %v860_v46 = vsel %vm816_vm9, %v789_v23, %v791_v8 }
 0x1a9   :  { %1172 = vmatpush1.bf16.msra.mxu1 %v860_v46  ;;  %v869_v58 = vsel %vm816_vm9, %v809_v12, %v811_v21 }
 0x1aa   :  { %v949_v55 = vsel %vm496_vm1, %v869_v58, 0 }
 0x1ab   :  { %v813_v59 = vpop.permute.xlu0 %812 }
 0x1ac   :  { %v815_v27 = vpop.permute.xlu1 %814  ;;  %v870_v37 = vsel %vm816_vm9, %v811_v21, %v813_v59 }
 0x1ad   :  { %v871_v50 = vsel %vm816_vm9, %v813_v59, %v815_v27  ;;  %5817 = vmatprep.subr.msk.bf16.mxu1 %vm496_vm1, %v815_v27  ;;  %5815 = vmatprep.subr.msk.bf16.mxu0 %vm496_vm1, %v870_v37 }
 0x1ae   :  { %1133 = vmatpush1.bf16.msra.mxu0 %v949_v55  ;;  %v955_v25 = vsel %vm496_vm1, %v871_v50, 0 }
 0x1af   :  { %1174 = vmatpush1.bf16.msra.mxu1 %v955_v25 }
 0x1b0   :  { %v5955_v33 = vpop.permute.xlu1 %5954 }
 0x1b1   :  { %5816 = vmatmul.mubr.msk.bf16.vlgmr.msra.gmra.mrb[8].mxu0 %vm920_vm10, %v6888_v3  ;;  %v5957_v63 = vunpack.i.h.bf16 %v5955_v33  ;;  %v5956_v43 = vunpack.i.l.bf16 %v5955_v33 }
 0x1b2   :  { %5818 = vmatmul.mubr.msk.bf16.vlgmr.msra.gmra.mrb[8].mxu1 %vm920_vm10, %v6888_v3  ;;  %1977 = vmatprep.mubr.bf16.mxu0 %v10770_v5  ;;  %v6974_v3 = vcombine.high %v5840_v24, %v5840_v24 }
 0x1b3   :  { %2018 = vmatprep.mubr.bf16.mxu1 %v10770_v5  ;;  %v7038_v49 = vsel %vm1389_vm11, %v5956_v43, %v5957_v63 }
 0x1b4   :  { %3183 = vrot.lane.b32.xlu1 %v6974_v3, %s6037_s21  ;;  %v5960_v51 = vpop.permute.xlu1 %5959  ;;  %10917 = vst [vmem:[#allocation14_spill] sm:$0xff] %v7038_v49 }
 0x1b5   :  { %v5961_v34 = vunpack.i.l.bf16 %v5960_v51  ;;  %v5962_v7 = vunpack.i.h.bf16 %v5960_v51  ;;  %v40_v51 = vld [vmem:[%s10759_s0 + $0x28] sm:$0xf] }
 0x1b6   :  { %41 = vst [vmem:[#allocation2 + $0x4] sm:$0xf] %v40_v51 }
 0x1b7   :  { %v6985_v20 = vsel %vm1389_vm11, %v5957_v63, %v5961_v34  ;;  %v6998_v40 = vsel %vm1389_vm11, %v5962_v7, %v5956_v43 }
 0x1b8   :  { %10911 = vst [vmem:[#allocation8_spill] sm:$0xff] %v6985_v20  ;;  %10913 = vst [vmem:[#allocation10_spill] sm:$0xff] %v6998_v40  ;;  %v7068_v27 = vpop.permute.xlu1 %5969 }
 0x1b9   :  { %v5972_v50 = vunpack.i.h.bf16 %v7068_v27  ;;  %v5971_v25 = vunpack.i.l.bf16 %v7068_v27 }
 0x1bc   :  { %v6980_v13 = vpop.permute.xlu0 %645 }
 0x1c0   :  { %v6991_v1 = vpop.permute.xlu0 %5964 }
 0x1c1   :  { %v5966_v9 = vunpack.i.l.bf16 %v6991_v1 }
 0x1c3   :  { %v7012_v35 = vsel %vm1389_vm11, %v5961_v34, %v5966_v9 }
 0x1c4   :  { %10915 = vst [vmem:[#allocation12_spill] sm:$0xff] %v7012_v35  ;;  %v7118_v7 = vpop.permute.xlu0 %5974 }
 0x1c5   :  { %v5977_v2 = vunpack.i.h.bf16 %v7118_v7 }
 0x23b   :  { %v994_v52 = vpop.f32.mrb[0].mxu0 }
 0x23c   :  { %v996_v57 = vpop.f32.mrb[1].mxu0  ;;  %v995_v53 = vadd.f32 %v994_v52, %v6980_v13  ;;  %v7079_v52 = vsel %vm1389_vm11, %v5971_v25, %v5972_v50 }
 0x23d   :  { %v998_v62 = vpop.f32.mrb[2].mxu0  ;;  %v997_v36 = vadd.f32 %v996_v57, %v6980_v13  ;;  %10919 = vst [vmem:[#allocation16_spill] sm:$0xff] %v7079_v52 }
 0x23e   :  { %v999_v54 = vpop.f32.mrb[3].mxu0  ;;  %v1218_v42 = vmul.f32 0.1, %v995_v53  ;;  %vm1206_vm13 = vcmp.ge.f32.partialorder %v995_v53, 0.0 }
 0x23f   :  { %v1035_v29 = vpop.f32.mrb[0].mxu1  ;;  %v1219_v17 = vmul.f32 0.1, %v997_v36  ;;  %vm1207_vm15 = vcmp.ge.f32.partialorder %v997_v36, 0.0 }
 0x240   :  { %v1036_v0 = vadd.f32 %v1035_v29, %v6980_v13  ;;  %v1037_v26 = vpop.f32.mrb[1].mxu1  ;;  %v1230_v10 = vsel %vm1206_vm13, %v995_v53, %v1218_v42 }
 0x241   :  { %v1039_v4 = vpop.f32.mrb[2].mxu1  ;;  %v1038_v12 = vadd.f32 %v1037_v26, %v6980_v13  ;;  %v7006_v60 = vmul.f32 %v6998_v40, %v1230_v10  ;;  %v1231_v16 = vsel %vm1207_vm15, %v997_v36, %v1219_v17  ;;  %v10773_v10 = vunpack.i.l.bf16 %v7118_v7 }
 0x242   :  { %vm1208_vm12 = vcmp.ge.f32.partialorder %v1036_v0, 0.0  ;;  %v1220_v31 = vmul.f32 0.1, %v1036_v0  ;;  %v1040_v18 = vpop.f32.mrb[3].mxu1  ;;  %v7045_v22 = vmul.f32 %v7038_v49, %v1231_v16 }
 0x243   :  { %v1221_v19 = vmul.f32 0.1, %v1038_v12  ;;  %vm1209_vm14 = vcmp.ge.f32.partialorder %v1038_v12, 0.0  ;;  %10914 = vst [vmem:[#allocation11_spill] sm:$0xff] %v7006_v60  ;;  %v7019_v48 = vpack.c.bf16 %v7006_v60, %v7006_v60  ;;  %v7129_v36 = vsel %vm1389_vm11, %v5972_v50, %v10773_v10 }
 0x244   :  { %v1232_v28 = vsel %vm1208_vm12, %v1036_v0, %v1220_v31  ;;  %10918 = vst [vmem:[#allocation15_spill] sm:$0xff] %v7045_v22  ;;  %v7053_v41 = vpack.c.bf16 %v7045_v22, %v7045_v22  ;;  %10921 = vst [vmem:[#allocation18_spill] sm:$0xff] %v7129_v36 }
 0x245   :  { %v6989_v30 = vmul.f32 %v6985_v20, %v1232_v28  ;;  %v1233_v14 = vsel %vm1209_vm14, %v1038_v12, %v1221_v19  ;;  %v1448_v54 = vrot.slane %v7019_v48, 4  ;;  %v5967_v19 = vunpack.i.h.bf16 %v6991_v1 }
 0x246   :  { %v7022_v32 = vmul.f32 %v7012_v35, %v1233_v14  ;;  %v1449_v37 = vrot.slane %v7053_v41, 4 }
 0x247   :  { %10912 = vst [vmem:[#allocation9_spill] sm:$0xff] %v6989_v30  ;;  %v6995_v6 = vpack.c.bf16 %v6989_v30, %v6989_v30  ;;  %v7136_v17 = vsel %vm1389_vm11, %v5966_v9, %v5967_v19  ;;  %v7154_v9 = vpop.permute.xlu1 %5979 }
 0x248   :  { %10916 = vst [vmem:[#allocation13_spill] sm:$0xff] %v7022_v32  ;;  %v7031_v38 = vpack.c.bf16 %v7022_v32, %v7022_v32  ;;  %10922 = vst [vmem:[#allocation19_spill] sm:$0xff] %v7136_v17  ;;  %v7190_v51 = vunpack.i.h.bf16 %v7154_v9 }
 0x249   :  { %1695 = vrot.lane.b32.xlu1 %v6995_v6, %s6044_s30  ;;  %1495 = vrot.lane.b32.xlu0 %v6995_v6, %s6038_s22  ;;  %v1450_v44 = vrot.slane %v6995_v6, 4 }
 0x24a   :  { %v1451_v24 = vrot.slane %v7031_v38, 4  ;;  %10930 = vst [vmem:[#allocation27_spill] sm:$0xff] %v7190_v51 }
 0x24d   :  { %1559 = vrot.lane.b32.xlu0 %v6995_v6, %s6040_s26  ;;  %1463 = vrot.lane.b32.xlu1 %v1450_v44, %s6037_s21 }
 0x251   :  { %1624 = vrot.lane.b32.xlu0 %v6995_v6, %s6042_s28  ;;  %1491 = vrot.lane.b32.xlu1 %v7019_v48, %s6038_s22 }
 0x255   :  { %1497 = vrot.lane.b32.xlu0 %v7031_v38, %s6038_s22  ;;  %1555 = vrot.lane.b32.xlu1 %v7019_v48, %s6040_s26 }
 0x259   :  { %1561 = vrot.lane.b32.xlu0 %v7031_v38, %s6040_s26  ;;  %1620 = vrot.lane.b32.xlu1 %v7019_v48, %s6042_s28 }
 0x25d   :  { %1626 = vrot.lane.b32.xlu0 %v7031_v38, %s6042_s28  ;;  %1691 = vrot.lane.b32.xlu1 %v7019_v48, %s6044_s30 }
 0x261   :  { %1697 = vrot.lane.b32.xlu0 %v7031_v38, %s6044_s30  ;;  %1493 = vrot.lane.b32.xlu1 %v7053_v41, %s6038_s22 }
 0x263   :  { %v1076_v39 = vpop.f32.mrb[4].mxu0 }
 0x264   :  { %v7059_v23 = vpop.f32.mrb[5].mxu0  ;;  %v1077_v18 = vadd.f32 %v1076_v39, %v6980_v13 }
 0x265   :  { %1527 = vrot.lane.b32.xlu0 %v1450_v44, %s6039_s23  ;;  %1557 = vrot.lane.b32.xlu1 %v7053_v41, %s6040_s26  ;;  %v1080_v45 = vpop.f32.mrb[6].mxu0 }
 0x266   :  { %v1081_v56 = vpop.f32.mrb[7].mxu0  ;;  %v1222_v28 = vmul.f32 0.1, %v1077_v18  ;;  %vm1210_vm13 = vcmp.ge.f32.partialorder %v1077_v18, 0.0 }
 0x267   :  { %v1117_v8 = vpop.f32.mrb[4].mxu1  ;;  %v7164_v56 = vpop.permute.xlu1 %1906 }
 0x268   :  { %v1118_v21 = vadd.f32 %v1117_v8, %v6980_v13  ;;  %v1119_v46 = vpop.f32.mrb[5].mxu1  ;;  %10925 = vst [vmem:[#allocation22_spill] sm:$0xff] %v7164_v56 }
 0x269   :  { %1591 = vrot.lane.b32.xlu0 %v1450_v44, %s6041_s27  ;;  %1622 = vrot.lane.b32.xlu1 %v7053_v41, %s6042_s28  ;;  %v1121_v58 = vpop.f32.mrb[6].mxu1  ;;  %v1120_v43 = vadd.f32 %v1119_v46, %v6980_v13 }
 0x26a   :  { %v1122_v59 = vpop.f32.mrb[7].mxu1  ;;  %v1224_v55 = vmul.f32 0.1, %v1118_v21  ;;  %vm1212_vm12 = vcmp.ge.f32.partialorder %v1118_v21, 0.0 }
 0x26b   :  { %v1225_v12 = vmul.f32 0.1, %v1120_v43  ;;  %vm1213_vm14 = vcmp.ge.f32.partialorder %v1120_v43, 0.0  ;;  %v7170_v8 = vpop.permute.xlu1 %5990  ;;  %v1079_v59 = vadd.f32 %v7059_v23, %v6980_v13 }
 0x26c   :  { %v1236_v33 = vsel %vm1212_vm12, %v1118_v21, %v1224_v55  ;;  %10926 = vst [vmem:[#allocation23_spill] sm:$0xff] %v7170_v8  ;;  %v7176_v21 = vpop.permute.xlu0 %5985 }
 0x26d   :  { %1660 = vrot.lane.b32.xlu0 %v1450_v44, %s6043_s29  ;;  %1525 = vrot.lane.b32.xlu1 %v1449_v37, %s6039_s23  ;;  %v7084_v57 = vmul.f32 %v7079_v52, %v1236_v33  ;;  %v1234_v44 = vsel %vm1210_vm13, %v1077_v18, %v1222_v28  ;;  %v1237_v14 = vsel %vm1213_vm14, %v1120_v43, %v1225_v12  ;;  %vm1211_vm15 = vcmp.ge.f32.partialorder %v1079_v59, 0.0 }
 0x26e   :  { %v7139_v16 = vmul.f32 %v7136_v17, %v1234_v44  ;;  %v7142_v39 = vmul.f32 %v7129_v36, %v1237_v14  ;;  %10927 = vst [vmem:[#allocation24_spill] sm:$0xff] %v7176_v21  ;;  %v7377_v36 = vld [vmem:[#allocation2 + $0x4] sm:$0xf] }
 0x26f   :  { %10920 = vst [vmem:[#allocation17_spill] sm:$0xff] %v7084_v57  ;;  %v7093_v62 = vpack.c.bf16 %v7084_v57, %v7084_v57  ;;  %v7185_v50 = vpop.permute.xlu1 %6000 }
 0x270   :  { %10923 = vst [vmem:[#allocation20_spill] sm:$0xff] %v7139_v16  ;;  %10924 = vst [vmem:[#allocation21_spill] sm:$0xff] %v7142_v39  ;;  %v7148_v45 = vpack.c.bf16 %v7139_v16, %v7139_v16  ;;  %v7152_v1 = vpack.c.bf16 %v7142_v39, %v7142_v39  ;;  %v7187_v55 = vpop.permute.xlu0 %5995  ;;  %v10940_v39 = vunpack.i.l.bf16 %v7118_v7  ;;  %v10943_v7 = vunpack.i.l.bf16 %v7154_v9 }
 0x271   :  { %1465 = vrot.lane.b32.xlu0 %v1451_v24, %s6037_s21  ;;  %1589 = vrot.lane.b32.xlu1 %v1449_v37, %s6041_s27  ;;  %v1454_v26 = vrot.slane %v7093_v62, 4  ;;  %10928 = vst [vmem:[#allocation25_spill] sm:$0xff] %v7185_v50  ;;  %10929 = vst [vmem:[#allocation26_spill] sm:$0xff] %v7187_v55 }
 0x272   :  { %v1452_v46 = vrot.slane %v7148_v45, 4  ;;  %v1455_v58 = vrot.slane %v7152_v1, 4  ;;  %v7295_v16 = vsel %vm1389_vm11, %v10940_v39, %v5977_v2  ;;  %v7309_v39 = vsel %vm1389_vm11, %v5977_v2, %v10943_v7 }
 0x273   :  { %v7195_v23 = vpop.permute.xlu1 %6010  ;;  %10941 = vst [vmem:[#allocation37_spill] sm:$0xff] %v7295_v16  ;;  %10944 = vst [vmem:[#allocation39_spill] sm:$0xff] %v7309_v39 }
 0x274   :  { %10931 = vst [vmem:[#allocation28_spill] sm:$0xff] %v7195_v23 }
 0x275   :  { %1529 = vrot.lane.b32.xlu0 %v1451_v24, %s6039_s23  ;;  %1658 = vrot.lane.b32.xlu1 %v1449_v37, %s6043_s29 }
 0x277   :  { %v7222_v28 = vpop.permute.xlu1 %3183 }
 0x278   :  { %10938 = vst [vmem:[#allocation35_spill] sm:$0xff] %v7222_v28 }
 0x279   :  { %1593 = vrot.lane.b32.xlu0 %v1451_v24, %s6041_s27  ;;  %1503 = vrot.lane.b32.xlu1 %v7093_v62, %s6038_s22 }
 0x27d   :  { %1662 = vrot.lane.b32.xlu0 %v1451_v24, %s6043_s29  ;;  %1567 = vrot.lane.b32.xlu1 %v7093_v62, %s6040_s26  ;;  %v1223_v24 = vmul.f32 0.1, %v1079_v59 }
 0x281   :  { %1693 = vrot.lane.b32.xlu0 %v7053_v41, %s6044_s30  ;;  %1632 = vrot.lane.b32.xlu1 %v7093_v62, %s6042_s28 }
 0x284   :  { %v7106_v29 = vpop.f32.mrb[8].mxu0 }
 0x285   :  { %v1199_v63 = vpop.f32.mrb[8].mxu1  ;;  %v7108_v53 = vpop.f32.mrb[9].mxu0  ;;  %1703 = vrot.lane.b32.xlu1 %v7093_v62, %s6044_s30  ;;  %1459 = vrot.lane.b32.xlu0 %v1448_v54, %s6037_s21 }
 0x286   :  { %v7113_v34 = vpop.f32.mrb[9].mxu1  ;;  %v1162_v0 = vpop.f32.mrb[10].mxu0  ;;  %v1161_v57 = vadd.f32 %v7108_v53, %v6980_v13 }
 0x287   :  { %v1203_v4 = vpop.f32.mrb[10].mxu1  ;;  %v1163_v31 = vpop.f32.mrb[11].mxu0 }
 0x288   :  { %v1204_v42 = vpop.f32.mrb[11].mxu1  ;;  %v7203_v4 = vpop.permute.xlu0 %6005  ;;  %v7210_v31 = vsel %vm1389_vm11, %v5967_v19, %v5971_v25 }
 0x289   :  { %1471 = vrot.lane.b32.xlu1 %v1454_v26, %s6037_s21  ;;  %1523 = vrot.lane.b32.xlu0 %v1448_v54, %s6039_s23  ;;  %10933 = vst [vmem:[#allocation30_spill] sm:$0xff] %v7203_v4  ;;  %10934 = vst [vmem:[#allocation31_spill] sm:$0xff] %v7210_v31 }
 0x28c   :  { %v7220_v42 = vpop.permute.xlu0 %3181 }
 0x28d   :  { %1535 = vrot.lane.b32.xlu1 %v1454_v26, %s6039_s23  ;;  %1587 = vrot.lane.b32.xlu0 %v1448_v54, %s6041_s27  ;;  %10937 = vst [vmem:[#allocation34_spill] sm:$0xff] %v7220_v42 }
 0x291   :  { %1599 = vrot.lane.b32.xlu1 %v1454_v26, %s6041_s27  ;;  %1656 = vrot.lane.b32.xlu0 %v1448_v54, %s6043_s29  ;;  %v10772_v54 = vunpack.i.l.bf16 %v7154_v9 }
 0x295   :  { %1668 = vrot.lane.b32.xlu1 %v1454_v26, %s6043_s29  ;;  %1461 = vrot.lane.b32.xlu0 %v1449_v37, %s6037_s21  ;;  %v1200_v37 = vadd.f32 %v1199_v63, %v6980_v13  ;;  %v1235_v63 = vsel %vm1211_vm15, %v1079_v59, %v1223_v24  ;;  %v7201_v26 = vsel %vm1389_vm11, %v10772_v54, %v7190_v51  ;;  %vm1215_vm15 = vcmp.ge.f32.partialorder %v1161_v57, 0.0 }
 0x296   :  { %10932 = vst [vmem:[#allocation29_spill] sm:$0xff] %v7201_v26  ;;  %v7213_v18 = vmul.f32 %v7210_v31, %v1235_v63  ;;  %v1202_v59 = vadd.f32 %v7113_v34, %v6980_v13  ;;  %v1159_v54 = vadd.f32 %v7106_v29, %v6980_v13  ;;  %v7384_v31 = vrot.slane %v7377_v36, 4 }
 0x297   :  { %v1228_v33 = vmul.f32 0.1, %v1200_v37  ;;  %vm1216_vm12 = vcmp.ge.f32.partialorder %v1200_v37, 0.0  ;;  %vm6050_vm11 = vmmov 0  }
 0x298   :  { %10935 = vst [vmem:[#allocation32_spill] sm:$0xff] %v7213_v18  ;;  %v7226_v27 = vpack.c.bf16 %v7213_v18, %v7213_v18  ;;  %vm1217_vm13 = vcmp.ge.f32.partialorder %v1202_v59, 0.0  ;;  %vm1214_vm14 = vcmp.ge.f32.partialorder %v1159_v54, 0.0  ;;  %v1227_v18 = vmul.f32 0.1, %v1161_v57 }
 0x299   :  { %1499 = vrot.lane.b32.xlu1 %v7148_v45, %s6038_s22  ;;  %1505 = vrot.lane.b32.xlu0 %v7152_v1, %s6038_s22  ;;  %v1240_v0 = vsel %vm1216_vm12, %v1200_v37, %v1228_v33  ;;  %vm2225_vm12 = vcmask 285696  }
 0x29a   :  { %v7216_v43 = vmul.f32 %v7201_v26, %v1240_v0  ;;  %v1453_v63 = vrot.slane %v7226_v27, 4  ;;  %v1229_v0 = vmul.f32 0.1, %v1202_v59 }
 0x29c   :  { %10936 = vst [vmem:[#allocation33_spill] sm:$0xff] %v7216_v43  ;;  %v7230_v25 = vpack.c.bf16 %v7216_v43, %v7216_v43  ;;  %v1241_v10 = vsel %vm1217_vm13, %v1202_v59, %v1229_v0  ;;  %v1226_v43 = vmul.f32 0.1, %v1159_v54 }
 0x29d   :  { %1563 = vrot.lane.b32.xlu1 %v7148_v45, %s6040_s26  ;;  %1569 = vrot.lane.b32.xlu0 %v7152_v1, %s6040_s26  ;;  %v1424_v15 = vmul.f32 %v7190_v51, %v1241_v10 }
 0x29e   :  { %10939 = vst [vmem:[#allocation36_spill] sm:$0xff] %v7230_v25  ;;  %v1458_v33 = vrot.slane %v7230_v25, 4  ;;  %v1238_v10 = vsel %vm1214_vm14, %v1159_v54, %v1226_v43  ;;  %v1239_v54 = vsel %vm1215_vm15, %v1161_v57, %v1227_v18 }
 0x29f   :  { %v1436_v29 = vpack.c.bf16 %v1424_v15, %v1424_v15  ;;  %v7300_v13 = vmul.f32 %v7295_v16, %v1238_v10 }
 0x2a1   :  { %1628 = vrot.lane.b32.xlu1 %v7148_v45, %s6042_s28  ;;  %1634 = vrot.lane.b32.xlu0 %v7152_v1, %s6042_s28  ;;  %10942 = vst [vmem:[#allocation38_spill] sm:$0xff] %v7300_v13  ;;  %v1655_v30 = vrot.slane %v1436_v29, 4  ;;  %v7315_v43 = vpack.c.bf16 %v7300_v13, %v7300_v13 }
 0x2a5   :  { %1699 = vrot.lane.b32.xlu1 %v7148_v45, %s6044_s30  ;;  %1705 = vrot.lane.b32.xlu0 %v7152_v1, %s6044_s30 }
 0x2a9   :  { %1467 = vrot.lane.b32.xlu1 %v1452_v46, %s6037_s21  ;;  %1473 = vrot.lane.b32.xlu0 %v1455_v58, %s6037_s21 }
 0x2ad   :  { %1531 = vrot.lane.b32.xlu1 %v1452_v46, %s6039_s23  ;;  %1537 = vrot.lane.b32.xlu0 %v1455_v58, %s6039_s23 }
 0x2b1   :  { %1595 = vrot.lane.b32.xlu1 %v1452_v46, %s6041_s27  ;;  %1601 = vrot.lane.b32.xlu0 %v1455_v58, %s6041_s27 }
 0x2b5   :  { %1664 = vrot.lane.b32.xlu1 %v1452_v46, %s6043_s29  ;;  %1670 = vrot.lane.b32.xlu0 %v1455_v58, %s6043_s29 }
 0x2b9   :  { %1511 = vrot.lane.b32.xlu1 %v7230_v25, %s6038_s22  ;;  %1501 = vrot.lane.b32.xlu0 %v7226_v27, %s6038_s22 }
 0x2bb   :  { %v7236_v12 = vpop.permute.xlu1 %1695  ;;  %v7238_v19 = vpop.permute.xlu0 %1495 }
 0x2bd   :  { %1575 = vrot.lane.b32.xlu1 %v7230_v25, %s6040_s26  ;;  %1565 = vrot.lane.b32.xlu0 %v7226_v27, %s6040_s26 }
 0x2bf   :  { %v7244_v44 = vpop.permute.xlu0 %1559  ;;  %v7246_v14 = vpop.permute.xlu1 %1463 }
 0x2c1   :  { %1640 = vrot.lane.b32.xlu1 %v7230_v25, %s6042_s28  ;;  %1630 = vrot.lane.b32.xlu0 %v7226_v27, %s6042_s28 }
 0x2c3   :  { %v7252_v46 = vpop.permute.xlu0 %1624  ;;  %v7254_v58 = vpop.permute.xlu1 %1491 }
 0x2c5   :  { %1711 = vrot.lane.b32.xlu1 %v7230_v25, %s6044_s30  ;;  %1701 = vrot.lane.b32.xlu0 %v7226_v27, %s6044_s30 }
 0x2c7   :  { %v7262_v37 = vpop.permute.xlu0 %1497  ;;  %v7264_v24 = vpop.permute.xlu1 %1555 }
 0x2c9   :  { %1479 = vrot.lane.b32.xlu1 %v1458_v33, %s6037_s21  ;;  %1469 = vrot.lane.b32.xlu0 %v1453_v63, %s6037_s21 }
 0x2cb   :  { %v7270_v34 = vpop.permute.xlu0 %1561  ;;  %v7272_v5 = vpop.permute.xlu1 %1620 }
 0x2cd   :  { %1543 = vrot.lane.b32.xlu1 %v1458_v33, %s6039_s23  ;;  %1533 = vrot.lane.b32.xlu0 %v1453_v63, %s6039_s23 }
 0x2cf   :  { %v7279_v61 = vpop.permute.xlu0 %1626  ;;  %v7281_v11 = vpop.permute.xlu1 %1691 }
 0x2d1   :  { %1607 = vrot.lane.b32.xlu1 %v1458_v33, %s6041_s27  ;;  %1597 = vrot.lane.b32.xlu0 %v1453_v63, %s6041_s27 }
 0x2d3   :  { %v7288_v59 = vpop.permute.xlu0 %1697  ;;  %v7290_v0 = vpop.permute.xlu1 %1493 }
 0x2d4   :  { %v1514_v42 = vsel %vm268_vm3, %v7290_v0, %v7238_v19 }
 0x2d5   :  { %1676 = vrot.lane.b32.xlu1 %v1458_v33, %s6043_s29  ;;  %1666 = vrot.lane.b32.xlu0 %v1453_v63, %s6043_s29  ;;  %v7318_v33 = vmul.f32 %v7309_v39, %v1239_v54  ;;  %v5796_v39 = vld [vmem:[%s10761_s2 + $0x4c] sm:$0xf] }
 0x2d6   :  { %94 = vst [vmem:[#allocation3 + $0x4] sm:$0xf] %v5796_v39  ;;  %v7389_v39 = vld [vmem:[%s10760_s1 + $0x30] sm:$0xff] }
 0x2d7   :  { %v7302_v15 = vpop.permute.xlu0 %1527  ;;  %v7304_v53 = vpop.permute.xlu1 %1557  ;;  %10945 = vst [vmem:[#allocation40_spill] sm:$0xff] %v7318_v33  ;;  %v7329_v2 = vpack.c.bf16 %v7318_v33, %v7318_v33  ;;  %v1456_v33 = vrot.slane %v7315_v43, 4 }
 0x2d9   :  { %1678 = vrot.lane.b32.xlu1 %v1655_v30, %s6043_s29  ;;  %1642 = vrot.lane.b32.xlu0 %v1436_v29, %s6042_s28  ;;  %v1457_v22 = vrot.slane %v7329_v2, 4 }
 0x2db   :  { %v7320_v63 = vpop.permute.xlu0 %1591  ;;  %v7322_v10 = vpop.permute.xlu1 %1622 }
 0x2dd   :  { %1507 = vrot.lane.b32.xlu1 %v7315_v43, %s6038_s22  ;;  %1713 = vrot.lane.b32.xlu0 %v1436_v29, %s6044_s30 }
 0x2df   :  { %v7331_v30 = vpop.permute.xlu0 %1660  ;;  %v1526_v57 = vpop.permute.xlu1 %1525 }
 0x2e0   :  { %v1546_v50 = vsel %vm304_vm2, %v1526_v57, %v7302_v15 }
 0x2e1   :  { %1571 = vrot.lane.b32.xlu1 %v7315_v43, %s6040_s26  ;;  %1509 = vrot.lane.b32.xlu0 %v7329_v2, %s6038_s22  ;;  %v1776_v25 = vsel %vm496_vm1, %v1514_v42, %v1546_v50 }
 0x2e3   :  { %v7337_v9 = vpop.permute.xlu0 %1465  ;;  %v7339_v18 = vpop.permute.xlu1 %1589 }
 0x2e5   :  { %1636 = vrot.lane.b32.xlu1 %v7315_v43, %s6042_s28  ;;  %1573 = vrot.lane.b32.xlu0 %v7329_v2, %s6040_s26 }
 0x2e7   :  { %v7345_v29 = vpop.permute.xlu0 %1529  ;;  %v7347_v54 = vpop.permute.xlu1 %1658 }
 0x2e8   :  { %v1681_v42 = vsel %vm448_vm6, %v7347_v54, %v7331_v30 }
 0x2e9   :  { %1707 = vrot.lane.b32.xlu1 %v7315_v43, %s6044_s30  ;;  %1638 = vrot.lane.b32.xlu0 %v7329_v2, %s6042_s28 }
 0x2eb   :  { %v7353_v7 = vpop.permute.xlu0 %1593  ;;  %v7355_v13 = vpop.permute.xlu1 %1503 }
 0x2ed   :  { %1475 = vrot.lane.b32.xlu1 %v1456_v33, %s6037_s21  ;;  %1709 = vrot.lane.b32.xlu0 %v7329_v2, %s6044_s30 }
 0x2ef   :  { %v7361_v32 = vpop.permute.xlu0 %1662  ;;  %v7363_v60 = vpop.permute.xlu1 %1567 }
 0x2f1   :  { %1539 = vrot.lane.b32.xlu1 %v1456_v33, %s6039_s23  ;;  %1477 = vrot.lane.b32.xlu0 %v1457_v22, %s6037_s21 }
 0x2f3   :  { %v7368_v51 = vpop.permute.xlu0 %1693  ;;  %v7370_v26 = vpop.permute.xlu1 %1632 }
 0x2f5   :  { %1603 = vrot.lane.b32.xlu1 %v1456_v33, %s6041_s27  ;;  %1541 = vrot.lane.b32.xlu0 %v1457_v22, %s6039_s23 }
 0x2f7   :  { %v7379_v16 = vpop.permute.xlu1 %1703  ;;  %v1460_v52 = vpop.permute.xlu0 %1459 }
 0x2f9   :  { %1672 = vrot.lane.b32.xlu1 %v1456_v33, %s6043_s29  ;;  %1605 = vrot.lane.b32.xlu0 %v1457_v22, %s6041_s27  ;;  %v7398_v33 = vcombine.low %v7389_v39, %v7389_v39 }
 0x2fb   :  { %v7391_v35 = vpop.permute.xlu1 %1471  ;;  %v1524_v17 = vpop.permute.xlu0 %1523 }
 0x2fd   :  { %3179 = vrot.lane.b32.xlu1 %v7384_v31, %s6037_s21  ;;  %1674 = vrot.lane.b32.xlu0 %v1457_v22, %s6043_s29 }
 0x2ff   :  { %v7400_v20 = vpop.permute.xlu1 %1535  ;;  %v1588_v49 = vpop.permute.xlu0 %1587 }
 0x301   :  { %3218 = vrot.lane.b32.xlu1 %v6974_v3, %s6038_s22  ;;  %3185 = vrot.lane.b32.xlu0 %v7398_v33, %s6037_s21 }
 0x303   :  { %v7406_v40 = vpop.permute.xlu1 %1599  ;;  %v1657_v23 = vpop.permute.xlu0 %1656 }
 0x305   :  { %3251 = vrot.lane.b32.xlu1 %v6972_v47, %s6039_s23  ;;  %3216 = vrot.lane.b32.xlu0 %v6972_v47, %s6038_s22 }
 0x307   :  { %v7412_v22 = vpop.permute.xlu1 %1668  ;;  %v1462_v4 = vpop.permute.xlu0 %1461 }
 0x308   :  { %v1481_v55 = vsel %vm232_vm0, %v1460_v52, %v1462_v4  ;;  %v1482_v56 = vsel %vm232_vm0, %v1462_v4, %v7246_v14  ;;  %v1545_v52 = vsel %vm304_vm2, %v1524_v17, %v1526_v57  ;;  %v1578_v17 = vsel %vm340_vm5, %v7304_v53, %v7244_v44 }
 0x309   :  { %3255 = vrot.lane.b32.xlu1 %v7398_v33, %s6039_s23  ;;  %3220 = vrot.lane.b32.xlu0 %v7398_v33, %s6038_s22  ;;  %v1732_v8 = vsel %vm496_vm1, %v7053_v41, %v1482_v56  ;;  %v1728_v21 = vsel %vm496_vm1, %v7019_v48, %v1481_v55  ;;  %v1610_v41 = vsel %vm376_vm4, %v7339_v18, %v7320_v63 }
 0x30a   :  { %1945 = vmatprep.subr.bf16.mxu0 %v1732_v8  ;;  %v1513_v48 = vsel %vm268_vm3, %v7254_v58, %v7290_v0  ;;  %v1609_v8 = vsel %vm376_vm4, %v1588_v49, %v7339_v18  ;;  %v1820_v55 = vsel %vm496_vm1, %v1578_v17, %v1610_v41  ;;  %v1645_v49 = vsel %vm412_vm7, %v7322_v10, %v7252_v46 }
 0x30b   :  { %v7431_v4 = vpop.permute.xlu1 %1499  ;;  %1946 = vmatpush1.bf16.msra.mxu0 %v1728_v21  ;;  %v7433_v28 = vpop.permute.xlu0 %1505  ;;  %v1772_v56 = vsel %vm496_vm1, %v1513_v48, %v1545_v52  ;;  %v1680_v0 = vsel %vm448_vm6, %v1657_v23, %v7347_v54  ;;  %v1715_v54 = vsel %vm484_vm8, %v7281_v11, %v7368_v51  ;;  %v1483_v11 = vsel %vm232_vm0, %v7246_v14, %v7337_v9 }
 0x30c   :  { %1947 = vmatprep.subr.bf16.mxu0 %v1776_v25  ;;  %v1577_v25 = vsel %vm340_vm5, %v7264_v24, %v7304_v53  ;;  %v1864_v24 = vsel %vm496_vm1, %v1645_v49, %v1681_v42  ;;  %v1644_v53 = vsel %vm412_vm7, %v7272_v5, %v7322_v10  ;;  %v1716_v5 = vsel %vm484_vm8, %v7368_v51, %v7236_v12  ;;  %v7512_v51 = vld [vmem:[%s10765_s6] sm:$0xf] }
 0x30d   :  { %3249 = vrot.lane.b32.xlu1 %v7384_v31, %s6039_s23  ;;  %3253 = vrot.lane.b32.xlu0 %v6974_v3, %s6039_s23  ;;  %v1816_v58 = vsel %vm496_vm1, %v1577_v25, %v1609_v8  ;;  %v1860_v23 = vsel %vm496_vm1, %v1644_v53, %v1680_v0  ;;  %v1913_v10 = vsel %vm496_vm1, %v1715_v54, 0  ;;  %v1736_v8 = vsel %vm496_vm1, %v6995_v6, %v1483_v11 }
 0x30e   :  { %v10946_v25 = vmov 0   ;;  %v1515_v6 = vsel %vm268_vm3, %v7238_v19, %v7262_v37  ;;  %v1611_v0 = vsel %vm376_vm4, %v7320_v63, %v7353_v7  ;;  %v1579_v53 = vsel %vm340_vm5, %v7244_v44, %v7270_v34 }
 0x30f   :  { %v7452_v21 = vpop.permute.xlu1 %1563  ;;  %1948 = vmatpush1.bf16.msra.mxu0 %v1772_v56  ;;  %v7454_v50 = vpop.permute.xlu0 %1569  ;;  %v1682_v54 = vsel %vm448_vm6, %v7331_v30, %v7361_v32 }
 0x310   :  { %1949 = vmatprep.subr.bf16.mxu0 %v1820_v55  ;;  %v1580_v19 = vsel %vm340_vm5, %v7270_v34, %v7452_v21 }
 0x311   :  { %3288 = vrot.lane.b32.xlu1 %v6974_v3, %s6040_s26  ;;  %3214 = vrot.lane.b32.xlu0 %v7377_v36, %s6038_s22 }
 0x313   :  { %v7473_v57 = vpop.permute.xlu1 %1628  ;;  %1950 = vmatpush1.bf16.msra.mxu0 %v1816_v58  ;;  %v7475_v18 = vpop.permute.xlu0 %1634 }
 0x314   :  { %1951 = vmatprep.subr.bf16.mxu0 %v1864_v24  ;;  %v1647_v44 = vsel %vm412_vm7, %v7279_v61, %v7473_v57 }
 0x315   :  { %3321 = vrot.lane.b32.xlu1 %v6972_v47, %s6041_s27  ;;  %3286 = vrot.lane.b32.xlu0 %v6972_v47, %s6040_s26 }
 0x317   :  { %v7489_v52 = vpop.permute.xlu1 %1699  ;;  %1952 = vmatpush1.bf16.msra.mxu0 %v1860_v23  ;;  %v7491_v41 = vpop.permute.xlu0 %1705  ;;  %v1824_v23 = vsel %vm496_vm1, %v1579_v53, %v1611_v0 }
 0x318   :  { %5819 = vmatprep.subr.msk.bf16.mxu0 %vm496_vm1, %v1716_v5 }
 0x319   :  { %3325 = vrot.lane.b32.xlu1 %v7398_v33, %s6041_s27  ;;  %3290 = vrot.lane.b32.xlu0 %v7398_v33, %s6040_s26 }
 0x31b   :  { %v7505_v48 = vpop.permute.xlu1 %1467  ;;  %1954 = vmatpush1.bf16.msra.mxu0 %v1913_v10  ;;  %v7507_v17 = vpop.permute.xlu0 %1473  ;;  %v1646_v10 = vsel %vm412_vm7, %v7252_v46, %v7279_v61  ;;  %v1718_v61 = vsel %vm484_vm8, %v7288_v59, %v7489_v52 }
 0x31c   :  { %v1484_v56 = vsel %vm232_vm0, %v7337_v9, %v7505_v48  ;;  %v1547_v9 = vsel %vm304_vm2, %v7302_v15, %v7345_v29  ;;  %v1868_v11 = vsel %vm496_vm1, %v1646_v10, %v1682_v54 }
 0x31d   :  { %3319 = vrot.lane.b32.xlu1 %v7384_v31, %s6041_s27  ;;  %3323 = vrot.lane.b32.xlu0 %v6974_v3, %s6041_s27  ;;  %v1740_v14 = vsel %vm496_vm1, %v7031_v38, %v1484_v56  ;;  %v1516_v38 = vsel %vm268_vm3, %v7262_v37, %v7431_v4  ;;  %v1780_v58 = vsel %vm496_vm1, %v1515_v6, %v1547_v9 }
 0x31e   :  { %5820 = vmatmul.mubr.msk.bf16.vlgmr.msra.gmra.mrb[12].mxu0 %vm920_vm10, %v7512_v51  ;;  %1986 = vmatprep.subr.bf16.mxu1 %v1740_v14  ;;  %v1717_v56 = vsel %vm484_vm8, %v7236_v12, %v7288_v59  ;;  %v7625_v9 = vcombine.high %v7389_v39, %v7389_v39  ;;  %v7643_v39 = vld [vmem:[%s10760_s1 + $0x40] sm:$0xff] }
 0x31f   :  { %1987 = vmatpush1.bf16.msra.mxu1 %v1736_v8  ;;  %v7530_v55 = vpop.permute.xlu1 %1531  ;;  %v7532_v42 = vpop.permute.xlu0 %1537  ;;  %2059 = vmatprep.mubr.bf16.mxu0 %v10946_v25  ;;  %v1919_v46 = vsel %vm496_vm1, %v1717_v56, 0  ;;  %v7661_v54 = vcombine.low %v7643_v39, %v7643_v39 }
 0x320   :  { %v1548_v49 = vsel %vm304_vm2, %v7345_v29, %v7530_v55 }
 0x321   :  { %3358 = vrot.lane.b32.xlu1 %v6974_v3, %s6042_s28  ;;  %3284 = vrot.lane.b32.xlu0 %v7377_v36, %s6040_s26  ;;  %v1784_v15 = vsel %vm496_vm1, %v1516_v38, %v1548_v49  ;;  %v5842_v38 = vld [vmem:[%s10760_s1 + $0x38] sm:$0xff]  ;;  %10947 = vst [vmem:[#allocation41_spill] sm:$0xff] %v7661_v54 }
 0x322   :  { %1988 = vmatprep.subr.bf16.mxu1 %v1784_v15  ;;  %v7636_v15 = vcombine.high %v5842_v38, %v5842_v38 }
 0x323   :  { %1989 = vmatpush1.bf16.msra.mxu1 %v1780_v58  ;;  %v7553_v29 = vpop.permute.xlu1 %1595  ;;  %v7555_v24 = vpop.permute.xlu0 %1601  ;;  %v7638_v58 = vcombine.low %v5842_v38, %v5842_v38 }
 0x324   :  { %v1612_v37 = vsel %vm376_vm4, %v7353_v7, %v7553_v29 }
 0x325   :  { %3391 = vrot.lane.b32.xlu1 %v6972_v47, %s6043_s29  ;;  %3356 = vrot.lane.b32.xlu0 %v6972_v47, %s6042_s28  ;;  %v1828_v63 = vsel %vm496_vm1, %v1580_v19, %v1612_v37 }
 0x326   :  { %1990 = vmatprep.subr.bf16.mxu1 %v1828_v63 }
 0x327   :  { %1991 = vmatpush1.bf16.msra.mxu1 %v1824_v23  ;;  %v7575_v7 = vpop.permute.xlu1 %1664  ;;  %v7577_v5 = vpop.permute.xlu0 %1670 }
 0x328   :  { %v1683_v34 = vsel %vm448_vm6, %v7361_v32, %v7575_v7 }
 0x329   :  { %3395 = vrot.lane.b32.xlu1 %v7398_v33, %s6043_s29  ;;  %3360 = vrot.lane.b32.xlu0 %v7398_v33, %s6042_s28  ;;  %v1872_v30 = vsel %vm496_vm1, %v1647_v44, %v1683_v34 }
 0x32a   :  { %1992 = vmatprep.subr.bf16.mxu1 %v1872_v30 }
 0x32b   :  { %1993 = vmatpush1.bf16.msra.mxu1 %v1868_v11  ;;  %v7597_v32 = vpop.permute.xlu1 %1511  ;;  %v1502_v14 = vpop.permute.xlu0 %1501 }
 0x32c   :  { %5821 = vmatprep.subr.msk.bf16.mxu1 %vm496_vm1, %v1718_v61  ;;  %v1517_v34 = vsel %vm268_vm3, %v7431_v4, %v1502_v14  ;;  %v1518_v10 = vsel %vm268_vm3, %v1502_v14, %v7355_v13 }
 0x32d   :  { %3389 = vrot.lane.b32.xlu1 %v7384_v31, %s6043_s29  ;;  %3393 = vrot.lane.b32.xlu0 %v6974_v3, %s6043_s29 }
 0x32f   :  { %1995 = vmatpush1.bf16.msra.mxu1 %v1919_v46  ;;  %v7608_v12 = vpop.permute.xlu1 %1575  ;;  %v1566_v8 = vpop.permute.xlu0 %1565 }
 0x330   :  { %v1582_v14 = vsel %vm340_vm5, %v1566_v8, %v7363_v60 }
 0x331   :  { %3426 = vrot.lane.b32.xlu1 %v6972_v47, %s6044_s30  ;;  %3354 = vrot.lane.b32.xlu0 %v7377_v36, %s6042_s28 }
 0x332   :  { %5822 = vmatmul.mubr.msk.bf16.vlgmr.msra.gmra.mrb[12].mxu1 %vm920_vm10, %v7512_v51 }
 0x333   :  { %v7616_v59 = vpop.permute.xlu1 %1640  ;;  %v1631_v31 = vpop.permute.xlu0 %1630  ;;  %2100 = vmatprep.mubr.bf16.mxu1 %v10946_v25 }
 0x335   :  { %3430 = vrot.lane.b32.xlu1 %v7398_v33, %s6044_s30  ;;  %3424 = vrot.lane.b32.xlu0 %v7377_v36, %s6044_s30 }
 0x337   :  { %v7630_v49 = vpop.permute.xlu1 %1711  ;;  %v1702_v6 = vpop.permute.xlu0 %1701 }
 0x339   :  { %3187 = vrot.lane.b32.xlu1 %v7625_v9, %s6037_s21  ;;  %3428 = vrot.lane.b32.xlu0 %v6974_v3, %s6044_s30 }
 0x33b   :  { %v7645_v0 = vpop.permute.xlu1 %1479  ;;  %v1470_v19 = vpop.permute.xlu0 %1469 }
 0x33c   :  { %v1485_v37 = vsel %vm232_vm0, %v7505_v48, %v1470_v19  ;;  %v1486_v53 = vsel %vm232_vm0, %v1470_v19, %v7391_v35 }
 0x33d   :  { %3191 = vrot.lane.b32.xlu1 %v7636_v15, %s6037_s21  ;;  %3189 = vrot.lane.b32.xlu0 %v7638_v58, %s6037_s21  ;;  %v1748_v63 = vsel %vm496_vm1, %v7226_v27, %v1486_v53  ;;  %v1744_v23 = vsel %vm496_vm1, %v7148_v45, %v1485_v37  ;;  %v1649_v37 = vsel %vm412_vm7, %v1631_v31, %v7370_v26 }
 0x33e   :  { %2027 = vmatprep.subr.bf16.mxu0 %v1748_v63 }
 0x33f   :  { %v7663_v48 = vpop.permute.xlu1 %1543  ;;  %2028 = vmatpush1.bf16.msra.mxu0 %v1744_v23  ;;  %v1534_v44 = vpop.permute.xlu0 %1533 }
 0x340   :  { %v1549_v27 = vsel %vm304_vm2, %v7530_v55, %v1534_v44  ;;  %v1550_v45 = vsel %vm304_vm2, %v1534_v44, %v7400_v20  ;;  %v1581_v55 = vsel %vm340_vm5, %v7452_v21, %v1566_v8 }
 0x341   :  { %3222 = vrot.lane.b32.xlu1 %v7625_v9, %s6038_s22  ;;  %3193 = vrot.lane.b32.xlu0 %v7661_v54, %s6037_s21  ;;  %v1792_v30 = vsel %vm496_vm1, %v1518_v10, %v1550_v45  ;;  %v1788_v11 = vsel %vm496_vm1, %v1517_v34, %v1549_v27  ;;  %v1720_v34 = vsel %vm484_vm8, %v1702_v6, %v7379_v16 }
 0x342   :  { %2029 = vmatprep.subr.bf16.mxu0 %v1792_v30 }
 0x343   :  { %v7679_v4 = vpop.permute.xlu1 %1607  ;;  %2030 = vmatpush1.bf16.msra.mxu0 %v1788_v11  ;;  %v1598_v56 = vpop.permute.xlu0 %1597 }
 0x344   :  { %v1613_v61 = vsel %vm376_vm4, %v7553_v29, %v1598_v56  ;;  %v1614_v46 = vsel %vm376_vm4, %v1598_v56, %v7406_v40  ;;  %v1648_v29 = vsel %vm412_vm7, %v7473_v57, %v1631_v31  ;;  %v1719_v57 = vsel %vm484_vm8, %v7489_v52, %v1702_v6 }
 0x345   :  { %3257 = vrot.lane.b32.xlu1 %v7625_v9, %s6039_s23  ;;  %3224 = vrot.lane.b32.xlu0 %v7638_v58, %s6038_s22  ;;  %v1836_v38 = vsel %vm496_vm1, %v1582_v14, %v1614_v46  ;;  %v1832_v19 = vsel %vm496_vm1, %v1581_v55, %v1613_v61  ;;  %v1925_v10 = vsel %vm496_vm1, %v1719_v57, 0  ;;  %v1487_v14 = vsel %vm232_vm0, %v7391_v35, %v7507_v17 }
 0x346   :  { %2031 = vmatprep.subr.bf16.mxu0 %v1836_v38  ;;  %v1519_v35 = vsel %vm268_vm3, %v7355_v13, %v7433_v28 }
 0x347   :  { %v7695_v21 = vpop.permute.xlu1 %1676  ;;  %2032 = vmatpush1.bf16.msra.mxu0 %v1832_v19  ;;  %v1667_v8 = vpop.permute.xlu0 %1666 }
 0x348   :  { %v1684_v53 = vsel %vm448_vm6, %v7575_v7, %v1667_v8  ;;  %v1685_v63 = vsel %vm448_vm6, %v1667_v8, %v7412_v22  ;;  %v1752_v8 = vsel %vm496_vm1, %v7093_v62, %v1487_v14 }
 0x349   :  { %3226 = vrot.lane.b32.xlu1 %v7636_v15, %s6038_s22  ;;  %3259 = vrot.lane.b32.xlu0 %v7638_v58, %s6039_s23  ;;  %v1880_v23 = vsel %vm496_vm1, %v1649_v37, %v1685_v63  ;;  %v1876_v44 = vsel %vm496_vm1, %v1648_v29, %v1684_v53 }
 0x34a   :  { %2033 = vmatprep.subr.bf16.mxu0 %v1880_v23 }
 0x34b   :  { %v7713_v31 = vpop.permute.xlu1 %1678  ;;  %2034 = vmatpush1.bf16.msra.mxu0 %v1876_v44  ;;  %v7715_v7 = vpop.permute.xlu0 %1642  ;;  %v1615_v44 = vsel %vm376_vm4, %v7406_v40, %v7555_v24 }
 0x34c   :  { %5823 = vmatprep.subr.msk.bf16.mxu0 %vm496_vm1, %v1720_v34 }
 0x34d   :  { %3261 = vrot.lane.b32.xlu1 %v7636_v15, %s6039_s23  ;;  %3228 = vrot.lane.b32.xlu0 %v7661_v54, %s6038_s22 }
 0x34f   :  { %v1508_v27 = vpop.permute.xlu1 %1507  ;;  %2036 = vmatpush1.bf16.msra.mxu0 %v1925_v10  ;;  %v7725_v52 = vpop.permute.xlu0 %1713 }
 0x350   :  { %v1520_v53 = vsel %vm268_vm3, %v7433_v28, %v1508_v27 }
 0x351   :  { %3292 = vrot.lane.b32.xlu1 %v7625_v9, %s6040_s26  ;;  %3263 = vrot.lane.b32.xlu0 %v7661_v54, %s6039_s23 }
 0x352   :  { %5824 = vmatmul.mubr.msk.bf16.vlgmr.msra.gmra.mrb[16].mxu0 %vm920_vm10, %v7512_v51 }
 0x353   :  { %v7733_v6 = vpop.permute.xlu1 %1571  ;;  %v1510_v45 = vpop.permute.xlu0 %1509  ;;  %2141 = vmatprep.mubr.bf16.mxu0 %v10946_v25 }
 0x354   :  { %v1584_v57 = vsel %vm340_vm5, %v7454_v50, %v7733_v6 }
 0x355   :  { %3327 = vrot.lane.b32.xlu1 %v7625_v9, %s6041_s27  ;;  %3294 = vrot.lane.b32.xlu0 %v7638_v58, %s6040_s26 }
 0x357   :  { %v7740_v30 = vpop.permute.xlu1 %1636  ;;  %v1574_v11 = vpop.permute.xlu0 %1573 }
 0x359   :  { %3296 = vrot.lane.b32.xlu1 %v7636_v15, %s6040_s26  ;;  %3329 = vrot.lane.b32.xlu0 %v7638_v58, %s6041_s27 }
 0x35b   :  { %v7746_v56 = vpop.permute.xlu1 %1707  ;;  %v7748_v55 = vpop.permute.xlu0 %1638 }
 0x35d   :  { %3331 = vrot.lane.b32.xlu1 %v7636_v15, %s6041_s27  ;;  %3298 = vrot.lane.b32.xlu0 %v7661_v54, %s6040_s26 }
 0x35f   :  { %v1476_v61 = vpop.permute.xlu1 %1475  ;;  %v7757_v46 = vpop.permute.xlu0 %1709 }
 0x360   :  { %v1488_v38 = vsel %vm232_vm0, %v7507_v17, %v1476_v61  ;;  %v1551_v17 = vsel %vm304_vm2, %v7400_v20, %v7532_v42 }
 0x361   :  { %3362 = vrot.lane.b32.xlu1 %v7625_v9, %s6042_s28  ;;  %3333 = vrot.lane.b32.xlu0 %v7661_v54, %s6041_s27  ;;  %v1756_v19 = vsel %vm496_vm1, %v7152_v1, %v1488_v38  ;;  %v1796_v23 = vsel %vm496_vm1, %v1519_v35, %v1551_v17  ;;  %v1686_v38 = vsel %vm448_vm6, %v7412_v22, %v7577_v5 }
 0x362   :  { %2068 = vmatprep.subr.bf16.mxu1 %v1756_v19  ;;  %v1651_v19 = vsel %vm412_vm7, %v7475_v18, %v7740_v30 }
 0x363   :  { %v1540_v29 = vpop.permute.xlu1 %1539  ;;  %2069 = vmatpush1.bf16.msra.mxu1 %v1752_v8  ;;  %v1478_v37 = vpop.permute.xlu0 %1477  ;;  %v1585_v8 = vsel %vm340_vm5, %v7733_v6, %v1574_v11 }
 0x364   :  { %v1552_v1 = vsel %vm304_vm2, %v7532_v42, %v1540_v29  ;;  %v1489_v63 = vsel %vm232_vm0, %v1476_v61, %v1478_v37  ;;  %v1490_v62 = vsel %vm232_vm0, %v1478_v37, %v7645_v0  ;;  %v1583_v42 = vsel %vm340_vm5, %v7363_v60, %v7454_v50 }
 0x365   :  { %3397 = vrot.lane.b32.xlu1 %v7625_v9, %s6043_s29  ;;  %3364 = vrot.lane.b32.xlu0 %v7638_v58, %s6042_s28  ;;  %v1800_v20 = vsel %vm496_vm1, %v1520_v53, %v1552_v1  ;;  %v1764_v13 = vsel %vm496_vm1, %v7329_v2, %v1490_v62  ;;  %v1760_v28 = vsel %vm496_vm1, %v7315_v43, %v1489_v63 }
 0x366   :  { %2070 = vmatprep.subr.bf16.mxu1 %v1800_v20  ;;  %2109 = vmatprep.subr.bf16.mxu0 %v1764_v13  ;;  %v1521_v2 = vsel %vm268_vm3, %v1508_v27, %v1510_v45  ;;  %v1522_v60 = vsel %vm268_vm3, %v1510_v45, %v7597_v32  ;;  %v1840_v61 = vsel %vm496_vm1, %v1583_v42, %v1615_v44  ;;  %v5844_v42 = vld [vmem:[%s10760_s1 + $0x48] sm:$0xff] }
 0x367   :  { %v1604_v34 = vpop.permute.xlu1 %1603  ;;  %2071 = vmatpush1.bf16.msra.mxu1 %v1796_v23  ;;  %2110 = vmatpush1.bf16.msra.mxu0 %v1760_v28  ;;  %v1542_v43 = vpop.permute.xlu0 %1541  ;;  %v1721_v53 = vsel %vm484_vm8, %v7379_v16, %v7491_v41  ;;  %v1722_v62 = vsel %vm484_vm8, %v7491_v41, %v7746_v56  ;;  %v1652_v20 = vsel %vm412_vm7, %v7740_v30, %v7748_v55 }
 0x368   :  { %v1616_v10 = vsel %vm376_vm4, %v7555_v24, %v1604_v34  ;;  %v1553_v14 = vsel %vm304_vm2, %v1540_v29, %v1542_v43  ;;  %v1554_v40 = vsel %vm304_vm2, %v1542_v43, %v7663_v48  ;;  %v1650_v24 = vsel %vm412_vm7, %v7370_v26, %v7475_v18 }
 0x369   :  { %3366 = vrot.lane.b32.xlu1 %v7636_v15, %s6042_s28  ;;  %3399 = vrot.lane.b32.xlu0 %v7638_v58, %s6043_s29  ;;  %v1844_v50 = vsel %vm496_vm1, %v1584_v57, %v1616_v10  ;;  %v1808_v27 = vsel %vm496_vm1, %v1522_v60, %v1554_v40  ;;  %v1804_v45 = vsel %vm496_vm1, %v1521_v2, %v1553_v14  ;;  %v7895_v10 = vld [vmem:[#allocation3 + $0x4] sm:$0xf] }
 0x36a   :  { %2072 = vmatprep.subr.bf16.mxu1 %v1844_v50  ;;  %2111 = vmatprep.subr.bf16.mxu0 %v1808_v27  ;;  %v1586_v26 = vsel %vm340_vm5, %v1574_v11, %v7608_v12  ;;  %v1653_v13 = vsel %vm412_vm7, %v7748_v55, %v7616_v59  ;;  %v1931_v55 = vsel %vm496_vm1, %v1721_v53, 0  ;;  %v1723_v23 = vsel %vm484_vm8, %v7746_v56, %v7757_v46 }
 0x36b   :  { %v1673_v35 = vpop.permute.xlu1 %1672  ;;  %2073 = vmatpush1.bf16.msra.mxu1 %v1840_v61  ;;  %2112 = vmatpush1.bf16.msra.mxu0 %v1804_v45  ;;  %v1606_v17 = vpop.permute.xlu0 %1605  ;;  %v1724_v2 = vsel %vm484_vm8, %v7757_v46, %v7630_v49  ;;  %v7887_v56 = vcombine.low %v5844_v42, %v5844_v42  ;;  %v1937_v43 = vsel %vm496_vm1, %v1723_v23, 0  ;;  %v10949_v46 = vld [vmem:[#allocation36_spill] sm:$0xff]  ;;  %v7913_v50 = vcombine.high %v7643_v39, %v7643_v39 }
 0x36c   :  { %v1687_v29 = vsel %vm448_vm6, %v7577_v5, %v1673_v35  ;;  %v1617_v37 = vsel %vm376_vm4, %v1604_v34, %v1606_v17  ;;  %v1618_v22 = vsel %vm376_vm4, %v1606_v17, %v7679_v4  ;;  %v1884_v5 = vsel %vm496_vm1, %v1650_v24, %v1686_v38 }
 0x36d   :  { %3401 = vrot.lane.b32.xlu1 %v7636_v15, %s6043_s29  ;;  %3368 = vrot.lane.b32.xlu0 %v7661_v54, %s6042_s28  ;;  %v1888_v18 = vsel %vm496_vm1, %v1651_v19, %v1687_v29  ;;  %v1852_v6 = vsel %vm496_vm1, %v1586_v26, %v1618_v22  ;;  %v1848_v11 = vsel %vm496_vm1, %v1585_v8, %v1617_v37  ;;  %v10815_v34 = vmov 0.0  }
 0x36e   :  { %2074 = vmatprep.subr.bf16.mxu1 %v1888_v18  ;;  %2113 = vmatprep.subr.bf16.mxu0 %v1852_v6  ;;  %10948 = vst [vmem:[#allocation42_spill] sm:$0xff] %v7887_v56  ;;  %v1768_v60 = vsel %vm496_vm1, %v10949_v46, %v7645_v0  ;;  %v7909_v0 = vrot.slane %v7895_v10, 4  ;;  %10950 = vst [vmem:[#allocation36_spill] sm:$0xff] %v7913_v50  ;;  %v1812_v27 = vsel %vm496_vm1, %v7597_v32, %v7663_v48  ;;  %v10956_v46 = vld [vmem:[#allocation34_spill] sm:$0xff] }
 0x36f   :  { %v7846_v1 = vpop.permute.xlu1 %3179  ;;  %2075 = vmatpush1.bf16.msra.mxu1 %v1884_v5  ;;  %2114 = vmatpush1.bf16.msra.mxu0 %v1848_v11  ;;  %v1675_v63 = vpop.permute.xlu0 %1674  ;;  %v7930_v39 = vcombine.high %v5844_v42, %v5844_v42  ;;  %v1856_v32 = vsel %vm496_vm1, %v7608_v12, %v7679_v4  ;;  %v1690_v48 = vsel %vm448_vm6, %v7695_v21, %v7713_v31 }
 0x370   :  { %v1688_v28 = vsel %vm448_vm6, %v1673_v35, %v1675_v63  ;;  %v1689_v16 = vsel %vm448_vm6, %v1675_v63, %v7695_v21  ;;  %5825 = vmatprep.subr.msk.bf16.mxu1 %vm496_vm1, %v1722_v62  ;;  %v1654_v61 = vsel %vm412_vm7, %v7616_v59, %v7715_v7  ;;  %v1725_v4 = vsel %vm484_vm8, %v7630_v49, %v7725_v52 }
 0x371   :  { %3434 = vrot.lane.b32.xlu1 %v7638_v58, %s6044_s30  ;;  %3403 = vrot.lane.b32.xlu0 %v7661_v54, %s6043_s29  ;;  %v1896_v41 = vsel %vm496_vm1, %v1653_v13, %v1689_v16  ;;  %v1892_v30 = vsel %vm496_vm1, %v1652_v20, %v1688_v28  ;;  %10952 = vst [vmem:[#allocation44_spill] sm:$0xff] %v7930_v39  ;;  %v1943_v31 = vsel %vm496_vm1, %v1725_v4, 0 }
 0x372   :  { %2115 = vmatprep.subr.bf16.mxu0 %v1896_v41  ;;  %v1900_v12 = vsel %vm496_vm1, %v1654_v61, %v1690_v48  ;;  %v3203_v61 = vsel %vm232_vm0, %v7846_v1, %v10956_v46 }
 0x373   :  { %v7874_v44 = vpop.permute.xlu1 %3218  ;;  %2077 = vmatpush1.bf16.msra.mxu1 %v1931_v55  ;;  %2116 = vmatpush1.bf16.msra.mxu0 %v1892_v30  ;;  %v7876_v57 = vpop.permute.xlu0 %3185  ;;  %v10955_v55 = vld [vmem:[#allocation35_spill] sm:$0xff] }
 0x374   :  { %5827 = vmatprep.subr.msk.bf16.mxu0 %vm496_vm1, %v1724_v2  ;;  %5910 = vmatprep.subr.bf16.mxu1 %v10815_v34  ;;  %v3205_v42 = vsel %vm232_vm0, %v10955_v55, %v7876_v57 }
 0x375   :  { %3438 = vrot.lane.b32.xlu1 %v7661_v54, %s6044_s30  ;;  %3432 = vrot.lane.b32.xlu0 %v7625_v9, %s6044_s30 }
 0x376   :  { %5826 = vmatmul.mubr.msk.bf16.vlgmr.msra.gmra.mrb[16].mxu1 %vm920_vm10, %v7512_v51 }
 0x377   :  { %v7897_v14 = vpop.permute.xlu1 %3251  ;;  %2118 = vmatpush1.bf16.msra.mxu0 %v1937_v43  ;;  %5911 = vmatpush3.bf16.msra.mxu1 %v1768_v60  ;;  %v7899_v40 = vpop.permute.xlu0 %3216  ;;  %v3467_v43 = vsel %vm496_vm1, %v6974_v3, %v3205_v42  ;;  %v3204_v60 = vsel %vm232_vm0, %v10956_v46, %v10955_v55  ;;  %v3461_v55 = vsel %vm496_vm1, %v7377_v36, %v3203_v61 }
 0x378   :  { %5912 = vmatprep.subr.bf16.mxu1 %v10815_v34  ;;  %5920 = vmatprep.mubr.msk.bf16.mxu1 %vm6050_vm11, %v10815_v34 }
 0x379   :  { %3197 = vrot.lane.b32.xlu1 %v7887_v56, %s6037_s21  ;;  %3436 = vrot.lane.b32.xlu0 %v7636_v15, %s6044_s30 }
 0x37a   :  { %5828 = vmatmul.mubr.msk.bf16.vlgmr.msra.gmra.mrb[20].mxu0 %vm920_vm10, %v7512_v51 }
 0x37b   :  { %v7920_v45 = vpop.permute.xlu1 %3255  ;;  %5913 = vmatpush3.bf16.msra.mxu1 %v1812_v27  ;;  %v7922_v24 = vpop.permute.xlu0 %3220  ;;  %2780 = vmatprep.mubr.bf16.mxu0 %v10946_v25 }
 0x37c   :  { %10951 = vst [vmem:[#allocation43_spill] sm:$0xff] %v7922_v24  ;;  %5914 = vmatprep.subr.bf16.mxu1 %v10815_v34  ;;  %v3240_v1 = vsel %vm268_vm3, %v7874_v44, %v7922_v24 }
 0x37d   :  { %3201 = vrot.lane.b32.xlu1 %v7909_v0, %s6037_s21  ;;  %3195 = vrot.lane.b32.xlu0 %v7913_v50, %s6037_s21 }
 0x37f   :  { %v7941_v38 = vpop.permute.xlu1 %3249  ;;  %5915 = vmatpush3.bf16.msra.mxu1 %v1856_v32  ;;  %v7943_v19 = vpop.permute.xlu0 %3253  ;;  %v3464_v32 = vsel %vm496_vm1, %v6972_v47, %v3204_v60 }
 0x380   :  { %5916 = vmatprep.subr.bf16.mxu1 %v10815_v34 }
 0x381   :  { %3232 = vrot.lane.b32.xlu1 %v7887_v56, %s6038_s22  ;;  %3199 = vrot.lane.b32.xlu0 %v7930_v39, %s6037_s21 }
 0x383   :  { %v7954_v59 = vpop.permute.xlu1 %3288  ;;  %5917 = vmatpush3.bf16.msra.mxu1 %v1900_v12  ;;  %v7956_v21 = vpop.permute.xlu0 %3214  ;;  %v3273_v12 = vsel %vm304_vm2, %v7941_v38, %v7897_v14 }
 0x384   :  { %5918 = vmatprep.subr.bf16.mxu1 %v10815_v34  ;;  %v3238_v4 = vsel %vm268_vm3, %v7956_v21, %v7899_v40  ;;  %v10981_v34 = vld [vmem:[#allocation23_spill] sm:$0xff] }
 0x385   :  { %3267 = vrot.lane.b32.xlu1 %v7887_v56, %s6039_s23  ;;  %3230 = vrot.lane.b32.xlu0 %v7913_v50, %s6038_s22 }
 0x387   :  { %v7964_v7 = vpop.permute.xlu1 %3321  ;;  %5919 = vmatpush3.bf16.msra.mxu1 %v1943_v31  ;;  %v7966_v8 = vpop.permute.xlu0 %3286 }
 0x389   :  { %3236 = vrot.lane.b32.xlu1 %v7895_v10, %s6038_s22  ;;  %3265 = vrot.lane.b32.xlu0 %v7913_v50, %s6039_s23 }
 0x38a   :  { %5921 = vmatmul.mubr.msk.bf16.vlgmr.msra.gmra.mrb[20].mxu1 %vm920_vm10, %v7512_v51 }
 0x38b   :  { %v7974_v49 = vpop.permute.xlu1 %3325  ;;  %v7976_v52 = vpop.permute.xlu0 %3290  ;;  %2821 = vmatprep.mubr.bf16.mxu1 %v10946_v25 }
 0x38c   :  { %10953 = vst [vmem:[#allocation45_spill] sm:$0xff] %v7974_v49  ;;  %10954 = vst [vmem:[#allocation46_spill] sm:$0xff] %v7976_v52  ;;  %v3310_v38 = vsel %vm340_vm5, %v7954_v59, %v7976_v52 }
 0x38d   :  { %3271 = vrot.lane.b32.xlu1 %v7909_v0, %s6039_s23  ;;  %3234 = vrot.lane.b32.xlu0 %v7930_v39, %s6038_s22 }
 0x38f   :  { %v7983_v35 = vpop.permute.xlu1 %3319  ;;  %v7985_v17 = vpop.permute.xlu0 %3323 }
 0x390   :  { %v3345_v21 = vsel %vm376_vm4, %v7985_v17, %v7974_v49  ;;  %v3344_v46 = vsel %vm376_vm4, %v7964_v7, %v7985_v17 }
 0x391   :  { %3302 = vrot.lane.b32.xlu1 %v7887_v56, %s6040_s26  ;;  %3269 = vrot.lane.b32.xlu0 %v7930_v39, %s6039_s23 }
 0x393   :  { %v7991_v51 = vpop.permute.xlu1 %3358  ;;  %v7993_v26 = vpop.permute.xlu0 %3284 }
 0x395   :  { %3337 = vrot.lane.b32.xlu1 %v7887_v56, %s6041_s27  ;;  %3300 = vrot.lane.b32.xlu0 %v7913_v50, %s6040_s26 }
 0x397   :  { %v7999_v29 = vpop.permute.xlu1 %3391  ;;  %v8001_v37 = vpop.permute.xlu0 %3356 }
 0x399   :  { %3306 = vrot.lane.b32.xlu1 %v7895_v10, %s6040_s26  ;;  %3335 = vrot.lane.b32.xlu0 %v7913_v50, %s6041_s27 }
 0x39b   :  { %v8007_v22 = vpop.permute.xlu1 %3395  ;;  %v8009_v18 = vpop.permute.xlu0 %3360 }
 0x39d   :  { %3341 = vrot.lane.b32.xlu1 %v7909_v0, %s6041_s27  ;;  %3304 = vrot.lane.b32.xlu0 %v7930_v39, %s6040_s26 }
 0x39f   :  { %v8015_v6 = vpop.permute.xlu1 %3389  ;;  %v8017_v11 = vpop.permute.xlu0 %3393 }
 0x3a1   :  { %3372 = vrot.lane.b32.xlu1 %v7887_v56, %s6042_s28  ;;  %3339 = vrot.lane.b32.xlu0 %v7930_v39, %s6041_s27 }
 0x3a3   :  { %v8023_v5 = vpop.permute.xlu1 %3426  ;;  %v8025_v53 = vpop.permute.xlu0 %3354 }
 0x3a5   :  { %3407 = vrot.lane.b32.xlu1 %v7887_v56, %s6043_s29  ;;  %3370 = vrot.lane.b32.xlu0 %v7913_v50, %s6042_s28 }
 0x3a7   :  { %v8031_v63 = vpop.permute.xlu1 %3430  ;;  %v8033_v62 = vpop.permute.xlu0 %3424 }
 0x3a9   :  { %3376 = vrot.lane.b32.xlu1 %v7895_v10, %s6042_s28  ;;  %3405 = vrot.lane.b32.xlu0 %v7913_v50, %s6043_s29 }
 0x3ab   :  { %v8039_v20 = vpop.permute.xlu1 %3187  ;;  %v8041_v13 = vpop.permute.xlu0 %3428 }
 0x3ad   :  { %3411 = vrot.lane.b32.xlu1 %v7909_v0, %s6043_s29  ;;  %3374 = vrot.lane.b32.xlu0 %v7930_v39, %s6042_s28  ;;  %v3239_v0 = vsel %vm268_vm3, %v7899_v40, %v7874_v44  ;;  %v3275_v40 = vsel %vm304_vm2, %v7943_v19, %v7920_v45 }
 0x3ae   :  { %v3503_v42 = vsel %vm496_vm1, %v3240_v1, %v3275_v40 }
 0x3af   :  { %v8047_v28 = vpop.permute.xlu1 %3191  ;;  %v8049_v16 = vpop.permute.xlu0 %3189 }
 0x3b1   :  { %3442 = vrot.lane.b32.xlu1 %v7887_v56, %s6044_s30  ;;  %3409 = vrot.lane.b32.xlu0 %v7930_v39, %s6043_s29  ;;  %v5993_v56 = vunpack.i.h.bf16 %v10981_v34 }
 0x3b3   :  { %v8055_v41 = vpop.permute.xlu1 %3222  ;;  %v8057_v30 = vpop.permute.xlu0 %3193 }
 0x3b5   :  { %3446 = vrot.lane.b32.xlu1 %v7895_v10, %s6044_s30  ;;  %3440 = vrot.lane.b32.xlu0 %v7913_v50, %s6044_s30  ;;  %v3274_v10 = vsel %vm304_vm2, %v7897_v14, %v7943_v19  ;;  %v3497_v14 = vsel %vm496_vm1, %v3238_v4, %v3273_v12  ;;  %v3539_v19 = vsel %vm496_vm1, %v3310_v38, %v3345_v21 }
 0x3b6   :  { %v3500_v48 = vsel %vm496_vm1, %v3239_v0, %v3274_v10 }
 0x3b7   :  { %v8066_v23 = vpop.permute.xlu1 %3257  ;;  %v8068_v2 = vpop.permute.xlu0 %3224 }
 0x3b9   :  { %3444 = vrot.lane.b32.xlu0 %v7930_v39, %s6044_s30  ;;  %3662 = vrot.lane.b32.xlu1 %v3467_v43, %s6045_s15  ;;  %v3309_v43 = vsel %vm340_vm5, %v7966_v8, %v7954_v59 }
 0x3ba   :  { %v3536_v10 = vsel %vm496_vm1, %v3309_v43, %v3344_v46  ;;  %v10980_v46 = vld [vmem:[#allocation24_spill] sm:$0xff] }
 0x3bb   :  { %v8084_v27 = vpop.permute.xlu1 %3226  ;;  %v8086_v3 = vpop.permute.xlu0 %3259  ;;  %v5988_v50 = vunpack.i.h.bf16 %v10980_v46 }
 0x3bc   :  { %10957 = vst [vmem:[#allocation35_spill] sm:$0xff] %v8084_v27 }
 0x3bd   :  { %3660 = vrot.lane.b32.xlu0 %v3464_v32, %s6045_s15  ;;  %3684 = vrot.lane.b32.xlu1 %v3500_v48, %s6045_s15 }
 0x3bf   :  { %v8102_v31 = vpop.permute.xlu1 %3261  ;;  %v8104_v47 = vpop.permute.xlu0 %3228 }
 0x3c0   :  { %10958 = vst [vmem:[#allocation34_spill] sm:$0xff] %v8102_v31  ;;  %10959 = vst [vmem:[#allocation47_spill] sm:$0xff] %v8104_v47 }
 0x3c1   :  { %3658 = vrot.lane.b32.xlu0 %v3461_v55, %s6045_s15  ;;  %3682 = vrot.lane.b32.xlu1 %v3497_v14, %s6045_s15 }
 0x3c3   :  { %v8123_v44 = vpop.permute.xlu1 %3292  ;;  %v8125_v36 = vpop.permute.xlu0 %3263 }
 0x3c4   :  { %10960 = vst [vmem:[#allocation48_spill] sm:$0xff] %v8123_v44  ;;  %10961 = vst [vmem:[#allocation49_spill] sm:$0xff] %v8125_v36 }
 0x3c5   :  { %3686 = vrot.lane.b32.xlu0 %v3503_v42, %s6045_s15  ;;  %3710 = vrot.lane.b32.xlu1 %v3539_v19, %s6045_s15 }
 0x3c7   :  { %v8137_v60 = vpop.permute.xlu1 %3327  ;;  %v8139_v0 = vpop.permute.xlu0 %3294 }
 0x3c8   :  { %10962 = vst [vmem:[#allocation50_spill] sm:$0xff] %v8137_v60  ;;  %10963 = vst [vmem:[#allocation51_spill] sm:$0xff] %v8139_v0 }
 0x3c9   :  { %3708 = vrot.lane.b32.xlu0 %v3536_v10, %s6045_s15  ;;  %v5987_v10 = vunpack.i.l.bf16 %v10980_v46 }
 0x3cb   :  { %v8143_v32 = vpop.permute.xlu1 %3296  ;;  %v8145_v48 = vpop.permute.xlu0 %3329 }
 0x3cc   :  { %10964 = vst [vmem:[#allocation52_spill] sm:$0xff] %v8143_v32  ;;  %10965 = vst [vmem:[#allocation53_spill] sm:$0xff] %v8145_v48 }
 0x3cf   :  { %v8147_v59 = vpop.permute.xlu1 %3331  ;;  %v8149_v61 = vpop.permute.xlu0 %3298 }
 0x3d0   :  { %10966 = vst [vmem:[#allocation54_spill] sm:$0xff] %v8147_v59  ;;  %10967 = vst [vmem:[#allocation55_spill] sm:$0xff] %v8149_v61 }
 0x3d3   :  { %v8151_v17 = vpop.permute.xlu1 %3362  ;;  %v8153_v12 = vpop.permute.xlu0 %3333 }
 0x3d4   :  { %10968 = vst [vmem:[#allocation56_spill] sm:$0xff] %v8151_v17  ;;  %10969 = vst [vmem:[#allocation57_spill] sm:$0xff] %v8153_v12 }
 0x3d7   :  { %v8155_v4 = vpop.permute.xlu0 %3364  ;;  %v8157_v1 = vpop.permute.xlu1 %3397 }
 0x3d8   :  { %10970 = vst [vmem:[#allocation58_spill] sm:$0xff] %v8155_v4  ;;  %10971 = vst [vmem:[#allocation59_spill] sm:$0xff] %v8157_v1  ;;  %v8189_v4 = vsel %vm2225_vm12, %v5987_v10, %v5988_v50 }
 0x3d9   :  { %10986 = vst [vmem:[#allocation68_spill] sm:$0xff] %v8189_v4 }
 0x3db   :  { %v8159_v55 = vpop.permute.xlu0 %3399  ;;  %v8161_v14 = vpop.permute.xlu1 %3366 }
 0x3dc   :  { %10972 = vst [vmem:[#allocation60_spill] sm:$0xff] %v8159_v55  ;;  %10973 = vst [vmem:[#allocation61_spill] sm:$0xff] %v8161_v14  ;;  %v10983_v14 = vld [vmem:[#allocation22_spill] sm:$0xff] }
 0x3df   :  { %v8163_v40 = vpop.permute.xlu0 %3368  ;;  %v8165_v38 = vpop.permute.xlu1 %3401 }
 0x3e0   :  { %10974 = vst [vmem:[#allocation62_spill] sm:$0xff] %v8163_v40  ;;  %10975 = vst [vmem:[#allocation63_spill] sm:$0xff] %v8165_v38 }
 0x3e3   :  { %v8167_v21 = vpop.permute.xlu0 %3403  ;;  %v8169_v42 = vpop.permute.xlu1 %3434 }
 0x3e4   :  { %10976 = vst [vmem:[#allocation64_spill] sm:$0xff] %v8167_v21  ;;  %10977 = vst [vmem:[#allocation65_spill] sm:$0xff] %v8169_v42 }
 0x3e7   :  { %v8171_v19 = vpop.permute.xlu0 %3432  ;;  %v8173_v43 = vpop.permute.xlu1 %3438 }
 0x3e8   :  { %10978 = vst [vmem:[#allocation66_spill] sm:$0xff] %v8171_v19  ;;  %10979 = vst [vmem:[#allocation67_spill] sm:$0xff] %v8173_v43  ;;  %v8183_v43 = vsel %vm2225_vm12, %v5993_v56, %v5987_v10 }
 0x3e9   :  { %10984 = vst [vmem:[#allocation23_spill] sm:$0xff] %v8183_v43 }
 0x3eb   :  { %v8177_v39 = vpop.permute.xlu0 %3436  ;;  %v8185_v17 = vpop.permute.xlu1 %3197 }
 0x3ec   :  { %10982 = vst [vmem:[#allocation24_spill] sm:$0xff] %v8177_v39  ;;  %10985 = vst [vmem:[#allocation22_spill] sm:$0xff] %v8185_v17 }
 0x3ef   :  { %v8191_v46 = vpop.permute.xlu0 %3195  ;;  %v8202_v56 = vpop.permute.xlu1 %3201 }
 0x3f0   :  { %10987 = vst [vmem:[#allocation69_spill] sm:$0xff] %v8191_v46  ;;  %10988 = vst [vmem:[#allocation70_spill] sm:$0xff] %v8202_v56 }
 0x3f1   :  { %v1979_v54 = vpop.f32.mrb[12].mxu0 }
 0x3f2   :  { %v1980_v40 = vadd.f32 %v1979_v54, %v10983_v14  ;;  %v1981_v38 = vpop.f32.mrb[13].mxu0 }
 0x3f3   :  { %v1982_v21 = vadd.f32 %v1981_v38, %v10983_v14  ;;  %v1983_v42 = vpop.f32.mrb[14].mxu0 }
 0x3f4   :  { %v2190_v1 = vmax.f32 %v1980_v40, 0.0  ;;  %v1984_v19 = vpop.f32.mrb[15].mxu0 }
 0x3f5   :  { %v2191_v55 = vmax.f32 %v1982_v21, 0.0 }
 0x3f6   :  { %v2248_v39 = vmul.f32 %v8183_v43, %v2190_v1  ;;  %v8204_v1 = vpop.permute.xlu0 %3199 }
 0x3f7   :  { %v2249_v54 = vmul.f32 %v8189_v4, %v2191_v55  ;;  %10989 = vst [vmem:[#allocation71_spill] sm:$0xff] %v8204_v1 }
 0x3f8   :  { %v8194_v52 = vpack.c.bf16 %v2248_v39, %v2248_v39  ;;  %v8210_v39 = vpop.permute.xlu1 %3232 }
 0x3f9   :  { %v8196_v38 = vpack.c.bf16 %v2249_v54, %v2249_v54  ;;  %10990 = vst [vmem:[#allocation72_spill] sm:$0xff] %v8210_v39  ;;  %v5992_v54 = vunpack.i.l.bf16 %v10981_v34 }
 0x3fa   :  { %2324 = vrot.lane.b32.xlu1 %v8194_v52, %s6038_s22  ;;  %v2281_v40 = vrot.slane %v8194_v52, 4  ;;  %v8214_v55 = vpop.permute.xlu0 %3230 }
 0x3fb   :  { %2518 = vrot.lane.b32.xlu0 %v8196_v38, %s6044_s30  ;;  %10991 = vst [vmem:[#allocation73_spill] sm:$0xff] %v8214_v55 }
 0x3fc   :  { %v8222_v4 = vpop.permute.xlu1 %3267 }
 0x3fd   :  { %10992 = vst [vmem:[#allocation74_spill] sm:$0xff] %v8222_v4 }
 0x3fe   :  { %2388 = vrot.lane.b32.xlu1 %v8194_v52, %s6040_s26  ;;  %v8224_v39 = vpop.permute.xlu0 %3265 }
 0x3ff   :  { %2292 = vrot.lane.b32.xlu0 %v2281_v40, %s6037_s21  ;;  %10993 = vst [vmem:[#allocation75_spill] sm:$0xff] %v8224_v39 }
 0x400   :  { %v8234_v56 = vpop.permute.xlu1 %3236 }
 0x401   :  { %10995 = vst [vmem:[#allocation77_spill] sm:$0xff] %v8234_v56 }
 0x402   :  { %2452 = vrot.lane.b32.xlu1 %v8194_v52, %s6042_s28  ;;  %v8238_v34 = vpop.permute.xlu0 %3234 }
 0x403   :  { %2356 = vrot.lane.b32.xlu0 %v2281_v40, %s6039_s23  ;;  %10996 = vst [vmem:[#allocation78_spill] sm:$0xff] %v8238_v34 }
 0x405   :  { %v2020_v21 = vpop.f32.mrb[12].mxu1 }
 0x406   :  { %v2021_v42 = vadd.f32 %v2020_v21, %v10983_v14  ;;  %v2022_v19 = vpop.f32.mrb[13].mxu1  ;;  %2516 = vrot.lane.b32.xlu1 %v8194_v52, %s6044_s30  ;;  %v8230_v21 = vsel %vm2225_vm12, %v5988_v50, %v5992_v54  ;;  %v10997_v50 = vld [vmem:[#allocation26_spill] sm:$0xff] }
 0x407   :  { %2420 = vrot.lane.b32.xlu0 %v2281_v40, %s6041_s27  ;;  %v2024_v10 = vpop.f32.mrb[14].mxu1  ;;  %10994 = vst [vmem:[#allocation76_spill] sm:$0xff] %v8230_v21 }
 0x408   :  { %v2025_v43 = vpop.f32.mrb[15].mxu1  ;;  %v2192_v55 = vmax.f32 %v2021_v42, 0.0  ;;  %v2282_v10 = vrot.slane %v8196_v38, 4  ;;  %v8249_v42 = vpop.permute.xlu1 %3271 }
 0x409   :  { %10998 = vst [vmem:[#allocation26_spill] sm:$0xff] %v8249_v42 }
 0x40a   :  { %2326 = vrot.lane.b32.xlu1 %v8196_v38, %s6038_s22  ;;  %v2250_v1 = vmul.f32 %v8230_v21, %v2192_v55  ;;  %v5997_v55 = vunpack.i.l.bf16 %v10997_v50  ;;  %v8251_v21 = vpop.permute.xlu0 %3269 }
 0x40b   :  { %2484 = vrot.lane.b32.xlu0 %v2281_v40, %s6043_s29  ;;  %v2023_v40 = vadd.f32 %v2022_v19, %v10983_v14  ;;  %10999 = vst [vmem:[#allocation79_spill] sm:$0xff] %v8251_v21 }
 0x40c   :  { %v8241_v43 = vpack.c.bf16 %v2250_v1, %v2250_v1  ;;  %v8257_v1 = vsel %vm2225_vm12, %v5992_v54, %v5997_v55  ;;  %v8260_v34 = vpop.permute.xlu1 %3302 }
 0x40d   :  { %v2193_v56 = vmax.f32 %v2023_v40, 0.0  ;;  %11000 = vst [vmem:[#allocation80_spill] sm:$0xff] %v8257_v1  ;;  %11001 = vst [vmem:[#allocation81_spill] sm:$0xff] %v8260_v34 }
 0x40e   :  { %2390 = vrot.lane.b32.xlu1 %v8196_v38, %s6040_s26  ;;  %v8263_v39 = vpop.permute.xlu0 %3300 }
 0x40f   :  { %2294 = vrot.lane.b32.xlu0 %v2282_v10, %s6037_s21  ;;  %v2251_v19 = vmul.f32 %v8257_v1, %v2193_v56  ;;  %11002 = vst [vmem:[#allocation82_spill] sm:$0xff] %v8263_v39  ;;  %v5998_v56 = vunpack.i.h.bf16 %v10997_v50 }
 0x410   :  { %v8272_v54 = vpop.permute.xlu1 %3337 }
 0x411   :  { %v8267_v40 = vpack.c.bf16 %v2251_v19, %v2251_v19  ;;  %11003 = vst [vmem:[#allocation83_spill] sm:$0xff] %v8272_v54  ;;  %v8289_v4 = vsel %vm2225_vm12, %v5997_v55, %v5998_v56  ;;  %v11011_v55 = vld [vmem:[#allocation25_spill] sm:$0xff] }
 0x412   :  { %2454 = vrot.lane.b32.xlu1 %v8196_v38, %s6042_s28  ;;  %v8274_v21 = vpop.permute.xlu0 %3335  ;;  %11007 = vst [vmem:[#allocation87_spill] sm:$0xff] %v8289_v4 }
 0x413   :  { %2328 = vrot.lane.b32.xlu0 %v8241_v43, %s6038_s22  ;;  %11004 = vst [vmem:[#allocation84_spill] sm:$0xff] %v8274_v21 }
 0x414   :  { %v8281_v19 = vpop.permute.xlu1 %3306 }
 0x415   :  { %11005 = vst [vmem:[#allocation85_spill] sm:$0xff] %v8281_v19 }
 0x416   :  { %2358 = vrot.lane.b32.xlu1 %v2282_v10, %s6039_s23  ;;  %v8284_v34 = vpop.permute.xlu0 %3304 }
 0x417   :  { %2392 = vrot.lane.b32.xlu0 %v8241_v43, %s6040_s26  ;;  %11006 = vst [vmem:[#allocation86_spill] sm:$0xff] %v8284_v34  ;;  %v2283_v34 = vrot.slane %v8241_v43, 4 }
 0x418   :  { %v8294_v50 = vpop.permute.xlu1 %3341 }
 0x419   :  { %11008 = vst [vmem:[#allocation88_spill] sm:$0xff] %v8294_v50 }
 0x41a   :  { %2422 = vrot.lane.b32.xlu1 %v2282_v10, %s6041_s27  ;;  %v8298_v19 = vpop.permute.xlu0 %3339 }
 0x41b   :  { %2456 = vrot.lane.b32.xlu0 %v8241_v43, %s6042_s28  ;;  %11010 = vst [vmem:[#allocation90_spill] sm:$0xff] %v8298_v19 }
 0x41e   :  { %2486 = vrot.lane.b32.xlu1 %v2282_v10, %s6043_s29 }
 0x41f   :  { %2330 = vrot.lane.b32.xlu0 %v8267_v40, %s6038_s22 }
 0x422   :  { %2520 = vrot.lane.b32.xlu1 %v8241_v43, %s6044_s30 }
 0x423   :  { %2394 = vrot.lane.b32.xlu0 %v8267_v40, %s6040_s26 }
 0x425   :  { %v2061_v1 = vpop.f32.mrb[16].mxu0 }
 0x426   :  { %v2062_v10 = vadd.f32 %v2061_v1, %v10983_v14  ;;  %v2063_v39 = vpop.f32.mrb[17].mxu0 }
 0x427   :  { %v2065_v42 = vpop.f32.mrb[18].mxu0  ;;  %2458 = vrot.lane.b32.xlu0 %v8267_v40, %s6042_s28 }
 0x428   :  { %v2194_v21 = vmax.f32 %v2062_v10, 0.0  ;;  %v2066_v54 = vpop.f32.mrb[19].mxu0  ;;  %v2064_v42 = vadd.f32 %v2063_v39, %v10983_v14  ;;  %v8306_v10 = vpop.permute.xlu1 %3372 }
 0x429   :  { %11012 = vst [vmem:[#allocation25_spill] sm:$0xff] %v8306_v10 }
 0x42a   :  { %v2252_v46 = vmul.f32 %v8289_v4, %v2194_v21  ;;  %v6002_v21 = vunpack.i.l.bf16 %v11011_v55  ;;  %v2195_v54 = vmax.f32 %v2064_v42, 0.0 }
 0x42b   :  { %2522 = vrot.lane.b32.xlu0 %v8267_v40, %s6044_s30 }
 0x42c   :  { %v8296_v1 = vpack.c.bf16 %v2252_v46, %v2252_v46  ;;  %v8310_v46 = vpop.permute.xlu0 %3370  ;;  %v8314_v39 = vsel %vm2225_vm12, %v5998_v56, %v6002_v21  ;;  %v8320_v42 = vpop.permute.xlu1 %3407 }
 0x42d   :  { %11013 = vst [vmem:[#allocation91_spill] sm:$0xff] %v8310_v46  ;;  %11014 = vst [vmem:[#allocation92_spill] sm:$0xff] %v8314_v39  ;;  %v2253_v4 = vmul.f32 %v8314_v39, %v2195_v54  ;;  %v2284_v39 = vrot.slane %v8267_v40, 4 }
 0x42e   :  { %11009 = vst [vmem:[#allocation89_spill] sm:$0xff] %v8296_v1  ;;  %2332 = vrot.lane.b32.xlu1 %v8296_v1, %s6038_s22  ;;  %11015 = vst [vmem:[#allocation93_spill] sm:$0xff] %v8320_v42 }
 0x42f   :  { %2360 = vrot.lane.b32.xlu0 %v2283_v34, %s6039_s23  ;;  %v8324_v19 = vpack.c.bf16 %v2253_v4, %v2253_v4 }
 0x430   :  { %v8322_v10 = vpop.permute.xlu0 %3405  ;;  %v8330_v56 = vpop.permute.xlu1 %3376 }
 0x431   :  { %11016 = vst [vmem:[#allocation94_spill] sm:$0xff] %v8322_v10  ;;  %11017 = vst [vmem:[#allocation95_spill] sm:$0xff] %v8324_v19 }
 0x432   :  { %2396 = vrot.lane.b32.xlu1 %v8296_v1, %s6040_s26  ;;  %11018 = vst [vmem:[#allocation96_spill] sm:$0xff] %v8330_v56  ;;  %v2285_v56 = vrot.slane %v8296_v1, 4 }
 0x433   :  { %2424 = vrot.lane.b32.xlu0 %v2283_v34, %s6041_s27 }
 0x434   :  { %v8333_v54 = vpop.permute.xlu0 %3374  ;;  %v8341_v4 = vpop.permute.xlu1 %3411 }
 0x435   :  { %11019 = vst [vmem:[#allocation97_spill] sm:$0xff] %v8333_v54  ;;  %11020 = vst [vmem:[#allocation98_spill] sm:$0xff] %v8341_v4 }
 0x436   :  { %2460 = vrot.lane.b32.xlu1 %v8296_v1, %s6042_s28 }
 0x437   :  { %2488 = vrot.lane.b32.xlu0 %v2283_v34, %s6043_s29 }
 0x438   :  { %v8343_v10 = vpop.permute.xlu0 %3409  ;;  %v8350_v42 = vpop.permute.xlu1 %3442 }
 0x439   :  { %11021 = vst [vmem:[#allocation99_spill] sm:$0xff] %v8343_v10  ;;  %11022 = vst [vmem:[#allocation100_spill] sm:$0xff] %v8350_v42 }
 0x43a   :  { %2524 = vrot.lane.b32.xlu1 %v8296_v1, %s6044_s30 }
 0x43b   :  { %2334 = vrot.lane.b32.xlu0 %v8324_v19, %s6038_s22 }
 0x43c   :  { %v8354_v4 = vpop.permute.xlu0 %3440  ;;  %v8363_v42 = vpop.permute.xlu1 %3446 }
 0x43d   :  { %11023 = vst [vmem:[#allocation101_spill] sm:$0xff] %v8354_v4  ;;  %11025 = vst [vmem:[#allocation103_spill] sm:$0xff] %v8363_v42 }
 0x43e   :  { %2296 = vrot.lane.b32.xlu1 %v2283_v34, %s6037_s21  ;;  %v6003_v34 = vunpack.i.h.bf16 %v11011_v55 }
 0x43f   :  { %2398 = vrot.lane.b32.xlu0 %v8324_v19, %s6040_s26 }
 0x440   :  { %v8358_v12 = vsel %vm2225_vm12, %v6002_v21, %v6003_v34  ;;  %v8367_v61 = vpop.permute.xlu0 %3444  ;;  %v11029_v21 = vld [vmem:[#allocation30_spill] sm:$0xff] }
 0x441   :  { %11024 = vst [vmem:[#allocation102_spill] sm:$0xff] %v8358_v12  ;;  %11027 = vst [vmem:[#allocation105_spill] sm:$0xff] %v8367_v61 }
 0x442   :  { %2298 = vrot.lane.b32.xlu1 %v2284_v39, %s6037_s21 }
 0x443   :  { %2462 = vrot.lane.b32.xlu0 %v8324_v19, %s6042_s28 }
 0x446   :  { %2362 = vrot.lane.b32.xlu1 %v2284_v39, %s6039_s23 }
 0x447   :  { %2526 = vrot.lane.b32.xlu0 %v8324_v19, %s6044_s30 }
 0x449   :  { %v2102_v54 = vpop.f32.mrb[16].mxu1 }
 0x44a   :  { %v2103_v46 = vadd.f32 %v2102_v54, %v10983_v14  ;;  %v2104_v50 = vpop.f32.mrb[17].mxu1  ;;  %2426 = vrot.lane.b32.xlu1 %v2284_v39, %s6041_s27 }
 0x44b   :  { %v2106_v10 = vpop.f32.mrb[18].mxu1  ;;  %2300 = vrot.lane.b32.xlu0 %v2285_v56, %s6037_s21 }
 0x44c   :  { %v2196_v17 = vmax.f32 %v2103_v46, 0.0  ;;  %v2107_v59 = vpop.f32.mrb[19].mxu1  ;;  %v6008_v46 = vunpack.i.h.bf16 %v11029_v21 }
 0x44d   :  { %v2143_v55 = vpop.f32.mrb[20].mxu0 }
 0x44e   :  { %v2254_v1 = vmul.f32 %v8358_v12, %v2196_v17  ;;  %v2145_v32 = vpop.f32.mrb[21].mxu0  ;;  %2490 = vrot.lane.b32.xlu1 %v2284_v39, %s6043_s29  ;;  %v2144_v59 = vadd.f32 %v2143_v55, %v10983_v14  ;;  %v8373_v17 = vpop.permute.xlu1 %3662 }
 0x44f   :  { %2364 = vrot.lane.b32.xlu0 %v2285_v56, %s6039_s23  ;;  %v2147_v54 = vpop.f32.mrb[22].mxu0  ;;  %11028 = vst [vmem:[#allocation106_spill] sm:$0xff] %v8373_v17  ;;  %v8378_v39 = vpop.permute.xlu0 %3660 }
 0x450   :  { %v8365_v4 = vpack.c.bf16 %v2254_v1, %v2254_v1  ;;  %v2148_v10 = vpop.f32.mrb[23].mxu0  ;;  %11030 = vst [vmem:[#allocation30_spill] sm:$0xff] %v8378_v39  ;;  %v2198_v1 = vmax.f32 %v2144_v59, 0.0  ;;  %v6007_v54 = vunpack.i.l.bf16 %v11029_v21 }
 0x451   :  { %v2286_v10 = vrot.slane %v8324_v19, 4 }
 0x452   :  { %11026 = vst [vmem:[#allocation104_spill] sm:$0xff] %v8365_v4  ;;  %2336 = vrot.lane.b32.xlu1 %v8365_v4, %s6038_s22  ;;  %v8386_v55 = vsel %vm2225_vm12, %v6007_v54, %v6008_v46  ;;  %v8389_v12 = vpop.permute.xlu1 %3684 }
 0x453   :  { %2428 = vrot.lane.b32.xlu0 %v2285_v56, %s6041_s27  ;;  %11031 = vst [vmem:[#allocation107_spill] sm:$0xff] %v8386_v55  ;;  %11032 = vst [vmem:[#allocation108_spill] sm:$0xff] %v8389_v12  ;;  %v2256_v17 = vmul.f32 %v8386_v55, %v2198_v1  ;;  %v8392_v39 = vpop.permute.xlu0 %3658  ;;  %v2287_v55 = vrot.slane %v8365_v4, 4 }
 0x454   :  { %11033 = vst [vmem:[#allocation109_spill] sm:$0xff] %v8392_v39 }
 0x455   :  { %v8398_v42 = vpack.c.bf16 %v2256_v17, %v2256_v17 }
 0x456   :  { %2400 = vrot.lane.b32.xlu1 %v8365_v4, %s6040_s26  ;;  %v8400_v25 = vpop.permute.xlu1 %3682 }
 0x457   :  { %2492 = vrot.lane.b32.xlu0 %v2285_v56, %s6043_s29  ;;  %v2105_v56 = vadd.f32 %v2104_v50, %v10983_v14  ;;  %11034 = vst [vmem:[#allocation110_spill] sm:$0xff] %v8398_v42  ;;  %11035 = vst [vmem:[#allocation111_spill] sm:$0xff] %v8400_v25  ;;  %v8404_v1 = vpop.permute.xlu0 %3686  ;;  %v8408_v50 = vsel %vm2225_vm12, %v6003_v34, %v6007_v54  ;;  %v2289_v48 = vrot.slane %v8398_v42, 4 }
 0x458   :  { %11036 = vst [vmem:[#allocation112_spill] sm:$0xff] %v8404_v1  ;;  %11037 = vst [vmem:[#allocation113_spill] sm:$0xff] %v8408_v50 }
 0x459   :  { %v2197_v49 = vmax.f32 %v2105_v56, 0.0 }
 0x45a   :  { %2464 = vrot.lane.b32.xlu1 %v8365_v4, %s6042_s28 }
 0x45b   :  { %2302 = vrot.lane.b32.xlu0 %v2286_v10, %s6037_s21 }
 0x45d   :  { %v2184_v59 = vpop.f32.mrb[20].mxu1 }
 0x45e   :  { %2528 = vrot.lane.b32.xlu1 %v8365_v4, %s6044_s30  ;;  %v5922_v21 = vpop.f32.mrb[21].mxu1  ;;  %v2185_v0 = vadd.f32 %v2184_v59, %v10983_v14  ;;  %v3308_v59 = vsel %vm340_vm5, %v7993_v26, %v7966_v8 }
 0x45f   :  { %2366 = vrot.lane.b32.xlu0 %v2286_v10, %s6039_s23  ;;  %v2187_v61 = vpop.f32.mrb[22].mxu1  ;;  %v2255_v21 = vmul.f32 %v8408_v50, %v2197_v49  ;;  %v2146_v49 = vadd.f32 %v2145_v32, %v10983_v14  ;;  %v3343_v14 = vsel %vm376_vm4, %v7983_v35, %v7964_v7 }
 0x460   :  { %v5923_v19 = vpop.f32.mrb[23].mxu1  ;;  %v8414_v61 = vpop.permute.xlu1 %3710  ;;  %v2200_v27 = vmax.f32 %v2185_v0, 0.0 }
 0x461   :  { %11038 = vst [vmem:[#allocation114_spill] sm:$0xff] %v8414_v61  ;;  %v8416_v19 = vpop.permute.xlu0 %3708  ;;  %v8418_v17 = vpack.c.bf16 %v2255_v21, %v2255_v21  ;;  %v2199_v50 = vmax.f32 %v2146_v49, 0.0 }
 0x462   :  { %2340 = vrot.lane.b32.xlu1 %v8398_v42, %s6038_s22  ;;  %11039 = vst [vmem:[#allocation115_spill] sm:$0xff] %v8416_v19 }
 0x463   :  { %2430 = vrot.lane.b32.xlu0 %v2286_v10, %s6041_s27  ;;  %11040 = vst [vmem:[#allocation116_spill] sm:$0xff] %v8418_v17 }
 0x466   :  { %2404 = vrot.lane.b32.xlu1 %v8398_v42, %s6040_s26 }
 0x467   :  { %2494 = vrot.lane.b32.xlu0 %v2286_v10, %s6043_s29  ;;  %v11041_v10 = vld [vmem:[#allocation28_spill] sm:$0xff] }
 0x468   :  { %v6012_v56 = vunpack.i.l.bf16 %v11041_v10  ;;  %v6013_v31 = vunpack.i.h.bf16 %v11041_v10 }
 0x46a   :  { %2468 = vrot.lane.b32.xlu1 %v8398_v42, %s6042_s28  ;;  %v8443_v32 = vsel %vm2225_vm12, %v6008_v46, %v6012_v56 }
 0x46b   :  { %2338 = vrot.lane.b32.xlu0 %v8418_v17, %s6038_s22  ;;  %11042 = vst [vmem:[#allocation28_spill] sm:$0xff] %v8443_v32  ;;  %v2257_v25 = vmul.f32 %v8443_v32, %v2199_v50  ;;  %v2288_v32 = vrot.slane %v8418_v17, 4 }
 0x46c   :  { %v8424_v34 = vpop.permute.xlu1 %2324 }
 0x46d   :  { %v8427_v54 = vpop.permute.xlu0 %2518  ;;  %v8455_v1 = vpack.c.bf16 %v2257_v25, %v2257_v25 }
 0x46e   :  { %2532 = vrot.lane.b32.xlu1 %v8398_v42, %s6044_s30 }
 0x46f   :  { %2402 = vrot.lane.b32.xlu0 %v8418_v17, %s6040_s26  ;;  %v2290_v42 = vrot.slane %v8455_v1, 4 }
 0x470   :  { %v8434_v21 = vpop.permute.xlu1 %2388 }
 0x471   :  { %v8437_v19 = vpop.permute.xlu0 %2292 }
 0x472   :  { %2304 = vrot.lane.b32.xlu1 %v2287_v55, %s6037_s21 }
 0x473   :  { %2466 = vrot.lane.b32.xlu0 %v8418_v17, %s6042_s28 }
 0x474   :  { %v8445_v61 = vpop.permute.xlu1 %2452 }
 0x475   :  { %v8448_v12 = vpop.permute.xlu0 %2356 }
 0x476   :  { %2368 = vrot.lane.b32.xlu1 %v2287_v55, %s6039_s23 }
 0x477   :  { %2530 = vrot.lane.b32.xlu0 %v8418_v17, %s6044_s30 }
 0x478   :  { %v8453_v49 = vpop.permute.xlu1 %2516 }
 0x479   :  { %v8457_v39 = vpop.permute.xlu0 %2420 }
 0x47a   :  { %2432 = vrot.lane.b32.xlu1 %v2287_v55, %s6041_s27 }
 0x47b   :  { %2406 = vrot.lane.b32.xlu0 %v8455_v1, %s6040_s26 }
 0x47c   :  { %v8462_v46 = vpop.permute.xlu1 %2326 }
 0x47d   :  { %v8464_v50 = vpop.permute.xlu0 %2484 }
 0x47e   :  { %2496 = vrot.lane.b32.xlu1 %v2287_v55, %s6043_s29 }
 0x47f   :  { %2306 = vrot.lane.b32.xlu0 %v2288_v32, %s6037_s21 }
 0x480   :  { %v8469_v4 = vpop.permute.xlu1 %2390 }
 0x481   :  { %v8471_v25 = vpop.permute.xlu0 %2294 }
 0x482   :  { %2342 = vrot.lane.b32.xlu1 %v8455_v1, %s6038_s22 }
 0x483   :  { %2370 = vrot.lane.b32.xlu0 %v2288_v32, %s6039_s23 }
 0x484   :  { %v8476_v60 = vpop.permute.xlu1 %2454 }
 0x485   :  { %v8479_v44 = vpop.permute.xlu0 %2328 }
 0x486   :  { %2308 = vrot.lane.b32.xlu1 %v2289_v48, %s6037_s21 }
 0x487   :  { %2434 = vrot.lane.b32.xlu0 %v2288_v32, %s6041_s27 }
 0x488   :  { %v8485_v17 = vpop.permute.xlu1 %2358 }
 0x489   :  { %v8483_v55 = vpop.permute.xlu0 %2392 }
 0x48a   :  { %2372 = vrot.lane.b32.xlu1 %v2289_v48, %s6039_s23 }
 0x48b   :  { %2498 = vrot.lane.b32.xlu0 %v2288_v32, %s6043_s29  ;;  %v8509_v32 = vsel %vm2225_vm12, %v6012_v56, %v6013_v31  ;;  %v3414_v31 = vsel %vm448_vm6, %v7999_v29, %v8017_v11 }
 0x48c   :  { %v8496_v36 = vpop.permute.xlu1 %2422  ;;  %11044 = vst [vmem:[#allocation118_spill] sm:$0xff] %v8509_v32  ;;  %v2258_v10 = vmul.f32 %v8509_v32, %v2200_v27  ;;  %v3379_v27 = vsel %vm412_vm7, %v8001_v37, %v7991_v51 }
 0x48d   :  { %v8490_v24 = vpop.permute.xlu0 %2456 }
 0x48e   :  { %2436 = vrot.lane.b32.xlu1 %v2289_v48, %s6041_s27  ;;  %v2269_v7 = vpack.c.bf16 %v2258_v10, %v2258_v10 }
 0x48f   :  { %2310 = vrot.lane.b32.xlu0 %v2290_v42, %s6037_s21 }
 0x490   :  { %v2291_v10 = vrot.slane %v2269_v7, 4 }
 0x491   :  { %v8498_v47 = vpop.permute.xlu0 %2330 }
 0x492   :  { %11043 = vst [vmem:[#allocation117_spill] sm:$0xff] %v8498_v47  ;;  %2500 = vrot.lane.b32.xlu1 %v2289_v48, %s6043_s29  ;;  %v8514_v47 = vpop.permute.xlu1 %2486  ;;  %v3533_v48 = vsel %vm496_vm1, %v3308_v59, %v3343_v14  ;;  %v3572_v59 = vsel %vm496_vm1, %v3379_v27, %v3414_v31 }
 0x493   :  { %2438 = vrot.lane.b32.xlu0 %v2290_v42, %s6041_s27 }
 0x495   :  { %v8512_v0 = vpop.permute.xlu0 %2394 }
 0x496   :  { %11045 = vst [vmem:[#allocation119_spill] sm:$0xff] %v8512_v0  ;;  %2374 = vrot.lane.b32.xlu1 %v2290_v42, %s6039_s23  ;;  %v8524_v8 = vpop.permute.xlu1 %2520 }
 0x497   :  { %3706 = vrot.lane.b32.xlu0 %v3533_v48, %s6045_s15 }
 0x499   :  { %v8519_v35 = vpop.permute.xlu0 %2458 }
 0x49a   :  { %11046 = vst [vmem:[#allocation120_spill] sm:$0xff] %v8519_v35  ;;  %2470 = vrot.lane.b32.xlu1 %v8455_v1, %s6042_s28 }
 0x49b   :  { %2344 = vrot.lane.b32.xlu0 %v2269_v7, %s6038_s22 }
 0x49d   :  { %v8526_v26 = vpop.permute.xlu0 %2522 }
 0x49e   :  { %11047 = vst [vmem:[#allocation121_spill] sm:$0xff] %v8526_v26  ;;  %2502 = vrot.lane.b32.xlu1 %v2290_v42, %s6043_s29  ;;  %v3380_v42 = vsel %vm412_vm7, %v7991_v51, %v8009_v18  ;;  %v3415_v26 = vsel %vm448_vm6, %v8017_v11, %v8007_v22  ;;  %v3413_v51 = vsel %vm448_vm6, %v8015_v6, %v7999_v29 }
 0x49f   :  { %2472 = vrot.lane.b32.xlu0 %v2269_v7, %s6042_s28  ;;  %v3378_v11 = vsel %vm412_vm7, %v8025_v53, %v8001_v37  ;;  %v3448_v53 = vsel %vm484_vm8, %v8033_v62, %v8023_v5 }
 0x4a0   :  { %v8536_v56 = vpop.permute.xlu1 %2332  ;;  %v3569_v37 = vsel %vm496_vm1, %v3378_v11, %v3413_v51  ;;  %v2378_v51 = vsel %vm304_vm2, %v8448_v12, %v8485_v17  ;;  %v3207_v12 = vsel %vm232_vm0, %v8039_v20, %v8049_v16 }
 0x4a1   :  { %v8538_v14 = vpop.permute.xlu0 %2360 }
 0x4a2   :  { %3732 = vrot.lane.b32.xlu1 %v3572_v59, %s6045_s15  ;;  %v3575_v59 = vsel %vm496_vm1, %v3380_v42, %v3415_v26  ;;  %v2314_v26 = vsel %vm232_vm0, %v8437_v19, %v8471_v25 }
 0x4a3   :  { %2376 = vrot.lane.b32.xlu0 %v2291_v10, %s6039_s23 }
 0x4a4   :  { %v8543_v48 = vpop.permute.xlu1 %2396 }
 0x4a5   :  { %v8545_v32 = vpop.permute.xlu0 %2424 }
 0x4a6   :  { %2408 = vrot.lane.b32.xlu1 %v2269_v7, %s6040_s26 }
 0x4a7   :  { %2504 = vrot.lane.b32.xlu0 %v2291_v10, %s6043_s29 }
 0x4a8   :  { %v8555_v27 = vpop.permute.xlu1 %2460 }
 0x4a9   :  { %v8557_v31 = vpop.permute.xlu0 %2488 }
 0x4aa   :  { %2312 = vrot.lane.b32.xlu1 %v2291_v10, %s6037_s21 }
 0x4ab   :  { %3734 = vrot.lane.b32.xlu0 %v3575_v59, %s6045_s15  ;;  %v2379_v59 = vsel %vm304_vm2, %v8485_v17, %v8538_v14  ;;  %v2411_v17 = vsel %vm340_vm5, %v8469_v4, %v8483_v55 }
 0x4ac   :  { %v8562_v35 = vpop.permute.xlu1 %2524 }
 0x4ad   :  { %v8564_v0 = vpop.permute.xlu0 %2334 }
 0x4ae   :  { %2440 = vrot.lane.b32.xlu1 %v2291_v10, %s6041_s27  ;;  %v2347_v10 = vsel %vm268_vm3, %v8462_v46, %v8479_v44 }
 0x4af   :  { %2534 = vrot.lane.b32.xlu0 %v8455_v1, %s6044_s30  ;;  %v2594_v11 = vsel %vm496_vm1, %v2347_v10, %v2379_v59  ;;  %v2507_v59 = vsel %vm448_vm6, %v8514_v47, %v8557_v31  ;;  %v3206_v10 = vsel %vm232_vm0, %v7876_v57, %v8039_v20  ;;  %v2506_v20 = vsel %vm448_vm6, %v8464_v50, %v8514_v47 }
 0x4b0   :  { %v2297_v42 = vpop.permute.xlu1 %2296  ;;  %v2474_v47 = vsel %vm412_vm7, %v8445_v61, %v8476_v60  ;;  %v2538_v61 = vsel %vm484_vm8, %v8453_v49, %v8427_v54 }
 0x4b1   :  { %v2315_v29 = vsel %vm232_vm0, %v8471_v25, %v2297_v42  ;;  %v8583_v6 = vpop.permute.xlu0 %2398  ;;  %v2550_v25 = vsel %vm496_vm1, %v8194_v52, %v2314_v26  ;;  %v3450_v52 = vsel %vm484_vm8, %v8041_v13, %v8031_v63 }
 0x4b2   :  { %3730 = vrot.lane.b32.xlu1 %v3569_v37, %s6045_s15  ;;  %v2554_v19 = vsel %vm496_vm1, %v8196_v38, %v2315_v29  ;;  %v2443_v38 = vsel %vm376_vm4, %v8496_v36, %v8545_v32  ;;  %v2346_v37 = vsel %vm268_vm3, %v8424_v34, %v8462_v46  ;;  %v2442_v34 = vsel %vm376_vm4, %v8457_v39, %v8496_v36 }
 0x4b3   :  { %3754 = vrot.lane.b32.xlu0 %v3448_v53, %s6045_s15  ;;  %2748 = vmatprep.subr.bf16.mxu0 %v2554_v19  ;;  %v2590_v26 = vsel %vm496_vm1, %v2346_v37, %v2378_v51  ;;  %v3449_v19 = vsel %vm484_vm8, %v8023_v5, %v8041_v13  ;;  %v2410_v36 = vsel %vm340_vm5, %v8434_v21, %v8469_v4 }
 0x4b4   :  { %v2299_v62 = vpop.permute.xlu1 %2298  ;;  %2749 = vmatpush1.bf16.msra.mxu0 %v2550_v25  ;;  %v3473_v39 = vsel %vm496_vm1, %v7625_v9, %v3207_v12  ;;  %v3209_v25 = vsel %vm232_vm0, %v8047_v28, %v8057_v30  ;;  %v2475_v5 = vsel %vm412_vm7, %v8476_v60, %v8490_v24  ;;  %v2630_v57 = vsel %vm496_vm1, %v2410_v36, %v2442_v34  ;;  %v11048_v12 = vld [vmem:[#allocation47_spill] sm:$0xff]  ;;  %v11052_v34 = vld [vmem:[#allocation34_spill] sm:$0xff] }
 0x4b5   :  { %2750 = vmatprep.subr.bf16.mxu0 %v2594_v11  ;;  %v8605_v29 = vpop.permute.xlu0 %2462  ;;  %v2674_v9 = vsel %vm496_vm1, %v2475_v5, %v2507_v59  ;;  %v2316_v4 = vsel %vm232_vm0, %v2297_v42, %v2299_v62  ;;  %v3470_v51 = vsel %vm496_vm1, %v7398_v33, %v3206_v10  ;;  %v3208_v11 = vsel %vm232_vm0, %v8049_v16, %v8047_v28 }
 0x4b6   :  { %2536 = vrot.lane.b32.xlu1 %v2269_v7, %s6044_s30  ;;  %v2634_v7 = vsel %vm496_vm1, %v2411_v17, %v2443_v38  ;;  %v3479_v42 = vsel %vm496_vm1, %v7636_v15, %v3209_v25  ;;  %v3242_v33 = vsel %vm268_vm3, %v8055_v41, %v8068_v2  ;;  %v3277_v28 = vsel %vm304_vm2, %v8066_v23, %v8086_v3  ;;  %v8727_v25 = vld [vmem:[%s10767_s8] sm:$0xf] }
 0x4b7   :  { %3758 = vrot.lane.b32.xlu0 %v3450_v52, %s6045_s15  ;;  %v2670_v16 = vsel %vm496_vm1, %v2474_v47, %v2506_v20  ;;  %v2558_v38 = vsel %vm496_vm1, %v8241_v43, %v2316_v4  ;;  %v3276_v37 = vsel %vm304_vm2, %v7920_v45, %v8066_v23  ;;  %v3476_v52 = vsel %vm496_vm1, %v7638_v58, %v3208_v11  ;;  %v11050_v43 = vld [vmem:[#allocation117_spill] sm:$0xff]  ;;  %v11055_v4 = vld [vmem:[#allocation48_spill] sm:$0xff]  ;;  %v11056_v11 = vld [vmem:[#allocation119_spill] sm:$0xff] }
 0x4b8   :  { %v2363_v46 = vpop.permute.xlu1 %2362  ;;  %2751 = vmatpush1.bf16.msra.mxu0 %v2590_v26  ;;  %v2349_v26 = vsel %vm268_vm3, %v11050_v43, %v8536_v56  ;;  %v3509_v23 = vsel %vm496_vm1, %v3242_v33, %v3277_v28  ;;  %v2719_v58 = vsel %vm496_vm1, %v2538_v61, 0  ;;  %v2348_v59 = vsel %vm268_vm3, %v8479_v44, %v11050_v43  ;;  %v11063_v43 = vld [vmem:[#allocation52_spill] sm:$0xff] }
 0x4b9   :  { %2752 = vmatprep.subr.bf16.mxu0 %v2634_v7  ;;  %v8629_v53 = vpop.permute.xlu0 %2526  ;;  %v3278_v5 = vsel %vm304_vm2, %v8086_v3, %v11052_v34  ;;  %v2412_v33 = vsel %vm340_vm5, %v8483_v55, %v11056_v11 }
 0x4ba   :  { %3756 = vrot.lane.b32.xlu1 %v3449_v19, %s6045_s15 }
 0x4bb   :  { %3666 = vrot.lane.b32.xlu0 %v3473_v39, %s6045_s15 }
 0x4bc   :  { %v2427_v13 = vpop.permute.xlu1 %2426  ;;  %2753 = vmatpush1.bf16.msra.mxu0 %v2630_v57 }
 0x4bd   :  { %2754 = vmatprep.subr.bf16.mxu0 %v2674_v9  ;;  %v8656_v21 = vpop.permute.xlu0 %2300  ;;  %v11054_v9 = vld [vmem:[#allocation51_spill] sm:$0xff] }
 0x4be   :  { %v2317_v50 = vsel %vm232_vm0, %v2299_v62, %v8656_v21  ;;  %3664 = vrot.lane.b32.xlu1 %v3470_v51, %s6045_s15  ;;  %v2539_v62 = vsel %vm484_vm8, %v8427_v54, %v8524_v8  ;;  %v11049_v54 = vld [vmem:[#allocation35_spill] sm:$0xff]  ;;  %v3312_v51 = vsel %vm340_vm5, %v11055_v4, %v11054_v9 }
 0x4bf   :  { %3670 = vrot.lane.b32.xlu0 %v3479_v42, %s6045_s15  ;;  %v2562_v60 = vsel %vm496_vm1, %v8267_v40, %v2317_v50  ;;  %v2380_v40 = vsel %vm304_vm2, %v8538_v14, %v2363_v46  ;;  %v3244_v17 = vsel %vm268_vm3, %v11049_v54, %v11048_v12  ;;  %v11051_v14 = vld [vmem:[#allocation49_spill] sm:$0xff]  ;;  %v3243_v44 = vsel %vm268_vm3, %v8068_v2, %v11049_v54  ;;  %v11058_v50 = vld [vmem:[#allocation50_spill] sm:$0xff] }
 0x4c0   :  { %v2491_v15 = vpop.permute.xlu1 %2490  ;;  %2755 = vmatpush1.bf16.msra.mxu0 %v2670_v16  ;;  %2789 = vmatprep.subr.bf16.mxu1 %v2562_v60  ;;  %v3279_v7 = vsel %vm304_vm2, %v11052_v34, %v11051_v14  ;;  %v2598_v39 = vsel %vm496_vm1, %v2348_v59, %v2380_v40  ;;  %v2413_v2 = vsel %vm340_vm5, %v11056_v11, %v8543_v48  ;;  %v11059_v60 = vmov 0   ;;  %v11061_v40 = vld [vmem:[#allocation120_spill] sm:$0xff] }
 0x4c1   :  { %5830 = vmatprep.subr.msk.bf16.mxu0 %vm496_vm1, %v2539_v62  ;;  %2790 = vmatpush1.bf16.msra.mxu1 %v2558_v38  ;;  %v8695_v49 = vpop.permute.xlu0 %2364  ;;  %v3515_v3 = vsel %vm496_vm1, %v3244_v17, %v3279_v7  ;;  %v2508_v61 = vsel %vm448_vm6, %v8557_v31, %v2491_v15  ;;  %v3512_v55 = vsel %vm496_vm1, %v3243_v44, %v3278_v5  ;;  %v11060_v38 = vld [vmem:[#allocation45_spill] sm:$0xff]  ;;  %v11062_v17 = vld [vmem:[#allocation55_spill] sm:$0xff] }
 0x4c2   :  { %v2381_v45 = vsel %vm304_vm2, %v2363_v46, %v8695_v49  ;;  %3668 = vrot.lane.b32.xlu1 %v3476_v52, %s6045_s15  ;;  %v11053_v46 = vld [vmem:[#allocation43_spill] sm:$0xff]  ;;  %v2477_v52 = vsel %vm412_vm7, %v11061_v40, %v8555_v27  ;;  %v2476_v7 = vsel %vm412_vm7, %v8490_v24, %v11061_v40 }
 0x4c3   :  { %3690 = vrot.lane.b32.xlu0 %v3509_v23, %s6045_s15  ;;  %v2602_v19 = vsel %vm496_vm1, %v2349_v26, %v2381_v45  ;;  %v3241_v10 = vsel %vm268_vm3, %v11053_v46, %v8055_v41  ;;  %v2444_v41 = vsel %vm376_vm4, %v8545_v32, %v2427_v13  ;;  %v11057_v32 = vld [vmem:[#allocation53_spill] sm:$0xff]  ;;  %v3314_v26 = vsel %vm340_vm5, %v11063_v43, %v11062_v17  ;;  %v11065_v23 = vld [vmem:[#allocation54_spill] sm:$0xff] }
 0x4c4   :  { %v8721_v36 = vpop.permute.xlu1 %2336  ;;  %2757 = vmatpush1.bf16.msra.mxu0 %v2719_v58  ;;  %2791 = vmatprep.subr.bf16.mxu1 %v2602_v19  ;;  %v3506_v20 = vsel %vm496_vm1, %v3241_v10, %v3276_v37  ;;  %v3347_v42 = vsel %vm376_vm4, %v11058_v50, %v11057_v32  ;;  %v2638_v16 = vsel %vm496_vm1, %v2412_v33, %v2444_v41  ;;  %v11064_v45 = vld [vmem:[#allocation57_spill] sm:$0xff]  ;;  %v11066_v58 = vld [vmem:[#allocation46_spill] sm:$0xff] }
 0x4c5   :  { %2792 = vmatpush1.bf16.msra.mxu1 %v2598_v39  ;;  %v8737_v57 = vpop.permute.xlu0 %2428  ;;  %v3346_v37 = vsel %vm376_vm4, %v11060_v38, %v11058_v50  ;;  %v3545_v31 = vsel %vm496_vm1, %v3312_v51, %v3347_v42  ;;  %v3349_v34 = vsel %vm376_vm4, %v11065_v23, %v11064_v45  ;;  %v3311_v59 = vsel %vm340_vm5, %v11066_v58, %v11055_v4  ;;  %v11067_v10 = vld [vmem:[#allocation121_spill] sm:$0xff]  ;;  %v11068_v4 = vld [vmem:[#allocation58_spill] sm:$0xff]  ;;  %v11069_v51 = vld [vmem:[#allocation56_spill] sm:$0xff] }
 0x4c6   :  { %v2445_v47 = vsel %vm376_vm4, %v2427_v13, %v8737_v57  ;;  %3688 = vrot.lane.b32.xlu1 %v3506_v20, %s6045_s15  ;;  %v2678_v46 = vsel %vm496_vm1, %v2476_v7, %v2508_v61  ;;  %v2540_v39 = vsel %vm484_vm8, %v8524_v8, %v11067_v10  ;;  %v3542_v24 = vsel %vm496_vm1, %v3311_v59, %v3346_v37  ;;  %v11073_v61 = vld [vmem:[#allocation61_spill] sm:$0xff]  ;;  %v11074_v38 = vld [vmem:[#allocation64_spill] sm:$0xff]  ;;  %v11075_v37 = vld [vmem:[#allocation63_spill] sm:$0xff] }
 0x4c7   :  { %3694 = vrot.lane.b32.xlu0 %v3515_v3, %s6045_s15  ;;  %v2642_v28 = vsel %vm496_vm1, %v2413_v2, %v2445_v47  ;;  %5831 = vmatmul.mubr.msk.bf16.vlgmr.msra.gmra.mrb[24].mxu0 %vm920_vm10, %v8727_v25  ;;  %v2541_v5 = vsel %vm484_vm8, %v11067_v10, %v8562_v35  ;;  %v3313_v41 = vsel %vm340_vm5, %v11054_v9, %v11063_v43  ;;  %v11070_v2 = vld [vmem:[#allocation60_spill] sm:$0xff]  ;;  %v11071_v47 = vld [vmem:[#allocation59_spill] sm:$0xff]  ;;  %v11077_v58 = vld [vmem:[#allocation66_spill] sm:$0xff] }
 0x4c8   :  { %v8760_v13 = vpop.permute.xlu1 %2400  ;;  %2793 = vmatprep.subr.bf16.mxu1 %v2642_v28  ;;  %2862 = vmatprep.mubr.bf16.mxu0 %v11059_v60  ;;  %v3348_v20 = vsel %vm376_vm4, %v11057_v32, %v11065_v23  ;;  %v3551_v8 = vsel %vm496_vm1, %v3314_v26, %v3349_v34  ;;  %v3382_v11 = vsel %vm412_vm7, %v11069_v51, %v11068_v4  ;;  %v2725_v32 = vsel %vm496_vm1, %v2540_v39, 0 }
 0x4c9   :  { %2794 = vmatpush1.bf16.msra.mxu1 %v2638_v16  ;;  %v8766_v62 = vpop.permute.xlu0 %2492  ;;  %v3417_v3 = vsel %vm448_vm6, %v11071_v47, %v11070_v2  ;;  %v3548_v42 = vsel %vm496_vm1, %v3313_v41, %v3348_v20  ;;  %v3416_v33 = vsel %vm448_vm6, %v8007_v22, %v11071_v47  ;;  %v11072_v16 = vld [vmem:[#allocation62_spill] sm:$0xff]  ;;  %v3419_v40 = vsel %vm448_vm6, %v11075_v37, %v11074_v38  ;;  %v11082_v47 = vld [vmem:[#allocation36_spill] sm:$0xff] }
 0x4ca   :  { %v2509_v54 = vsel %vm448_vm6, %v2491_v15, %v8766_v62  ;;  %3692 = vrot.lane.b32.xlu1 %v3512_v55, %s6045_s15  ;;  %v3581_v28 = vsel %vm496_vm1, %v3382_v11, %v3417_v3  ;;  %v3384_v55 = vsel %vm412_vm7, %v11073_v61, %v11072_v16  ;;  %v3383_v43 = vsel %vm412_vm7, %v11068_v4, %v11073_v61  ;;  %v11080_v20 = vld [vmem:[#allocation22_spill] sm:$0xff] }
 0x4cb   :  { %3714 = vrot.lane.b32.xlu0 %v3545_v31, %s6045_s15  ;;  %v2682_v15 = vsel %vm496_vm1, %v2477_v52, %v2509_v54  ;;  %v3381_v52 = vsel %vm412_vm7, %v8009_v18, %v11069_v51  ;;  %v3418_v26 = vsel %vm448_vm6, %v11070_v2, %v11075_v37  ;;  %v3587_v18 = vsel %vm496_vm1, %v3384_v55, %v3419_v40  ;;  %v11085_v37 = vld [vmem:[#allocation41_spill] sm:$0xff] }
 0x4cc   :  { %v8793_v19 = vpop.permute.xlu1 %2464  ;;  %2795 = vmatprep.subr.bf16.mxu1 %v2682_v15  ;;  %v3578_v31 = vsel %vm496_vm1, %v3381_v52, %v3416_v33  ;;  %v3584_v7 = vsel %vm496_vm1, %v3383_v43, %v3418_v26  ;;  %v11076_v15 = vld [vmem:[#allocation65_spill] sm:$0xff]  ;;  %v3451_v39 = vsel %vm484_vm8, %v8031_v63, %v11077_v58 }
 0x4cd   :  { %2796 = vmatpush1.bf16.msra.mxu1 %v2678_v46  ;;  %v2303_v44 = vpop.permute.xlu0 %2302  ;;  %v3452_v59 = vsel %vm484_vm8, %v11077_v58, %v11076_v15  ;;  %v11091_v58 = vld [vmem:[#allocation75_spill] sm:$0xff] }
 0x4ce   :  { %3712 = vrot.lane.b32.xlu1 %v3542_v24, %s6045_s15  ;;  %5832 = vmatprep.subr.msk.bf16.mxu1 %vm496_vm1, %v2541_v5  ;;  %v11078_v24 = vld [vmem:[#allocation67_spill] sm:$0xff]  ;;  %v11079_v5 = vld [vmem:[#allocation24_spill] sm:$0xff] }
 0x4cf   :  { %3718 = vrot.lane.b32.xlu0 %v3551_v8, %s6045_s15  ;;  %v3454_v41 = vsel %vm484_vm8, %v11079_v5, %v11078_v24  ;;  %v11081_v8 = vld [vmem:[#allocation69_spill] sm:$0xff]  ;;  %v3453_v63 = vsel %vm484_vm8, %v11076_v15, %v11079_v5  ;;  %v11090_v15 = vld [vmem:[#allocation74_spill] sm:$0xff] }
 0x4d0   :  { %v8819_v9 = vpop.permute.xlu1 %2528  ;;  %v3211_v4 = vsel %vm232_vm0, %v11081_v8, %v11080_v20  ;;  %v3210_v2 = vsel %vm232_vm0, %v8057_v30, %v11081_v8  ;;  %v2351_v8 = vsel %vm268_vm3, %v8564_v0, %v8721_v36 }
 0x4d1   :  { %2798 = vmatpush1.bf16.msra.mxu1 %v2725_v32  ;;  %v2367_v50 = vpop.permute.xlu0 %2366  ;;  %v3485_v3 = vsel %vm496_vm1, %v11082_v47, %v3211_v4  ;;  %v11083_v32 = vld [vmem:[#allocation70_spill] sm:$0xff]  ;;  %v3482_v40 = vsel %vm496_vm1, %v11085_v37, %v3210_v2 }
 0x4d2   :  { %3716 = vrot.lane.b32.xlu1 %v3548_v42, %s6045_s15  ;;  %v11084_v42 = vld [vmem:[#allocation71_spill] sm:$0xff]  ;;  %v11093_v2 = vld [vmem:[#allocation42_spill] sm:$0xff] }
 0x4d3   :  { %3738 = vrot.lane.b32.xlu0 %v3581_v28, %s6045_s15  ;;  %v3213_v33 = vsel %vm232_vm0, %v11084_v42, %v11083_v32  ;;  %v2318_v28 = vsel %vm232_vm0, %v8656_v21, %v2303_v44  ;;  %v3212_v52 = vsel %vm232_vm0, %v11080_v20, %v11084_v42  ;;  %v11087_v21 = vld [vmem:[#allocation95_spill] sm:$0xff]  ;;  %v11096_v37 = vld [vmem:[#allocation26_spill] sm:$0xff] }
 0x4d4   :  { %v8838_v54 = vpop.permute.xlu1 %2340  ;;  %5833 = vmatmul.mubr.msk.bf16.vlgmr.msra.gmra.mrb[24].mxu1 %vm920_vm10, %v8727_v25  ;;  %v3488_v47 = vsel %vm496_vm1, %v11093_v2, %v3212_v52 }
 0x4d5   :  { %v8842_v22 = vpop.permute.xlu0 %2430  ;;  %2903 = vmatprep.mubr.bf16.mxu1 %v11059_v60 }
 0x4d6   :  { %3736 = vrot.lane.b32.xlu1 %v3578_v31, %s6045_s15  ;;  %v11086_v31 = vld [vmem:[#allocation44_spill] sm:$0xff] }
 0x4d7   :  { %3742 = vrot.lane.b32.xlu0 %v3587_v18, %s6045_s15  ;;  %v3491_v43 = vsel %vm496_vm1, %v11086_v31, %v3213_v33  ;;  %v11088_v18 = vld [vmem:[#allocation72_spill] sm:$0xff] }
 0x4d8   :  { %v8855_v23 = vpop.permute.xlu1 %2404 }
 0x4d9   :  { %v8857_v34 = vpop.permute.xlu0 %2494 }
 0x4da   :  { %3740 = vrot.lane.b32.xlu1 %v3584_v7, %s6045_s15  ;;  %v11089_v7 = vld [vmem:[#allocation73_spill] sm:$0xff] }
 0x4db   :  { %3762 = vrot.lane.b32.xlu0 %v3452_v59, %s6045_s15  ;;  %v3281_v59 = vsel %vm304_vm2, %v11091_v58, %v11090_v15 }
 0x4dc   :  { %v8865_v46 = vpop.permute.xlu1 %2468 }
 0x4dd   :  { %v8867_v10 = vpop.permute.xlu0 %2338 }
 0x4de   :  { %3760 = vrot.lane.b32.xlu1 %v3451_v39, %s6045_s15  ;;  %v11092_v39 = vld [vmem:[#allocation89_spill] sm:$0xff] }
 0x4df   :  { %3766 = vrot.lane.b32.xlu0 %v3454_v41, %s6045_s15  ;;  %v2566_v5 = vsel %vm496_vm1, %v11092_v39, %v2318_v28  ;;  %v2382_v41 = vsel %vm304_vm2, %v8695_v49, %v2367_v50  ;;  %v2350_v49 = vsel %vm268_vm3, %v8536_v56, %v8564_v0  ;;  %v11095_v28 = vld [vmem:[#allocation78_spill] sm:$0xff]  ;;  %v3245_v0 = vsel %vm268_vm3, %v11048_v12, %v11089_v7 }
 0x4e0   :  { %v8880_v51 = vpop.permute.xlu1 %2532  ;;  %v2446_v56 = vsel %vm376_vm4, %v8737_v57, %v8842_v22 }
 0x4e1   :  { %v8882_v11 = vpop.permute.xlu0 %2402 }
 0x4e2   :  { %3764 = vrot.lane.b32.xlu1 %v3453_v63, %s6045_s15 }
 0x4e3   :  { %3674 = vrot.lane.b32.xlu0 %v3485_v3, %s6045_s15  ;;  %v3280_v3 = vsel %vm304_vm2, %v11051_v14, %v11091_v58  ;;  %v2606_v14 = vsel %vm496_vm1, %v2350_v49, %v2382_v41  ;;  %v11101_v41 = vld [vmem:[#allocation84_spill] sm:$0xff] }
 0x4e4   :  { %v8899_v61 = vpop.permute.xlu1 %2304  ;;  %v3350_v49 = vsel %vm376_vm4, %v11064_v45, %v11101_v41 }
 0x4e5   :  { %v2319_v55 = vsel %vm232_vm0, %v2303_v44, %v8899_v61  ;;  %v8903_v30 = vpop.permute.xlu0 %2466  ;;  %v3246_v44 = vsel %vm268_vm3, %v11089_v7, %v11088_v18  ;;  %v3518_v7 = vsel %vm496_vm1, %v3245_v0, %v3280_v3 }
 0x4e6   :  { %3672 = vrot.lane.b32.xlu1 %v3482_v40, %s6045_s15  ;;  %v2570_v26 = vsel %vm496_vm1, %v11087_v21, %v2319_v55  ;;  %v3521_v42 = vsel %vm496_vm1, %v3246_v44, %v3281_v59  ;;  %v11097_v40 = vld [vmem:[#allocation79_spill] sm:$0xff]  ;;  %v2415_v21 = vsel %vm340_vm5, %v8583_v6, %v8760_v13  ;;  %v11098_v59 = vld [vmem:[#allocation81_spill] sm:$0xff] }
 0x4e7   :  { %3678 = vrot.lane.b32.xlu0 %v3491_v43, %s6045_s15  ;;  %2830 = vmatprep.subr.bf16.mxu0 %v2570_v26  ;;  %v3283_v52 = vsel %vm304_vm2, %v11097_v40, %v11096_v37  ;;  %v3247_v43 = vsel %vm268_vm3, %v11088_v18, %v11095_v28  ;;  %v3282_v57 = vsel %vm304_vm2, %v11090_v15, %v11097_v40  ;;  %v11104_v40 = vld [vmem:[#allocation88_spill] sm:$0xff] }
 0x4e8   :  { %v8926_v20 = vpop.permute.xlu1 %2368  ;;  %2831 = vmatpush1.bf16.msra.mxu0 %v2566_v5  ;;  %v2414_v18 = vsel %vm340_vm5, %v8543_v48, %v8583_v6  ;;  %v11100_v5 = vld [vmem:[#allocation83_spill] sm:$0xff]  ;;  %v2510_v48 = vsel %vm448_vm6, %v8766_v62, %v8857_v34  ;;  %v3524_v3 = vsel %vm496_vm1, %v3247_v43, %v3282_v57  ;;  %v2478_v62 = vsel %vm412_vm7, %v8555_v27, %v8605_v29 }
 0x4e9   :  { %v2383_v4 = vsel %vm304_vm2, %v2367_v50, %v8926_v20  ;;  %v8933_v63 = vpop.permute.xlu0 %2530  ;;  %v11094_v50 = vld [vmem:[#allocation77_spill] sm:$0xff]  ;;  %v2646_v15 = vsel %vm496_vm1, %v2414_v18, %v2446_v56  ;;  %v2686_v45 = vsel %vm496_vm1, %v2478_v62, %v2510_v48  ;;  %v2543_v56 = vsel %vm484_vm8, %v8629_v53, %v8819_v9  ;;  %v11107_v57 = vld [vmem:[#allocation91_spill] sm:$0xff]  ;;  %v11113_v62 = vld [vmem:[#allocation98_spill] sm:$0xff] }
 0x4ea   :  { %3676 = vrot.lane.b32.xlu1 %v3488_v47, %s6045_s15  ;;  %v2610_v33 = vsel %vm496_vm1, %v2351_v8, %v2383_v4  ;;  %v3248_v55 = vsel %vm268_vm3, %v11095_v28, %v11094_v50  ;;  %v3351_v8 = vsel %vm376_vm4, %v11101_v41, %v11100_v5  ;;  %v2479_v4 = vsel %vm412_vm7, %v8605_v29, %v8793_v19  ;;  %v11102_v28 = vld [vmem:[#allocation85_spill] sm:$0xff] }
 0x4eb   :  { %3698 = vrot.lane.b32.xlu0 %v3521_v42, %s6045_s15  ;;  %2832 = vmatprep.subr.bf16.mxu0 %v2610_v33  ;;  %v3527_v44 = vsel %vm496_vm1, %v3248_v55, %v3283_v52  ;;  %v11103_v55 = vld [vmem:[#allocation86_spill] sm:$0xff]  ;;  %v2542_v29 = vsel %vm484_vm8, %v8562_v35, %v8629_v53  ;;  %v11108_v18 = vld [vmem:[#allocation93_spill] sm:$0xff] }
 0x4ec   :  { %v8960_v31 = vpop.permute.xlu1 %2432  ;;  %2833 = vmatpush1.bf16.msra.mxu0 %v2606_v14  ;;  %v11105_v52 = vld [vmem:[#allocation90_spill] sm:$0xff] }
 0x4ed   :  { %v2447_v26 = vsel %vm376_vm4, %v8842_v22, %v8960_v31  ;;  %v8971_v12 = vpop.permute.xlu0 %2406  ;;  %v11099_v22 = vld [vmem:[#allocation82_spill] sm:$0xff]  ;;  %v3353_v14 = vsel %vm376_vm4, %v11105_v52, %v11104_v40  ;;  %v3352_v35 = vsel %vm376_vm4, %v11100_v5, %v11105_v52 }
 0x4ee   :  { %3696 = vrot.lane.b32.xlu1 %v3518_v7, %s6045_s15  ;;  %v2650_v58 = vsel %vm496_vm1, %v2415_v21, %v2447_v26  ;;  %v3316_v39 = vsel %vm340_vm5, %v11099_v22, %v11098_v59  ;;  %v3315_v27 = vsel %vm340_vm5, %v11062_v17, %v11099_v22  ;;  %v3317_v17 = vsel %vm340_vm5, %v11098_v59, %v11103_v55  ;;  %v11106_v7 = vld [vmem:[#allocation25_spill] sm:$0xff] }
 0x4ef   :  { %3702 = vrot.lane.b32.xlu0 %v3527_v44, %s6045_s15  ;;  %2834 = vmatprep.subr.bf16.mxu0 %v2650_v58  ;;  %v3557_v42 = vsel %vm496_vm1, %v3316_v39, %v3351_v8  ;;  %v3554_v21 = vsel %vm496_vm1, %v3315_v27, %v3350_v49  ;;  %v3386_v53 = vsel %vm412_vm7, %v11107_v57, %v11106_v7  ;;  %v11109_v44 = vld [vmem:[#allocation94_spill] sm:$0xff]  ;;  %v2731_v59 = vsel %vm496_vm1, %v2542_v29, 0 }
 0x4f0   :  { %v8994_v6 = vpop.permute.xlu1 %2496  ;;  %2835 = vmatpush1.bf16.msra.mxu0 %v2646_v15  ;;  %v3421_v58 = vsel %vm448_vm6, %v11109_v44, %v11108_v18  ;;  %v3560_v8 = vsel %vm496_vm1, %v3317_v17, %v3352_v35  ;;  %v3420_v15 = vsel %vm448_vm6, %v11074_v38, %v11109_v44 }
 0x4f1   :  { %v2511_v2 = vsel %vm448_vm6, %v8857_v34, %v8994_v6  ;;  %v2307_v47 = vpop.permute.xlu0 %2306  ;;  %v3318_v34 = vsel %vm340_vm5, %v11103_v55, %v11102_v28  ;;  %v3593_v48 = vsel %vm496_vm1, %v3386_v53, %v3421_v58  ;;  %v3385_v55 = vsel %vm412_vm7, %v11072_v16, %v11107_v57 }
 0x4f2   :  { %3700 = vrot.lane.b32.xlu1 %v3524_v3, %s6045_s15  ;;  %v2690_v33 = vsel %vm496_vm1, %v2479_v4, %v2511_v2  ;;  %v3563_v26 = vsel %vm496_vm1, %v3318_v34, %v3353_v14  ;;  %v2320_v22 = vsel %vm232_vm0, %v8899_v61, %v2307_v47  ;;  %v11110_v4 = vld [vmem:[#allocation116_spill] sm:$0xff]  ;;  %v11112_v3 = vld [vmem:[#allocation97_spill] sm:$0xff]  ;;  %v2416_v53 = vsel %vm340_vm5, %v8760_v13, %v8882_v11 }
 0x4f3   :  { %3722 = vrot.lane.b32.xlu0 %v3557_v42, %s6045_s15  ;;  %2836 = vmatprep.subr.bf16.mxu0 %v2690_v33  ;;  %v11111_v2 = vld [vmem:[#allocation96_spill] sm:$0xff]  ;;  %v3387_v14 = vsel %vm412_vm7, %v11106_v7, %v11112_v3  ;;  %v2481_v13 = vsel %vm412_vm7, %v8903_v30, %v8865_v46 }
 0x4f4   :  { %v9026_v0 = vpop.permute.xlu1 %2342  ;;  %2837 = vmatpush1.bf16.msra.mxu0 %v2686_v45  ;;  %v3388_v49 = vsel %vm412_vm7, %v11112_v3, %v11111_v2  ;;  %v11115_v33 = vld [vmem:[#allocation104_spill] sm:$0xff]  ;;  %v2353_v45 = vsel %vm268_vm3, %v8867_v10, %v8838_v54 }
 0x4f5   :  { %5834 = vmatprep.subr.msk.bf16.mxu0 %vm496_vm1, %v2543_v56  ;;  %v2371_v43 = vpop.permute.xlu0 %2370  ;;  %v2574_v38 = vsel %vm496_vm1, %v11115_v33, %v2320_v22  ;;  %v2352_v56 = vsel %vm268_vm3, %v8721_v36, %v8867_v10  ;;  %v2417_v36 = vsel %vm340_vm5, %v8882_v11, %v8855_v23 }
 0x4f6   :  { %3720 = vrot.lane.b32.xlu1 %v3554_v21, %s6045_s15  ;;  %v2384_v34 = vsel %vm304_vm2, %v8926_v20, %v2371_v43  ;;  %v3590_v20 = vsel %vm496_vm1, %v3385_v55, %v3420_v15  ;;  %v11118_v15 = vld [vmem:[#allocation103_spill] sm:$0xff] }
 0x4f7   :  { %3726 = vrot.lane.b32.xlu0 %v3563_v26, %s6045_s15 }
 0x4f8   :  { %v9051_v39 = vpop.permute.xlu1 %2308  ;;  %2839 = vmatpush1.bf16.msra.mxu0 %v2731_v59 }
 0x4f9   :  { %v2321_v5 = vsel %vm232_vm0, %v2307_v47, %v9051_v39  ;;  %v2435_v41 = vpop.permute.xlu0 %2434  ;;  %v11114_v47 = vld [vmem:[#allocation99_spill] sm:$0xff] }
 0x4fa   :  { %3724 = vrot.lane.b32.xlu1 %v3560_v8, %s6045_s15  ;;  %v2578_v61 = vsel %vm496_vm1, %v11110_v4, %v2321_v5  ;;  %v3423_v42 = vsel %vm448_vm6, %v11114_v47, %v11113_v62  ;;  %v3422_v29 = vsel %vm448_vm6, %v11108_v18, %v11114_v47  ;;  %v2448_v35 = vsel %vm376_vm4, %v8960_v31, %v2435_v41  ;;  %v11116_v31 = vld [vmem:[#allocation100_spill] sm:$0xff]  ;;  %v11117_v18 = vld [vmem:[#allocation101_spill] sm:$0xff] }
 0x4fb   :  { %3746 = vrot.lane.b32.xlu0 %v3593_v48, %s6045_s15  ;;  %2871 = vmatprep.subr.bf16.mxu1 %v2578_v61  ;;  %v3599_v21 = vsel %vm496_vm1, %v3388_v49, %v3423_v42  ;;  %v3596_v57 = vsel %vm496_vm1, %v3387_v14, %v3422_v29  ;;  %v3456_v44 = vsel %vm484_vm8, %v11117_v18, %v11116_v31  ;;  %v11119_v48 = vld [vmem:[#allocation105_spill] sm:$0xff]  ;;  %v6034_v14 = vld [vmem:[#allocation3 + $0x4] sm:$0xf]  ;;  %v11124_v29 = vld [vmem:[#allocation108_spill] sm:$0xff] }
 0x4fc   :  { %v9077_v52 = vpop.permute.xlu1 %2372  ;;  %2872 = vmatpush1.bf16.msra.mxu1 %v2574_v38  ;;  %5835 = vmatmul.mubr.msk.bf16.vlgmr.msra.gmra.mrb[28].mxu0 %vm920_vm10, %v8727_v25  ;;  %v2654_v59 = vsel %vm496_vm1, %v2416_v53, %v2448_v35  ;;  %v3455_v8 = vsel %vm484_vm8, %v11078_v24, %v11117_v18  ;;  %v3458_v4 = vsel %vm484_vm8, %v11119_v48, %v11118_v15  ;;  %v11121_v38 = vld [vmem:[#allocation30_spill] sm:$0xff] }
 0x4fd   :  { %v2385_v16 = vsel %vm304_vm2, %v2371_v43, %v9077_v52  ;;  %v2499_v27 = vpop.permute.xlu0 %2498  ;;  %2944 = vmatprep.mubr.bf16.mxu0 %v11059_v60  ;;  %v2614_v43 = vsel %vm496_vm1, %v2352_v56, %v2384_v34  ;;  %v2544_v24 = vsel %vm484_vm8, %v8819_v9, %v8933_v63  ;;  %v3457_v47 = vsel %vm484_vm8, %v11116_v31, %v11119_v48  ;;  %v3604_v56 = vld [vmem:[%s10764_s5] sm:$0xff] }
 0x4fe   :  { %3744 = vrot.lane.b32.xlu1 %v3590_v20, %s6045_s15  ;;  %v2618_v17 = vsel %vm496_vm1, %v2353_v45, %v2385_v16  ;;  %v2512_v22 = vsel %vm448_vm6, %v8994_v6, %v2499_v27  ;;  %v2480_v6 = vsel %vm412_vm7, %v8793_v19, %v8903_v30  ;;  %v2545_v19 = vsel %vm484_vm8, %v8933_v63, %v8880_v51  ;;  %v11120_v63 = vld [vmem:[#allocation106_spill] sm:$0xff]  ;;  %v11123_v20 = vld [vmem:[#allocation112_spill] sm:$0xff] }
 0x4ff   :  { %3750 = vrot.lane.b32.xlu0 %v3599_v21, %s6045_s15  ;;  %2873 = vmatprep.subr.bf16.mxu1 %v2618_v17  ;;  %v2694_v3 = vsel %vm496_vm1, %v2480_v6, %v2512_v22  ;;  %v3530_v42 = vsel %vm496_vm1, %v11094_v50, %v11096_v37  ;;  %v2737_v9 = vsel %vm496_vm1, %v2544_v24, 0  ;;  %v3779_v55 = vsel %vm816_vm9, %v11121_v38, %v11120_v63  ;;  %v11122_v37 = vld [vmem:[#allocation109_spill] sm:$0xff]  ;;  %v11125_v21 = vld [vmem:[#allocation111_spill] sm:$0xff]  ;;  %v11126_v35 = vld [vmem:[#allocation114_spill] sm:$0xff] }
 0x500   :  { %v9104_v26 = vpop.permute.xlu1 %2436  ;;  %2874 = vmatpush1.bf16.msra.mxu1 %v2614_v43  ;;  %v3494_v45 = vsel %vm496_vm1, %v6034_v14, %v11083_v32  ;;  %v3602_v50 = vsel %vm496_vm1, %v11111_v2, %v11113_v62  ;;  %v3778_v16 = vsel %vm816_vm9, %v11122_v37, %v11121_v38  ;;  %v3790_v32 = vsel %vm816_vm9, %v11124_v29, %v11123_v20 }
 0x501   :  { %v2449_v10 = vsel %vm376_vm4, %v2435_v41, %v9104_v26  ;;  %v9111_v7 = vpop.permute.xlu0 %2310  ;;  %v3566_v62 = vsel %vm496_vm1, %v11102_v28, %v11104_v40  ;;  %v3789_v17 = vsel %vm816_vm9, %v11125_v21, %v11124_v29 }
 0x502   :  { %3748 = vrot.lane.b32.xlu1 %v3596_v57, %s6045_s15  ;;  %v2658_v58 = vsel %vm496_vm1, %v2417_v36, %v2449_v10  ;;  %v11127_v36 = vld [vmem:[#allocation115_spill] sm:$0xff]  ;;  %v2322_v31 = vsel %vm232_vm0, %v9051_v39, %v9111_v7  ;;  %v11128_v39 = vld [vmem:[#allocation110_spill] sm:$0xff] }
 0x503   :  { %3770 = vrot.lane.b32.xlu0 %v3456_v44, %s6045_s15  ;;  %2875 = vmatprep.subr.bf16.mxu1 %v2658_v58  ;;  %v3801_v10 = vsel %vm816_vm9, %v11127_v36, %v11126_v35 }
 0x504   :  { %v9126_v5 = vpop.permute.xlu1 %2500  ;;  %2876 = vmatpush1.bf16.msra.mxu1 %v2654_v59 }
 0x505   :  { %v2513_v11 = vsel %vm448_vm6, %v2499_v27, %v9126_v5  ;;  %v9133_v41 = vpop.permute.xlu0 %2438 }
 0x506   :  { %3768 = vrot.lane.b32.xlu1 %v3455_v8, %s6045_s15  ;;  %v2698_v61 = vsel %vm496_vm1, %v2481_v13, %v2513_v11  ;;  %v2582_v8 = vsel %vm496_vm1, %v11128_v39, %v2322_v31 }
 0x507   :  { %3774 = vrot.lane.b32.xlu0 %v3458_v4, %s6045_s15  ;;  %2877 = vmatprep.subr.bf16.mxu1 %v2698_v61  ;;  %v2354_v4 = vsel %vm268_vm3, %v8838_v54, %v9026_v0  ;;  %v2418_v54 = vsel %vm340_vm5, %v8855_v23, %v8971_v12 }
 0x508   :  { %v2375_v49 = vpop.permute.xlu1 %2374  ;;  %2878 = vmatpush1.bf16.msra.mxu1 %v2694_v3 }
 0x509   :  { %5836 = vmatprep.subr.msk.bf16.mxu1 %vm496_vm1, %v2545_v19  ;;  %v3707_v30 = vpop.permute.xlu0 %3706  ;;  %v2386_v6 = vsel %vm304_vm2, %v9077_v52, %v2375_v49  ;;  %v2450_v52 = vsel %vm376_vm4, %v9104_v26, %v9133_v41 }
 0x50a   :  { %3772 = vrot.lane.b32.xlu1 %v3457_v47, %s6045_s15  ;;  %v3800_v28 = vsel %vm816_vm9, %v3707_v30, %v11127_v36  ;;  %v2622_v3 = vsel %vm496_vm1, %v2354_v4, %v2386_v6  ;;  %v2662_v26 = vsel %vm496_vm1, %v2418_v54, %v2450_v52 }
 0x50b   :  { %3704 = vrot.lane.b32.xlu0 %v3530_v42, %s6045_s15 }
 0x50c   :  { %v9164_v33 = vpop.permute.xlu1 %2470  ;;  %2880 = vmatpush1.bf16.msra.mxu1 %v2737_v9 }
 0x50d   :  { %3920 = vmatprep.subr.bf16.mxu1 %v3779_v55  ;;  %v2345_v34 = vpop.permute.xlu0 %2344  ;;  %v2482_v23 = vsel %vm412_vm7, %v8865_v46, %v9164_v33 }
 0x50e   :  { %3680 = vrot.lane.b32.xlu1 %v3494_v45, %s6045_s15  ;;  %v2355_v11 = vsel %vm268_vm3, %v9026_v0, %v2345_v34 }
 0x50f   :  { %3752 = vrot.lane.b32.xlu0 %v3602_v50, %s6045_s15  ;;  %5837 = vmatmul.mubr.msk.bf16.vlgmr.msra.gmra.mrb[28].mxu1 %vm920_vm10, %v8727_v25 }
 0x510   :  { %v2503_v27 = vpop.permute.xlu1 %2502  ;;  %3921 = vmatpush1.bf16.msra.mxu1 %v3778_v16  ;;  %3952 = vmatprep.mubr.bf16.mxu1 %v11059_v60 }
 0x511   :  { %3922 = vmatprep.subr.bf16.mxu1 %v3790_v32  ;;  %v2473_v2 = vpop.permute.xlu0 %2472 }
 0x512   :  { %3728 = vrot.lane.b32.xlu1 %v3566_v62, %s6045_s15  ;;  %v2483_v0 = vsel %vm412_vm7, %v9164_v33, %v2473_v2 }
 0x513   :  { %3607 = vperm.xlu0 %5952, %v3604_v56  }
 0x514   :  { %v3733_v43 = vpop.permute.xlu1 %3732  ;;  %3923 = vmatpush1.bf16.msra.mxu1 %v3789_v17 }
 0x515   :  { %3924 = vmatprep.subr.bf16.mxu1 %v3801_v10  ;;  %v2377_v57 = vpop.permute.xlu0 %2376 }
 0x516   :  { %3776 = vrot.lane.b32.xlu1 %v11118_v15, %s6045_s15  ;;  %v2387_v44 = vsel %vm304_vm2, %v2375_v49, %v2377_v57 }
 0x517   :  { %v2626_v15 = vsel %vm496_vm1, %v2355_v11, %v2387_v44 }
 0x518   :  { %v2409_v40 = vpop.permute.xlu1 %2408  ;;  %3925 = vmatpush1.bf16.msra.mxu1 %v3800_v28 }
 0x519   :  { %v2505_v53 = vpop.permute.xlu0 %2504  ;;  %v2419_v61 = vsel %vm340_vm5, %v8971_v12, %v2409_v40 }
 0x51a   :  { %v2515_v19 = vsel %vm448_vm6, %v2503_v27, %v2505_v53 }
 0x51b   :  { %v2706_v9 = vsel %vm496_vm1, %v2483_v0, %v2515_v19 }
 0x51c   :  { %v2313_v18 = vpop.permute.xlu1 %2312 }
 0x51d   :  { %v2323_v58 = vsel %vm232_vm0, %v9111_v7, %v2313_v18  ;;  %v9208_v59 = vpop.permute.xlu0 %3734 }
 0x51e   :  { %v2586_v22 = vsel %vm496_vm1, %v8455_v1, %v2323_v58  ;;  %v3812_v13 = vsel %vm816_vm9, %v3733_v43, %v9208_v59 }
 0x51f   :  { %2912 = vmatprep.subr.bf16.mxu0 %v2586_v22  ;;  %3926 = vmatprep.subr.bf16.mxu1 %v3812_v13 }
 0x520   :  { %v2441_v7 = vpop.permute.xlu1 %2440  ;;  %2913 = vmatpush1.bf16.msra.mxu0 %v2582_v8 }
 0x521   :  { %v2451_v1 = vsel %vm376_vm4, %v9133_v41, %v2441_v7  ;;  %2914 = vmatprep.subr.bf16.mxu0 %v2626_v15  ;;  %v2535_v48 = vpop.permute.xlu0 %2534  ;;  %v2514_v41 = vsel %vm448_vm6, %v9126_v5, %v2503_v27 }
 0x522   :  { %v2666_v49 = vsel %vm496_vm1, %v2419_v61, %v2451_v1  ;;  %v2702_v12 = vsel %vm496_vm1, %v2482_v23, %v2514_v41  ;;  %v2546_v55 = vsel %vm484_vm8, %v8880_v51, %v2535_v48  ;;  %v9263_v51 = vld [vmem:[%s10763_s4] sm:$0xf] }
 0x523   :  { %v2743_v33 = vsel %vm496_vm1, %v2546_v55, 0 }
 0x524   :  { %v3731_v24 = vpop.permute.xlu1 %3730  ;;  %2915 = vmatpush1.bf16.msra.mxu0 %v2622_v3 }
 0x525   :  { %v3811_v30 = vsel %vm816_vm9, %v3731_v24, %v3733_v43  ;;  %2916 = vmatprep.subr.bf16.mxu0 %v2666_v49  ;;  %v3755_v47 = vpop.permute.xlu0 %3754 }
 0x526   :  { %3927 = vmatpush1.bf16.msra.mxu1 %v3811_v30 }
 0x528   :  { %v2537_v42 = vpop.permute.xlu1 %2536  ;;  %2917 = vmatpush1.bf16.msra.mxu0 %v2662_v26 }
 0x529   :  { %2918 = vmatprep.subr.bf16.mxu0 %v2706_v9  ;;  %v9244_v38 = vpop.permute.xlu0 %3758  ;;  %v2547_v34 = vsel %vm484_vm8, %v2535_v48, %v2537_v42 }
 0x52c   :  { %v3757_v14 = vpop.permute.xlu1 %3756  ;;  %2919 = vmatpush1.bf16.msra.mxu0 %v2702_v12 }
 0x52d   :  { %v3822_v5 = vsel %vm816_vm9, %v3755_v47, %v3757_v14  ;;  %5838 = vmatprep.subr.msk.bf16.mxu0 %vm496_vm1, %v2547_v34  ;;  %v3667_v45 = vpop.permute.xlu0 %3666  ;;  %v3823_v50 = vsel %vm816_vm9, %v3757_v14, %v9244_v38 }
 0x52e   :  { %5855 = vmatprep.subr.msk.bf16.mxu1 %vm496_vm1, %v3823_v50  ;;  %v3885_v46 = vsel %vm496_vm1, %v3822_v5, 0 }
 0x52f   :  { %3929 = vmatpush1.bf16.msra.mxu1 %v3885_v46 }
 0x530   :  { %v3665_v37 = vpop.permute.xlu1 %3664  ;;  %2921 = vmatpush1.bf16.msra.mxu0 %v2743_v33 }
 0x531   :  { %v9265_v16 = vpop.permute.xlu0 %3670  ;;  %v3781_v27 = vsel %vm816_vm9, %v3665_v37, %v3667_v45  ;;  %v3780_v29 = vsel %vm816_vm9, %v11120_v63, %v3665_v37 }
 0x532   :  { %5856 = vmatmul.mubr.msk.bf16.vlgmr.msra.gmra.mrb[32].mxu1 %vm920_vm10, %v9263_v51  ;;  %3961 = vmatprep.subr.bf16.mxu0 %v3781_v27 }
 0x533   :  { %5839 = vmatmul.mubr.msk.bf16.vlgmr.msra.gmra.mrb[32].mxu0 %vm920_vm10, %v8727_v25  ;;  %4034 = vmatprep.mubr.bf16.mxu1 %v11059_v60 }
 0x534   :  { %v3669_v32 = vpop.permute.xlu1 %3668  ;;  %3962 = vmatpush1.bf16.msra.mxu0 %v3780_v29  ;;  %3993 = vmatprep.mubr.bf16.mxu0 %v11059_v60 }
 0x535   :  { %v3691_v56 = vpop.permute.xlu0 %3690  ;;  %v3783_v2 = vsel %vm816_vm9, %v3669_v32, %v9265_v16  ;;  %v3782_v62 = vsel %vm816_vm9, %v3667_v45, %v3669_v32 }
 0x536   :  { %4002 = vmatprep.subr.bf16.mxu1 %v3783_v2 }
 0x537   :  { %4003 = vmatpush1.bf16.msra.mxu1 %v3782_v62 }
 0x538   :  { %v3689_v21 = vpop.permute.xlu1 %3688 }
 0x539   :  { %v9279_v17 = vpop.permute.xlu0 %3694  ;;  %v3792_v25 = vsel %vm816_vm9, %v3689_v21, %v3691_v56  ;;  %v3791_v63 = vsel %vm816_vm9, %v11123_v20, %v3689_v21 }
 0x53a   :  { %3963 = vmatprep.subr.bf16.mxu0 %v3792_v25 }
 0x53b   :  { %3964 = vmatpush1.bf16.msra.mxu0 %v3791_v63 }
 0x53c   :  { %v3693_v43 = vpop.permute.xlu1 %3692 }
 0x53d   :  { %v3715_v36 = vpop.permute.xlu0 %3714  ;;  %v3794_v10 = vsel %vm816_vm9, %v3693_v43, %v9279_v17  ;;  %v3793_v57 = vsel %vm816_vm9, %v3691_v56, %v3693_v43 }
 0x53e   :  { %4004 = vmatprep.subr.bf16.mxu1 %v3794_v10 }
 0x53f   :  { %4005 = vmatpush1.bf16.msra.mxu1 %v3793_v57 }
 0x540   :  { %v3713_v28 = vpop.permute.xlu1 %3712 }
 0x541   :  { %v9287_v40 = vpop.permute.xlu0 %3718  ;;  %v3803_v53 = vsel %vm816_vm9, %v3713_v28, %v3715_v36  ;;  %v3802_v31 = vsel %vm816_vm9, %v11126_v35, %v3713_v28 }
 0x542   :  { %3965 = vmatprep.subr.bf16.mxu0 %v3803_v53 }
 0x543   :  { %3966 = vmatpush1.bf16.msra.mxu0 %v3802_v31 }
 0x544   :  { %v3717_v20 = vpop.permute.xlu1 %3716 }
 0x545   :  { %v3739_v18 = vpop.permute.xlu0 %3738  ;;  %v3805_v44 = vsel %vm816_vm9, %v3717_v20, %v9287_v40  ;;  %v3804_v58 = vsel %vm816_vm9, %v3715_v36, %v3717_v20 }
 0x546   :  { %4006 = vmatprep.subr.bf16.mxu1 %v3805_v44 }
 0x547   :  { %4007 = vmatpush1.bf16.msra.mxu1 %v3804_v58 }
 0x548   :  { %v3737_v22 = vpop.permute.xlu1 %3736 }
 0x549   :  { %v9295_v13 = vpop.permute.xlu0 %3742  ;;  %v3814_v11 = vsel %vm816_vm9, %v3737_v22, %v3739_v18  ;;  %v3813_v39 = vsel %vm816_vm9, %v9208_v59, %v3737_v22 }
 0x54a   :  { %3967 = vmatprep.subr.bf16.mxu0 %v3814_v11 }
 0x54b   :  { %3968 = vmatpush1.bf16.msra.mxu0 %v3813_v39 }
 0x54c   :  { %v3741_v35 = vpop.permute.xlu1 %3740 }
 0x54d   :  { %v3763_v8 = vpop.permute.xlu0 %3762  ;;  %v3816_v6 = vsel %vm816_vm9, %v3741_v35, %v9295_v13  ;;  %v3815_v7 = vsel %vm816_vm9, %v3739_v18, %v3741_v35 }
 0x54e   :  { %4008 = vmatprep.subr.bf16.mxu1 %v3816_v6 }
 0x54f   :  { %4009 = vmatpush1.bf16.msra.mxu1 %v3815_v7 }
 0x550   :  { %v3761_v15 = vpop.permute.xlu1 %3760 }
 0x551   :  { %v3824_v1 = vsel %vm816_vm9, %v9244_v38, %v3761_v15  ;;  %v9305_v48 = vpop.permute.xlu0 %3766  ;;  %v3825_v4 = vsel %vm816_vm9, %v3761_v15, %v3763_v8 }
 0x552   :  { %5857 = vmatprep.subr.msk.bf16.mxu0 %vm496_vm1, %v3825_v4  ;;  %v3891_v59 = vsel %vm496_vm1, %v3824_v1, 0 }
 0x553   :  { %3970 = vmatpush1.bf16.msra.mxu0 %v3891_v59 }
 0x554   :  { %v3765_v61 = vpop.permute.xlu1 %3764 }
 0x555   :  { %v3826_v3 = vsel %vm816_vm9, %v3763_v8, %v3765_v61  ;;  %v3675_v52 = vpop.permute.xlu0 %3674  ;;  %v3827_v24 = vsel %vm816_vm9, %v3765_v61, %v9305_v48 }
 0x556   :  { %5858 = vmatmul.mubr.msk.bf16.vlgmr.msra.gmra.mrb[36].mxu0 %vm920_vm10, %v9263_v51  ;;  %5859 = vmatprep.subr.msk.bf16.mxu1 %vm496_vm1, %v3827_v24  ;;  %v3897_v49 = vsel %vm496_vm1, %v3826_v3, 0 }
 0x557   :  { %4011 = vmatpush1.bf16.msra.mxu1 %v3897_v49  ;;  %4075 = vmatprep.mubr.bf16.mxu0 %v11059_v60 }
 0x558   :  { %v3673_v19 = vpop.permute.xlu1 %3672 }
 0x559   :  { %v9318_v30 = vpop.permute.xlu0 %3678  ;;  %v3785_v47 = vsel %vm816_vm9, %v3673_v19, %v3675_v52  ;;  %v3784_v54 = vsel %vm816_vm9, %v9265_v16, %v3673_v19 }
 0x55a   :  { %5860 = vmatmul.mubr.msk.bf16.vlgmr.msra.gmra.mrb[36].mxu1 %vm920_vm10, %v9263_v51  ;;  %4043 = vmatprep.subr.bf16.mxu0 %v3785_v47 }
 0x55b   :  { %4044 = vmatpush1.bf16.msra.mxu0 %v3784_v54  ;;  %4116 = vmatprep.mubr.bf16.mxu1 %v11059_v60 }
 0x55c   :  { %v3677_v0 = vpop.permute.xlu1 %3676 }
 0x55d   :  { %v3699_v26 = vpop.permute.xlu0 %3698  ;;  %v3787_v41 = vsel %vm816_vm9, %v3677_v0, %v9318_v30  ;;  %v3786_v42 = vsel %vm816_vm9, %v3675_v52, %v3677_v0 }
 0x55e   :  { %4084 = vmatprep.subr.bf16.mxu1 %v3787_v41 }
 0x55f   :  { %4085 = vmatpush1.bf16.msra.mxu1 %v3786_v42 }
 0x560   :  { %v3697_v9 = vpop.permute.xlu1 %3696 }
 0x561   :  { %v3703_v38 = vpop.permute.xlu0 %3702  ;;  %v3796_v23 = vsel %vm816_vm9, %v3697_v9, %v3699_v26  ;;  %v3795_v12 = vsel %vm816_vm9, %v9279_v17, %v3697_v9 }
 0x562   :  { %4045 = vmatprep.subr.bf16.mxu0 %v3796_v23 }
 0x563   :  { %4046 = vmatpush1.bf16.msra.mxu0 %v3795_v12 }
 0x564   :  { %v3701_v55 = vpop.permute.xlu1 %3700 }
 0x565   :  { %v3723_v34 = vpop.permute.xlu0 %3722  ;;  %v3798_v14 = vsel %vm816_vm9, %v3701_v55, %v3703_v38  ;;  %v3797_v5 = vsel %vm816_vm9, %v3699_v26, %v3701_v55 }
 0x566   :  { %4086 = vmatprep.subr.bf16.mxu1 %v3798_v14 }
 0x567   :  { %4087 = vmatpush1.bf16.msra.mxu1 %v3797_v5 }
 0x568   :  { %v3721_v45 = vpop.permute.xlu1 %3720 }
 0x569   :  { %v3727_v50 = vpop.permute.xlu0 %3726  ;;  %v3807_v46 = vsel %vm816_vm9, %v3721_v45, %v3723_v34  ;;  %v3806_v33 = vsel %vm816_vm9, %v9287_v40, %v3721_v45 }
 0x56a   :  { %4047 = vmatprep.subr.bf16.mxu0 %v3807_v46 }
 0x56b   :  { %4048 = vmatpush1.bf16.msra.mxu0 %v3806_v33  ;;  %v11136_v33 = vld [vmem:[#allocation10_spill] sm:$0xff] }
 0x56c   :  { %v3725_v37 = vpop.permute.xlu1 %3724 }
 0x56d   :  { %v3747_v16 = vpop.permute.xlu0 %3746  ;;  %v3809_v27 = vsel %vm816_vm9, %v3725_v37, %v3727_v50  ;;  %v3808_v29 = vsel %vm816_vm9, %v3723_v34, %v3725_v37 }
 0x56e   :  { %4088 = vmatprep.subr.bf16.mxu1 %v3809_v27  ;;  %v11137_v27 = vld [vmem:[#allocation14_spill] sm:$0xff] }
 0x56f   :  { %4089 = vmatpush1.bf16.msra.mxu1 %v3808_v29 }
 0x570   :  { %v3745_v32 = vpop.permute.xlu1 %3744 }
 0x571   :  { %v3751_v56 = vpop.permute.xlu0 %3750  ;;  %v3818_v2 = vsel %vm816_vm9, %v3745_v32, %v3747_v16  ;;  %v3817_v62 = vsel %vm816_vm9, %v9295_v13, %v3745_v32 }
 0x572   :  { %4049 = vmatprep.subr.bf16.mxu0 %v3818_v2 }
 0x573   :  { %4050 = vmatpush1.bf16.msra.mxu0 %v3817_v62 }
 0x574   :  { %v3749_v21 = vpop.permute.xlu1 %3748 }
 0x575   :  { %v3820_v17 = vsel %vm816_vm9, %v3749_v21, %v3751_v56  ;;  %v3819_v25 = vsel %vm816_vm9, %v3747_v16, %v3749_v21  ;;  %v3771_v63 = vpop.permute.xlu0 %3770 }
 0x576   :  { %4090 = vmatprep.subr.bf16.mxu1 %v3820_v17 }
 0x577   :  { %4091 = vmatpush1.bf16.msra.mxu1 %v3819_v25 }
 0x578   :  { %v3769_v43 = vpop.permute.xlu1 %3768 }
 0x579   :  { %v3828_v36 = vsel %vm816_vm9, %v9305_v48, %v3769_v43  ;;  %v3829_v10 = vsel %vm816_vm9, %v3769_v43, %v3771_v63  ;;  %v3775_v28 = vpop.permute.xlu0 %3774 }
 0x57a   :  { %5861 = vmatprep.subr.msk.bf16.mxu0 %vm496_vm1, %v3829_v10  ;;  %v3903_v57 = vsel %vm496_vm1, %v3828_v36, 0 }
 0x57b   :  { %4052 = vmatpush1.bf16.msra.mxu0 %v3903_v57 }
 0x57c   :  { %v3773_v40 = vpop.permute.xlu1 %3772 }
 0x57d   :  { %v3830_v53 = vsel %vm816_vm9, %v3771_v63, %v3773_v40  ;;  %v3831_v31 = vsel %vm816_vm9, %v3773_v40, %v3775_v28  ;;  %v3705_v58 = vpop.permute.xlu0 %3704 }
 0x57e   :  { %5862 = vmatmul.mubr.msk.bf16.vlgmr.msra.gmra.mrb[40].mxu0 %vm920_vm10, %v9263_v51  ;;  %5863 = vmatprep.subr.msk.bf16.mxu1 %vm496_vm1, %v3831_v31  ;;  %v3909_v20 = vsel %vm496_vm1, %v3830_v53, 0  ;;  %v3799_v13 = vsel %vm816_vm9, %v3703_v38, %v3705_v58  ;;  %v11138_v31 = vld [vmem:[#allocation8_spill] sm:$0xff] }
 0x57f   :  { %4093 = vmatpush1.bf16.msra.mxu1 %v3909_v20  ;;  %4157 = vmatprep.mubr.bf16.mxu0 %v11059_v60 }
 0x580   :  { %v3681_v18 = vpop.permute.xlu1 %3680 }
 0x581   :  { %4125 = vmatprep.subr.bf16.mxu0 %v3681_v18  ;;  %v3788_v44 = vsel %vm816_vm9, %v9318_v30, %v3681_v18  ;;  %v3753_v39 = vpop.permute.xlu0 %3752 }
 0x582   :  { %5864 = vmatmul.mubr.msk.bf16.vlgmr.msra.gmra.mrb[40].mxu1 %vm920_vm10, %v9263_v51  ;;  %4126 = vmatpush1.bf16.msra.mxu0 %v3788_v44  ;;  %v3821_v8 = vsel %vm816_vm9, %v3751_v56, %v3753_v39 }
 0x583   :  { %4127 = vmatprep.subr.bf16.mxu0 %v3705_v58  ;;  %4766 = vmatprep.mubr.bf16.mxu1 %v11059_v60 }
 0x584   :  { %v3729_v22 = vpop.permute.xlu1 %3728 }
 0x585   :  { %v3810_v11 = vsel %vm816_vm9, %v3727_v50, %v3729_v22 }
 0x586   :  { %4128 = vmatpush1.bf16.msra.mxu0 %v3799_v13 }
 0x587   :  { %4129 = vmatprep.subr.bf16.mxu0 %v3729_v22 }
 0x588   :  { %v3777_v35 = vpop.permute.xlu1 %3776 }
 0x589   :  { %v3832_v6 = vsel %vm816_vm9, %v3775_v28, %v3777_v35 }
 0x58a   :  { %4130 = vmatpush1.bf16.msra.mxu0 %v3810_v11  ;;  %v3915_v7 = vsel %vm496_vm1, %v3832_v6, 0  ;;  %v11140_v6 = vld [vmem:[#allocation12_spill] sm:$0xff] }
 0x58b   :  { %4131 = vmatprep.subr.bf16.mxu0 %v3753_v39  ;;  %v11139_v39 = vld [vmem:[#allocation19_spill] sm:$0xff] }
 0x58e   :  { %4132 = vmatpush1.bf16.msra.mxu0 %v3821_v8 }
 0x58f   :  { %5865 = vmatprep.subr.msk.bf16.mxu0 %vm496_vm1, %v3777_v35 }
 0x592   :  { %4134 = vmatpush1.bf16.msra.mxu0 %v3915_v7  ;;  %v9386_v26 = vpop.permute.xlu0 %3607 }
 0x595   :  { %5866 = vmatmul.mubr.msk.bf16.vlgmr.msra.gmra.mrb[44].mxu0 %vm920_vm10, %v9263_v51 }
 0x596   :  { %4807 = vmatprep.mubr.bf16.mxu0 %v11059_v60 }
 0x59a   :  { %v9370_v15 = vpop.f32.mrb[24].mxu0 }
 0x59b   :  { %v9372_v1 = vpop.f32.mrb[25].mxu0 }
 0x59c   :  { %v2786_v48 = vpop.f32.mrb[26].mxu0 }
 0x59d   :  { %v2787_v4 = vpop.f32.mrb[27].mxu0 }
 0x5a7   :  { %v9374_v59 = vpop.f32.mrb[24].mxu1 }
 0x5a8   :  { %v9376_v61 = vpop.f32.mrb[25].mxu1 }
 0x5a9   :  { %11129 = vst [vmem:[#allocation47_spill] sm:$0xff] %v9376_v61  ;;  %v2827_v3 = vpop.f32.mrb[26].mxu1 }
 0x5aa   :  { %v2828_v52 = vpop.f32.mrb[27].mxu1 }
 0x5cf   :  { %v9378_v24 = vpop.f32.mrb[28].mxu0 }
 0x5d0   :  { %11130 = vst [vmem:[#allocation35_spill] sm:$0xff] %v9378_v24  ;;  %v9380_v49 = vpop.f32.mrb[29].mxu0 }
 0x5d1   :  { %11131 = vst [vmem:[#allocation117_spill] sm:$0xff] %v9380_v49  ;;  %v2868_v19 = vpop.f32.mrb[30].mxu0 }
 0x5d2   :  { %v2869_v51 = vpop.f32.mrb[31].mxu0 }
 0x5e2   :  { %v9382_v30 = vpop.f32.mrb[28].mxu1 }
 0x5e3   :  { %11132 = vst [vmem:[#allocation49_spill] sm:$0xff] %v9382_v30  ;;  %v9384_v47 = vpop.f32.mrb[29].mxu1 }
 0x5e4   :  { %11133 = vst [vmem:[#allocation34_spill] sm:$0xff] %v9384_v47  ;;  %v2909_v54 = vpop.f32.mrb[30].mxu1 }
 0x5e5   :  { %v2910_v0 = vpop.f32.mrb[31].mxu1 }
 0x605   :  { %v3954_v41 = vpop.f32.mrb[32].mxu1 }
 0x606   :  { %v3955_v42 = vadd.f32 %v3954_v41, %v9386_v26  ;;  %v3956_v9 = vpop.f32.mrb[33].mxu1  ;;  %v9389_v38 = vpop.f32.mrb[32].mxu0 }
 0x607   :  { %11134 = vst [vmem:[#allocation43_spill] sm:$0xff] %v9389_v38  ;;  %v3957_v23 = vadd.f32 %v3956_v9, %v9386_v26  ;;  %v3958_v12 = vpop.f32.mrb[34].mxu1  ;;  %v9392_v55 = vpop.f32.mrb[33].mxu0 }
 0x608   :  { %11135 = vst [vmem:[#allocation51_spill] sm:$0xff] %v9392_v55  ;;  %vm4166_vm9 = vcmp.ge.f32.partialorder %v3955_v42, 0.0  ;;  %v4178_v34 = vmul.f32 0.1, %v3955_v42  ;;  %v3959_v14 = vpop.f32.mrb[35].mxu1  ;;  %v2950_v5 = vpop.f32.mrb[34].mxu0 }
 0x609   :  { %vm4167_vm13 = vcmp.ge.f32.partialorder %v3957_v23, 0.0  ;;  %v4179_v45 = vmul.f32 0.1, %v3957_v23  ;;  %v2951_v50 = vpop.f32.mrb[35].mxu0 }
 0x60a   :  { %v4190_v46 = vsel %vm4166_vm9, %v3955_v42, %v4178_v34  ;;  %v11141_v34 = vld [vmem:[#allocation31_spill] sm:$0xff] }
 0x60b   :  { %v9395_v37 = vmul.f32 %v4190_v46, %v11136_v33  ;;  %v4191_v16 = vsel %vm4167_vm13, %v3957_v23, %v4179_v45 }
 0x60c   :  { %v9398_v29 = vmul.f32 %v4191_v16, %v11137_v27  ;;  %v11142_v27 = vld [vmem:[#allocation16_spill] sm:$0xff] }
 0x60d   :  { %v9402_v32 = vpack.c.bf16 %v9395_v37, %v9395_v37 }
 0x60e   :  { %v9406_v56 = vpack.c.bf16 %v9398_v29, %v9398_v29 }
 0x60f   :  { %4280 = vrot.lane.b32.xlu0 %v9402_v32, %s6038_s22  ;;  %v4237_v2 = vrot.slane %v9402_v32, 4 }
 0x610   :  { %4482 = vrot.lane.b32.xlu1 %v9406_v56, %s6044_s30  ;;  %v4238_v62 = vrot.slane %v9406_v56, 4 }
 0x613   :  { %4344 = vrot.lane.b32.xlu0 %v9402_v32, %s6040_s26 }
 0x614   :  { %4248 = vrot.lane.b32.xlu1 %v4237_v2, %s6037_s21 }
 0x617   :  { %4409 = vrot.lane.b32.xlu0 %v9402_v32, %s6042_s28 }
 0x618   :  { %4312 = vrot.lane.b32.xlu1 %v4237_v2, %s6039_s23 }
 0x61b   :  { %4480 = vrot.lane.b32.xlu0 %v9402_v32, %s6044_s30 }
 0x61c   :  { %4376 = vrot.lane.b32.xlu1 %v4237_v2, %s6041_s27 }
 0x61f   :  { %4282 = vrot.lane.b32.xlu0 %v9406_v56, %s6038_s22 }
 0x620   :  { %4445 = vrot.lane.b32.xlu1 %v4237_v2, %s6043_s29 }
 0x623   :  { %4346 = vrot.lane.b32.xlu0 %v9406_v56, %s6040_s26 }
 0x624   :  { %4250 = vrot.lane.b32.xlu1 %v4238_v62, %s6037_s21 }
 0x627   :  { %4411 = vrot.lane.b32.xlu0 %v9406_v56, %s6042_s28 }
 0x629   :  { %v3995_v21 = vpop.f32.mrb[36].mxu0 }
 0x62a   :  { %v3996_v17 = vadd.f32 %v3995_v21, %v9386_v26  ;;  %v3997_v25 = vpop.f32.mrb[37].mxu0 }
 0x62b   :  { %v3999_v63 = vpop.f32.mrb[38].mxu0  ;;  %4314 = vrot.lane.b32.xlu0 %v4238_v62, %s6039_s23  ;;  %v3998_v28 = vadd.f32 %v3997_v25, %v9386_v26 }
 0x62c   :  { %vm4168_vm14 = vcmp.ge.f32.partialorder %v3996_v17, 0.0  ;;  %v4180_v43 = vmul.f32 0.1, %v3996_v17  ;;  %v4000_v36 = vpop.f32.mrb[39].mxu0 }
 0x62d   :  { %v4036_v10 = vpop.f32.mrb[36].mxu1  ;;  %v4181_v13 = vmul.f32 0.1, %v3998_v28  ;;  %vm4169_vm12 = vcmp.ge.f32.partialorder %v3998_v28, 0.0 }
 0x62e   :  { %v4192_v57 = vsel %vm4168_vm14, %v3996_v17, %v4180_v43  ;;  %v4037_v40 = vadd.f32 %v4036_v10, %v9386_v26  ;;  %v4038_v53 = vpop.f32.mrb[37].mxu1  ;;  %v11143_v43 = vld [vmem:[#allocation37_spill] sm:$0xff] }
 0x62f   :  { %v9436_v20 = vmul.f32 %v4192_v57, %v11138_v31  ;;  %4378 = vrot.lane.b32.xlu0 %v4238_v62, %s6041_s27  ;;  %v4040_v18 = vpop.f32.mrb[38].mxu1  ;;  %v4193_v8 = vsel %vm4169_vm12, %v3998_v28, %v4181_v13  ;;  %v4039_v52 = vadd.f32 %v4038_v53, %v9386_v26 }
 0x630   :  { %vm4170_vm15 = vcmp.ge.f32.partialorder %v4037_v40, 0.0  ;;  %v4182_v44 = vmul.f32 0.1, %v4037_v40  ;;  %v4041_v58 = vpop.f32.mrb[39].mxu1  ;;  %v9454_v7 = vmul.f32 %v4193_v8, %v11140_v6  ;;  %v11144_v8 = vld [vmem:[#allocation18_spill] sm:$0xff] }
 0x631   :  { %v9441_v22 = vpack.c.bf16 %v9436_v20, %v9436_v20  ;;  %v4183_v51 = vmul.f32 0.1, %v4039_v52  ;;  %vm4171_vm9 = vcmp.ge.f32.partialorder %v4039_v52, 0.0 }
 0x632   :  { %v4194_v11 = vsel %vm4170_vm15, %v4037_v40, %v4182_v44  ;;  %v9466_v4 = vpack.c.bf16 %v9454_v7, %v9454_v7 }
 0x633   :  { %4447 = vrot.lane.b32.xlu0 %v4238_v62, %s6043_s29  ;;  %4284 = vrot.lane.b32.xlu1 %v9441_v22, %s6038_s22  ;;  %v9447_v35 = vmul.f32 %v4194_v11, %v11139_v39  ;;  %v4239_v3 = vrot.slane %v9441_v22, 4  ;;  %v4195_v0 = vsel %vm4171_vm9, %v4039_v52, %v4183_v51 }
 0x634   :  { %v4240_v19 = vrot.slane %v9466_v4, 4  ;;  %v9492_v14 = vmul.f32 %v4195_v0, %v11141_v34 }
 0x635   :  { %v9458_v48 = vpack.c.bf16 %v9447_v35, %v9447_v35 }
 0x636   :  { %v9498_v16 = vpack.c.bf16 %v9492_v14, %v9492_v14 }
 0x637   :  { %4484 = vrot.lane.b32.xlu0 %v9441_v22, %s6044_s30  ;;  %4348 = vrot.lane.b32.xlu1 %v9441_v22, %s6040_s26  ;;  %v4241_v57 = vrot.slane %v9458_v48, 4 }
 0x638   :  { %v4242_v31 = vrot.slane %v9498_v16, 4 }
 0x63b   :  { %4288 = vrot.lane.b32.xlu0 %v9458_v48, %s6038_s22  ;;  %4413 = vrot.lane.b32.xlu1 %v9441_v22, %s6042_s28 }
 0x63f   :  { %4352 = vrot.lane.b32.xlu0 %v9458_v48, %s6040_s26  ;;  %4286 = vrot.lane.b32.xlu1 %v9466_v4, %s6038_s22 }
 0x643   :  { %4417 = vrot.lane.b32.xlu0 %v9458_v48, %s6042_s28  ;;  %4350 = vrot.lane.b32.xlu1 %v9466_v4, %s6040_s26 }
 0x647   :  { %4488 = vrot.lane.b32.xlu0 %v9458_v48, %s6044_s30  ;;  %4415 = vrot.lane.b32.xlu1 %v9466_v4, %s6042_s28 }
 0x64b   :  { %4252 = vrot.lane.b32.xlu0 %v4239_v3, %s6037_s21  ;;  %4486 = vrot.lane.b32.xlu1 %v9466_v4, %s6044_s30 }
 0x64f   :  { %4254 = vrot.lane.b32.xlu0 %v4240_v19, %s6037_s21  ;;  %4316 = vrot.lane.b32.xlu1 %v4239_v3, %s6039_s23 }
 0x651   :  { %v4077_v54 = vpop.f32.mrb[40].mxu0 }
 0x652   :  { %v4078_v41 = vadd.f32 %v4077_v54, %v9386_v26  ;;  %v4079_v42 = vpop.f32.mrb[41].mxu0 }
 0x653   :  { %4318 = vrot.lane.b32.xlu0 %v4240_v19, %s6039_s23  ;;  %4380 = vrot.lane.b32.xlu1 %v4239_v3, %s6041_s27  ;;  %v4081_v9 = vpop.f32.mrb[42].mxu0  ;;  %v4080_v18 = vadd.f32 %v4079_v42, %v9386_v26 }
 0x654   :  { %vm4172_vm13 = vcmp.ge.f32.partialorder %v4078_v41, 0.0  ;;  %v4184_v23 = vmul.f32 0.1, %v4078_v41  ;;  %v4082_v12 = vpop.f32.mrb[43].mxu0 }
 0x655   :  { %v4118_v5 = vpop.f32.mrb[40].mxu1  ;;  %v4185_v58 = vmul.f32 0.1, %v4080_v18  ;;  %vm4173_vm15 = vcmp.ge.f32.partialorder %v4080_v18, 0.0 }
 0x656   :  { %v4196_v45 = vsel %vm4172_vm13, %v4078_v41, %v4184_v23  ;;  %v4120_v50 = vpop.f32.mrb[41].mxu1  ;;  %v4119_v21 = vadd.f32 %v4118_v5, %v9386_v26 }
 0x657   :  { %4382 = vrot.lane.b32.xlu0 %v4240_v19, %s6041_s27  ;;  %4449 = vrot.lane.b32.xlu1 %v4239_v3, %s6043_s29  ;;  %v4122_v46 = vpop.f32.mrb[42].mxu1  ;;  %v9501_v2 = vmul.f32 %v4196_v45, %v11142_v27  ;;  %v4197_v11 = vsel %vm4173_vm15, %v4080_v18, %v4185_v58  ;;  %v4121_v54 = vadd.f32 %v4120_v50, %v9386_v26  ;;  %v11145_v45 = vld [vmem:[#allocation39_spill] sm:$0xff] }
 0x658   :  { %v4123_v33 = vpop.f32.mrb[43].mxu1  ;;  %v4186_v17 = vmul.f32 0.1, %v4119_v21  ;;  %vm4174_vm14 = vcmp.ge.f32.partialorder %v4119_v21, 0.0  ;;  %v9560_v6 = vmul.f32 %v4197_v11, %v11144_v8 }
 0x659   :  { %v9508_v62 = vpack.c.bf16 %v9501_v2, %v9501_v2  ;;  %v4187_v42 = vmul.f32 0.1, %v4121_v54  ;;  %vm4175_vm12 = vcmp.ge.f32.partialorder %v4121_v54, 0.0 }
 0x65a   :  { %v4198_v25 = vsel %vm4174_vm14, %v4119_v21, %v4186_v17  ;;  %v9568_v52 = vpack.c.bf16 %v9560_v6, %v9560_v6  ;;  %v11146_v17 = vld [vmem:[#allocation29_spill] sm:$0xff] }
 0x65b   :  { %4451 = vrot.lane.b32.xlu0 %v4240_v19, %s6043_s29  ;;  %4290 = vrot.lane.b32.xlu1 %v9498_v16, %s6038_s22  ;;  %v9524_v36 = vmul.f32 %v4198_v25, %v11143_v43  ;;  %v4243_v44 = vrot.slane %v9508_v62, 4  ;;  %v4199_v34 = vsel %vm4175_vm12, %v4121_v54, %v4187_v42 }
 0x65c   :  { %v9593_v50 = vmul.f32 %v4199_v34, %v11145_v45  ;;  %v4244_v58 = vrot.slane %v9568_v52, 4  ;;  %v11147_v34 = vld [vmem:[#allocation27_spill] sm:$0xff] }
 0x65d   :  { %v9534_v53 = vpack.c.bf16 %v9524_v36, %v9524_v36 }
 0x65e   :  { %v9604_v21 = vpack.c.bf16 %v9593_v50, %v9593_v50 }
 0x65f   :  { %4292 = vrot.lane.b32.xlu0 %v9508_v62, %s6038_s22  ;;  %4354 = vrot.lane.b32.xlu1 %v9498_v16, %s6040_s26  ;;  %v4245_v41 = vrot.slane %v9534_v53, 4 }
 0x663   :  { %4356 = vrot.lane.b32.xlu0 %v9508_v62, %s6040_s26  ;;  %4419 = vrot.lane.b32.xlu1 %v9498_v16, %s6042_s28 }
 0x667   :  { %4421 = vrot.lane.b32.xlu0 %v9508_v62, %s6042_s28  ;;  %4490 = vrot.lane.b32.xlu1 %v9498_v16, %s6044_s30 }
 0x668   :  { %v4159_v63 = vpop.f32.mrb[44].mxu0 }
 0x669   :  { %v9526_v10 = vpop.f32.mrb[45].mxu0  ;;  %v4160_v9 = vadd.f32 %v4159_v63, %v9386_v26 }
 0x66a   :  { %v4163_v28 = vpop.f32.mrb[46].mxu0  ;;  %v4162_v11 = vadd.f32 %v9526_v10, %v9386_v26 }
 0x66b   :  { %4492 = vrot.lane.b32.xlu0 %v9508_v62, %s6044_s30  ;;  %4256 = vrot.lane.b32.xlu1 %v4241_v57, %s6037_s21  ;;  %v4164_v40 = vpop.f32.mrb[47].mxu0  ;;  %v4188_v5 = vmul.f32 0.1, %v4160_v9  ;;  %vm4176_vm9 = vcmp.ge.f32.partialorder %v4160_v9, 0.0 }
 0x66c   :  { %v4189_v42 = vmul.f32 0.1, %v4162_v11  ;;  %vm4177_vm13 = vcmp.ge.f32.partialorder %v4162_v11, 0.0 }
 0x66d   :  { %v4200_v27 = vsel %vm4176_vm9, %v4160_v9, %v4188_v5 }
 0x66e   :  { %v9607_v25 = vmul.f32 %v4200_v27, %v11146_v17  ;;  %v4201_v10 = vsel %vm4177_vm13, %v4162_v11, %v4189_v42 }
 0x66f   :  { %4296 = vrot.lane.b32.xlu0 %v9534_v53, %s6038_s22  ;;  %4320 = vrot.lane.b32.xlu1 %v4241_v57, %s6039_s23  ;;  %v4213_v5 = vmul.f32 %v11147_v34, %v4201_v10  ;;  %v4246_v34 = vrot.slane %v9604_v21, 4 }
 0x671   :  { %v4225_v17 = vpack.c.bf16 %v4213_v5, %v4213_v5 }
 0x673   :  { %4360 = vrot.lane.b32.xlu0 %v9534_v53, %s6040_s26  ;;  %4384 = vrot.lane.b32.xlu1 %v4241_v57, %s6041_s27  ;;  %v4444_v10 = vrot.slane %v4225_v17, 4 }
 0x677   :  { %4425 = vrot.lane.b32.xlu0 %v9534_v53, %s6042_s28  ;;  %4453 = vrot.lane.b32.xlu1 %v4241_v57, %s6043_s29  ;;  %v9618_v57 = vpack.c.bf16 %v9607_v25, %v9607_v25 }
 0x67b   :  { %4496 = vrot.lane.b32.xlu0 %v9534_v53, %s6044_s30  ;;  %4258 = vrot.lane.b32.xlu1 %v4242_v31, %s6037_s21 }
 0x67f   :  { %4260 = vrot.lane.b32.xlu0 %v4243_v44, %s6037_s21  ;;  %4322 = vrot.lane.b32.xlu1 %v4242_v31, %s6039_s23 }
 0x681   :  { %v9553_v13 = vpop.permute.xlu0 %4280 }
 0x682   :  { %v9555_v39 = vpop.permute.xlu1 %4482 }
 0x683   :  { %4324 = vrot.lane.b32.xlu0 %v4243_v44, %s6039_s23  ;;  %4386 = vrot.lane.b32.xlu1 %v4242_v31, %s6041_s27 }
 0x685   :  { %v9562_v3 = vpop.permute.xlu0 %4344 }
 0x686   :  { %v9570_v19 = vpop.permute.xlu1 %4248 }
 0x687   :  { %4388 = vrot.lane.b32.xlu0 %v4243_v44, %s6041_s27  ;;  %4455 = vrot.lane.b32.xlu1 %v4242_v31, %s6043_s29 }
 0x689   :  { %v9572_v51 = vpop.permute.xlu0 %4409 }
 0x68a   :  { %v9582_v23 = vpop.permute.xlu1 %4312 }
 0x68b   :  { %4457 = vrot.lane.b32.xlu0 %v4243_v44, %s6043_s29  ;;  %4294 = vrot.lane.b32.xlu1 %v9568_v52, %s6038_s22 }
 0x68d   :  { %v9578_v0 = vpop.permute.xlu0 %4480 }
 0x68e   :  { %v9595_v46 = vpop.permute.xlu1 %4376 }
 0x68f   :  { %4264 = vrot.lane.b32.xlu0 %v4245_v41, %s6037_s21  ;;  %4358 = vrot.lane.b32.xlu1 %v9568_v52, %s6040_s26 }
 0x691   :  { %v9587_v12 = vpop.permute.xlu0 %4282 }
 0x692   :  { %v9611_v43 = vpop.permute.xlu1 %4445 }
 0x693   :  { %4328 = vrot.lane.b32.xlu0 %v4245_v41, %s6039_s23  ;;  %4423 = vrot.lane.b32.xlu1 %v9568_v52, %s6042_s28 }
 0x695   :  { %v9597_v33 = vpop.permute.xlu0 %4346 }
 0x696   :  { %v4251_v40 = vpop.permute.xlu1 %4250 }
 0x697   :  { %4392 = vrot.lane.b32.xlu0 %v4245_v41, %s6041_s27  ;;  %4494 = vrot.lane.b32.xlu1 %v9568_v52, %s6044_s30 }
 0x699   :  { %v9609_v63 = vpop.permute.xlu0 %4411 }
 0x69b   :  { %4461 = vrot.lane.b32.xlu0 %v4245_v41, %s6043_s29  ;;  %4298 = vrot.lane.b32.xlu1 %v9604_v21, %s6038_s22  ;;  %v4247_v41 = vrot.slane %v9618_v57, 4 }
 0x69d   :  { %v4315_v28 = vpop.permute.xlu0 %4314 }
 0x69e   :  { %v4334_v49 = vsel %vm304_vm2, %v9582_v23, %v4315_v28 }
 0x69f   :  { %4300 = vrot.lane.b32.xlu0 %v9618_v57, %s6038_s22  ;;  %4362 = vrot.lane.b32.xlu1 %v9604_v21, %s6040_s26 }
 0x6a1   :  { %v9624_v31 = vpop.permute.xlu0 %4378 }
 0x6a3   :  { %4364 = vrot.lane.b32.xlu0 %v9618_v57, %s6040_s26  ;;  %4427 = vrot.lane.b32.xlu1 %v9604_v21, %s6042_s28 }
 0x6a5   :  { %v9630_v18 = vpop.permute.xlu0 %4447  ;;  %v9632_v44 = vpop.permute.xlu1 %4284 }
 0x6a6   :  { %v4303_v61 = vsel %vm268_vm3, %v9587_v12, %v9632_v44 }
 0x6a7   :  { %4429 = vrot.lane.b32.xlu0 %v9618_v57, %s6042_s28  ;;  %4262 = vrot.lane.b32.xlu1 %v4244_v58, %s6037_s21 }
 0x6a9   :  { %v9640_v8 = vpop.permute.xlu0 %4484  ;;  %v9642_v54 = vpop.permute.xlu1 %4348 }
 0x6ab   :  { %4268 = vrot.lane.b32.xlu0 %v4247_v41, %s6037_s21  ;;  %4326 = vrot.lane.b32.xlu1 %v4244_v58, %s6039_s23 }
 0x6ad   :  { %v9647_v9 = vpop.permute.xlu0 %4288  ;;  %v9649_v26 = vpop.permute.xlu1 %4413 }
 0x6af   :  { %4332 = vrot.lane.b32.xlu0 %v4247_v41, %s6039_s23  ;;  %4390 = vrot.lane.b32.xlu1 %v4244_v58, %s6041_s27 }
 0x6b1   :  { %v9654_v45 = vpop.permute.xlu0 %4352  ;;  %v9656_v27 = vpop.permute.xlu1 %4286 }
 0x6b3   :  { %4396 = vrot.lane.b32.xlu0 %v4247_v41, %s6041_s27  ;;  %4459 = vrot.lane.b32.xlu1 %v4244_v58, %s6043_s29  ;;  %v4270_v58 = vsel %vm232_vm0, %v9570_v19, %v4251_v40  ;;  %v4692_v19 = vld [vmem:[%s10766_s7] sm:$0xff] }
 0x6b5   :  { %v9660_v55 = vpop.permute.xlu0 %4417  ;;  %v9662_v38 = vpop.permute.xlu1 %4350 }
 0x6b7   :  { %4465 = vrot.lane.b32.xlu0 %v4247_v41, %s6043_s29  ;;  %4498 = vrot.lane.b32.xlu1 %v9604_v21, %s6044_s30 }
 0x6b9   :  { %v9667_v11 = vpop.permute.xlu0 %4488  ;;  %v9669_v42 = vpop.permute.xlu1 %4415 }
 0x6bb   :  { %4467 = vrot.lane.b32.xlu0 %v4444_v10, %s6043_s29  ;;  %4266 = vrot.lane.b32.xlu1 %v4246_v34, %s6037_s21  ;;  %v4517_v10 = vsel %vm496_vm1, %v9402_v32, %v4270_v58  ;;  %v4398_v58 = vsel %vm376_vm4, %v9595_v46, %v9624_v31  ;;  %v4469_v46 = vsel %vm448_vm6, %v9611_v43, %v9630_v18 }
 0x6bd   :  { %v4253_v5 = vpop.permute.xlu0 %4252  ;;  %v9676_v47 = vpop.permute.xlu1 %4486 }
 0x6be   :  { %v4271_v41 = vsel %vm232_vm0, %v4251_v40, %v4253_v5 }
 0x6bf   :  { %4500 = vrot.lane.b32.xlu0 %v9618_v57, %s6044_s30  ;;  %4330 = vrot.lane.b32.xlu1 %v4246_v34, %s6039_s23  ;;  %v4521_v30 = vsel %vm496_vm1, %v9406_v56, %v4271_v41 }
 0x6c0   :  { %4734 = vmatprep.subr.bf16.mxu1 %v4521_v30  ;;  %v4302_v30 = vsel %vm268_vm3, %v9553_v13, %v9587_v12 }
 0x6c1   :  { %v4255_v40 = vpop.permute.xlu0 %4254  ;;  %4735 = vmatpush1.bf16.msra.mxu1 %v4517_v10  ;;  %v4317_v24 = vpop.permute.xlu1 %4316  ;;  %v4561_v23 = vsel %vm496_vm1, %v4302_v30, %v4334_v49  ;;  %v4504_v30 = vsel %vm484_vm8, %v9578_v0, %v9555_v39  ;;  %v9747_v0 = vld [vmem:[%s10765_s6] sm:$0xf] }
 0x6c2   :  { %v4335_v56 = vsel %vm304_vm2, %v4315_v28, %v4317_v24  ;;  %v4367_v28 = vsel %vm340_vm5, %v9597_v33, %v9642_v54 }
 0x6c3   :  { %4695 = vperm.xlu0 %5952, %v4692_v19   ;;  %4394 = vrot.lane.b32.xlu1 %v4246_v34, %s6041_s27  ;;  %v4565_v32 = vsel %vm496_vm1, %v4303_v61, %v4335_v56  ;;  %v4366_v61 = vsel %vm340_vm5, %v9562_v3, %v9597_v33  ;;  %v4433_v33 = vsel %vm412_vm7, %v9572_v51, %v9609_v63  ;;  %v4702_v51 = vsel %vm496_vm1, %v4504_v30, 0 }
 0x6c4   :  { %4736 = vmatprep.subr.bf16.mxu1 %v4565_v32  ;;  %v4605_v12 = vsel %vm496_vm1, %v4366_v61, %v4398_v58  ;;  %v4649_v43 = vsel %vm496_vm1, %v4433_v33, %v4469_v46  ;;  %v4272_v61 = vsel %vm232_vm0, %v4253_v5, %v4255_v40  ;;  %v4305_v5 = vsel %vm268_vm3, %v9656_v27, %v9647_v9 }
 0x6c5   :  { %v4319_v41 = vpop.permute.xlu0 %4318  ;;  %4737 = vmatpush1.bf16.msra.mxu1 %v4561_v23  ;;  %v4381_v10 = vpop.permute.xlu1 %4380 }
 0x6c6   :  { %v4399_v13 = vsel %vm376_vm4, %v9624_v31, %v4381_v10  ;;  %v4434_v31 = vsel %vm412_vm7, %v9609_v63, %v9649_v26  ;;  %v4336_v33 = vsel %vm304_vm2, %v4317_v24, %v4319_v41 }
 0x6c7   :  { %4463 = vrot.lane.b32.xlu1 %v4246_v34, %s6043_s29  ;;  %v4609_v49 = vsel %vm496_vm1, %v4367_v28, %v4399_v13 }
 0x6c8   :  { %4738 = vmatprep.subr.bf16.mxu1 %v4609_v49 }
 0x6c9   :  { %v4383_v19 = vpop.permute.xlu0 %4382  ;;  %4739 = vmatpush1.bf16.msra.mxu1 %v4605_v12  ;;  %v4450_v56 = vpop.permute.xlu1 %4449 }
 0x6ca   :  { %v4470_v3 = vsel %vm448_vm6, %v9630_v18, %v4450_v56  ;;  %v4505_v18 = vsel %vm484_vm8, %v9555_v39, %v9640_v8  ;;  %v4400_v24 = vsel %vm376_vm4, %v4381_v10, %v4383_v19 }
 0x6cb   :  { %4431 = vrot.lane.b32.xlu1 %v4225_v17, %s6042_s28  ;;  %v4653_v34 = vsel %vm496_vm1, %v4434_v31, %v4470_v3  ;;  %v4525_v3 = vsel %vm496_vm1, %v9441_v22, %v4272_v61  ;;  %v4369_v61 = vsel %vm340_vm5, %v9662_v38, %v9654_v45 }
 0x6cc   :  { %4740 = vmatprep.subr.bf16.mxu1 %v4653_v34 }
 0x6cd   :  { %v4452_v32 = vpop.permute.xlu0 %4451  ;;  %4741 = vmatpush1.bf16.msra.mxu1 %v4649_v43  ;;  %v9732_v23 = vpop.permute.xlu1 %4290 }
 0x6ce   :  { %5867 = vmatprep.subr.msk.bf16.mxu1 %vm496_vm1, %v4505_v18  ;;  %v4471_v10 = vsel %vm448_vm6, %v4450_v56, %v4452_v32  ;;  %v4506_v56 = vsel %vm484_vm8, %v9640_v8, %v9676_v47 }
 0x6cf   :  { %4502 = vrot.lane.b32.xlu1 %v4225_v17, %s6044_s30 }
 0x6d1   :  { %v9740_v63 = vpop.permute.xlu0 %4292  ;;  %4743 = vmatpush1.bf16.msra.mxu1 %v4702_v51  ;;  %v9742_v58 = vpop.permute.xlu1 %4354 }
 0x6d4   :  { %5868 = vmatmul.mubr.msk.bf16.vlgmr.msra.gmra.mrb[44].mxu1 %vm920_vm10, %v9747_v0 }
 0x6d5   :  { %v9751_v39 = vpop.permute.xlu0 %4356  ;;  %v9753_v28 = vpop.permute.xlu1 %4419  ;;  %4848 = vmatprep.mubr.bf16.mxu1 %v11059_v60 }
 0x6d9   :  { %v9756_v17 = vpop.permute.xlu0 %4421  ;;  %v9758_v13 = vpop.permute.xlu1 %4490 }
 0x6dd   :  { %v9761_v49 = vpop.permute.xlu0 %4492  ;;  %v4257_v12 = vpop.permute.xlu1 %4256 }
 0x6de   :  { %v4273_v46 = vsel %vm232_vm0, %v4255_v40, %v4257_v12 }
 0x6df   :  { %v4529_v31 = vsel %vm496_vm1, %v9466_v4, %v4273_v46  ;;  %v4304_v4 = vsel %vm268_vm3, %v9632_v44, %v9656_v27  ;;  %v4368_v44 = vsel %vm340_vm5, %v9642_v54, %v9662_v38  ;;  %v4435_v38 = vsel %vm412_vm7, %v9649_v26, %v9669_v42 }
 0x6e0   :  { %4775 = vmatprep.subr.bf16.mxu0 %v4529_v31  ;;  %v4569_v22 = vsel %vm496_vm1, %v4304_v4, %v4336_v33  ;;  %v4613_v46 = vsel %vm496_vm1, %v4368_v44, %v4400_v24  ;;  %v4436_v33 = vsel %vm412_vm7, %v9669_v42, %v9660_v55  ;;  %v4708_v26 = vsel %vm496_vm1, %v4506_v56, 0 }
 0x6e1   :  { %v9769_v34 = vpop.permute.xlu0 %4296  ;;  %4776 = vmatpush1.bf16.msra.mxu0 %v4525_v3  ;;  %v4321_v43 = vpop.permute.xlu1 %4320  ;;  %v4307_v44 = vsel %vm268_vm3, %v9732_v23, %v9740_v63 }
 0x6e2   :  { %v4337_v30 = vsel %vm304_vm2, %v4319_v41, %v4321_v43 }
 0x6e3   :  { %v4573_v40 = vsel %vm496_vm1, %v4305_v5, %v4337_v30  ;;  %v4657_v5 = vsel %vm496_vm1, %v4435_v38, %v4471_v10 }
 0x6e4   :  { %4777 = vmatprep.subr.bf16.mxu0 %v4573_v40 }
 0x6e5   :  { %v9781_v18 = vpop.permute.xlu0 %4360  ;;  %4778 = vmatpush1.bf16.msra.mxu0 %v4569_v22  ;;  %v4385_v51 = vpop.permute.xlu1 %4384 }
 0x6e6   :  { %v4401_v41 = vsel %vm376_vm4, %v4383_v19, %v4385_v51 }
 0x6e7   :  { %v4617_v27 = vsel %vm496_vm1, %v4369_v61, %v4401_v41 }
 0x6e8   :  { %4779 = vmatprep.subr.bf16.mxu0 %v4617_v27  ;;  %v4306_v27 = vsel %vm268_vm3, %v9647_v9, %v9732_v23  ;;  %v4370_v9 = vsel %vm340_vm5, %v9654_v45, %v9742_v58  ;;  %v4437_v45 = vsel %vm412_vm7, %v9660_v55, %v9753_v28 }
 0x6e9   :  { %v9793_v31 = vpop.permute.xlu0 %4425  ;;  %4780 = vmatpush1.bf16.msra.mxu0 %v4613_v46  ;;  %v4454_v3 = vpop.permute.xlu1 %4453 }
 0x6ea   :  { %v4472_v19 = vsel %vm448_vm6, %v4452_v32, %v4454_v3  ;;  %v4507_v32 = vsel %vm484_vm8, %v9676_v47, %v9667_v11 }
 0x6eb   :  { %v4661_v54 = vsel %vm496_vm1, %v4436_v33, %v4472_v19  ;;  %v4371_v19 = vsel %vm340_vm5, %v9742_v58, %v9751_v39 }
 0x6ec   :  { %4781 = vmatprep.subr.bf16.mxu0 %v4661_v54 }
 0x6ed   :  { %v9807_v30 = vpop.permute.xlu0 %4496  ;;  %4782 = vmatpush1.bf16.msra.mxu0 %v4657_v5  ;;  %v4259_v4 = vpop.permute.xlu1 %4258 }
 0x6ee   :  { %5869 = vmatprep.subr.msk.bf16.mxu0 %vm496_vm1, %v4507_v32  ;;  %v4274_v42 = vsel %vm232_vm0, %v4257_v12, %v4259_v4 }
 0x6ef   :  { %v4533_v47 = vsel %vm496_vm1, %v9458_v48, %v4274_v42 }
 0x6f1   :  { %v4261_v40 = vpop.permute.xlu0 %4260  ;;  %4784 = vmatpush1.bf16.msra.mxu0 %v4708_v26  ;;  %v4323_v22 = vpop.permute.xlu1 %4322 }
 0x6f2   :  { %v4275_v24 = vsel %vm232_vm0, %v4259_v4, %v4261_v40  ;;  %v4338_v61 = vsel %vm304_vm2, %v4321_v43, %v4323_v22  ;;  %v4438_v4 = vsel %vm412_vm7, %v9753_v28, %v9756_v17 }
 0x6f3   :  { %v4537_v8 = vsel %vm496_vm1, %v9498_v16, %v4275_v24  ;;  %v4577_v43 = vsel %vm496_vm1, %v4306_v27, %v4338_v61  ;;  %v4509_v24 = vsel %vm484_vm8, %v9758_v13, %v9761_v49 }
 0x6f4   :  { %5870 = vmatmul.mubr.msk.bf16.vlgmr.msra.gmra.mrb[48].mxu0 %vm920_vm10, %v9747_v0  ;;  %4816 = vmatprep.subr.bf16.mxu1 %v4537_v8 }
 0x6f5   :  { %v9823_v41 = vpop.permute.xlu0 %4324  ;;  %4817 = vmatpush1.bf16.msra.mxu1 %v4533_v47  ;;  %v4387_v12 = vpop.permute.xlu1 %4386  ;;  %4889 = vmatprep.mubr.bf16.mxu0 %v11059_v60 }
 0x6f6   :  { %v4339_v16 = vsel %vm304_vm2, %v4323_v22, %v9823_v41  ;;  %v4402_v46 = vsel %vm376_vm4, %v4385_v51, %v4387_v12 }
 0x6f7   :  { %v4581_v48 = vsel %vm496_vm1, %v4307_v44, %v4339_v16  ;;  %v4621_v54 = vsel %vm496_vm1, %v4370_v9, %v4402_v46 }
 0x6f8   :  { %4818 = vmatprep.subr.bf16.mxu1 %v4581_v48 }
 0x6f9   :  { %v4389_v10 = vpop.permute.xlu0 %4388  ;;  %4819 = vmatpush1.bf16.msra.mxu1 %v4577_v43  ;;  %v4456_v33 = vpop.permute.xlu1 %4455 }
 0x6fa   :  { %v4403_v38 = vsel %vm376_vm4, %v4387_v12, %v4389_v10  ;;  %v4473_v51 = vsel %vm448_vm6, %v4454_v3, %v4456_v33  ;;  %v4508_v3 = vsel %vm484_vm8, %v9667_v11, %v9758_v13 }
 0x6fb   :  { %v4625_v23 = vsel %vm496_vm1, %v4371_v19, %v4403_v38  ;;  %v4665_v26 = vsel %vm496_vm1, %v4437_v45, %v4473_v51  ;;  %v4714_v55 = vsel %vm496_vm1, %v4508_v3, 0 }
 0x6fc   :  { %4820 = vmatprep.subr.bf16.mxu1 %v4625_v23 }
 0x6fd   :  { %v4458_v5 = vpop.permute.xlu0 %4457  ;;  %4821 = vmatpush1.bf16.msra.mxu1 %v4621_v54  ;;  %v4295_v56 = vpop.permute.xlu1 %4294 }
 0x6fe   :  { %v4474_v32 = vsel %vm448_vm6, %v4456_v33, %v4458_v5  ;;  %v4308_v54 = vsel %vm268_vm3, %v9740_v63, %v4295_v56  ;;  %v4309_v51 = vsel %vm268_vm3, %v4295_v56, %v9769_v34 }
 0x6ff   :  { %v4669_v58 = vsel %vm496_vm1, %v4438_v4, %v4474_v32 }
 0x700   :  { %4822 = vmatprep.subr.bf16.mxu1 %v4669_v58 }
 0x701   :  { %v9859_v42 = vpop.permute.xlu0 %4264  ;;  %4823 = vmatpush1.bf16.msra.mxu1 %v4665_v26  ;;  %v4359_v22 = vpop.permute.xlu1 %4358 }
 0x702   :  { %5871 = vmatprep.subr.msk.bf16.mxu1 %vm496_vm1, %v4509_v24  ;;  %v4372_v45 = vsel %vm340_vm5, %v9751_v39, %v4359_v22  ;;  %v4373_v63 = vsel %vm340_vm5, %v4359_v22, %v9781_v18 }
 0x705   :  { %v9866_v28 = vpop.permute.xlu0 %4328  ;;  %4825 = vmatpush1.bf16.msra.mxu1 %v4714_v55  ;;  %v4424_v8 = vpop.permute.xlu1 %4423 }
 0x706   :  { %v4439_v55 = vsel %vm412_vm7, %v9756_v17, %v4424_v8  ;;  %v4440_v39 = vsel %vm412_vm7, %v4424_v8, %v9793_v31 }
 0x708   :  { %5872 = vmatmul.mubr.msk.bf16.vlgmr.msra.gmra.mrb[48].mxu1 %vm920_vm10, %v9747_v0 }
 0x709   :  { %v9870_v11 = vpop.permute.xlu0 %4392  ;;  %v4495_v47 = vpop.permute.xlu1 %4494  ;;  %4930 = vmatprep.mubr.bf16.mxu1 %v11059_v60 }
 0x70a   :  { %v4511_v17 = vsel %vm484_vm8, %v4495_v47, %v9807_v30 }
 0x70d   :  { %v9873_v61 = vpop.permute.xlu0 %4461  ;;  %v9875_v12 = vpop.permute.xlu1 %4298 }
 0x711   :  { %v9877_v13 = vpop.permute.xlu0 %4300  ;;  %v9879_v44 = vpop.permute.xlu1 %4362 }
 0x715   :  { %v9881_v16 = vpop.permute.xlu0 %4364  ;;  %v9883_v27 = vpop.permute.xlu1 %4427 }
 0x719   :  { %v9885_v48 = vpop.permute.xlu0 %4429  ;;  %v4263_v43 = vpop.permute.xlu1 %4262 }
 0x71a   :  { %v4276_v46 = vsel %vm232_vm0, %v4261_v40, %v4263_v43  ;;  %v4277_v33 = vsel %vm232_vm0, %v4263_v43, %v9859_v42 }
 0x71b   :  { %v4545_v19 = vsel %vm496_vm1, %v9568_v52, %v4277_v33  ;;  %v4541_v38 = vsel %vm496_vm1, %v9508_v62, %v4276_v46 }
 0x71c   :  { %4857 = vmatprep.subr.bf16.mxu0 %v4545_v19  ;;  %v4510_v19 = vsel %vm484_vm8, %v9761_v49, %v4495_v47 }
 0x71d   :  { %v4269_v9 = vpop.permute.xlu0 %4268  ;;  %4858 = vmatpush1.bf16.msra.mxu0 %v4541_v38  ;;  %v4327_v23 = vpop.permute.xlu1 %4326 }
 0x71e   :  { %v4340_v40 = vsel %vm304_vm2, %v9823_v41, %v4327_v23  ;;  %v4341_v4 = vsel %vm304_vm2, %v4327_v23, %v9866_v28 }
 0x71f   :  { %v4589_v52 = vsel %vm496_vm1, %v4309_v51, %v4341_v4  ;;  %v4585_v62 = vsel %vm496_vm1, %v4308_v54, %v4340_v40  ;;  %v11148_v40 = vmov 0.0   ;;  %v4557_v4 = vsel %vm496_vm1, %v9618_v57, %v4269_v9 }
 0x720   :  { %4859 = vmatprep.subr.bf16.mxu0 %v4589_v52 }
 0x721   :  { %4860 = vmatpush1.bf16.msra.mxu0 %v4585_v62  ;;  %v4391_v32 = vpop.permute.xlu1 %4390  ;;  %v4333_v56 = vpop.permute.xlu0 %4332 }
 0x722   :  { %v4404_v58 = vsel %vm376_vm4, %v4389_v10, %v4391_v32  ;;  %v4405_v41 = vsel %vm376_vm4, %v4391_v32, %v9870_v11  ;;  %v4601_v32 = vsel %vm496_vm1, %v9877_v13, %v4333_v56 }
 0x723   :  { %v4633_v26 = vsel %vm496_vm1, %v4373_v63, %v4405_v41  ;;  %v4629_v3 = vsel %vm496_vm1, %v4372_v45, %v4404_v58  ;;  %v4375_v45 = vsel %vm340_vm5, %v9879_v44, %v9881_v16 }
 0x724   :  { %4861 = vmatprep.subr.bf16.mxu0 %v4633_v26 }
 0x725   :  { %4862 = vmatpush1.bf16.msra.mxu0 %v4629_v3  ;;  %v4460_v24 = vpop.permute.xlu1 %4459  ;;  %v4397_v33 = vpop.permute.xlu0 %4396 }
 0x726   :  { %v4475_v22 = vsel %vm448_vm6, %v4458_v5, %v4460_v24  ;;  %v4476_v10 = vsel %vm448_vm6, %v4460_v24, %v9873_v61  ;;  %v4720_v5 = vsel %vm496_vm1, %v4510_v19, 0  ;;  %v4645_v41 = vsel %vm496_vm1, %v9881_v16, %v4397_v33 }
 0x727   :  { %v4677_v43 = vsel %vm496_vm1, %v4440_v39, %v4476_v10  ;;  %v4673_v46 = vsel %vm496_vm1, %v4439_v55, %v4475_v22 }
 0x728   :  { %4863 = vmatprep.subr.bf16.mxu0 %v4677_v43 }
 0x729   :  { %4864 = vmatpush1.bf16.msra.mxu0 %v4673_v46  ;;  %v4499_v38 = vpop.permute.xlu1 %4498  ;;  %v4466_v23 = vpop.permute.xlu0 %4465 }
 0x72a   :  { %5873 = vmatprep.subr.msk.bf16.mxu0 %vm496_vm1, %v4511_v17 }
 0x72d   :  { %4866 = vmatpush1.bf16.msra.mxu0 %v4720_v5  ;;  %v4267_v8 = vpop.permute.xlu1 %4266 }
 0x72e   :  { %v4278_v54 = vsel %vm232_vm0, %v9859_v42, %v4267_v8  ;;  %v4279_v51 = vsel %vm232_vm0, %v4267_v8, %v4269_v9  ;;  %5924 = vmatprep.subr.bf16.mxu0 %v11148_v40  ;;  %v4310_v42 = vsel %vm268_vm3, %v9769_v34, %v9875_v12  ;;  %v4468_v9 = vpop.permute.xlu0 %4467 }
 0x72f   :  { %v4553_v49 = vsel %vm496_vm1, %v9604_v21, %v4279_v51  ;;  %v4549_v47 = vsel %vm496_vm1, %v9534_v53, %v4278_v54  ;;  %v4311_v21 = vsel %vm268_vm3, %v9875_v12, %v9877_v13  ;;  %v4479_v22 = vsel %vm448_vm6, %v4466_v23, %v4468_v9  ;;  %v11149_v54 = vld [vmem:[#allocation23_spill] sm:$0xff]  ;;  %v11151_v9 = vld [vmem:[#allocation76_spill] sm:$0xff] }
 0x730   :  { %5874 = vmatmul.mubr.msk.bf16.vlgmr.msra.gmra.mrb[52].mxu0 %vm920_vm10, %v9747_v0  ;;  %4898 = vmatprep.subr.bf16.mxu1 %v4553_v49 }
 0x731   :  { %4899 = vmatpush1.bf16.msra.mxu1 %v4549_v47  ;;  %5925 = vmatpush3.bf16.msra.mxu0 %v4557_v4  ;;  %v4331_v52 = vpop.permute.xlu1 %4330  ;;  %v11150_v47 = vld [vmem:[#allocation68_spill] sm:$0xff] }
 0x732   :  { %v4342_v53 = vsel %vm304_vm2, %v9866_v28, %v4331_v52  ;;  %v4343_v62 = vsel %vm304_vm2, %v4331_v52, %v4333_v56  ;;  %5926 = vmatprep.subr.bf16.mxu0 %v11148_v40  ;;  %5934 = vmatprep.mubr.msk.bf16.mxu0 %vm6050_vm11, %v11148_v40  ;;  %v4374_v28 = vsel %vm340_vm5, %v9781_v18, %v9879_v44  ;;  %v4501_v26 = vpop.permute.xlu0 %4500 }
 0x733   :  { %v4597_v57 = vsel %vm496_vm1, %v4311_v21, %v4343_v62  ;;  %v4593_v34 = vsel %vm496_vm1, %v4310_v42, %v4342_v53  ;;  %v4441_v44 = vsel %vm412_vm7, %v9793_v31, %v9883_v27  ;;  %v4512_v31 = vsel %vm484_vm8, %v9807_v30, %v4499_v38 }
 0x734   :  { %4900 = vmatprep.subr.bf16.mxu1 %v4597_v57  ;;  %v4726_v43 = vsel %vm496_vm1, %v4512_v31, 0 }
 0x735   :  { %4901 = vmatpush1.bf16.msra.mxu1 %v4593_v34  ;;  %5927 = vmatpush3.bf16.msra.mxu0 %v4601_v32  ;;  %v4395_v12 = vpop.permute.xlu1 %4394 }
 0x736   :  { %v4406_v63 = vsel %vm376_vm4, %v9870_v11, %v4395_v12  ;;  %v4407_v58 = vsel %vm376_vm4, %v4395_v12, %v4397_v33  ;;  %5928 = vmatprep.subr.bf16.mxu0 %v11148_v40  ;;  %v4442_v11 = vsel %vm412_vm7, %v9883_v27, %v9885_v48  ;;  %v4513_v27 = vsel %vm484_vm8, %v4499_v38, %v4501_v26 }
 0x737   :  { %v4641_v13 = vsel %vm496_vm1, %v4375_v45, %v4407_v58  ;;  %v4637_v56 = vsel %vm496_vm1, %v4374_v28, %v4406_v63 }
 0x738   :  { %4902 = vmatprep.subr.bf16.mxu1 %v4641_v13 }
 0x739   :  { %4903 = vmatpush1.bf16.msra.mxu1 %v4637_v56  ;;  %5929 = vmatpush3.bf16.msra.mxu0 %v4645_v41  ;;  %v4464_v18 = vpop.permute.xlu1 %4463 }
 0x73a   :  { %v4477_v3 = vsel %vm448_vm6, %v9873_v61, %v4464_v18  ;;  %v4478_v24 = vsel %vm448_vm6, %v4464_v18, %v4466_v23  ;;  %5930 = vmatprep.subr.bf16.mxu0 %v11148_v40 }
 0x73b   :  { %v4685_v16 = vsel %vm496_vm1, %v4442_v11, %v4478_v24  ;;  %v4681_v55 = vsel %vm496_vm1, %v4441_v44, %v4477_v3  ;;  %v11152_v11 = vld [vmem:[#allocation87_spill] sm:$0xff] }
 0x73c   :  { %4904 = vmatprep.subr.bf16.mxu1 %v4685_v16 }
 0x73d   :  { %4905 = vmatpush1.bf16.msra.mxu1 %v4681_v55  ;;  %v4432_v39 = vpop.permute.xlu1 %4431  ;;  %v11153_v55 = vld [vmem:[#allocation80_spill] sm:$0xff] }
 0x73e   :  { %v4443_v61 = vsel %vm412_vm7, %v9885_v48, %v4432_v39  ;;  %5875 = vmatprep.subr.msk.bf16.mxu1 %vm496_vm1, %v4513_v27 }
 0x73f   :  { %v4689_v10 = vsel %vm496_vm1, %v4443_v61, %v4479_v22 }
 0x740   :  { %5931 = vmatpush3.bf16.msra.mxu0 %v4689_v10 }
 0x741   :  { %4907 = vmatpush1.bf16.msra.mxu1 %v4726_v43  ;;  %v4503_v46 = vpop.permute.xlu1 %4502  ;;  %5932 = vmatprep.subr.bf16.mxu0 %v11148_v40 }
 0x742   :  { %v4514_v30 = vsel %vm484_vm8, %v4501_v26, %v4503_v46  ;;  %v10000_v48 = vpop.permute.xlu0 %4695 }
 0x743   :  { %v4732_v33 = vsel %vm496_vm1, %v4514_v30, 0  ;;  %v11154_v30 = vld [vmem:[#allocation102_spill] sm:$0xff] }
 0x744   :  { %5876 = vmatmul.mubr.msk.bf16.vlgmr.msra.gmra.mrb[52].mxu1 %vm920_vm10, %v9747_v0  ;;  %5933 = vmatpush3.bf16.msra.mxu0 %v4732_v33 }
 0x745   :  { %5522 = vmatprep.mubr.bf16.mxu1 %v11059_v60 }
 0x747   :  { %5935 = vmatmul.mubr.msk.bf16.vlgmr.msra.gmra.mrb[56].mxu0 %vm920_vm10, %v9747_v0 }
 0x748   :  { %5563 = vmatprep.mubr.bf16.mxu0 %v11059_v60 }
 0x7a7   :  { %v4768_v19 = vpop.f32.mrb[44].mxu1 }
 0x7a8   :  { %v4769_v38 = vadd.f32 %v4768_v19, %v10000_v48  ;;  %v4770_v17 = vpop.f32.mrb[45].mxu1 }
 0x7a9   :  { %v4772_v5 = vpop.f32.mrb[46].mxu1  ;;  %v4771_v0 = vadd.f32 %v4770_v17, %v10000_v48 }
 0x7aa   :  { %v4979_v8 = vmax.f32 %v4769_v38, 0.0  ;;  %v4773_v23 = vpop.f32.mrb[47].mxu1 }
 0x7ab   :  { %v4980_v49 = vmax.f32 %v4771_v0, 0.0 }
 0x7ac   :  { %v4990_v51 = vmul.f32 %v4979_v8, %v11149_v54 }
 0x7ad   :  { %v4991_v4 = vmul.f32 %v4980_v49, %v11150_v47 }
 0x7ae   :  { %v10004_v40 = vpack.c.bf16 %v4990_v51, %v4990_v51  ;;  %v11155_v51 = vld [vmem:[#allocation92_spill] sm:$0xff] }
 0x7af   :  { %v10016_v42 = vpack.c.bf16 %v4991_v4, %v4991_v4 }
 0x7b0   :  { %5066 = vrot.lane.b32.xlu0 %v10004_v40, %s6038_s22  ;;  %v5023_v18 = vrot.slane %v10004_v40, 4 }
 0x7b1   :  { %v5024_v45 = vrot.slane %v10016_v42, 4 }
 0x7b4   :  { %5130 = vrot.lane.b32.xlu0 %v10004_v40, %s6040_s26 }
 0x7b8   :  { %5194 = vrot.lane.b32.xlu0 %v10004_v40, %s6042_s28 }
 0x7bc   :  { %5258 = vrot.lane.b32.xlu0 %v10004_v40, %s6044_s30 }
 0x7c0   :  { %5068 = vrot.lane.b32.xlu0 %v10016_v42, %s6038_s22 }
 0x7c4   :  { %5132 = vrot.lane.b32.xlu0 %v10016_v42, %s6040_s26 }
 0x7c7   :  { %v4809_v52 = vpop.f32.mrb[48].mxu0 }
 0x7c8   :  { %v4810_v21 = vadd.f32 %v4809_v52, %v10000_v48  ;;  %5196 = vrot.lane.b32.xlu0 %v10016_v42, %s6042_s28  ;;  %v4811_v53 = vpop.f32.mrb[49].mxu0 }
 0x7c9   :  { %v4813_v62 = vpop.f32.mrb[50].mxu0  ;;  %v4812_v3 = vadd.f32 %v4811_v53, %v10000_v48 }
 0x7ca   :  { %v4981_v57 = vmax.f32 %v4810_v21, 0.0  ;;  %v4814_v34 = vpop.f32.mrb[51].mxu0 }
 0x7cb   :  { %v4982_v16 = vmax.f32 %v4812_v3, 0.0 }
 0x7cc   :  { %v4992_v32 = vmul.f32 %v4981_v57, %v11151_v9 }
 0x7cd   :  { %v4993_v31 = vmul.f32 %v4982_v16, %v11153_v55 }
 0x7ce   :  { %v10026_v12 = vpack.c.bf16 %v4992_v32, %v4992_v32 }
 0x7cf   :  { %v10061_v39 = vpack.c.bf16 %v4993_v31, %v4993_v31 }
 0x7d0   :  { %5262 = vrot.lane.b32.xlu0 %v10026_v12, %s6044_s30  ;;  %5070 = vrot.lane.b32.xlu1 %v10026_v12, %s6038_s22  ;;  %v5025_v28 = vrot.slane %v10026_v12, 4 }
 0x7d1   :  { %v5026_v38 = vrot.slane %v10061_v39, 4 }
 0x7d4   :  { %5134 = vrot.lane.b32.xlu1 %v10026_v12, %s6040_s26  ;;  %5038 = vrot.lane.b32.xlu0 %v5025_v28, %s6037_s21 }
 0x7d8   :  { %5198 = vrot.lane.b32.xlu1 %v10026_v12, %s6042_s28  ;;  %5100 = vrot.lane.b32.xlu0 %v5024_v45, %s6039_s23 }
 0x7db   :  { %v4850_v63 = vpop.f32.mrb[48].mxu1 }
 0x7dc   :  { %v4851_v58 = vadd.f32 %v4850_v63, %v10000_v48  ;;  %5260 = vrot.lane.b32.xlu1 %v10016_v42, %s6044_s30  ;;  %5164 = vrot.lane.b32.xlu0 %v5024_v45, %s6041_s27  ;;  %v4852_v13 = vpop.f32.mrb[49].mxu1 }
 0x7dd   :  { %v4854_v56 = vpop.f32.mrb[50].mxu1  ;;  %v4853_v17 = vadd.f32 %v4852_v13, %v10000_v48 }
 0x7de   :  { %v4983_v41 = vmax.f32 %v4851_v58, 0.0  ;;  %v4855_v44 = vpop.f32.mrb[51].mxu1 }
 0x7df   :  { %v4984_v5 = vmax.f32 %v4853_v17, 0.0  ;;  %v11157_v44 = vld [vmem:[#allocation107_spill] sm:$0xff] }
 0x7e0   :  { %v4994_v26 = vmul.f32 %v4983_v41, %v11152_v11  ;;  %5034 = vrot.lane.b32.xlu1 %v5023_v18, %s6037_s21  ;;  %5228 = vrot.lane.b32.xlu0 %v5024_v45, %s6043_s29 }
 0x7e1   :  { %v4995_v0 = vmul.f32 %v4984_v5, %v11155_v51 }
 0x7e2   :  { %v10049_v24 = vpack.c.bf16 %v4994_v26, %v4994_v26 }
 0x7e3   :  { %v10098_v62 = vpack.c.bf16 %v4995_v0, %v4995_v0 }
 0x7e4   :  { %5098 = vrot.lane.b32.xlu1 %v5023_v18, %s6039_s23  ;;  %5074 = vrot.lane.b32.xlu0 %v10049_v24, %s6038_s22  ;;  %v5027_v47 = vrot.slane %v10049_v24, 4 }
 0x7e5   :  { %v5028_v55 = vrot.slane %v10098_v62, 4 }
 0x7e8   :  { %5162 = vrot.lane.b32.xlu1 %v5023_v18, %s6041_s27  ;;  %5138 = vrot.lane.b32.xlu0 %v10049_v24, %s6040_s26 }
 0x7ec   :  { %5226 = vrot.lane.b32.xlu1 %v5023_v18, %s6043_s29  ;;  %5202 = vrot.lane.b32.xlu0 %v10049_v24, %s6042_s28 }
 0x7f0   :  { %5072 = vrot.lane.b32.xlu1 %v10061_v39, %s6038_s22  ;;  %5266 = vrot.lane.b32.xlu0 %v10049_v24, %s6044_s30 }
 0x7f4   :  { %5136 = vrot.lane.b32.xlu1 %v10061_v39, %s6040_s26 }
 0x7f8   :  { %5200 = vrot.lane.b32.xlu1 %v10061_v39, %s6042_s28 }
 0x7fc   :  { %5264 = vrot.lane.b32.xlu1 %v10061_v39, %s6044_s30 }
 0x800   :  { %5036 = vrot.lane.b32.xlu1 %v5024_v45, %s6037_s21 }
 0x803   :  { %v4891_v27 = vpop.f32.mrb[52].mxu0 }
 0x804   :  { %v4892_v22 = vadd.f32 %v4891_v27, %v10000_v48  ;;  %5102 = vrot.lane.b32.xlu1 %v5025_v28, %s6039_s23  ;;  %v4893_v61 = vpop.f32.mrb[53].mxu0 }
 0x805   :  { %v4895_v10 = vpop.f32.mrb[54].mxu0  ;;  %v4894_v57 = vadd.f32 %v4893_v61, %v10000_v48 }
 0x806   :  { %v4985_v43 = vmax.f32 %v4892_v22, 0.0  ;;  %v4896_v46 = vpop.f32.mrb[55].mxu0  ;;  %v11158_v22 = vld [vmem:[#allocation118_spill] sm:$0xff] }
 0x807   :  { %v4986_v9 = vmax.f32 %v4894_v57, 0.0 }
 0x808   :  { %v4996_v33 = vmul.f32 %v4985_v43, %v11154_v30  ;;  %5166 = vrot.lane.b32.xlu1 %v5025_v28, %s6041_s27 }
 0x80a   :  { %v10078_v19 = vpack.c.bf16 %v4996_v33, %v4996_v33 }
 0x80c   :  { %5230 = vrot.lane.b32.xlu1 %v5025_v28, %s6043_s29  ;;  %5078 = vrot.lane.b32.xlu0 %v10078_v19, %s6038_s22  ;;  %v11156_v28 = vld [vmem:[#allocation113_spill] sm:$0xff]  ;;  %v5029_v63 = vrot.slane %v10078_v19, 4 }
 0x80d   :  { %v4997_v45 = vmul.f32 %v4986_v9, %v11156_v28 }
 0x80f   :  { %v10119_v58 = vpack.c.bf16 %v4997_v45, %v4997_v45 }
 0x810   :  { %5040 = vrot.lane.b32.xlu1 %v5026_v38, %s6037_s21  ;;  %5142 = vrot.lane.b32.xlu0 %v10078_v19, %s6040_s26 }
 0x811   :  { %v5030_v17 = vrot.slane %v10119_v58, 4 }
 0x814   :  { %5104 = vrot.lane.b32.xlu1 %v5026_v38, %s6039_s23  ;;  %5206 = vrot.lane.b32.xlu0 %v10078_v19, %s6042_s28 }
 0x817   :  { %v4932_v8 = vpop.f32.mrb[52].mxu1 }
 0x818   :  { %5168 = vrot.lane.b32.xlu1 %v5026_v38, %s6041_s27  ;;  %5270 = vrot.lane.b32.xlu0 %v10078_v19, %s6044_s30  ;;  %v4934_v23 = vpop.f32.mrb[53].mxu1  ;;  %v4933_v13 = vadd.f32 %v4932_v8, %v10000_v48 }
 0x819   :  { %v4936_v54 = vpop.f32.mrb[54].mxu1  ;;  %v4935_v5 = vadd.f32 %v4934_v23, %v10000_v48 }
 0x81a   :  { %v4973_v49 = vpop.f32.mrb[56].mxu0  ;;  %v4937_v4 = vpop.f32.mrb[55].mxu1  ;;  %v4987_v41 = vmax.f32 %v4933_v13, 0.0 }
 0x81b   :  { %v5936_v52 = vpop.f32.mrb[57].mxu0  ;;  %v4974_v3 = vadd.f32 %v4973_v49, %v10000_v48  ;;  %v4988_v51 = vmax.f32 %v4935_v5, 0.0 }
 0x81c   :  { %5232 = vrot.lane.b32.xlu1 %v5026_v38, %s6043_s29  ;;  %5042 = vrot.lane.b32.xlu0 %v5027_v47, %s6037_s21  ;;  %v4976_v21 = vpop.f32.mrb[58].mxu0  ;;  %v4998_v11 = vmul.f32 %v4987_v41, %v11157_v44 }
 0x81d   :  { %v5937_v53 = vpop.f32.mrb[59].mxu0  ;;  %v4989_v31 = vmax.f32 %v4974_v3, 0.0 }
 0x81e   :  { %v10136_v26 = vpack.c.bf16 %v4998_v11, %v4998_v11 }
 0x81f   :  { %v5000_v61 = vmul.f32 %v4989_v31, %v11158_v22 }
 0x820   :  { %5076 = vrot.lane.b32.xlu1 %v10098_v62, %s6038_s22  ;;  %5106 = vrot.lane.b32.xlu0 %v5027_v47, %s6039_s23  ;;  %v5031_v49 = vrot.slane %v10136_v26, 4 }
 0x821   :  { %v10156_v43 = vpack.c.bf16 %v5000_v61, %v5000_v61 }
 0x822   :  { %v10104_v34 = vpop.permute.xlu0 %5066 }
 0x823   :  { %v5033_v45 = vrot.slane %v10156_v43, 4 }
 0x824   :  { %5140 = vrot.lane.b32.xlu1 %v10098_v62, %s6040_s26  ;;  %5170 = vrot.lane.b32.xlu0 %v5027_v47, %s6041_s27 }
 0x826   :  { %v10109_v32 = vpop.permute.xlu0 %5130 }
 0x828   :  { %5204 = vrot.lane.b32.xlu1 %v10098_v62, %s6042_s28  ;;  %5234 = vrot.lane.b32.xlu0 %v5027_v47, %s6043_s29  ;;  %v11159_v47 = vld [vmem:[#allocation28_spill] sm:$0xff] }
 0x829   :  { %v4999_v4 = vmul.f32 %v4988_v51, %v11159_v47 }
 0x82a   :  { %v10122_v56 = vpop.permute.xlu0 %5194 }
 0x82b   :  { %v10187_v52 = vpack.c.bf16 %v4999_v4, %v4999_v4 }
 0x82c   :  { %5268 = vrot.lane.b32.xlu1 %v10098_v62, %s6044_s30  ;;  %5046 = vrot.lane.b32.xlu0 %v5029_v63, %s6037_s21 }
 0x82d   :  { %v5032_v13 = vrot.slane %v10187_v52, 4 }
 0x82e   :  { %v10127_v18 = vpop.permute.xlu0 %5258 }
 0x830   :  { %5080 = vrot.lane.b32.xlu1 %v10119_v58, %s6038_s22  ;;  %5110 = vrot.lane.b32.xlu0 %v5029_v63, %s6039_s23 }
 0x832   :  { %v10139_v16 = vpop.permute.xlu0 %5068 }
 0x834   :  { %5144 = vrot.lane.b32.xlu1 %v10119_v58, %s6040_s26  ;;  %5174 = vrot.lane.b32.xlu0 %v5029_v63, %s6041_s27 }
 0x836   :  { %v10145_v27 = vpop.permute.xlu0 %5132 }
 0x838   :  { %5208 = vrot.lane.b32.xlu1 %v10119_v58, %s6042_s28  ;;  %5238 = vrot.lane.b32.xlu0 %v5029_v63, %s6043_s29 }
 0x83a   :  { %v10158_v46 = vpop.permute.xlu0 %5196 }
 0x83c   :  { %5044 = vrot.lane.b32.xlu1 %v5028_v55, %s6037_s21  ;;  %5082 = vrot.lane.b32.xlu0 %v10136_v26, %s6038_s22 }
 0x840   :  { %5108 = vrot.lane.b32.xlu1 %v5028_v55, %s6039_s23  ;;  %5146 = vrot.lane.b32.xlu0 %v10136_v26, %s6040_s26 }
 0x842   :  { %v10151_v10 = vpop.permute.xlu1 %5070  ;;  %v10165_v33 = vpop.permute.xlu0 %5262 }
 0x844   :  { %5172 = vrot.lane.b32.xlu1 %v5028_v55, %s6041_s27  ;;  %5210 = vrot.lane.b32.xlu0 %v10136_v26, %s6042_s28 }
 0x846   :  { %v10160_v30 = vpop.permute.xlu1 %5134  ;;  %v10176_v54 = vpop.permute.xlu0 %5038 }
 0x848   :  { %5236 = vrot.lane.b32.xlu1 %v5028_v55, %s6043_s29  ;;  %5086 = vrot.lane.b32.xlu0 %v10156_v43, %s6038_s22 }
 0x84a   :  { %v10167_v38 = vpop.permute.xlu1 %5198  ;;  %v5101_v48 = vpop.permute.xlu0 %5100 }
 0x84c   :  { %5048 = vrot.lane.b32.xlu1 %v5030_v17, %s6037_s21  ;;  %5150 = vrot.lane.b32.xlu0 %v10156_v43, %s6040_s26 }
 0x84e   :  { %v10174_v8 = vpop.permute.xlu1 %5260  ;;  %v5165_v53 = vpop.permute.xlu0 %5164 }
 0x850   :  { %5112 = vrot.lane.b32.xlu1 %v5030_v17, %s6039_s23  ;;  %5214 = vrot.lane.b32.xlu0 %v10156_v43, %s6042_s28 }
 0x852   :  { %v5035_v0 = vpop.permute.xlu1 %5034  ;;  %v5229_v9 = vpop.permute.xlu0 %5228 }
 0x854   :  { %5176 = vrot.lane.b32.xlu1 %v5030_v17, %s6041_s27  ;;  %5050 = vrot.lane.b32.xlu0 %v5031_v49, %s6037_s21 }
 0x856   :  { %v5099_v23 = vpop.permute.xlu1 %5098  ;;  %v10204_v41 = vpop.permute.xlu0 %5074 }
 0x857   :  { %v5120_v51 = vsel %vm304_vm2, %v5099_v23, %v5101_v48  ;;  %v5451_v23 = vld [vmem:[%s10768_s9] sm:$0xff] }
 0x858   :  { %5240 = vrot.lane.b32.xlu1 %v5030_v17, %s6043_s29  ;;  %5114 = vrot.lane.b32.xlu0 %v5031_v49, %s6039_s23 }
 0x85a   :  { %v5163_v21 = vpop.permute.xlu1 %5162  ;;  %v10212_v11 = vpop.permute.xlu0 %5138 }
 0x85c   :  { %5084 = vrot.lane.b32.xlu1 %v10187_v52, %s6038_s22  ;;  %5178 = vrot.lane.b32.xlu0 %v5031_v49, %s6041_s27 }
 0x85e   :  { %v5227_v57 = vpop.permute.xlu1 %5226  ;;  %v10221_v61 = vpop.permute.xlu0 %5202 }
 0x860   :  { %5148 = vrot.lane.b32.xlu1 %v10187_v52, %s6040_s26  ;;  %5242 = vrot.lane.b32.xlu0 %v5031_v49, %s6043_s29  ;;  %v5089_v49 = vsel %vm268_vm3, %v10139_v16, %v10151_v10 }
 0x862   :  { %v10195_v28 = vpop.permute.xlu1 %5072 }
 0x864   :  { %5212 = vrot.lane.b32.xlu1 %v10187_v52, %s6042_s28  ;;  %5054 = vrot.lane.b32.xlu0 %v5033_v45, %s6037_s21 }
 0x866   :  { %v10201_v63 = vpop.permute.xlu1 %5136 }
 0x868   :  { %5052 = vrot.lane.b32.xlu1 %v5032_v13, %s6037_s21  ;;  %5118 = vrot.lane.b32.xlu0 %v5033_v45, %s6039_s23 }
 0x86a   :  { %v10208_v44 = vpop.permute.xlu1 %5200 }
 0x86c   :  { %5116 = vrot.lane.b32.xlu1 %v5032_v13, %s6039_s23  ;;  %5182 = vrot.lane.b32.xlu0 %v5033_v45, %s6041_s27 }
 0x86e   :  { %v10214_v3 = vpop.permute.xlu1 %5264 }
 0x870   :  { %5180 = vrot.lane.b32.xlu1 %v5032_v13, %s6041_s27  ;;  %5246 = vrot.lane.b32.xlu0 %v5033_v45, %s6043_s29  ;;  %v10251_v45 = vpop.permute.xlu0 %5266 }
 0x872   :  { %v5037_v55 = vpop.permute.xlu1 %5036 }
 0x873   :  { %v5056_v31 = vsel %vm232_vm0, %v5035_v0, %v5037_v55  ;;  %v5057_v22 = vsel %vm232_vm0, %v5037_v55, %v10176_v54 }
 0x874   :  { %5244 = vrot.lane.b32.xlu1 %v5032_v13, %s6043_s29  ;;  %5274 = vrot.lane.b32.xlu0 %v10136_v26, %s6044_s30  ;;  %v5296_v17 = vsel %vm496_vm1, %v10016_v42, %v5057_v22  ;;  %v5292_v5 = vsel %vm496_vm1, %v10004_v40, %v5056_v31  ;;  %v5088_v42 = vsel %vm268_vm3, %v10104_v34, %v10139_v16 }
 0x875   :  { %5490 = vmatprep.subr.bf16.mxu1 %v5296_v17  ;;  %v5332_v4 = vsel %vm496_vm1, %v5088_v42, %v5120_v51  ;;  %v5153_v16 = vsel %vm340_vm5, %v10145_v27, %v10160_v30  ;;  %v5152_v13 = vsel %vm340_vm5, %v10109_v32, %v10145_v27  ;;  %v5248_v31 = vsel %vm448_vm6, %v5227_v57, %v5229_v9  ;;  %v11162_v42 = vld [vmem:[#allocation13_spill] sm:$0xff] }
 0x876   :  { %5491 = vmatpush1.bf16.msra.mxu1 %v5292_v5  ;;  %v10231_v0 = vpop.permute.xlu1 %5102  ;;  %v5217_v32 = vsel %vm412_vm7, %v10158_v46, %v10167_v38  ;;  %v11160_v5 = vld [vmem:[#allocation15_spill] sm:$0xff] }
 0x877   :  { %v5121_v47 = vsel %vm304_vm2, %v5101_v48, %v10231_v0  ;;  %v5184_v48 = vsel %vm376_vm4, %v5163_v21, %v5165_v53 }
 0x878   :  { %5272 = vrot.lane.b32.xlu1 %v10119_v58, %s6044_s30  ;;  %5278 = vrot.lane.b32.xlu0 %v10156_v43, %s6044_s30  ;;  %v5336_v40 = vsel %vm496_vm1, %v5089_v49, %v5121_v47  ;;  %v5372_v55 = vsel %vm496_vm1, %v5152_v13, %v5184_v48  ;;  %v5280_v49 = vsel %vm484_vm8, %v10127_v18, %v10174_v8  ;;  %v11164_v48 = vld [vmem:[#allocation32_spill] sm:$0xff] }
 0x879   :  { %5492 = vmatprep.subr.bf16.mxu1 %v5336_v40  ;;  %v5461_v40 = vsel %vm496_vm1, %v5280_v49, 0  ;;  %v11165_v13 = vld [vmem:[#allocation20_spill] sm:$0xff] }
 0x87a   :  { %5493 = vmatpush1.bf16.msra.mxu1 %v5332_v4  ;;  %v10253_v34 = vpop.permute.xlu1 %5166 }
 0x87b   :  { %v5185_v43 = vsel %vm376_vm4, %v5165_v53, %v10253_v34  ;;  %v5216_v53 = vsel %vm412_vm7, %v10122_v56, %v10158_v46  ;;  %v5281_v56 = vsel %vm484_vm8, %v10174_v8, %v10165_v33  ;;  %v11161_v46 = vld [vmem:[#allocation11_spill] sm:$0xff]  ;;  %v11163_v8 = vld [vmem:[#allocation9_spill] sm:$0xff] }
 0x87c   :  { %5276 = vrot.lane.b32.xlu1 %v10187_v52, %s6044_s30  ;;  %5454 = vperm.xlu0 %5952, %v5451_v23   ;;  %v5376_v21 = vsel %vm496_vm1, %v5153_v16, %v5185_v43  ;;  %v5412_v51 = vsel %vm496_vm1, %v5216_v53, %v5248_v31  ;;  %v11167_v53 = vld [vmem:[#allocation40_spill] sm:$0xff] }
 0x87d   :  { %5494 = vmatprep.subr.bf16.mxu1 %v5376_v21  ;;  %v11166_v21 = vld [vmem:[#allocation21_spill] sm:$0xff] }
 0x87e   :  { %v10268_v22 = vpop.permute.xlu0 %5078  ;;  %5495 = vmatpush1.bf16.msra.mxu1 %v5372_v55  ;;  %v10270_v17 = vpop.permute.xlu1 %5230 }
 0x87f   :  { %v5249_v27 = vsel %vm448_vm6, %v5229_v9, %v10270_v17 }
 0x880   :  { %2712 = vperm.xlu1 %5983, %v5451_v23   ;;  %2966 = vrot.lane.b32.xlu0 %v11160_v5, %s6044_s30  ;;  %v5416_v57 = vsel %vm496_vm1, %v5217_v32, %v5249_v27  ;;  %v10303_v23 = vld [vmem:[%s10767_s8] sm:$0xf]  ;;  %v11168_v5 = vld [vmem:[#allocation17_spill] sm:$0xff] }
 0x881   :  { %5496 = vmatprep.subr.bf16.mxu1 %v5416_v57 }
 0x882   :  { %v10287_v47 = vpop.permute.xlu0 %5142  ;;  %5497 = vmatpush1.bf16.msra.mxu1 %v5412_v51  ;;  %v5041_v9 = vpop.permute.xlu1 %5040 }
 0x883   :  { %5878 = vmatprep.subr.msk.bf16.mxu1 %vm496_vm1, %v5281_v56  ;;  %v5058_v55 = vsel %vm232_vm0, %v10176_v54, %v5041_v9  ;;  %v5091_v56 = vsel %vm268_vm3, %v10195_v28, %v10204_v41 }
 0x884   :  { %2964 = vrot.lane.b32.xlu1 %v11161_v46, %s6044_s30  ;;  %2970 = vrot.lane.b32.xlu0 %v11162_v42, %s6044_s30  ;;  %v5300_v51 = vsel %vm496_vm1, %v10026_v12, %v5058_v55  ;;  %v11169_v12 = vld [vmem:[#allocation38_spill] sm:$0xff] }
 0x886   :  { %v10298_v4 = vpop.permute.xlu0 %5206  ;;  %5499 = vmatpush1.bf16.msra.mxu1 %v5461_v40  ;;  %v5105_v18 = vpop.permute.xlu1 %5104 }
 0x887   :  { %v5122_v54 = vsel %vm304_vm2, %v10231_v0, %v5105_v18 }
 0x888   :  { %2968 = vrot.lane.b32.xlu1 %v11163_v8, %s6044_s30  ;;  %2974 = vrot.lane.b32.xlu0 %v11164_v48, %s6044_s30 }
 0x889   :  { %5879 = vmatmul.mubr.msk.bf16.vlgmr.msra.gmra.mrb[56].mxu1 %vm920_vm10, %v10303_v23 }
 0x88a   :  { %v10311_v16 = vpop.permute.xlu0 %5270  ;;  %v5169_v43 = vpop.permute.xlu1 %5168  ;;  %5604 = vmatprep.mubr.bf16.mxu1 %v11059_v60 }
 0x88b   :  { %v5186_v40 = vsel %vm376_vm4, %v10253_v34, %v5169_v43  ;;  %v11170_v34 = vld [vmem:[#allocation33_spill] sm:$0xff] }
 0x88c   :  { %2972 = vrot.lane.b32.xlu1 %v11165_v13, %s6044_s30  ;;  %2978 = vrot.lane.b32.xlu0 %v11166_v21, %s6044_s30 }
 0x88e   :  { %v10320_v31 = vpop.permute.xlu0 %5042  ;;  %v5233_v32 = vpop.permute.xlu1 %5232 }
 0x88f   :  { %v5059_v27 = vsel %vm232_vm0, %v5041_v9, %v10320_v31  ;;  %v5250_v21 = vsel %vm448_vm6, %v10270_v17, %v5233_v32 }
 0x890   :  { %2982 = vrot.lane.b32.xlu0 %v11167_v53, %s6044_s30  ;;  %2976 = vrot.lane.b32.xlu1 %v11168_v5, %s6044_s30  ;;  %v5304_v57 = vsel %vm496_vm1, %v10061_v39, %v5059_v27  ;;  %v5090_v39 = vsel %vm268_vm3, %v10151_v10, %v10195_v28  ;;  %v5154_v28 = vsel %vm340_vm5, %v10160_v30, %v10201_v63 }
 0x891   :  { %5531 = vmatprep.subr.bf16.mxu0 %v5304_v57  ;;  %v5340_v42 = vsel %vm496_vm1, %v5090_v39, %v5122_v54  ;;  %v5380_v13 = vsel %vm496_vm1, %v5154_v28, %v5186_v40  ;;  %v5282_v53 = vsel %vm484_vm8, %v10165_v33, %v10214_v3 }
 0x892   :  { %v10334_v49 = vpop.permute.xlu0 %5106  ;;  %5532 = vmatpush1.bf16.msra.mxu0 %v5300_v51  ;;  %v10336_v9 = vpop.permute.xlu1 %5076 }
 0x893   :  { %v5123_v46 = vsel %vm304_vm2, %v5105_v18, %v10334_v49 }
 0x894   :  { %5706 = vrot.lane.b32.xlu0 %v9395_v37, %s6044_s30  ;;  %2980 = vrot.lane.b32.xlu1 %v11169_v12, %s6044_s30  ;;  %v5344_v0 = vsel %vm496_vm1, %v5091_v56, %v5123_v46  ;;  %v5155_v37 = vsel %vm340_vm5, %v10201_v63, %v10212_v11  ;;  %v5218_v63 = vsel %vm412_vm7, %v10167_v38, %v10208_v44 }
 0x895   :  { %5533 = vmatprep.subr.bf16.mxu0 %v5344_v0  ;;  %v5420_v27 = vsel %vm496_vm1, %v5218_v63, %v5250_v21  ;;  %v5092_v56 = vsel %vm268_vm3, %v10204_v41, %v10336_v9 }
 0x896   :  { %v10354_v8 = vpop.permute.xlu0 %5170  ;;  %5534 = vmatpush1.bf16.msra.mxu0 %v5340_v42  ;;  %v10356_v18 = vpop.permute.xlu1 %5140 }
 0x897   :  { %v5187_v10 = vsel %vm376_vm4, %v5169_v43, %v10354_v8  ;;  %v5156_v41 = vsel %vm340_vm5, %v10212_v11, %v10356_v18 }
 0x898   :  { %5710 = vrot.lane.b32.xlu0 %v9436_v20, %s6044_s30  ;;  %2984 = vrot.lane.b32.xlu1 %v11170_v34, %s6044_s30  ;;  %v5384_v48 = vsel %vm496_vm1, %v5155_v37, %v5187_v10  ;;  %v5219_v20 = vsel %vm412_vm7, %v10208_v44, %v10221_v61 }
 0x899   :  { %5535 = vmatprep.subr.bf16.mxu0 %v5384_v48 }
 0x89a   :  { %v10374_v55 = vpop.permute.xlu0 %5234  ;;  %5536 = vmatpush1.bf16.msra.mxu0 %v5380_v13  ;;  %v10376_v43 = vpop.permute.xlu1 %5204 }
 0x89b   :  { %v5251_v30 = vsel %vm448_vm6, %v5233_v32, %v10374_v55  ;;  %v5283_v32 = vsel %vm484_vm8, %v10214_v3, %v10251_v45  ;;  %v5220_v11 = vsel %vm412_vm7, %v10221_v61, %v10376_v43 }
 0x89c   :  { %5714 = vrot.lane.b32.xlu0 %v9447_v35, %s6044_s30  ;;  %5708 = vrot.lane.b32.xlu1 %v9398_v29, %s6044_s30  ;;  %v5424_v17 = vsel %vm496_vm1, %v5219_v20, %v5251_v30  ;;  %v5467_v29 = vsel %vm496_vm1, %v5282_v53, 0 }
 0x89d   :  { %5537 = vmatprep.subr.bf16.mxu0 %v5424_v17 }
 0x89e   :  { %v10398_v38 = vpop.permute.xlu0 %5046  ;;  %5538 = vmatpush1.bf16.msra.mxu0 %v5420_v27  ;;  %v5269_v35 = vpop.permute.xlu1 %5268 }
 0x89f   :  { %5880 = vmatprep.subr.msk.bf16.mxu0 %vm496_vm1, %v5283_v32  ;;  %v5284_v21 = vsel %vm484_vm8, %v10251_v45, %v5269_v35  ;;  %v5285_v61 = vsel %vm484_vm8, %v5269_v35, %v10311_v16 }
 0x8a0   :  { %5718 = vrot.lane.b32.xlu0 %v9501_v2, %s6044_s30  ;;  %5712 = vrot.lane.b32.xlu1 %v9454_v7, %s6044_s30 }
 0x8a2   :  { %v10406_v44 = vpop.permute.xlu0 %5110  ;;  %5540 = vmatpush1.bf16.msra.mxu0 %v5467_v29  ;;  %v10408_v33 = vpop.permute.xlu1 %5080 }
 0x8a4   :  { %5722 = vrot.lane.b32.xlu0 %v9524_v36, %s6044_s30  ;;  %5716 = vrot.lane.b32.xlu1 %v9492_v14, %s6044_s30 }
 0x8a5   :  { %5881 = vmatmul.mubr.msk.bf16.vlgmr.msra.gmra.mrb[60].mxu0 %vm920_vm10, %v10303_v23 }
 0x8a6   :  { %v10416_v2 = vpop.permute.xlu0 %5174  ;;  %v10418_v3 = vpop.permute.xlu1 %5144  ;;  %5645 = vmatprep.mubr.bf16.mxu0 %v11059_v60 }
 0x8a8   :  { %5726 = vrot.lane.b32.xlu0 %v9607_v25, %s6044_s30  ;;  %5720 = vrot.lane.b32.xlu1 %v9560_v6, %s6044_s30 }
 0x8aa   :  { %v10425_v7 = vpop.permute.xlu0 %5238  ;;  %v10427_v36 = vpop.permute.xlu1 %5208 }
 0x8ac   :  { %5724 = vrot.lane.b32.xlu1 %v9593_v50, %s6044_s30 }
 0x8ae   :  { %v10431_v14 = vpop.permute.xlu0 %5082  ;;  %v5045_v5 = vpop.permute.xlu1 %5044 }
 0x8af   :  { %v5060_v57 = vsel %vm232_vm0, %v10320_v31, %v5045_v5  ;;  %v5061_v51 = vsel %vm232_vm0, %v5045_v5, %v10398_v38  ;;  %v5093_v31 = vsel %vm268_vm3, %v10336_v9, %v10268_v22 }
 0x8b0   :  { %v5312_v25 = vsel %vm496_vm1, %v10098_v62, %v5061_v51  ;;  %v5308_v6 = vsel %vm496_vm1, %v10049_v24, %v5060_v57 }
 0x8b1   :  { %5572 = vmatprep.subr.bf16.mxu1 %v5312_v25 }
 0x8b2   :  { %v10441_v54 = vpop.permute.xlu0 %5146  ;;  %5573 = vmatpush1.bf16.msra.mxu1 %v5308_v6  ;;  %v5109_v50 = vpop.permute.xlu1 %5108 }
 0x8b3   :  { %v5124_v46 = vsel %vm304_vm2, %v10334_v49, %v5109_v50  ;;  %v5125_v62 = vsel %vm304_vm2, %v5109_v50, %v10406_v44  ;;  %v5157_v49 = vsel %vm340_vm5, %v10356_v18, %v10287_v47  ;;  %v5159_v50 = vsel %vm340_vm5, %v10418_v3, %v10441_v54 }
 0x8b4   :  { %v5352_v24 = vsel %vm496_vm1, %v5093_v31, %v5125_v62  ;;  %v5348_v39 = vsel %vm496_vm1, %v5092_v56, %v5124_v46 }
 0x8b5   :  { %5574 = vmatprep.subr.bf16.mxu1 %v5352_v24 }
 0x8b6   :  { %v10455_v12 = vpop.permute.xlu0 %5210  ;;  %5575 = vmatpush1.bf16.msra.mxu1 %v5348_v39  ;;  %v5173_v0 = vpop.permute.xlu1 %5172 }
 0x8b7   :  { %v5188_v9 = vsel %vm376_vm4, %v10354_v8, %v5173_v0  ;;  %v5189_v42 = vsel %vm376_vm4, %v5173_v0, %v10416_v2  ;;  %v5221_v8 = vsel %vm412_vm7, %v10376_v43, %v10298_v4  ;;  %v5223_v24 = vsel %vm412_vm7, %v10427_v36, %v10455_v12 }
 0x8b8   :  { %v5392_v40 = vsel %vm496_vm1, %v5157_v49, %v5189_v42  ;;  %v5388_v37 = vsel %vm496_vm1, %v5156_v41, %v5188_v9 }
 0x8b9   :  { %5576 = vmatprep.subr.bf16.mxu1 %v5392_v40 }
 0x8ba   :  { %v10469_v10 = vpop.permute.xlu0 %5086  ;;  %5577 = vmatpush1.bf16.msra.mxu1 %v5388_v37  ;;  %v5237_v28 = vpop.permute.xlu1 %5236 }
 0x8bb   :  { %v5252_v18 = vsel %vm448_vm6, %v10374_v55, %v5237_v28  ;;  %v5253_v34 = vsel %vm448_vm6, %v5237_v28, %v10425_v7  ;;  %v5473_v55 = vsel %vm496_vm1, %v5284_v21, 0 }
 0x8bc   :  { %v5432_v48 = vsel %vm496_vm1, %v5221_v8, %v5253_v34  ;;  %v5428_v13 = vsel %vm496_vm1, %v5220_v11, %v5252_v18 }
 0x8bd   :  { %5578 = vmatprep.subr.bf16.mxu1 %v5432_v48 }
 0x8be   :  { %v10487_v20 = vpop.permute.xlu0 %5150  ;;  %5579 = vmatpush1.bf16.msra.mxu1 %v5428_v13  ;;  %v5049_v43 = vpop.permute.xlu1 %5048 }
 0x8bf   :  { %5882 = vmatprep.subr.msk.bf16.mxu1 %vm496_vm1, %v5285_v61  ;;  %v5062_v45 = vsel %vm232_vm0, %v10398_v38, %v5049_v43  ;;  %v5095_v38 = vsel %vm268_vm3, %v10408_v33, %v10431_v14 }
 0x8c0   :  { %v5316_v35 = vsel %vm496_vm1, %v10078_v19, %v5062_v45 }
 0x8c2   :  { %v10491_v30 = vpop.permute.xlu0 %5214  ;;  %5581 = vmatpush1.bf16.msra.mxu1 %v5473_v55  ;;  %v5113_v63 = vpop.permute.xlu1 %5112 }
 0x8c3   :  { %v5126_v29 = vsel %vm304_vm2, %v10406_v44, %v5113_v63 }
 0x8c5   :  { %5883 = vmatmul.mubr.msk.bf16.vlgmr.msra.gmra.mrb[60].mxu1 %vm920_vm10, %v10303_v23 }
 0x8c6   :  { %v5051_v17 = vpop.permute.xlu0 %5050  ;;  %v5177_v27 = vpop.permute.xlu1 %5176  ;;  %5686 = vmatprep.mubr.bf16.mxu1 %v11059_v60 }
 0x8c7   :  { %v5063_v53 = vsel %vm232_vm0, %v5049_v43, %v5051_v17  ;;  %v5190_v44 = vsel %vm376_vm4, %v10416_v2, %v5177_v27 }
 0x8c8   :  { %v5320_v32 = vsel %vm496_vm1, %v10119_v58, %v5063_v53  ;;  %v5094_v58 = vsel %vm268_vm3, %v10268_v22, %v10408_v33  ;;  %v5158_v22 = vsel %vm340_vm5, %v10287_v47, %v10418_v3  ;;  %v5222_v47 = vsel %vm412_vm7, %v10298_v4, %v10427_v36 }
 0x8c9   :  { %5613 = vmatprep.subr.bf16.mxu0 %v5320_v32  ;;  %v5356_v19 = vsel %vm496_vm1, %v5094_v58, %v5126_v29  ;;  %v5396_v31 = vsel %vm496_vm1, %v5158_v22, %v5190_v44 }
 0x8ca   :  { %v5115_v5 = vpop.permute.xlu0 %5114  ;;  %5614 = vmatpush1.bf16.msra.mxu0 %v5316_v35  ;;  %v5241_v57 = vpop.permute.xlu1 %5240 }
 0x8cb   :  { %v5127_v60 = vsel %vm304_vm2, %v5113_v63, %v5115_v5  ;;  %v5254_v2 = vsel %vm448_vm6, %v10425_v7, %v5241_v57 }
 0x8cc   :  { %v5360_v51 = vsel %vm496_vm1, %v5095_v38, %v5127_v60  ;;  %v5436_v0 = vsel %vm496_vm1, %v5222_v47, %v5254_v2 }
 0x8cd   :  { %5615 = vmatprep.subr.bf16.mxu0 %v5360_v51 }
 0x8ce   :  { %v5179_v25 = vpop.permute.xlu0 %5178  ;;  %5616 = vmatpush1.bf16.msra.mxu0 %v5356_v19  ;;  %v5085_v6 = vpop.permute.xlu1 %5084  ;;  %v6036_v19 = vld [vmem:[%s10762_s3 + $0x8] sm:$0xf] }
 0x8cf   :  { %v5191_v56 = vsel %vm376_vm4, %v5177_v27, %v5179_v25  ;;  %v5096_v11 = vsel %vm268_vm3, %v10431_v14, %v5085_v6  ;;  %v5097_v8 = vsel %vm268_vm3, %v5085_v6, %v10469_v10  ;;  %v154_v44 = vrot.slane %v6036_v19, 1 }
 0x8d0   :  { %v5400_v33 = vsel %vm496_vm1, %v5159_v50, %v5191_v56 }
 0x8d1   :  { %5617 = vmatprep.subr.bf16.mxu0 %v5400_v33  ;;  %v11171_v33 = vld [vmem:[#allocation4_spill] sm:$0xff] }
 0x8d2   :  { %v5243_v46 = vpop.permute.xlu0 %5242  ;;  %5618 = vmatpush1.bf16.msra.mxu0 %v5396_v31  ;;  %v5149_v62 = vpop.permute.xlu1 %5148  ;;  %v11172_v31 = vld [vmem:[#allocation5_spill] sm:$0xff] }
 0x8d3   :  { %v5255_v39 = vsel %vm448_vm6, %v5241_v57, %v5243_v46  ;;  %v5160_v21 = vsel %vm340_vm5, %v10441_v54, %v5149_v62  ;;  %v5161_v14 = vsel %vm340_vm5, %v5149_v62, %v10487_v20 }
 0x8d4   :  { %v5440_v3 = vsel %vm496_vm1, %v5223_v24, %v5255_v39 }
 0x8d5   :  { %5619 = vmatprep.subr.bf16.mxu0 %v5440_v3  ;;  %v11173_v3 = vld [vmem:[#allocation6_spill] sm:$0xff] }
 0x8d6   :  { %v5055_v41 = vpop.permute.xlu0 %5054  ;;  %5620 = vmatpush1.bf16.msra.mxu0 %v5436_v0  ;;  %v5213_v7 = vpop.permute.xlu1 %5212 }
 0x8d7   :  { %v5224_v45 = vsel %vm412_vm7, %v10455_v12, %v5213_v7  ;;  %v5225_v54 = vsel %vm412_vm7, %v5213_v7, %v10491_v30 }
 0x8da   :  { %v5119_v49 = vpop.permute.xlu0 %5118  ;;  %v5053_v9 = vpop.permute.xlu1 %5052 }
 0x8db   :  { %v5064_v42 = vsel %vm232_vm0, %v5051_v17, %v5053_v9  ;;  %v5065_v40 = vsel %vm232_vm0, %v5053_v9, %v5055_v41  ;;  %vm155_vm0 = vcmask 1046528  }
 0x8dc   :  { %v5328_v37 = vsel %vm496_vm1, %v10187_v52, %v5065_v40  ;;  %v5324_v4 = vsel %vm496_vm1, %v10136_v26, %v5064_v42 }
 0x8dd   :  { %5654 = vmatprep.subr.bf16.mxu1 %v5328_v37 }
 0x8de   :  { %v5183_v36 = vpop.permute.xlu0 %5182  ;;  %5655 = vmatpush1.bf16.msra.mxu1 %v5324_v4  ;;  %v5117_v28 = vpop.permute.xlu1 %5116 }
 0x8df   :  { %v5128_v18 = vsel %vm304_vm2, %v5115_v5, %v5117_v28  ;;  %v5129_v34 = vsel %vm304_vm2, %v5117_v28, %v5119_v49  ;;  %v11174_v49 = vld [vmem:[#allocation7_spill] sm:$0xff] }
 0x8e0   :  { %v5368_v48 = vsel %vm496_vm1, %v5097_v8, %v5129_v34  ;;  %v5364_v52 = vsel %vm496_vm1, %v5096_v11, %v5128_v18 }
 0x8e1   :  { %5656 = vmatprep.subr.bf16.mxu1 %v5368_v48 }
 0x8e2   :  { %v5247_v26 = vpop.permute.xlu0 %5246  ;;  %5657 = vmatpush1.bf16.msra.mxu1 %v5364_v52  ;;  %v5181_v13 = vpop.permute.xlu1 %5180 }
 0x8e3   :  { %v5192_v10 = vsel %vm376_vm4, %v5179_v25, %v5181_v13  ;;  %v5193_v61 = vsel %vm376_vm4, %v5181_v13, %v5183_v36  ;;  %v161_v13 = vunpack.c.l.bf16 %v154_v44 }
 0x8e4   :  { %v5408_v43 = vsel %vm496_vm1, %v5161_v14, %v5193_v61  ;;  %v5404_v55 = vsel %vm496_vm1, %v5160_v21, %v5192_v10  ;;  %v11175_v10 = vld [vmem:[#allocation47_spill] sm:$0xff] }
 0x8e5   :  { %5658 = vmatprep.subr.bf16.mxu1 %v5408_v43  ;;  %v11176_v43 = vld [vmem:[#allocation35_spill] sm:$0xff] }
 0x8e6   :  { %5659 = vmatpush1.bf16.msra.mxu1 %v5404_v55  ;;  %v5245_v63 = vpop.permute.xlu1 %5244  ;;  %v5275_v27 = vpop.permute.xlu0 %5274 }
 0x8e7   :  { %v5256_v17 = vsel %vm448_vm6, %v5243_v46, %v5245_v63  ;;  %v5257_v20 = vsel %vm448_vm6, %v5245_v63, %v5247_v26 }
 0x8e8   :  { %v5448_v53 = vsel %vm496_vm1, %v5225_v54, %v5257_v20  ;;  %v5444_v32 = vsel %vm496_vm1, %v5224_v45, %v5256_v17 }
 0x8e9   :  { %5660 = vmatprep.subr.bf16.mxu1 %v5448_v53 }
 0x8ea   :  { %5661 = vmatpush1.bf16.msra.mxu1 %v5444_v32  ;;  %v5273_v35 = vpop.permute.xlu1 %5272  ;;  %v5279_v30 = vpop.permute.xlu0 %5278 }
 0x8eb   :  { %v5286_v29 = vsel %vm484_vm8, %v10311_v16, %v5273_v35  ;;  %v5287_v12 = vsel %vm484_vm8, %v5273_v35, %v5275_v27  ;;  %v6035_v16 = vld [vmem:[%s10762_s3] sm:$0xff] }
 0x8ec   :  { %v5479_v5 = vsel %vm496_vm1, %v5286_v29, 0  ;;  %5884 = vmatprep.subr.msk.bf16.mxu0 %vm496_vm1, %v5287_v12  ;;  %v153_v51 = vrot.slane %v6035_v16, 1  ;;  %v3055_v29 = vrot.slane %v161_v13, %v11171_v33 }
 0x8ed   :  { %5622 = vmatpush1.bf16.msra.mxu0 %v5479_v5 }
 0x8ee   :  { %v5277_v57 = vpop.permute.xlu1 %5276  ;;  %v156_v25 = vsel %vm155_vm0, %v153_v51, %v154_v44 }
 0x8ef   :  { %v5288_v38 = vsel %vm484_vm8, %v5275_v27, %v5277_v57  ;;  %v5289_v60 = vsel %vm484_vm8, %v5277_v57, %v5279_v30  ;;  %v159_v50 = vunpack.c.l.bf16 %v156_v25  ;;  %v160_v46 = vunpack.c.h.bf16 %v156_v25  ;;  %v11177_v30 = vld [vmem:[#allocation117_spill] sm:$0xff] }
 0x8f0   :  { %v5485_v58 = vsel %vm496_vm1, %v5288_v38, 0  ;;  %5885 = vmatmul.mubr.msk.bf16.vlgmr.msra.gmra.mrb[64].mxu0 %vm920_vm10, %v10303_v23  ;;  %5886 = vmatprep.subr.msk.bf16.mxu1 %vm496_vm1, %v5289_v60  ;;  %v11178_v38 = vld [vmem:[#allocation49_spill] sm:$0xff] }
 0x8f1   :  { %5663 = vmatpush1.bf16.msra.mxu1 %v5485_v58  ;;  %v3027_v2 = vrot.slane %v159_v50, %v11172_v31  ;;  %v3031_v0 = vrot.slane %v159_v50, %v11173_v3  ;;  %v3035_v9 = vrot.slane %v159_v50, %v11174_v49  ;;  %v3039_v40 = vrot.slane %v160_v46, %v11171_v33 }
 0x8f2   :  { %v3047_v26 = vrot.slane %v160_v46, %v11173_v3  ;;  %v3051_v35 = vrot.slane %v160_v46, %v11174_v49 }
 0x8f3   :  { %v10600_v42 = vrot.slane %v3027_v2, %v11171_v33  ;;  %v10609_v28 = vrot.slane %v3031_v0, %v11171_v33  ;;  %v10617_v52 = vrot.slane %v3035_v9, %v11171_v33 }
 0x8f4   :  { %5887 = vmatmul.mubr.msk.bf16.vlgmr.msra.gmra.mrb[64].mxu1 %vm920_vm10, %v10303_v23  ;;  %v3023_v23 = vrot.slane %v159_v50, %v11171_v33  ;;  %v10642_v32 = vrot.slane %v3047_v26, %v11171_v33  ;;  %v10661_v25 = vrot.slane %v3051_v35, %v11171_v33  ;;  %v10664_v50 = vrot.slane %v3055_v29, %v11171_v33 }
 0x8f6   :  { %v10594_v39 = vrot.slane %v3023_v23, %v11171_v33 }
 0x8fb   :  { %v10585_v6 = vpop.permute.xlu0 %5454 }
 0x8ff   :  { %v2967_v56 = vpop.permute.xlu0 %2966  ;;  %v10587_v22 = vpop.permute.xlu1 %2712 }
 0x900   :  { %v2783_v24 = vadd.f32 %v9370_v15, %v10587_v22  ;;  %v2785_v15 = vadd.f32 %v9372_v1, %v10587_v22  ;;  %v2824_v36 = vadd.f32 %v9374_v59, %v10587_v22  ;;  %v10620_v1 = vrot.slane %v3039_v40, %v11171_v33 }
 0x901   :  { %v3043_v59 = vrot.slane %v160_v46, %v11172_v31  ;;  %v2826_v61 = vadd.f32 %v11175_v10, %v10587_v22  ;;  %v2865_v55 = vadd.f32 %v11176_v43, %v10587_v22  ;;  %v2867_v57 = vadd.f32 %v11177_v30, %v10587_v22 }
 0x902   :  { %v2906_v60 = vadd.f32 %v11178_v38, %v10587_v22 }
 0x903   :  { %v2971_v62 = vpop.permute.xlu0 %2970  ;;  %v2965_v47 = vpop.permute.xlu1 %2964  ;;  %v10639_v53 = vrot.slane %v3043_v59, %v11171_v33 }
 0x904   :  { %v2987_v41 = vsel %vm484_vm8, %v2965_v47, %v2967_v56  ;;  %v11180_v47 = vld [vmem:[#allocation43_spill] sm:$0xff] }
 0x905   :  { %v3007_v7 = vadd.f32 %v2987_v41, %v2783_v24  ;;  %v2947_v3 = vadd.f32 %v11180_v47, %v10587_v22 }
 0x907   :  { %v3110_v37 = vmul.f32 %v10594_v39, %v3007_v7  ;;  %v2975_v4 = vpop.permute.xlu0 %2974  ;;  %v2969_v11 = vpop.permute.xlu1 %2968 }
 0x908   :  { %v2988_v8 = vsel %vm484_vm8, %v2967_v56, %v2969_v11  ;;  %v2989_v18 = vsel %vm484_vm8, %v2969_v11, %v2971_v62  ;;  %v3059_v56 = vrot.slane %v161_v13, %v11172_v31 }
 0x909   :  { %3120 = vst [vmem:[%s10769_s10] sm:$0xff] %v3110_v37  ;;  %v3008_v34 = vadd.f32 %v2988_v8, %v2785_v15  ;;  %v3009_v48 = vadd.f32 %v2989_v18, %v2824_v36  ;;  %v11181_v37 = vld [vmem:[#allocation51_spill] sm:$0xff] }
 0x90a   :  { %v10686_v15 = vrot.slane %v3059_v56, %v11171_v33 }
 0x90b   :  { %v3111_v21 = vmul.f32 %v10600_v42, %v3008_v34  ;;  %v3112_v14 = vmul.f32 %v10609_v28, %v3009_v48  ;;  %v2973_v63 = vpop.permute.xlu1 %2972  ;;  %v2979_v17 = vpop.permute.xlu0 %2978 }
 0x90c   :  { %v2990_v45 = vsel %vm484_vm8, %v2971_v62, %v2973_v63  ;;  %v2991_v54 = vsel %vm484_vm8, %v2973_v63, %v2975_v4  ;;  %v11179_v62 = vld [vmem:[#allocation34_spill] sm:$0xff] }
 0x90d   :  { %3121 = vst [vmem:[%s10769_s10 + $0x8] sm:$0xff] %v3111_v21  ;;  %3122 = vst [vmem:[%s10769_s10 + $0x10] sm:$0xff] %v3112_v14  ;;  %v3010_v20 = vadd.f32 %v2990_v45, %v2826_v61  ;;  %v3011_v27 = vadd.f32 %v2991_v54, %v2865_v55  ;;  %v2908_v24 = vadd.f32 %v11179_v62, %v10587_v22 }
 0x90f   :  { %v3113_v12 = vmul.f32 %v10617_v52, %v3010_v20  ;;  %v3114_v5 = vmul.f32 %v10620_v1, %v3011_v27  ;;  %v2977_v58 = vpop.permute.xlu1 %2976  ;;  %v2983_v23 = vpop.permute.xlu0 %2982 }
 0x910   :  { %v2992_v16 = vsel %vm484_vm8, %v2975_v4, %v2977_v58  ;;  %v2993_v51 = vsel %vm484_vm8, %v2977_v58, %v2979_v17  ;;  %v2949_v4 = vadd.f32 %v11181_v37, %v10587_v22 }
 0x911   :  { %3123 = vst [vmem:[%s10769_s10 + $0x18] sm:$0xff] %v3113_v12  ;;  %3124 = vst [vmem:[%s10769_s10 + $0x20] sm:$0xff] %v3114_v5  ;;  %v3012_v19 = vadd.f32 %v2992_v16, %v2867_v57  ;;  %v3013_v44 = vadd.f32 %v2993_v51, %v2906_v60 }
 0x913   :  { %v3115_v2 = vmul.f32 %v10639_v53, %v3012_v19  ;;  %v3116_v46 = vmul.f32 %v10642_v32, %v3013_v44  ;;  %v2981_v0 = vpop.permute.xlu1 %2980  ;;  %v5707_v22 = vpop.permute.xlu0 %5706 }
 0x914   :  { %v2994_v41 = vsel %vm484_vm8, %v2979_v17, %v2981_v0  ;;  %v2995_v7 = vsel %vm484_vm8, %v2981_v0, %v2983_v23 }
 0x915   :  { %3125 = vst [vmem:[%s10769_s10 + $0x28] sm:$0xff] %v3115_v2  ;;  %3126 = vst [vmem:[%s10769_s10 + $0x30] sm:$0xff] %v3116_v46  ;;  %v3014_v31 = vadd.f32 %v2994_v41, %v2908_v24  ;;  %v3015_v49 = vadd.f32 %v2995_v7, %v2947_v3 }
 0x917   :  { %v3117_v9 = vmul.f32 %v10661_v25, %v3014_v31  ;;  %v3118_v40 = vmul.f32 %v10664_v50, %v3015_v49  ;;  %v2985_v36 = vpop.permute.xlu1 %2984  ;;  %v5711_v26 = vpop.permute.xlu0 %5710 }
 0x918   :  { %v2996_v11 = vsel %vm484_vm8, %v2983_v23, %v2985_v36 }
 0x919   :  { %3127 = vst [vmem:[%s10769_s10 + $0x38] sm:$0xff] %v3117_v9  ;;  %3128 = vst [vmem:[%s10769_s10 + $0x40] sm:$0xff] %v3118_v40  ;;  %v3016_v8 = vadd.f32 %v2996_v11, %v2949_v4 }
 0x91b   :  { %v3119_v18 = vmul.f32 %v10686_v15, %v3016_v8  ;;  %v5709_v33 = vpop.permute.xlu1 %5708  ;;  %v5715_v35 = vpop.permute.xlu0 %5714 }
 0x91c   :  { %v5728_v13 = vsel %vm484_vm8, %v5707_v22, %v5709_v33  ;;  %v5729_v10 = vsel %vm484_vm8, %v5709_v33, %v5711_v26 }
 0x91d   :  { %3129 = vst [vmem:[%s10769_s10 + $0x48] sm:$0xff] %v3119_v18 }
 0x91f   :  { %v5713_v54 = vpop.permute.xlu1 %5712  ;;  %v5719_v44 = vpop.permute.xlu0 %5718 }
 0x920   :  { %v5730_v29 = vsel %vm484_vm8, %v5711_v26, %v5713_v54 }
 0x923   :  { %v5717_v58 = vpop.permute.xlu1 %5716  ;;  %v5723_v0 = vpop.permute.xlu0 %5722 }
 0x924   :  { %v5732_v56 = vsel %vm484_vm8, %v5715_v35, %v5717_v58 }
 0x927   :  { %v5721_v3 = vpop.permute.xlu1 %5720  ;;  %v5727_v33 = vpop.permute.xlu0 %5726 }
 0x928   :  { %v5734_v49 = vsel %vm484_vm8, %v5719_v44, %v5721_v3 }
 0x92b   :  { %v5725_v40 = vpop.permute.xlu1 %5724 }
 0x95c   :  { %v5524_v34 = vpop.f32.mrb[56].mxu1 }
 0x95d   :  { %v5525_v48 = vadd.f32 %v5524_v34, %v10585_v6  ;;  %v5526_v59 = vpop.f32.mrb[57].mxu1  ;;  %v5736_v34 = vsel %vm484_vm8, %v5723_v0, %v5725_v40 }
 0x95e   :  { %v5527_v21 = vadd.f32 %v5526_v59, %v10585_v6  ;;  %v5528_v14 = vpop.f32.mrb[58].mxu1 }
 0x95f   :  { %v5748_v61 = vadd.f32 %v5728_v13, %v5525_v48  ;;  %v5529_v43 = vpop.f32.mrb[59].mxu1  ;;  %v5737_v13 = vsel %vm484_vm8, %v5725_v40, %v5727_v33 }
 0x960   :  { %v5749_v55 = vadd.f32 %v5729_v10, %v5527_v21 }
 0x961   :  { %v5758_v63 = vmul.f32 %v5748_v61, %v10594_v39 }
 0x962   :  { %v5759_v45 = vmul.f32 %v5749_v55, %v10600_v42  ;;  %v5731_v42 = vsel %vm484_vm8, %v5713_v54, %v5715_v35 }
 0x963   :  { %5888 = vst [vmem:[%s10769_s10 + $0x50] sm:$0xff] %v5758_v63 }
 0x964   :  { %5889 = vst [vmem:[%s10769_s10 + $0x58] sm:$0xff] %v5759_v45 }
 0x978   :  { %v5565_v17 = vpop.f32.mrb[60].mxu0 }
 0x979   :  { %v5566_v20 = vadd.f32 %v5565_v17, %v10585_v6  ;;  %v5567_v27 = vpop.f32.mrb[61].mxu0 }
 0x97a   :  { %v5568_v39 = vadd.f32 %v5567_v27, %v10585_v6  ;;  %v5569_v12 = vpop.f32.mrb[62].mxu0 }
 0x97b   :  { %v5750_v5 = vadd.f32 %v5730_v29, %v5566_v20  ;;  %v5570_v30 = vpop.f32.mrb[63].mxu0 }
 0x97c   :  { %v5751_v57 = vadd.f32 %v5731_v42, %v5568_v39 }
 0x97d   :  { %v5760_v38 = vmul.f32 %v5750_v5, %v10609_v28 }
 0x97e   :  { %v5761_v60 = vmul.f32 %v5751_v57, %v10617_v52  ;;  %v5733_v52 = vsel %vm484_vm8, %v5717_v58, %v5719_v44 }
 0x97f   :  { %5890 = vst [vmem:[%s10769_s10 + $0x60] sm:$0xff] %v5760_v38 }
 0x980   :  { %5891 = vst [vmem:[%s10769_s10 + $0x68] sm:$0xff] %v5761_v60 }
 0x998   :  { %v5606_v16 = vpop.f32.mrb[60].mxu1 }
 0x999   :  { %v5607_v51 = vadd.f32 %v5606_v16, %v10585_v6  ;;  %v5608_v19 = vpop.f32.mrb[61].mxu1 }
 0x99a   :  { %v5609_v28 = vadd.f32 %v5608_v19, %v10585_v6  ;;  %v5610_v23 = vpop.f32.mrb[62].mxu1 }
 0x99b   :  { %v5752_v2 = vadd.f32 %v5732_v56, %v5607_v51  ;;  %v5611_v46 = vpop.f32.mrb[63].mxu1 }
 0x99c   :  { %v5753_v62 = vadd.f32 %v5733_v52, %v5609_v28 }
 0x99d   :  { %v5762_v24 = vmul.f32 %v5752_v2, %v10620_v1 }
 0x99e   :  { %v5763_v47 = vmul.f32 %v5753_v62, %v10639_v53  ;;  %v5735_v53 = vsel %vm484_vm8, %v5721_v3, %v5723_v0 }
 0x99f   :  { %5892 = vst [vmem:[%s10769_s10 + $0x70] sm:$0xff] %v5762_v24 }
 0x9a0   :  { %5893 = vst [vmem:[%s10769_s10 + $0x78] sm:$0xff] %v5763_v47 }
 0x9c3   :  { %v5647_v41 = vpop.f32.mrb[64].mxu0 }
 0x9c4   :  { %v5648_v7 = vadd.f32 %v5647_v41, %v10585_v6  ;;  %v5649_v31 = vpop.f32.mrb[65].mxu0 }
 0x9c5   :  { %v5650_v1 = vadd.f32 %v5649_v31, %v10585_v6  ;;  %v5651_v9 = vpop.f32.mrb[66].mxu0 }
 0x9c6   :  { %v5754_v37 = vadd.f32 %v5734_v49, %v5648_v7  ;;  %v5652_v4 = vpop.f32.mrb[67].mxu0 }
 0x9c7   :  { %v5755_v36 = vadd.f32 %v5735_v53, %v5650_v1  ;;  %v5688_v11 = vpop.f32.mrb[64].mxu1 }
 0x9c8   :  { %v5764_v8 = vmul.f32 %v5754_v37, %v10642_v32  ;;  %v5689_v18 = vadd.f32 %v5688_v11, %v10585_v6  ;;  %v5690_v22 = vpop.f32.mrb[65].mxu1 }
 0x9c9   :  { %v5765_v48 = vmul.f32 %v5755_v36, %v10661_v25  ;;  %v5691_v59 = vadd.f32 %v5690_v22, %v10585_v6  ;;  %v5692_v26 = vpop.f32.mrb[66].mxu1 }
 0x9ca   :  { %5894 = vst [vmem:[%s10769_s10 + $0x80] sm:$0xff] %v5764_v8  ;;  %v5756_v21 = vadd.f32 %v5736_v34, %v5689_v18  ;;  %v5693_v14 = vpop.f32.mrb[67].mxu1 }
 0x9cb   :  { %5895 = vst [vmem:[%s10769_s10 + $0x88] sm:$0xff] %v5765_v48  ;;  %v5757_v32 = vadd.f32 %v5737_v13, %v5691_v59 }
 0x9cc   :  { %v5766_v10 = vmul.f32 %v5756_v21, %v10664_v50 }
 0x9cd   :  { %v5767_v25 = vmul.f32 %v5757_v32, %v10686_v15 }
 0x9ce   :  { %5896 = vst [vmem:[%s10769_s10 + $0x90] sm:$0xff] %v5766_v10 }
 0x9cf   :  { %5897 = vst [vmem:[%s10769_s10 + $0x98] sm:$0xff] %v5767_v25 }

</bundles_post_ra>
